<compile_context>
chip_gen: v7x
topology: tpu7x:2x2x1
jax: 0.10.0
libtpu: 0.0.40
codegen_flags: <defaults>
</compile_context>

<pallas_src>
import numpy as np
import jax
import jax.numpy as jnp
from jax import lax
from jax.experimental import pallas as pl
from jax.experimental.pallas import tpu as pltpu

EPS = 1e-5  # PyTorch BatchNorm2d default eps
_HIGHEST = lax.Precision.HIGHEST

_SMEM = pl.BlockSpec(memory_space=pltpu.MemorySpace.SMEM)
_VMEM = pl.BlockSpec(memory_space=pltpu.MemorySpace.VMEM)


# ----------------------------------------------------------------------------
# Host-side (numpy) structure matrices.  The conv zero-padding is folded into
# the zero-fill of these matrices, so no dedicated pad matmuls exist anywhere.
# ----------------------------------------------------------------------------
def _row_shift(h, p):
    """(h, h): (S_p @ x)[r, :] = x[r + p - 1, :] with zero fill (pad-by-1 folded)."""
    m = np.zeros((h, h), np.float32)
    for r in range(h):
        s = r + p - 1
        if 0 <= s < h:
            m[r, s] = 1.0
    return m


def _col_shift(w, q):
    """(w, w): (x @ T_q)[:, c] = x[:, c + q - 1] with zero fill (pad-by-1 folded)."""
    m = np.zeros((w, w), np.float32)
    for c in range(w):
        s = c + q - 1
        if 0 <= s < w:
            m[s, c] = 1.0
    return m


def _row_resize(h_in, h_out):
    """(h_out, h_in): nearest row resize, src = (r * h_in) // h_out."""
    m = np.zeros((h_out, h_in), np.float32)
    for r in range(h_out):
        m[r, (r * h_in) // h_out] = 1.0
    return m


def _col_resize_shift(w_in, w_out, q):
    """(w_in, w_out): (y @ M)[:, c] = y[:, src(c + q - 1)] — nearest column
    resize composed with column tap q of the combined conv; zero when c+q-1
    hits the 1-pixel pad border."""
    m = np.zeros((w_in, w_out), np.float32)
    for c in range(w_out):
        s = c + q - 1
        if 0 <= s < w_out:
            m[(s * w_in) // w_out, c] = 1.0
    return m


def build_decoder_tables(params, in_hw, out_hw, batch):
    """One-time preprocessing of the Decoder weights into the structure
    matrices consumed by the fused kernel (analogous to BN folding).  Done in
    numpy so the forward path stays a single pallas_call with no XLA glue."""
    Hout, Wout = int(out_hw[0]), int(out_hw[1])
    bn = 1.0 / np.sqrt(1.0 + EPS)  # eval-mode BN: mean=0, var=1, gamma=1, beta=0

    fw = [np.asarray(w, np.float32) for w in params["feat_w_raw"]]   # (3,3) each
    fb = [float(np.asarray(b)) for b in params["feat_b_raw"]]
    wc = np.asarray(params["comb_w_raw"], np.float32)[0]             # (C, 3, 3)
    bc = float(np.asarray(params["comb_b_raw"]))

    eye_n = np.eye(batch, dtype=np.float32)
    tables = {
        "feat_bias": jnp.asarray(np.asarray([bn * b for b in fb], np.float32)),
        "comb_bias": jnp.asarray(np.asarray([bn * bc], np.float32)),
        "SH": jnp.asarray(np.stack([_row_shift(Hout, p) for p in range(3)])),
        "per_feat": [],
    }
    for i, (Hi, Wi) in enumerate(in_hw):
        # stage-1 conv: row shifts (shared over batch) and per-p weighted
        # column taps (block-diagonal over the lane-packed batch, BN folded)
        s = np.stack([_row_shift(Hi, p) for p in range(3)])
        c1 = np.stack([
            np.kron(eye_n, bn * sum(fw[i][p, q] * _col_shift(Wi, q) for q in range(3)))
            for p in range(3)])
        # nearest row-resize Hi -> Hout (0/1 selection)
        rr = _row_resize(Hi, Hout)
        # combined conv, column side: col-resize + 3 col taps + BN scale,
        # block-diagonal over batch; the channel sum happens by accumulation.
        cw = np.stack([
            np.kron(eye_n, bn * sum(wc[i, p, q] * _col_resize_shift(Wi, Wout, q)
                                    for q in range(3)))
            for p in range(3)])
        tables["per_feat"].append({
            "S": jnp.asarray(s),      # (3, Hi, Hi)
            "C1": jnp.asarray(c1),    # (3, N*Wi, N*Wi)
            "RR": jnp.asarray(rr),    # (Hout, Hi)
            "CW": jnp.asarray(cw),    # (3, N*Wi, N*Wout)
        })
    return tables


# ----------------------------------------------------------------------------
# Fused Pallas kernel
# ----------------------------------------------------------------------------
def _build_kernel(in_hw, out_hw, n_batch, n_feat):
    Hout, Wout = out_hw

    def kernel(*refs):
        # refs: feat_bias(C,) comb_bias(1,) in SMEM; per feature
        # [x(N,1,Hi,Wi), S(3,Hi,Hi), C1(3,NWi,NWi), RR(Hout,Hi), CW(3,NWi,NWout)]
        # in VMEM; SH(3,Hout,Hout); out(N,1,Hout,Wout); per-feature scratch
        # slabs (Hi, N*Wi).
        feat_b_ref, comb_b_ref = refs[0], refs[1]
        per_feat = [refs[2 + 5 * i: 2 + 5 * (i + 1)] for i in range(n_feat)]
        sh_ref = refs[2 + 5 * n_feat]
        out_ref = refs[3 + 5 * n_feat]
        xslab_refs = refs[4 + 5 * n_feat:]

        def mm(a, b):
            return jnp.dot(a, b, precision=_HIGHEST,
                           preferred_element_type=jnp.float32)

        # per-row-tap accumulators of the combined conv (summed over features)
        m_acc = [None, None, None]

        for i in range(n_feat):
            Hi, Wi = in_hw[i]
            x_ref, s_ref, c1_ref, rr_ref, cw_ref = per_feat[i]
            xs_ref = xslab_refs[i]

            # ---- pack batch along the lane axis: (Hi, N*Wi)
            x = x_ref[...]                                   # (N, 1, Hi, Wi)
            for n in range(n_batch):
                xs_ref[:, n * Wi:(n + 1) * Wi] = x[n, 0]
            xsl = xs_ref[...]                                # (Hi, N*Wi)

            # ---- Conv2d(1,1,3,pad=1): 3 (row-shift, weighted-col-tap) matmul
            #      pairs; zero padding is the zero-fill of the shift matrices.
            acc = mm(s_ref[0], mm(xsl, c1_ref[0]))
            acc = acc + mm(s_ref[1], mm(xsl, c1_ref[1]))
            acc = acc + mm(s_ref[2], mm(xsl, c1_ref[2]))

            # ---- folded eval-mode BatchNorm (+conv bias) and ReLU
            y = jnp.maximum(acc + feat_b_ref[i], 0.0)        # (Hi, N*Wi)

            # ---- nearest row-resize to Hout (0/1 selection matmul)
            yr = mm(rr_ref[...], y)                          # (Hout, N*Wi)

            # ---- combined conv, column side: col-resize + 3 col taps + BN
            #      scale + channel sum folded into one matmul per row tap p.
            for p in range(3):
                v = mm(yr, cw_ref[p])                        # (Hout, N*Wout)
                m_acc[p] = v if m_acc[p] is None else m_acc[p] + v

        # ---- combined conv row taps, folded BatchNorm bias, Sigmoid
        comb = mm(sh_ref[0], m_acc[0])
        comb = comb + mm(sh_ref[1], m_acc[1])
        comb = comb + mm(sh_ref[2], m_acc[2])
        comb = comb + comb_b_ref[0]
        out = 1.0 / (1.0 + jnp.exp(-comb))                   # (Hout, N*Wout)

        for n in range(n_batch):
            out_ref[n] = out[:, n * Wout:(n + 1) * Wout].reshape(1, Hout, Wout)

    return kernel


def decoder_forward(img_feats, pla_feats, tables, shape):
    """img_feats / pla_feats: lists of (N, 1, Hi, Wi) NCHW arrays. Returns (N, 1, H, W)."""
    xs = [jnp.asarray(x, jnp.float32) for x in list(img_feats) + list(pla_feats)]
    n_feat = len(xs)
    N = int(xs[0].shape[0])
    Hout, Wout = int(shape[0]), int(shape[1])
    in_hw = [(int(x.shape[-2]), int(x.shape[-1])) for x in xs]

    args = [tables["feat_bias"], tables["comb_bias"]]
    specs = [_SMEM, _SMEM]
    scratch = []
    for x, pf, (Hi, Wi) in zip(xs, tables["per_feat"], in_hw):
        args += [x, pf["S"], pf["C1"], pf["RR"], pf["CW"]]
        specs += [_VMEM] * 5
        scratch.append(pltpu.VMEM((Hi, N * Wi), jnp.float32))
    args.append(tables["SH"])
    specs.append(_VMEM)

    kernel = _build_kernel(in_hw, (Hout, Wout), N, n_feat)
    return pl.pallas_call(
        kernel,
        out_shape=jax.ShapeDtypeStruct((N, 1, Hout, Wout), jnp.float32),
        in_specs=specs,
        out_specs=_VMEM,
        scratch_shapes=scratch,
    )(*args)


# ----------------------------------------------------------------------------
# Parameters (raw, PyTorch-style init)
# ----------------------------------------------------------------------------
def init_params(key, num_img_feat, num_pla_feat):
    n_feat = num_img_feat + num_pla_feat
    std = (2.0 / (3 * 3 * 1)) ** 0.5   # weight.normal_(0, sqrt(2/n)), n = k*k*out_ch
    keys = jax.random.split(key, 2 * n_feat + 2)
    feat_w, feat_b = [], []
    for i in range(n_feat):
        feat_w.append(jax.random.normal(keys[2 * i], (3, 3), jnp.float32) * std)
        feat_b.append(jax.random.uniform(keys[2 * i + 1], (), jnp.float32, -1.0 / 3, 1.0 / 3))
    wc = jax.random.normal(keys[-2], (1, n_feat, 3, 3), jnp.float32) * std
    bc = jax.random.uniform(keys[-1], (), jnp.float32, -0.1, 0.1)
    return {"feat_w_raw": feat_w, "feat_b_raw": feat_b,
            "comb_w_raw": wc, "comb_b_raw": bc}


# ----------------------------------------------------------------------------
# Pure-JAX reference (same math, no Pallas) for verification
# ----------------------------------------------------------------------------
def _nearest_resize(x, out_hw):
    """x: (N, H, W). Matches F.interpolate(mode='nearest'): src = floor(i*in/out)."""
    Hin, Win = x.shape[-2:]
    Hout, Wout = out_hw
    ih = (jnp.arange(Hout) * Hin) // Hout
    iw = (jnp.arange(Wout) * Win) // Wout
    return jnp.take(jnp.take(x, ih, axis=1), iw, axis=2)


def _conv3x3_ref(x, w, b):
    N, Cin, H, W = x.shape
    xpad = jnp.pad(x, ((0, 0), (0, 0), (1, 1), (1, 1)))
    outs = []
    for co in range(w.shape[0]):
        acc = jnp.zeros((N, H, W), jnp.float32)
        for ci in range(Cin):
            for dh in range(3):
                for dw in range(3):
                    acc = acc + w[co, ci, dh, dw] * xpad[:, ci, dh:dh + H, dw:dw + W]
        outs.append(acc + b)
    return jnp.stack(outs, axis=1)


def decoder_ref(img_feats, pla_feats, params, shape):
    bn = 1.0 / jnp.sqrt(1.0 + EPS)
    feats = []
    for x, w, b in zip(list(img_feats) + list(pla_feats),
                       params["feat_w_raw"], params["feat_b_raw"]):
        y = jnp.maximum(_conv3x3_ref(x, w[None, None], b) * bn, 0.0)
        feats.append(_nearest_resize(y[:, 0], shape))
    feat = jnp.stack(feats, axis=1)
    y = _conv3x3_ref(feat, params["comb_w_raw"], params["comb_b_raw"]) * bn
    return jax.nn.sigmoid(y)


if __name__ == "__main__":
    key = jax.random.PRNGKey(0)
    shape = (16, 16)            # Decoder(shape=...)
    num_img_feat, num_pla_feat = 3, 2
    N = 2

    k_in, k_par = jax.random.split(key)
    sizes_img = [(8, 8), (16, 16), (12, 12)]
    sizes_pla = [(4, 4), (16, 16)]
    kin = jax.random.split(k_in, len(sizes_img) + len(sizes_pla))
    img_feats = [jax.random.normal(kin[i], (N, 1, h, w), jnp.float32)
                 for i, (h, w) in enumerate(sizes_img)]
    pla_feats = [jax.random.normal(kin[len(sizes_img) + i], (N, 1, h, w), jnp.float32)
                 for i, (h, w) in enumerate(sizes_pla)]

    params = init_params(k_par, num_img_feat, num_pla_feat)
    in_hw = sizes_img + sizes_pla
    tables = build_decoder_tables(params, in_hw, shape, N)   # one-time weight prep

    out = jax.block_until_ready(decoder_forward(img_feats, pla_feats, tables, shape))
    ref = decoder_ref(img_feats, pla_feats, params, shape)

    assert out.shape == (N, 1) + shape, out.shape
    assert bool(jnp.all(jnp.isfinite(out)))
    err = float(jnp.max(jnp.abs(out - ref)))
    assert err < 2e-5, err
    print("KERNEL_OK")
</pallas_src>

<mosaic_0001>
module attributes {stable_mosaic.version = 11 : i64} {
  func.func @kernel(%arg0: memref<5xf32, #tpu.memory_space<smem>>, %arg1: memref<1xf32, #tpu.memory_space<smem>>, %arg2: memref<2x1x8x8xf32, #tpu.memory_space<vmem>>, %arg3: memref<3x8x8xf32, #tpu.memory_space<vmem>>, %arg4: memref<3x16x16xf32, #tpu.memory_space<vmem>>, %arg5: memref<16x8xf32, #tpu.memory_space<vmem>>, %arg6: memref<3x16x32xf32, #tpu.memory_space<vmem>>, %arg7: memref<2x1x16x16xf32, #tpu.memory_space<vmem>>, %arg8: memref<3x16x16xf32, #tpu.memory_space<vmem>>, %arg9: memref<3x32x32xf32, #tpu.memory_space<vmem>>, %arg10: memref<16x16xf32, #tpu.memory_space<vmem>>, %arg11: memref<3x32x32xf32, #tpu.memory_space<vmem>>, %arg12: memref<2x1x12x12xf32, #tpu.memory_space<vmem>>, %arg13: memref<3x12x12xf32, #tpu.memory_space<vmem>>, %arg14: memref<3x24x24xf32, #tpu.memory_space<vmem>>, %arg15: memref<16x12xf32, #tpu.memory_space<vmem>>, %arg16: memref<3x24x32xf32, #tpu.memory_space<vmem>>, %arg17: memref<2x1x4x4xf32, #tpu.memory_space<vmem>>, %arg18: memref<3x4x4xf32, #tpu.memory_space<vmem>>, %arg19: memref<3x8x8xf32, #tpu.memory_space<vmem>>, %arg20: memref<16x4xf32, #tpu.memory_space<vmem>>, %arg21: memref<3x8x32xf32, #tpu.memory_space<vmem>>, %arg22: memref<2x1x16x16xf32, #tpu.memory_space<vmem>>, %arg23: memref<3x16x16xf32, #tpu.memory_space<vmem>>, %arg24: memref<3x32x32xf32, #tpu.memory_space<vmem>>, %arg25: memref<16x16xf32, #tpu.memory_space<vmem>>, %arg26: memref<3x32x32xf32, #tpu.memory_space<vmem>>, %arg27: memref<3x16x16xf32, #tpu.memory_space<vmem>>, %arg28: memref<2x1x16x16xf32, #tpu.memory_space<vmem>>, %arg29: memref<8x16xf32, #tpu.memory_space<vmem>>, %arg30: memref<16x32xf32, #tpu.memory_space<vmem>>, %arg31: memref<12x24xf32, #tpu.memory_space<vmem>>, %arg32: memref<4x8xf32, #tpu.memory_space<vmem>>, %arg33: memref<16x32xf32, #tpu.memory_space<vmem>>) attributes {dimension_semantics = [], scalar_prefetch = 0 : i64, scratch_operands = 5 : i64, tpu.core_type = #tpu.core_type<tc>} {
    %c0 = arith.constant 0 : index
    %c0_0 = arith.constant 0 : index
    %c0_1 = arith.constant 0 : index
    %c0_2 = arith.constant 0 : index
    %0 = vector.load %arg2[%c0, %c0_0, %c0_1, %c0_2] : memref<2x1x8x8xf32, #tpu.memory_space<vmem>>, vector<2x1x8x8xf32>
    %1 = vector.extract_strided_slice %0 {offsets = [0, 0, 0, 0], sizes = [1, 1, 8, 8], strides = [1, 1, 1, 1]} : vector<2x1x8x8xf32> to vector<1x1x8x8xf32>
    %2 = vector.shape_cast %1 : vector<1x1x8x8xf32> to vector<8x8xf32>
    %c0_3 = arith.constant 0 : index
    %c0_4 = arith.constant 0 : index
    %3 = vector.load %arg29[%c0_3, %c0_4] : memref<8x16xf32, #tpu.memory_space<vmem>>, vector<8x8xf32>
    tpu.vector_store %arg29[%c0_3, %c0_4], %2 {strides = array<i32>} : memref<8x16xf32, #tpu.memory_space<vmem>>, vector<8x8xf32>,
    %4 = vector.extract_strided_slice %0 {offsets = [1, 0, 0, 0], sizes = [1, 1, 8, 8], strides = [1, 1, 1, 1]} : vector<2x1x8x8xf32> to vector<1x1x8x8xf32>
    %5 = vector.shape_cast %4 : vector<1x1x8x8xf32> to vector<8x8xf32>
    %c0_5 = arith.constant 0 : index
    %c8 = arith.constant 8 : index
    %6 = vector.load %arg29[%c0_5, %c8] : memref<8x16xf32, #tpu.memory_space<vmem>>, vector<8x8xf32>
    tpu.vector_store %arg29[%c0_5, %c8], %5 {strides = array<i32>} : memref<8x16xf32, #tpu.memory_space<vmem>>, vector<8x8xf32>,
    %c0_6 = arith.constant 0 : index
    %c0_7 = arith.constant 0 : index
    %7 = vector.load %arg29[%c0_6, %c0_7] : memref<8x16xf32, #tpu.memory_space<vmem>>, vector<8x16xf32>
    %c0_8 = arith.constant 0 : index
    %c0_9 = arith.constant 0 : index
    %c0_10 = arith.constant 0 : index
    %8 = vector.load %arg3[%c0_8, %c0_9, %c0_10] : memref<3x8x8xf32, #tpu.memory_space<vmem>>, vector<1x8x8xf32>
    %9 = vector.shape_cast %8 : vector<1x8x8xf32> to vector<8x8xf32>
    %c0_11 = arith.constant 0 : index
    %c0_12 = arith.constant 0 : index
    %c0_13 = arith.constant 0 : index
    %10 = vector.load %arg4[%c0_11, %c0_12, %c0_13] : memref<3x16x16xf32, #tpu.memory_space<vmem>>, vector<1x16x16xf32>
    %11 = vector.shape_cast %10 : vector<1x16x16xf32> to vector<16x16xf32>
    %cst = arith.constant dense<0.000000e+00> : vector<8x16xf32>
    %12 = tpu.matmul %7, %11, %cst {dimension_numbers = #tpu.dot_dimension_numbers<[1], [0], [0], [1], [0, 0, 1, 1], [], []>, precision = #tpu.contract_precision<fp32>} : vector<8x16xf32>, vector<16x16xf32>, vector<8x16xf32> -> vector<8x16xf32>
    %cst_14 = arith.constant dense<0.000000e+00> : vector<8x16xf32>
    %13 = tpu.matmul %9, %12, %cst_14 {dimension_numbers = #tpu.dot_dimension_numbers<[1], [0], [0], [1], [0, 0, 1, 1], [], []>, precision = #tpu.contract_precision<fp32>} : vector<8x8xf32>, vector<8x16xf32>, vector<8x16xf32> -> vector<8x16xf32>
    %c1 = arith.constant 1 : index
    %c0_15 = arith.constant 0 : index
    %c0_16 = arith.constant 0 : index
    %14 = vector.load %arg3[%c1, %c0_15, %c0_16] : memref<3x8x8xf32, #tpu.memory_space<vmem>>, vector<1x8x8xf32>
    %15 = vector.shape_cast %14 : vector<1x8x8xf32> to vector<8x8xf32>
    %c1_17 = arith.constant 1 : index
    %c0_18 = arith.constant 0 : index
    %c0_19 = arith.constant 0 : index
    %16 = vector.load %arg4[%c1_17, %c0_18, %c0_19] : memref<3x16x16xf32, #tpu.memory_space<vmem>>, vector<1x16x16xf32>
    %17 = vector.shape_cast %16 : vector<1x16x16xf32> to vector<16x16xf32>
    %cst_20 = arith.constant dense<0.000000e+00> : vector<8x16xf32>
    %18 = tpu.matmul %7, %17, %cst_20 {dimension_numbers = #tpu.dot_dimension_numbers<[1], [0], [0], [1], [0, 0, 1, 1], [], []>, precision = #tpu.contract_precision<fp32>} : vector<8x16xf32>, vector<16x16xf32>, vector<8x16xf32> -> vector<8x16xf32>
    %cst_21 = arith.constant dense<0.000000e+00> : vector<8x16xf32>
    %19 = tpu.matmul %15, %18, %cst_21 {dimension_numbers = #tpu.dot_dimension_numbers<[1], [0], [0], [1], [0, 0, 1, 1], [], []>, precision = #tpu.contract_precision<fp32>} : vector<8x8xf32>, vector<8x16xf32>, vector<8x16xf32> -> vector<8x16xf32>
    %20 = arith.addf %13, %19 : vector<8x16xf32>
    %c2 = arith.constant 2 : index
    %c0_22 = arith.constant 0 : index
    %c0_23 = arith.constant 0 : index
    %21 = vector.load %arg3[%c2, %c0_22, %c0_23] : memref<3x8x8xf32, #tpu.memory_space<vmem>>, vector<1x8x8xf32>
    %22 = vector.shape_cast %21 : vector<1x8x8xf32> to vector<8x8xf32>
    %c2_24 = arith.constant 2 : index
    %c0_25 = arith.constant 0 : index
    %c0_26 = arith.constant 0 : index
    %23 = vector.load %arg4[%c2_24, %c0_25, %c0_26] : memref<3x16x16xf32, #tpu.memory_space<vmem>>, vector<1x16x16xf32>
    %24 = vector.shape_cast %23 : vector<1x16x16xf32> to vector<16x16xf32>
    %cst_27 = arith.constant dense<0.000000e+00> : vector<8x16xf32>
    %25 = tpu.matmul %7, %24, %cst_27 {dimension_numbers = #tpu.dot_dimension_numbers<[1], [0], [0], [1], [0, 0, 1, 1], [], []>, precision = #tpu.contract_precision<fp32>} : vector<8x16xf32>, vector<16x16xf32>, vector<8x16xf32> -> vector<8x16xf32>
    %cst_28 = arith.constant dense<0.000000e+00> : vector<8x16xf32>
    %26 = tpu.matmul %22, %25, %cst_28 {dimension_numbers = #tpu.dot_dimension_numbers<[1], [0], [0], [1], [0, 0, 1, 1], [], []>, precision = #tpu.contract_precision<fp32>} : vector<8x8xf32>, vector<8x16xf32>, vector<8x16xf32> -> vector<8x16xf32>
    %27 = arith.addf %20, %26 : vector<8x16xf32>
    %c0_29 = arith.constant 0 : index
    %28 = memref.load %arg0[%c0_29] : memref<5xf32, #tpu.memory_space<smem>>
    %29 = vector.broadcast %28 : f32 to vector<8x16xf32>
    %30 = arith.addf %27, %29 : vector<8x16xf32>
    %cst_30 = arith.constant 0.000000e+00 : f32
    %31 = vector.broadcast %cst_30 : f32 to vector<8x16xf32>
    %32 = arith.maximumf %30, %31 : vector<8x16xf32>
    %c0_31 = arith.constant 0 : index
    %c0_32 = arith.constant 0 : index
    %33 = vector.load %arg5[%c0_31, %c0_32] : memref<16x8xf32, #tpu.memory_space<vmem>>, vector<16x8xf32>
    %cst_33 = arith.constant dense<0.000000e+00> : vector<16x16xf32>
    %34 = tpu.matmul %33, %32, %cst_33 {dimension_numbers = #tpu.dot_dimension_numbers<[1], [0], [0], [1], [0, 0, 1, 1], [], []>, precision = #tpu.contract_precision<fp32>} : vector<16x8xf32>, vector<8x16xf32>, vector<16x16xf32> -> vector<16x16xf32>
    %c0_34 = arith.constant 0 : index
    %c0_35 = arith.constant 0 : index
    %c0_36 = arith.constant 0 : index
    %35 = vector.load %arg6[%c0_34, %c0_35, %c0_36] : memref<3x16x32xf32, #tpu.memory_space<vmem>>, vector<1x16x32xf32>
    %36 = vector.shape_cast %35 : vector<1x16x32xf32> to vector<16x32xf32>
    %cst_37 = arith.constant dense<0.000000e+00> : vector<16x32xf32>
    %37 = tpu.matmul %34, %36, %cst_37 {dimension_numbers = #tpu.dot_dimension_numbers<[1], [0], [0], [1], [0, 0, 1, 1], [], []>, precision = #tpu.contract_precision<fp32>} : vector<16x16xf32>, vector<16x32xf32>, vector<16x32xf32> -> vector<16x32xf32>
    %c1_38 = arith.constant 1 : index
    %c0_39 = arith.constant 0 : index
    %c0_40 = arith.constant 0 : index
    %38 = vector.load %arg6[%c1_38, %c0_39, %c0_40] : memref<3x16x32xf32, #tpu.memory_space<vmem>>, vector<1x16x32xf32>
    %39 = vector.shape_cast %38 : vector<1x16x32xf32> to vector<16x32xf32>
    %cst_41 = arith.constant dense<0.000000e+00> : vector<16x32xf32>
    %40 = tpu.matmul %34, %39, %cst_41 {dimension_numbers = #tpu.dot_dimension_numbers<[1], [0], [0], [1], [0, 0, 1, 1], [], []>, precision = #tpu.contract_precision<fp32>} : vector<16x16xf32>, vector<16x32xf32>, vector<16x32xf32> -> vector<16x32xf32>
    %c2_42 = arith.constant 2 : index
    %c0_43 = arith.constant 0 : index
    %c0_44 = arith.constant 0 : index
    %41 = vector.load %arg6[%c2_42, %c0_43, %c0_44] : memref<3x16x32xf32, #tpu.memory_space<vmem>>, vector<1x16x32xf32>
    %42 = vector.shape_cast %41 : vector<1x16x32xf32> to vector<16x32xf32>
    %cst_45 = arith.constant dense<0.000000e+00> : vector<16x32xf32>
    %43 = tpu.matmul %34, %42, %cst_45 {dimension_numbers = #tpu.dot_dimension_numbers<[1], [0], [0], [1], [0, 0, 1, 1], [], []>, precision = #tpu.contract_precision<fp32>} : vector<16x16xf32>, vector<16x32xf32>, vector<16x32xf32> -> vector<16x32xf32>
    %c0_46 = arith.constant 0 : index
    %c0_47 = arith.constant 0 : index
    %c0_48 = arith.constant 0 : index
    %c0_49 = arith.constant 0 : index
    %44 = vector.load %arg7[%c0_46, %c0_47, %c0_48, %c0_49] : memref<2x1x16x16xf32, #tpu.memory_space<vmem>>, vector<2x1x16x16xf32>
    %45 = vector.extract_strided_slice %44 {offsets = [0, 0, 0, 0], sizes = [1, 1, 16, 16], strides = [1, 1, 1, 1]} : vector<2x1x16x16xf32> to vector<1x1x16x16xf32>
    %46 = vector.shape_cast %45 : vector<1x1x16x16xf32> to vector<16x16xf32>
    %c0_50 = arith.constant 0 : index
    %c0_51 = arith.constant 0 : index
    %47 = vector.load %arg30[%c0_50, %c0_51] : memref<16x32xf32, #tpu.memory_space<vmem>>, vector<16x16xf32>
    tpu.vector_store %arg30[%c0_50, %c0_51], %46 {strides = array<i32>} : memref<16x32xf32, #tpu.memory_space<vmem>>, vector<16x16xf32>,
    %48 = vector.extract_strided_slice %44 {offsets = [1, 0, 0, 0], sizes = [1, 1, 16, 16], strides = [1, 1, 1, 1]} : vector<2x1x16x16xf32> to vector<1x1x16x16xf32>
    %49 = vector.shape_cast %48 : vector<1x1x16x16xf32> to vector<16x16xf32>
    %c0_52 = arith.constant 0 : index
    %c16 = arith.constant 16 : index
    %50 = vector.load %arg30[%c0_52, %c16] : memref<16x32xf32, #tpu.memory_space<vmem>>, vector<16x16xf32>
    tpu.vector_store %arg30[%c0_52, %c16], %49 {strides = array<i32>} : memref<16x32xf32, #tpu.memory_space<vmem>>, vector<16x16xf32>,
    %c0_53 = arith.constant 0 : index
    %c0_54 = arith.constant 0 : index
    %51 = vector.load %arg30[%c0_53, %c0_54] : memref<16x32xf32, #tpu.memory_space<vmem>>, vector<16x32xf32>
    %c0_55 = arith.constant 0 : index
    %c0_56 = arith.constant 0 : index
    %c0_57 = arith.constant 0 : index
    %52 = vector.load %arg8[%c0_55, %c0_56, %c0_57] : memref<3x16x16xf32, #tpu.memory_space<vmem>>, vector<1x16x16xf32>
    %53 = vector.shape_cast %52 : vector<1x16x16xf32> to vector<16x16xf32>
    %c0_58 = arith.constant 0 : index
    %c0_59 = arith.constant 0 : index
    %c0_60 = arith.constant 0 : index
    %54 = vector.load %arg9[%c0_58, %c0_59, %c0_60] : memref<3x32x32xf32, #tpu.memory_space<vmem>>, vector<1x32x32xf32>
    %55 = vector.shape_cast %54 : vector<1x32x32xf32> to vector<32x32xf32>
    %cst_61 = arith.constant dense<0.000000e+00> : vector<16x32xf32>
    %56 = tpu.matmul %51, %55, %cst_61 {dimension_numbers = #tpu.dot_dimension_numbers<[1], [0], [0], [1], [0, 0, 1, 1], [], []>, precision = #tpu.contract_precision<fp32>} : vector<16x32xf32>, vector<32x32xf32>, vector<16x32xf32> -> vector<16x32xf32>
    %cst_62 = arith.constant dense<0.000000e+00> : vector<16x32xf32>
    %57 = tpu.matmul %53, %56, %cst_62 {dimension_numbers = #tpu.dot_dimension_numbers<[1], [0], [0], [1], [0, 0, 1, 1], [], []>, precision = #tpu.contract_precision<fp32>} : vector<16x16xf32>, vector<16x32xf32>, vector<16x32xf32> -> vector<16x32xf32>
    %c1_63 = arith.constant 1 : index
    %c0_64 = arith.constant 0 : index
    %c0_65 = arith.constant 0 : index
    %58 = vector.load %arg8[%c1_63, %c0_64, %c0_65] : memref<3x16x16xf32, #tpu.memory_space<vmem>>, vector<1x16x16xf32>
    %59 = vector.shape_cast %58 : vector<1x16x16xf32> to vector<16x16xf32>
    %c1_66 = arith.constant 1 : index
    %c0_67 = arith.constant 0 : index
    %c0_68 = arith.constant 0 : index
    %60 = vector.load %arg9[%c1_66, %c0_67, %c0_68] : memref<3x32x32xf32, #tpu.memory_space<vmem>>, vector<1x32x32xf32>
    %61 = vector.shape_cast %60 : vector<1x32x32xf32> to vector<32x32xf32>
    %cst_69 = arith.constant dense<0.000000e+00> : vector<16x32xf32>
    %62 = tpu.matmul %51, %61, %cst_69 {dimension_numbers = #tpu.dot_dimension_numbers<[1], [0], [0], [1], [0, 0, 1, 1], [], []>, precision = #tpu.contract_precision<fp32>} : vector<16x32xf32>, vector<32x32xf32>, vector<16x32xf32> -> vector<16x32xf32>
    %cst_70 = arith.constant dense<0.000000e+00> : vector<16x32xf32>
    %63 = tpu.matmul %59, %62, %cst_70 {dimension_numbers = #tpu.dot_dimension_numbers<[1], [0], [0], [1], [0, 0, 1, 1], [], []>, precision = #tpu.contract_precision<fp32>} : vector<16x16xf32>, vector<16x32xf32>, vector<16x32xf32> -> vector<16x32xf32>
    %64 = arith.addf %57, %63 : vector<16x32xf32>
    %c2_71 = arith.constant 2 : index
    %c0_72 = arith.constant 0 : index
    %c0_73 = arith.constant 0 : index
    %65 = vector.load %arg8[%c2_71, %c0_72, %c0_73] : memref<3x16x16xf32, #tpu.memory_space<vmem>>, vector<1x16x16xf32>
    %66 = vector.shape_cast %65 : vector<1x16x16xf32> to vector<16x16xf32>
    %c2_74 = arith.constant 2 : index
    %c0_75 = arith.constant 0 : index
    %c0_76 = arith.constant 0 : index
    %67 = vector.load %arg9[%c2_74, %c0_75, %c0_76] : memref<3x32x32xf32, #tpu.memory_space<vmem>>, vector<1x32x32xf32>
    %68 = vector.shape_cast %67 : vector<1x32x32xf32> to vector<32x32xf32>
    %cst_77 = arith.constant dense<0.000000e+00> : vector<16x32xf32>
    %69 = tpu.matmul %51, %68, %cst_77 {dimension_numbers = #tpu.dot_dimension_numbers<[1], [0], [0], [1], [0, 0, 1, 1], [], []>, precision = #tpu.contract_precision<fp32>} : vector<16x32xf32>, vector<32x32xf32>, vector<16x32xf32> -> vector<16x32xf32>
    %cst_78 = arith.constant dense<0.000000e+00> : vector<16x32xf32>
    %70 = tpu.matmul %66, %69, %cst_78 {dimension_numbers = #tpu.dot_dimension_numbers<[1], [0], [0], [1], [0, 0, 1, 1], [], []>, precision = #tpu.contract_precision<fp32>} : vector<16x16xf32>, vector<16x32xf32>, vector<16x32xf32> -> vector<16x32xf32>
    %71 = arith.addf %64, %70 : vector<16x32xf32>
    %c1_79 = arith.constant 1 : index
    %72 = memref.load %arg0[%c1_79] : memref<5xf32, #tpu.memory_space<smem>>
    %73 = vector.broadcast %72 : f32 to vector<16x32xf32>
    %74 = arith.addf %71, %73 : vector<16x32xf32>
    %cst_80 = arith.constant 0.000000e+00 : f32
    %75 = vector.broadcast %cst_80 : f32 to vector<16x32xf32>
    %76 = arith.maximumf %74, %75 : vector<16x32xf32>
    %c0_81 = arith.constant 0 : index
    %c0_82 = arith.constant 0 : index
    %77 = vector.load %arg10[%c0_81, %c0_82] : memref<16x16xf32, #tpu.memory_space<vmem>>, vector<16x16xf32>
    %cst_83 = arith.constant dense<0.000000e+00> : vector<16x32xf32>
    %78 = tpu.matmul %77, %76, %cst_83 {dimension_numbers = #tpu.dot_dimension_numbers<[1], [0], [0], [1], [0, 0, 1, 1], [], []>, precision = #tpu.contract_precision<fp32>} : vector<16x16xf32>, vector<16x32xf32>, vector<16x32xf32> -> vector<16x32xf32>
    %c0_84 = arith.constant 0 : index
    %c0_85 = arith.constant 0 : index
    %c0_86 = arith.constant 0 : index
    %79 = vector.load %arg11[%c0_84, %c0_85, %c0_86] : memref<3x32x32xf32, #tpu.memory_space<vmem>>, vector<1x32x32xf32>
    %80 = vector.shape_cast %79 : vector<1x32x32xf32> to vector<32x32xf32>
    %cst_87 = arith.constant dense<0.000000e+00> : vector<16x32xf32>
    %81 = tpu.matmul %78, %80, %cst_87 {dimension_numbers = #tpu.dot_dimension_numbers<[1], [0], [0], [1], [0, 0, 1, 1], [], []>, precision = #tpu.contract_precision<fp32>} : vector<16x32xf32>, vector<32x32xf32>, vector<16x32xf32> -> vector<16x32xf32>
    %82 = arith.addf %37, %81 : vector<16x32xf32>
    %c1_88 = arith.constant 1 : index
    %c0_89 = arith.constant 0 : index
    %c0_90 = arith.constant 0 : index
    %83 = vector.load %arg11[%c1_88, %c0_89, %c0_90] : memref<3x32x32xf32, #tpu.memory_space<vmem>>, vector<1x32x32xf32>
    %84 = vector.shape_cast %83 : vector<1x32x32xf32> to vector<32x32xf32>
    %cst_91 = arith.constant dense<0.000000e+00> : vector<16x32xf32>
    %85 = tpu.matmul %78, %84, %cst_91 {dimension_numbers = #tpu.dot_dimension_numbers<[1], [0], [0], [1], [0, 0, 1, 1], [], []>, precision = #tpu.contract_precision<fp32>} : vector<16x32xf32>, vector<32x32xf32>, vector<16x32xf32> -> vector<16x32xf32>
    %86 = arith.addf %40, %85 : vector<16x32xf32>
    %c2_92 = arith.constant 2 : index
    %c0_93 = arith.constant 0 : index
    %c0_94 = arith.constant 0 : index
    %87 = vector.load %arg11[%c2_92, %c0_93, %c0_94] : memref<3x32x32xf32, #tpu.memory_space<vmem>>, vector<1x32x32xf32>
    %88 = vector.shape_cast %87 : vector<1x32x32xf32> to vector<32x32xf32>
    %cst_95 = arith.constant dense<0.000000e+00> : vector<16x32xf32>
    %89 = tpu.matmul %78, %88, %cst_95 {dimension_numbers = #tpu.dot_dimension_numbers<[1], [0], [0], [1], [0, 0, 1, 1], [], []>, precision = #tpu.contract_precision<fp32>} : vector<16x32xf32>, vector<32x32xf32>, vector<16x32xf32> -> vector<16x32xf32>
    %90 = arith.addf %43, %89 : vector<16x32xf32>
    %c0_96 = arith.constant 0 : index
    %c0_97 = arith.constant 0 : index
    %c0_98 = arith.constant 0 : index
    %c0_99 = arith.constant 0 : index
    %91 = vector.load %arg12[%c0_96, %c0_97, %c0_98, %c0_99] : memref<2x1x12x12xf32, #tpu.memory_space<vmem>>, vector<2x1x12x12xf32>
    %92 = vector.extract_strided_slice %91 {offsets = [0, 0, 0, 0], sizes = [1, 1, 12, 12], strides = [1, 1, 1, 1]} : vector<2x1x12x12xf32> to vector<1x1x12x12xf32>
    %93 = vector.shape_cast %92 : vector<1x1x12x12xf32> to vector<12x12xf32>
    %c0_100 = arith.constant 0 : index
    %c0_101 = arith.constant 0 : index
    %94 = vector.load %arg31[%c0_100, %c0_101] : memref<12x24xf32, #tpu.memory_space<vmem>>, vector<12x12xf32>
    tpu.vector_store %arg31[%c0_100, %c0_101], %93 {strides = array<i32>} : memref<12x24xf32, #tpu.memory_space<vmem>>, vector<12x12xf32>,
    %95 = vector.extract_strided_slice %91 {offsets = [1, 0, 0, 0], sizes = [1, 1, 12, 12], strides = [1, 1, 1, 1]} : vector<2x1x12x12xf32> to vector<1x1x12x12xf32>
    %96 = vector.shape_cast %95 : vector<1x1x12x12xf32> to vector<12x12xf32>
    %c0_102 = arith.constant 0 : index
    %c12 = arith.constant 12 : index
    %97 = vector.load %arg31[%c0_102, %c12] : memref<12x24xf32, #tpu.memory_space<vmem>>, vector<12x12xf32>
    tpu.vector_store %arg31[%c0_102, %c12], %96 {strides = array<i32>} : memref<12x24xf32, #tpu.memory_space<vmem>>, vector<12x12xf32>,
    %c0_103 = arith.constant 0 : index
    %c0_104 = arith.constant 0 : index
    %98 = vector.load %arg31[%c0_103, %c0_104] : memref<12x24xf32, #tpu.memory_space<vmem>>, vector<12x24xf32>
    %c0_105 = arith.constant 0 : index
    %c0_106 = arith.constant 0 : index
    %c0_107 = arith.constant 0 : index
    %99 = vector.load %arg13[%c0_105, %c0_106, %c0_107] : memref<3x12x12xf32, #tpu.memory_space<vmem>>, vector<1x12x12xf32>
    %100 = vector.shape_cast %99 : vector<1x12x12xf32> to vector<12x12xf32>
    %c0_108 = arith.constant 0 : index
    %c0_109 = arith.constant 0 : index
    %c0_110 = arith.constant 0 : index
    %101 = vector.load %arg14[%c0_108, %c0_109, %c0_110] : memref<3x24x24xf32, #tpu.memory_space<vmem>>, vector<1x24x24xf32>
    %102 = vector.shape_cast %101 : vector<1x24x24xf32> to vector<24x24xf32>
    %cst_111 = arith.constant dense<0.000000e+00> : vector<12x24xf32>
    %103 = tpu.matmul %98, %102, %cst_111 {dimension_numbers = #tpu.dot_dimension_numbers<[1], [0], [0], [1], [0, 0, 1, 1], [], []>, precision = #tpu.contract_precision<fp32>} : vector<12x24xf32>, vector<24x24xf32>, vector<12x24xf32> -> vector<12x24xf32>
    %cst_112 = arith.constant dense<0.000000e+00> : vector<12x24xf32>
    %104 = tpu.matmul %100, %103, %cst_112 {dimension_numbers = #tpu.dot_dimension_numbers<[1], [0], [0], [1], [0, 0, 1, 1], [], []>, precision = #tpu.contract_precision<fp32>} : vector<12x12xf32>, vector<12x24xf32>, vector<12x24xf32> -> vector<12x24xf32>
    %c1_113 = arith.constant 1 : index
    %c0_114 = arith.constant 0 : index
    %c0_115 = arith.constant 0 : index
    %105 = vector.load %arg13[%c1_113, %c0_114, %c0_115] : memref<3x12x12xf32, #tpu.memory_space<vmem>>, vector<1x12x12xf32>
    %106 = vector.shape_cast %105 : vector<1x12x12xf32> to vector<12x12xf32>
    %c1_116 = arith.constant 1 : index
    %c0_117 = arith.constant 0 : index
    %c0_118 = arith.constant 0 : index
    %107 = vector.load %arg14[%c1_116, %c0_117, %c0_118] : memref<3x24x24xf32, #tpu.memory_space<vmem>>, vector<1x24x24xf32>
    %108 = vector.shape_cast %107 : vector<1x24x24xf32> to vector<24x24xf32>
    %cst_119 = arith.constant dense<0.000000e+00> : vector<12x24xf32>
    %109 = tpu.matmul %98, %108, %cst_119 {dimension_numbers = #tpu.dot_dimension_numbers<[1], [0], [0], [1], [0, 0, 1, 1], [], []>, precision = #tpu.contract_precision<fp32>} : vector<12x24xf32>, vector<24x24xf32>, vector<12x24xf32> -> vector<12x24xf32>
    %cst_120 = arith.constant dense<0.000000e+00> : vector<12x24xf32>
    %110 = tpu.matmul %106, %109, %cst_120 {dimension_numbers = #tpu.dot_dimension_numbers<[1], [0], [0], [1], [0, 0, 1, 1], [], []>, precision = #tpu.contract_precision<fp32>} : vector<12x12xf32>, vector<12x24xf32>, vector<12x24xf32> -> vector<12x24xf32>
    %111 = arith.addf %104, %110 : vector<12x24xf32>
    %c2_121 = arith.constant 2 : index
    %c0_122 = arith.constant 0 : index
    %c0_123 = arith.constant 0 : index
    %112 = vector.load %arg13[%c2_121, %c0_122, %c0_123] : memref<3x12x12xf32, #tpu.memory_space<vmem>>, vector<1x12x12xf32>
    %113 = vector.shape_cast %112 : vector<1x12x12xf32> to vector<12x12xf32>
    %c2_124 = arith.constant 2 : index
    %c0_125 = arith.constant 0 : index
    %c0_126 = arith.constant 0 : index
    %114 = vector.load %arg14[%c2_124, %c0_125, %c0_126] : memref<3x24x24xf32, #tpu.memory_space<vmem>>, vector<1x24x24xf32>
    %115 = vector.shape_cast %114 : vector<1x24x24xf32> to vector<24x24xf32>
    %cst_127 = arith.constant dense<0.000000e+00> : vector<12x24xf32>
    %116 = tpu.matmul %98, %115, %cst_127 {dimension_numbers = #tpu.dot_dimension_numbers<[1], [0], [0], [1], [0, 0, 1, 1], [], []>, precision = #tpu.contract_precision<fp32>} : vector<12x24xf32>, vector<24x24xf32>, vector<12x24xf32> -> vector<12x24xf32>
    %cst_128 = arith.constant dense<0.000000e+00> : vector<12x24xf32>
    %117 = tpu.matmul %113, %116, %cst_128 {dimension_numbers = #tpu.dot_dimension_numbers<[1], [0], [0], [1], [0, 0, 1, 1], [], []>, precision = #tpu.contract_precision<fp32>} : vector<12x12xf32>, vector<12x24xf32>, vector<12x24xf32> -> vector<12x24xf32>
    %118 = arith.addf %111, %117 : vector<12x24xf32>
    %c2_129 = arith.constant 2 : index
    %119 = memref.load %arg0[%c2_129] : memref<5xf32, #tpu.memory_space<smem>>
    %120 = vector.broadcast %119 : f32 to vector<12x24xf32>
    %121 = arith.addf %118, %120 : vector<12x24xf32>
    %cst_130 = arith.constant 0.000000e+00 : f32
    %122 = vector.broadcast %cst_130 : f32 to vector<12x24xf32>
    %123 = arith.maximumf %121, %122 : vector<12x24xf32>
    %c0_131 = arith.constant 0 : index
    %c0_132 = arith.constant 0 : index
    %124 = vector.load %arg15[%c0_131, %c0_132] : memref<16x12xf32, #tpu.memory_space<vmem>>, vector<16x12xf32>
    %cst_133 = arith.constant dense<0.000000e+00> : vector<16x24xf32>
    %125 = tpu.matmul %124, %123, %cst_133 {dimension_numbers = #tpu.dot_dimension_numbers<[1], [0], [0], [1], [0, 0, 1, 1], [], []>, precision = #tpu.contract_precision<fp32>} : vector<16x12xf32>, vector<12x24xf32>, vector<16x24xf32> -> vector<16x24xf32>
    %c0_134 = arith.constant 0 : index
    %c0_135 = arith.constant 0 : index
    %c0_136 = arith.constant 0 : index
    %126 = vector.load %arg16[%c0_134, %c0_135, %c0_136] : memref<3x24x32xf32, #tpu.memory_space<vmem>>, vector<1x24x32xf32>
    %127 = vector.shape_cast %126 : vector<1x24x32xf32> to vector<24x32xf32>
    %cst_137 = arith.constant dense<0.000000e+00> : vector<16x32xf32>
    %128 = tpu.matmul %125, %127, %cst_137 {dimension_numbers = #tpu.dot_dimension_numbers<[1], [0], [0], [1], [0, 0, 1, 1], [], []>, precision = #tpu.contract_precision<fp32>} : vector<16x24xf32>, vector<24x32xf32>, vector<16x32xf32> -> vector<16x32xf32>
    %129 = arith.addf %82, %128 : vector<16x32xf32>
    %c1_138 = arith.constant 1 : index
    %c0_139 = arith.constant 0 : index
    %c0_140 = arith.constant 0 : index
    %130 = vector.load %arg16[%c1_138, %c0_139, %c0_140] : memref<3x24x32xf32, #tpu.memory_space<vmem>>, vector<1x24x32xf32>
    %131 = vector.shape_cast %130 : vector<1x24x32xf32> to vector<24x32xf32>
    %cst_141 = arith.constant dense<0.000000e+00> : vector<16x32xf32>
    %132 = tpu.matmul %125, %131, %cst_141 {dimension_numbers = #tpu.dot_dimension_numbers<[1], [0], [0], [1], [0, 0, 1, 1], [], []>, precision = #tpu.contract_precision<fp32>} : vector<16x24xf32>, vector<24x32xf32>, vector<16x32xf32> -> vector<16x32xf32>
    %133 = arith.addf %86, %132 : vector<16x32xf32>
    %c2_142 = arith.constant 2 : index
    %c0_143 = arith.constant 0 : index
    %c0_144 = arith.constant 0 : index
    %134 = vector.load %arg16[%c2_142, %c0_143, %c0_144] : memref<3x24x32xf32, #tpu.memory_space<vmem>>, vector<1x24x32xf32>
    %135 = vector.shape_cast %134 : vector<1x24x32xf32> to vector<24x32xf32>
    %cst_145 = arith.constant dense<0.000000e+00> : vector<16x32xf32>
    %136 = tpu.matmul %125, %135, %cst_145 {dimension_numbers = #tpu.dot_dimension_numbers<[1], [0], [0], [1], [0, 0, 1, 1], [], []>, precision = #tpu.contract_precision<fp32>} : vector<16x24xf32>, vector<24x32xf32>, vector<16x32xf32> -> vector<16x32xf32>
    %137 = arith.addf %90, %136 : vector<16x32xf32>
    %c0_146 = arith.constant 0 : index
    %c0_147 = arith.constant 0 : index
    %c0_148 = arith.constant 0 : index
    %c0_149 = arith.constant 0 : index
    %138 = vector.load %arg17[%c0_146, %c0_147, %c0_148, %c0_149] : memref<2x1x4x4xf32, #tpu.memory_space<vmem>>, vector<2x1x4x4xf32>
    %139 = vector.extract_strided_slice %138 {offsets = [0, 0, 0, 0], sizes = [1, 1, 4, 4], strides = [1, 1, 1, 1]} : vector<2x1x4x4xf32> to vector<1x1x4x4xf32>
    %140 = vector.shape_cast %139 : vector<1x1x4x4xf32> to vector<4x4xf32>
    %c0_150 = arith.constant 0 : index
    %c0_151 = arith.constant 0 : index
    %141 = vector.load %arg32[%c0_150, %c0_151] : memref<4x8xf32, #tpu.memory_space<vmem>>, vector<4x4xf32>
    tpu.vector_store %arg32[%c0_150, %c0_151], %140 {strides = array<i32>} : memref<4x8xf32, #tpu.memory_space<vmem>>, vector<4x4xf32>,
    %142 = vector.extract_strided_slice %138 {offsets = [1, 0, 0, 0], sizes = [1, 1, 4, 4], strides = [1, 1, 1, 1]} : vector<2x1x4x4xf32> to vector<1x1x4x4xf32>
    %143 = vector.shape_cast %142 : vector<1x1x4x4xf32> to vector<4x4xf32>
    %c0_152 = arith.constant 0 : index
    %c4 = arith.constant 4 : index
    %144 = vector.load %arg32[%c0_152, %c4] : memref<4x8xf32, #tpu.memory_space<vmem>>, vector<4x4xf32>
    tpu.vector_store %arg32[%c0_152, %c4], %143 {strides = array<i32>} : memref<4x8xf32, #tpu.memory_space<vmem>>, vector<4x4xf32>,
    %c0_153 = arith.constant 0 : index
    %c0_154 = arith.constant 0 : index
    %145 = vector.load %arg32[%c0_153, %c0_154] : memref<4x8xf32, #tpu.memory_space<vmem>>, vector<4x8xf32>
    %c0_155 = arith.constant 0 : index
    %c0_156 = arith.constant 0 : index
    %c0_157 = arith.constant 0 : index
    %146 = vector.load %arg18[%c0_155, %c0_156, %c0_157] : memref<3x4x4xf32, #tpu.memory_space<vmem>>, vector<1x4x4xf32>
    %147 = vector.shape_cast %146 : vector<1x4x4xf32> to vector<4x4xf32>
    %c0_158 = arith.constant 0 : index
    %c0_159 = arith.constant 0 : index
    %c0_160 = arith.constant 0 : index
    %148 = vector.load %arg19[%c0_158, %c0_159, %c0_160] : memref<3x8x8xf32, #tpu.memory_space<vmem>>, vector<1x8x8xf32>
    %149 = vector.shape_cast %148 : vector<1x8x8xf32> to vector<8x8xf32>
    %cst_161 = arith.constant dense<0.000000e+00> : vector<4x8xf32>
    %150 = tpu.matmul %145, %149, %cst_161 {dimension_numbers = #tpu.dot_dimension_numbers<[1], [0], [0], [1], [0, 0, 1, 1], [], []>, precision = #tpu.contract_precision<fp32>} : vector<4x8xf32>, vector<8x8xf32>, vector<4x8xf32> -> vector<4x8xf32>
    %cst_162 = arith.constant dense<0.000000e+00> : vector<4x8xf32>
    %151 = tpu.matmul %147, %150, %cst_162 {dimension_numbers = #tpu.dot_dimension_numbers<[1], [0], [0], [1], [0, 0, 1, 1], [], []>, precision = #tpu.contract_precision<fp32>} : vector<4x4xf32>, vector<4x8xf32>, vector<4x8xf32> -> vector<4x8xf32>
    %c1_163 = arith.constant 1 : index
    %c0_164 = arith.constant 0 : index
    %c0_165 = arith.constant 0 : index
    %152 = vector.load %arg18[%c1_163, %c0_164, %c0_165] : memref<3x4x4xf32, #tpu.memory_space<vmem>>, vector<1x4x4xf32>
    %153 = vector.shape_cast %152 : vector<1x4x4xf32> to vector<4x4xf32>
    %c1_166 = arith.constant 1 : index
    %c0_167 = arith.constant 0 : index
    %c0_168 = arith.constant 0 : index
    %154 = vector.load %arg19[%c1_166, %c0_167, %c0_168] : memref<3x8x8xf32, #tpu.memory_space<vmem>>, vector<1x8x8xf32>
    %155 = vector.shape_cast %154 : vector<1x8x8xf32> to vector<8x8xf32>
    %cst_169 = arith.constant dense<0.000000e+00> : vector<4x8xf32>
    %156 = tpu.matmul %145, %155, %cst_169 {dimension_numbers = #tpu.dot_dimension_numbers<[1], [0], [0], [1], [0, 0, 1, 1], [], []>, precision = #tpu.contract_precision<fp32>} : vector<4x8xf32>, vector<8x8xf32>, vector<4x8xf32> -> vector<4x8xf32>
    %cst_170 = arith.constant dense<0.000000e+00> : vector<4x8xf32>
    %157 = tpu.matmul %153, %156, %cst_170 {dimension_numbers = #tpu.dot_dimension_numbers<[1], [0], [0], [1], [0, 0, 1, 1], [], []>, precision = #tpu.contract_precision<fp32>} : vector<4x4xf32>, vector<4x8xf32>, vector<4x8xf32> -> vector<4x8xf32>
    %158 = arith.addf %151, %157 : vector<4x8xf32>
    %c2_171 = arith.constant 2 : index
    %c0_172 = arith.constant 0 : index
    %c0_173 = arith.constant 0 : index
    %159 = vector.load %arg18[%c2_171, %c0_172, %c0_173] : memref<3x4x4xf32, #tpu.memory_space<vmem>>, vector<1x4x4xf32>
    %160 = vector.shape_cast %159 : vector<1x4x4xf32> to vector<4x4xf32>
    %c2_174 = arith.constant 2 : index
    %c0_175 = arith.constant 0 : index
    %c0_176 = arith.constant 0 : index
    %161 = vector.load %arg19[%c2_174, %c0_175, %c0_176] : memref<3x8x8xf32, #tpu.memory_space<vmem>>, vector<1x8x8xf32>
    %162 = vector.shape_cast %161 : vector<1x8x8xf32> to vector<8x8xf32>
    %cst_177 = arith.constant dense<0.000000e+00> : vector<4x8xf32>
    %163 = tpu.matmul %145, %162, %cst_177 {dimension_numbers = #tpu.dot_dimension_numbers<[1], [0], [0], [1], [0, 0, 1, 1], [], []>, precision = #tpu.contract_precision<fp32>} : vector<4x8xf32>, vector<8x8xf32>, vector<4x8xf32> -> vector<4x8xf32>
    %cst_178 = arith.constant dense<0.000000e+00> : vector<4x8xf32>
    %164 = tpu.matmul %160, %163, %cst_178 {dimension_numbers = #tpu.dot_dimension_numbers<[1], [0], [0], [1], [0, 0, 1, 1], [], []>, precision = #tpu.contract_precision<fp32>} : vector<4x4xf32>, vector<4x8xf32>, vector<4x8xf32> -> vector<4x8xf32>
    %165 = arith.addf %158, %164 : vector<4x8xf32>
    %c3 = arith.constant 3 : index
    %166 = memref.load %arg0[%c3] : memref<5xf32, #tpu.memory_space<smem>>
    %167 = vector.broadcast %166 : f32 to vector<4x8xf32>
    %168 = arith.addf %165, %167 : vector<4x8xf32>
    %cst_179 = arith.constant 0.000000e+00 : f32
    %169 = vector.broadcast %cst_179 : f32 to vector<4x8xf32>
    %170 = arith.maximumf %168, %169 : vector<4x8xf32>
    %c0_180 = arith.constant 0 : index
    %c0_181 = arith.constant 0 : index
    %171 = vector.load %arg20[%c0_180, %c0_181] : memref<16x4xf32, #tpu.memory_space<vmem>>, vector<16x4xf32>
    %cst_182 = arith.constant dense<0.000000e+00> : vector<16x8xf32>
    %172 = tpu.matmul %171, %170, %cst_182 {dimension_numbers = #tpu.dot_dimension_numbers<[1], [0], [0], [1], [0, 0, 1, 1], [], []>, precision = #tpu.contract_precision<fp32>} : vector<16x4xf32>, vector<4x8xf32>, vector<16x8xf32> -> vector<16x8xf32>
    %c0_183 = arith.constant 0 : index
    %c0_184 = arith.constant 0 : index
    %c0_185 = arith.constant 0 : index
    %173 = vector.load %arg21[%c0_183, %c0_184, %c0_185] : memref<3x8x32xf32, #tpu.memory_space<vmem>>, vector<1x8x32xf32>
    %174 = vector.shape_cast %173 : vector<1x8x32xf32> to vector<8x32xf32>
    %cst_186 = arith.constant dense<0.000000e+00> : vector<16x32xf32>
    %175 = tpu.matmul %172, %174, %cst_186 {dimension_numbers = #tpu.dot_dimension_numbers<[1], [0], [0], [1], [0, 0, 1, 1], [], []>, precision = #tpu.contract_precision<fp32>} : vector<16x8xf32>, vector<8x32xf32>, vector<16x32xf32> -> vector<16x32xf32>
    %176 = arith.addf %129, %175 : vector<16x32xf32>
    %c1_187 = arith.constant 1 : index
    %c0_188 = arith.constant 0 : index
    %c0_189 = arith.constant 0 : index
    %177 = vector.load %arg21[%c1_187, %c0_188, %c0_189] : memref<3x8x32xf32, #tpu.memory_space<vmem>>, vector<1x8x32xf32>
    %178 = vector.shape_cast %177 : vector<1x8x32xf32> to vector<8x32xf32>
    %cst_190 = arith.constant dense<0.000000e+00> : vector<16x32xf32>
    %179 = tpu.matmul %172, %178, %cst_190 {dimension_numbers = #tpu.dot_dimension_numbers<[1], [0], [0], [1], [0, 0, 1, 1], [], []>, precision = #tpu.contract_precision<fp32>} : vector<16x8xf32>, vector<8x32xf32>, vector<16x32xf32> -> vector<16x32xf32>
    %180 = arith.addf %133, %179 : vector<16x32xf32>
    %c2_191 = arith.constant 2 : index
    %c0_192 = arith.constant 0 : index
    %c0_193 = arith.constant 0 : index
    %181 = vector.load %arg21[%c2_191, %c0_192, %c0_193] : memref<3x8x32xf32, #tpu.memory_space<vmem>>, vector<1x8x32xf32>
    %182 = vector.shape_cast %181 : vector<1x8x32xf32> to vector<8x32xf32>
    %cst_194 = arith.constant dense<0.000000e+00> : vector<16x32xf32>
    %183 = tpu.matmul %172, %182, %cst_194 {dimension_numbers = #tpu.dot_dimension_numbers<[1], [0], [0], [1], [0, 0, 1, 1], [], []>, precision = #tpu.contract_precision<fp32>} : vector<16x8xf32>, vector<8x32xf32>, vector<16x32xf32> -> vector<16x32xf32>
    %184 = arith.addf %137, %183 : vector<16x32xf32>
    %c0_195 = arith.constant 0 : index
    %c0_196 = arith.constant 0 : index
    %c0_197 = arith.constant 0 : index
    %c0_198 = arith.constant 0 : index
    %185 = vector.load %arg22[%c0_195, %c0_196, %c0_197, %c0_198] : memref<2x1x16x16xf32, #tpu.memory_space<vmem>>, vector<2x1x16x16xf32>
    %186 = vector.extract_strided_slice %185 {offsets = [0, 0, 0, 0], sizes = [1, 1, 16, 16], strides = [1, 1, 1, 1]} : vector<2x1x16x16xf32> to vector<1x1x16x16xf32>
    %187 = vector.shape_cast %186 : vector<1x1x16x16xf32> to vector<16x16xf32>
    %c0_199 = arith.constant 0 : index
    %c0_200 = arith.constant 0 : index
    %188 = vector.load %arg33[%c0_199, %c0_200] : memref<16x32xf32, #tpu.memory_space<vmem>>, vector<16x16xf32>
    tpu.vector_store %arg33[%c0_199, %c0_200], %187 {strides = array<i32>} : memref<16x32xf32, #tpu.memory_space<vmem>>, vector<16x16xf32>,
    %189 = vector.extract_strided_slice %185 {offsets = [1, 0, 0, 0], sizes = [1, 1, 16, 16], strides = [1, 1, 1, 1]} : vector<2x1x16x16xf32> to vector<1x1x16x16xf32>
    %190 = vector.shape_cast %189 : vector<1x1x16x16xf32> to vector<16x16xf32>
    %c0_201 = arith.constant 0 : index
    %c16_202 = arith.constant 16 : index
    %191 = vector.load %arg33[%c0_201, %c16_202] : memref<16x32xf32, #tpu.memory_space<vmem>>, vector<16x16xf32>
    tpu.vector_store %arg33[%c0_201, %c16_202], %190 {strides = array<i32>} : memref<16x32xf32, #tpu.memory_space<vmem>>, vector<16x16xf32>,
    %c0_203 = arith.constant 0 : index
    %c0_204 = arith.constant 0 : index
    %192 = vector.load %arg33[%c0_203, %c0_204] : memref<16x32xf32, #tpu.memory_space<vmem>>, vector<16x32xf32>
    %c0_205 = arith.constant 0 : index
    %c0_206 = arith.constant 0 : index
    %c0_207 = arith.constant 0 : index
    %193 = vector.load %arg23[%c0_205, %c0_206, %c0_207] : memref<3x16x16xf32, #tpu.memory_space<vmem>>, vector<1x16x16xf32>
    %194 = vector.shape_cast %193 : vector<1x16x16xf32> to vector<16x16xf32>
    %c0_208 = arith.constant 0 : index
    %c0_209 = arith.constant 0 : index
    %c0_210 = arith.constant 0 : index
    %195 = vector.load %arg24[%c0_208, %c0_209, %c0_210] : memref<3x32x32xf32, #tpu.memory_space<vmem>>, vector<1x32x32xf32>
    %196 = vector.shape_cast %195 : vector<1x32x32xf32> to vector<32x32xf32>
    %cst_211 = arith.constant dense<0.000000e+00> : vector<16x32xf32>
    %197 = tpu.matmul %192, %196, %cst_211 {dimension_numbers = #tpu.dot_dimension_numbers<[1], [0], [0], [1], [0, 0, 1, 1], [], []>, precision = #tpu.contract_precision<fp32>} : vector<16x32xf32>, vector<32x32xf32>, vector<16x32xf32> -> vector<16x32xf32>
    %cst_212 = arith.constant dense<0.000000e+00> : vector<16x32xf32>
    %198 = tpu.matmul %194, %197, %cst_212 {dimension_numbers = #tpu.dot_dimension_numbers<[1], [0], [0], [1], [0, 0, 1, 1], [], []>, precision = #tpu.contract_precision<fp32>} : vector<16x16xf32>, vector<16x32xf32>, vector<16x32xf32> -> vector<16x32xf32>
    %c1_213 = arith.constant 1 : index
    %c0_214 = arith.constant 0 : index
    %c0_215 = arith.constant 0 : index
    %199 = vector.load %arg23[%c1_213, %c0_214, %c0_215] : memref<3x16x16xf32, #tpu.memory_space<vmem>>, vector<1x16x16xf32>
    %200 = vector.shape_cast %199 : vector<1x16x16xf32> to vector<16x16xf32>
    %c1_216 = arith.constant 1 : index
    %c0_217 = arith.constant 0 : index
    %c0_218 = arith.constant 0 : index
    %201 = vector.load %arg24[%c1_216, %c0_217, %c0_218] : memref<3x32x32xf32, #tpu.memory_space<vmem>>, vector<1x32x32xf32>
    %202 = vector.shape_cast %201 : vector<1x32x32xf32> to vector<32x32xf32>
    %cst_219 = arith.constant dense<0.000000e+00> : vector<16x32xf32>
    %203 = tpu.matmul %192, %202, %cst_219 {dimension_numbers = #tpu.dot_dimension_numbers<[1], [0], [0], [1], [0, 0, 1, 1], [], []>, precision = #tpu.contract_precision<fp32>} : vector<16x32xf32>, vector<32x32xf32>, vector<16x32xf32> -> vector<16x32xf32>
    %cst_220 = arith.constant dense<0.000000e+00> : vector<16x32xf32>
    %204 = tpu.matmul %200, %203, %cst_220 {dimension_numbers = #tpu.dot_dimension_numbers<[1], [0], [0], [1], [0, 0, 1, 1], [], []>, precision = #tpu.contract_precision<fp32>} : vector<16x16xf32>, vector<16x32xf32>, vector<16x32xf32> -> vector<16x32xf32>
    %205 = arith.addf %198, %204 : vector<16x32xf32>
    %c2_221 = arith.constant 2 : index
    %c0_222 = arith.constant 0 : index
    %c0_223 = arith.constant 0 : index
    %206 = vector.load %arg23[%c2_221, %c0_222, %c0_223] : memref<3x16x16xf32, #tpu.memory_space<vmem>>, vector<1x16x16xf32>
    %207 = vector.shape_cast %206 : vector<1x16x16xf32> to vector<16x16xf32>
    %c2_224 = arith.constant 2 : index
    %c0_225 = arith.constant 0 : index
    %c0_226 = arith.constant 0 : index
    %208 = vector.load %arg24[%c2_224, %c0_225, %c0_226] : memref<3x32x32xf32, #tpu.memory_space<vmem>>, vector<1x32x32xf32>
    %209 = vector.shape_cast %208 : vector<1x32x32xf32> to vector<32x32xf32>
    %cst_227 = arith.constant dense<0.000000e+00> : vector<16x32xf32>
    %210 = tpu.matmul %192, %209, %cst_227 {dimension_numbers = #tpu.dot_dimension_numbers<[1], [0], [0], [1], [0, 0, 1, 1], [], []>, precision = #tpu.contract_precision<fp32>} : vector<16x32xf32>, vector<32x32xf32>, vector<16x32xf32> -> vector<16x32xf32>
    %cst_228 = arith.constant dense<0.000000e+00> : vector<16x32xf32>
    %211 = tpu.matmul %207, %210, %cst_228 {dimension_numbers = #tpu.dot_dimension_numbers<[1], [0], [0], [1], [0, 0, 1, 1], [], []>, precision = #tpu.contract_precision<fp32>} : vector<16x16xf32>, vector<16x32xf32>, vector<16x32xf32> -> vector<16x32xf32>
    %212 = arith.addf %205, %211 : vector<16x32xf32>
    %c4_229 = arith.constant 4 : index
    %213 = memref.load %arg0[%c4_229] : memref<5xf32, #tpu.memory_space<smem>>
    %214 = vector.broadcast %213 : f32 to vector<16x32xf32>
    %215 = arith.addf %212, %214 : vector<16x32xf32>
    %cst_230 = arith.constant 0.000000e+00 : f32
    %216 = vector.broadcast %cst_230 : f32 to vector<16x32xf32>
    %217 = arith.maximumf %215, %216 : vector<16x32xf32>
    %c0_231 = arith.constant 0 : index
    %c0_232 = arith.constant 0 : index
    %218 = vector.load %arg25[%c0_231, %c0_232] : memref<16x16xf32, #tpu.memory_space<vmem>>, vector<16x16xf32>
    %cst_233 = arith.constant dense<0.000000e+00> : vector<16x32xf32>
    %219 = tpu.matmul %218, %217, %cst_233 {dimension_numbers = #tpu.dot_dimension_numbers<[1], [0], [0], [1], [0, 0, 1, 1], [], []>, precision = #tpu.contract_precision<fp32>} : vector<16x16xf32>, vector<16x32xf32>, vector<16x32xf32> -> vector<16x32xf32>
    %c0_234 = arith.constant 0 : index
    %c0_235 = arith.constant 0 : index
    %c0_236 = arith.constant 0 : index
    %220 = vector.load %arg26[%c0_234, %c0_235, %c0_236] : memref<3x32x32xf32, #tpu.memory_space<vmem>>, vector<1x32x32xf32>
    %221 = vector.shape_cast %220 : vector<1x32x32xf32> to vector<32x32xf32>
    %cst_237 = arith.constant dense<0.000000e+00> : vector<16x32xf32>
    %222 = tpu.matmul %219, %221, %cst_237 {dimension_numbers = #tpu.dot_dimension_numbers<[1], [0], [0], [1], [0, 0, 1, 1], [], []>, precision = #tpu.contract_precision<fp32>} : vector<16x32xf32>, vector<32x32xf32>, vector<16x32xf32> -> vector<16x32xf32>
    %223 = arith.addf %176, %222 : vector<16x32xf32>
    %c1_238 = arith.constant 1 : index
    %c0_239 = arith.constant 0 : index
    %c0_240 = arith.constant 0 : index
    %224 = vector.load %arg26[%c1_238, %c0_239, %c0_240] : memref<3x32x32xf32, #tpu.memory_space<vmem>>, vector<1x32x32xf32>
    %225 = vector.shape_cast %224 : vector<1x32x32xf32> to vector<32x32xf32>
    %cst_241 = arith.constant dense<0.000000e+00> : vector<16x32xf32>
    %226 = tpu.matmul %219, %225, %cst_241 {dimension_numbers = #tpu.dot_dimension_numbers<[1], [0], [0], [1], [0, 0, 1, 1], [], []>, precision = #tpu.contract_precision<fp32>} : vector<16x32xf32>, vector<32x32xf32>, vector<16x32xf32> -> vector<16x32xf32>
    %227 = arith.addf %180, %226 : vector<16x32xf32>
    %c2_242 = arith.constant 2 : index
    %c0_243 = arith.constant 0 : index
    %c0_244 = arith.constant 0 : index
    %228 = vector.load %arg26[%c2_242, %c0_243, %c0_244] : memref<3x32x32xf32, #tpu.memory_space<vmem>>, vector<1x32x32xf32>
    %229 = vector.shape_cast %228 : vector<1x32x32xf32> to vector<32x32xf32>
    %cst_245 = arith.constant dense<0.000000e+00> : vector<16x32xf32>
    %230 = tpu.matmul %219, %229, %cst_245 {dimension_numbers = #tpu.dot_dimension_numbers<[1], [0], [0], [1], [0, 0, 1, 1], [], []>, precision = #tpu.contract_precision<fp32>} : vector<16x32xf32>, vector<32x32xf32>, vector<16x32xf32> -> vector<16x32xf32>
    %231 = arith.addf %184, %230 : vector<16x32xf32>
    %c0_246 = arith.constant 0 : index
    %c0_247 = arith.constant 0 : index
    %c0_248 = arith.constant 0 : index
    %232 = vector.load %arg27[%c0_246, %c0_247, %c0_248] : memref<3x16x16xf32, #tpu.memory_space<vmem>>, vector<1x16x16xf32>
    %233 = vector.shape_cast %232 : vector<1x16x16xf32> to vector<16x16xf32>
    %cst_249 = arith.constant dense<0.000000e+00> : vector<16x32xf32>
    %234 = tpu.matmul %233, %223, %cst_249 {dimension_numbers = #tpu.dot_dimension_numbers<[1], [0], [0], [1], [0, 0, 1, 1], [], []>, precision = #tpu.contract_precision<fp32>} : vector<16x16xf32>, vector<16x32xf32>, vector<16x32xf32> -> vector<16x32xf32>
    %c1_250 = arith.constant 1 : index
    %c0_251 = arith.constant 0 : index
    %c0_252 = arith.constant 0 : index
    %235 = vector.load %arg27[%c1_250, %c0_251, %c0_252] : memref<3x16x16xf32, #tpu.memory_space<vmem>>, vector<1x16x16xf32>
    %236 = vector.shape_cast %235 : vector<1x16x16xf32> to vector<16x16xf32>
    %cst_253 = arith.constant dense<0.000000e+00> : vector<16x32xf32>
    %237 = tpu.matmul %236, %227, %cst_253 {dimension_numbers = #tpu.dot_dimension_numbers<[1], [0], [0], [1], [0, 0, 1, 1], [], []>, precision = #tpu.contract_precision<fp32>} : vector<16x16xf32>, vector<16x32xf32>, vector<16x32xf32> -> vector<16x32xf32>
    %238 = arith.addf %234, %237 : vector<16x32xf32>
    %c2_254 = arith.constant 2 : index
    %c0_255 = arith.constant 0 : index
    %c0_256 = arith.constant 0 : index
    %239 = vector.load %arg27[%c2_254, %c0_255, %c0_256] : memref<3x16x16xf32, #tpu.memory_space<vmem>>, vector<1x16x16xf32>
    %240 = vector.shape_cast %239 : vector<1x16x16xf32> to vector<16x16xf32>
    %cst_257 = arith.constant dense<0.000000e+00> : vector<16x32xf32>
    %241 = tpu.matmul %240, %231, %cst_257 {dimension_numbers = #tpu.dot_dimension_numbers<[1], [0], [0], [1], [0, 0, 1, 1], [], []>, precision = #tpu.contract_precision<fp32>} : vector<16x16xf32>, vector<16x32xf32>, vector<16x32xf32> -> vector<16x32xf32>
    %242 = arith.addf %238, %241 : vector<16x32xf32>
    %c0_258 = arith.constant 0 : index
    %243 = memref.load %arg1[%c0_258] : memref<1xf32, #tpu.memory_space<smem>>
    %244 = vector.broadcast %243 : f32 to vector<16x32xf32>
    %245 = arith.addf %242, %244 : vector<16x32xf32>
    %cst_259 = arith.constant 0.000000e+00 : f32
    %246 = vector.broadcast %cst_259 : f32 to vector<16x32xf32>
    %247 = arith.subf %246, %245 : vector<16x32xf32>
    %248 = math.exp %247 : vector<16x32xf32>
    %cst_260 = arith.constant 1.000000e+00 : f32
    %249 = vector.broadcast %cst_260 : f32 to vector<16x32xf32>
    %250 = arith.addf %249, %248 : vector<16x32xf32>
    %cst_261 = arith.constant 1.000000e+00 : f32
    %251 = vector.broadcast %cst_261 : f32 to vector<16x32xf32>
    %252 = arith.divf %251, %250 : vector<16x32xf32>
    %253 = vector.extract_strided_slice %252 {offsets = [0, 0], sizes = [16, 16], strides = [1, 1]} : vector<16x32xf32> to vector<16x16xf32>
    %254 = vector.shape_cast %253 : vector<16x16xf32> to vector<1x16x16xf32>
    %c0_262 = arith.constant 0 : index
    %c0_263 = arith.constant 0 : index
    %c0_264 = arith.constant 0 : index
    %c0_265 = arith.constant 0 : index
    %255 = vector.load %arg28[%c0_262, %c0_263, %c0_264, %c0_265] : memref<2x1x16x16xf32, #tpu.memory_space<vmem>>, vector<1x1x16x16xf32>
    %256 = vector.shape_cast %255 : vector<1x1x16x16xf32> to vector<1x16x16xf32>
    %257 = vector.shape_cast %254 : vector<1x16x16xf32> to vector<1x1x16x16xf32>
    tpu.vector_store %arg28[%c0_262, %c0_263, %c0_264, %c0_265], %257 {strides = array<i32>} : memref<2x1x16x16xf32, #tpu.memory_space<vmem>>, vector<1x1x16x16xf32>,
    %258 = vector.extract_strided_slice %252 {offsets = [0, 16], sizes = [16, 16], strides = [1, 1]} : vector<16x32xf32> to vector<16x16xf32>
    %259 = vector.shape_cast %258 : vector<16x16xf32> to vector<1x16x16xf32>
    %c1_266 = arith.constant 1 : index
    %c0_267 = arith.constant 0 : index
    %c0_268 = arith.constant 0 : index
    %c0_269 = arith.constant 0 : index
    %260 = vector.load %arg28[%c1_266, %c0_267, %c0_268, %c0_269] : memref<2x1x16x16xf32, #tpu.memory_space<vmem>>, vector<1x1x16x16xf32>
    %261 = vector.shape_cast %260 : vector<1x1x16x16xf32> to vector<1x16x16xf32>
    %262 = vector.shape_cast %259 : vector<1x16x16xf32> to vector<1x1x16x16xf32>
    tpu.vector_store %arg28[%c1_266, %c0_267, %c0_268, %c0_269], %262 {strides = array<i32>} : memref<2x1x16x16xf32, #tpu.memory_space<vmem>>, vector<1x1x16x16xf32>,
    return
  }
}

</mosaic_0001>

<bundles_post_ra>
// kernel: tpu_custom_call.1
= control target key start
LH: loop header
LB: loop body
LE: loop exit
PB: predicated region body
PF: predicated region fallthrough
CT: control target
= control target key end

     0   :  { %s35634_s0 = inlined_call_operand.vmem [shape: f32[5], index: 0, kind: input, shape index: {}]   ;;  %s35635_s1 = inlined_call_operand.<no memory space> [shape: f32[1], index: 1, kind: input, shape index: {}]   ;;  %s35636_s2 = inlined_call_operand.hbm [shape: f32[2,1,8,8], index: 2, kind: input, shape index: {}]   ;;  %s35637_s3 = inlined_call_operand.hbm [shape: f32[3,8,8], index: 3, kind: input, shape index: {}]   ;;  %s35638_s4 = inlined_call_operand.hbm [shape: f32[3,16,16], index: 4, kind: input, shape index: {}]   ;;  %s35639_s5 = inlined_call_operand.vmem [shape: f32[16,8], index: 5, kind: input, shape index: {}]   ;;  %s35640_s6 = inlined_call_operand.hbm [shape: f32[3,16,32], index: 6, kind: input, shape index: {}]   ;;  %s35641_s7 = inlined_call_operand.hbm [shape: f32[2,1,16,16], index: 7, kind: input, shape index: {}]   ;;  %s35642_s8 = inlined_call_operand.hbm [shape: f32[3,16,16], index: 8, kind: input, shape index: {}]   ;;  %s35643_s9 = inlined_call_operand.vmem [shape: f32[3,32,32], index: 9, kind: input, shape index: {}]   ;;  %s35644_s10 = inlined_call_operand.hbm [shape: f32[16,16], index: 10, kind: input, shape index: {}]   ;;  %s35645_s11 = inlined_call_operand.hbm [shape: f32[3,32,32], index: 11, kind: input, shape index: {}]   ;;  %s35646_s12 = inlined_call_operand.vmem [shape: f32[2,1,12,12], index: 12, kind: input, shape index: {}]   ;;  %s35647_s13 = inlined_call_operand.hbm [shape: f32[3,12,12], index: 13, kind: input, shape index: {}]   ;;  %s35648_s14 = inlined_call_operand.hbm [shape: f32[3,24,24], index: 14, kind: input, shape index: {}]   ;;  %s35649_s15 = inlined_call_operand.hbm [shape: f32[16,12], index: 15, kind: input, shape index: {}]   ;;  %s35650_s16 = inlined_call_operand.hbm [shape: f32[3,24,32], index: 16, kind: input, shape index: {}]   ;;  %s35651_s17 = inlined_call_operand.hbm [shape: f32[2,1,4,4], index: 17, kind: input, shape index: {}]   ;;  %s35652_s18 = inlined_call_operand.hbm [shape: f32[3,4,4], index: 18, kind: input, shape index: {}]   ;;  %s35653_s19 = inlined_call_operand.hbm [shape: f32[3,8,8], index: 19, kind: input, shape index: {}]   ;;  %s35654_s20 = inlined_call_operand.vmem [shape: f32[16,4], index: 20, kind: input, shape index: {}]   ;;  %s35655_s21 = inlined_call_operand.hbm [shape: f32[3,8,32], index: 21, kind: input, shape index: {}]   ;;  %s35656_s22 = inlined_call_operand.hbm [shape: f32[2,1,16,16], index: 22, kind: input, shape index: {}]   ;;  %s35657_s23 = inlined_call_operand.hbm [shape: f32[3,16,16], index: 23, kind: input, shape index: {}]   ;;  %s35658_s24 = inlined_call_operand.hbm [shape: f32[3,32,32], index: 24, kind: input, shape index: {}]   ;;  %s35659_s25 = inlined_call_operand.hbm [shape: f32[16,16], index: 25, kind: input, shape index: {}]   ;;  %s35660_s26 = inlined_call_operand.vmem [shape: f32[3,32,32], index: 26, kind: input, shape index: {}]   ;;  %s35661_s27 = inlined_call_operand.hbm [shape: f32[3,16,16], index: 27, kind: input, shape index: {}]   ;;  %s35662_s28 = inlined_call_operand.hbm [shape: f32[2,1,16,16], index: 28, kind: output, shape index: {}]  }
   0x1   :  { %35677 = sst [smem:[#allocation57_spill]] %s35634_s0 }
   0x2   :  { %35678 = sst [smem:[#allocation58_spill]] %s35635_s1 }
   0x3   :  { %35679 = sst [smem:[#allocation59_spill]] %s35636_s2 }
   0x4   :  { %35680 = sst [smem:[#allocation60_spill]] %s35637_s3 }
   0x5   :  { %35681 = sst [smem:[#allocation61_spill]] %s35638_s4 }
   0x6   :  { %35682 = sst [smem:[#allocation62_spill]] %s35639_s5 }
   0x7   :  { %35683 = sst [smem:[#allocation63_spill]] %s35640_s6 }
   0x8   :  { %35684 = sst [smem:[#allocation64_spill]] %s35641_s7 }
   0x9   :  { %35685 = sst [smem:[#allocation65_spill]] %s35642_s8 }
   0xa   :  { %35686 = sst [smem:[#allocation66_spill]] %s35643_s9 }
   0xb   :  { %35687 = sst [smem:[#allocation67_spill]] %s35644_s10 }
   0xc   :  { %35688 = sst [smem:[#allocation68_spill]] %s35645_s11 }
   0xd   :  { %35689 = sst [smem:[#allocation69_spill]] %s35646_s12 }
   0xe   :  { %35690 = sst [smem:[#allocation70_spill]] %s35654_s20 }
   0xf   :  { %35691 = sst [smem:[#allocation71_spill]] %s35660_s26 }
  0x10   :  { %35692 = sst [smem:[#allocation72_spill]] %s35662_s28 }
  0x11   :  { %34 = vsyncpa [#allocation11], 0 }
  0x12   :  { %35 = vsyncpa [#allocation9], 0 }
  0x13   :  { %36 = vsyncpa [#allocation14], 0 }
  0x14   :  { %37 = vsyncpa [#allocation17], 0 }
  0x15   :  { %38 = vsyncpa [#allocation20], 0 }
  0x16   :  { %39 = vsyncpa [#allocation23], 0 }
  0x17   :  { %40 = vsyncpa [#allocation26], 0 }
  0x18   :  { %41 = vsyncpa [#allocation29], 0 }
  0x19   :  { %42 = vsyncpa [#allocation32], 0 }
  0x1a   :  { %43 = vsyncpa [#allocation35], 0 }
  0x1b   :  { %44 = vsyncpa [#allocation38], 0 }
  0x1c   :  { %45 = vsyncpa [#allocation41], 0 }
  0x1d   :  { %46 = vsyncpa [#allocation10], 0  ;;  %s33249_s8 = smov [#allocation13]   ;;  %s33250_s9 = smov [#allocation16]  }
  0x1e   :  { %s76_s5 = sshll.u32 %s33249_s8, 4  ;;  %s102_s30 = sshll.u32 %s33250_s9, 4  ;;  %s77_s5 = int_to_ptr.vmem [resolvable:$true] %s76_s5  ;;  %s33427_s30 = int_to_ptr.vmem [resolvable:$true] %s102_s30 }
  0x1f   :  { %s35693_s10 = sld [smem:[#allocation60_spill]] }
  0x25   :  { %s32727_s0 = scalar_lea.hbm %s35693_s10, 384 }
  0x26   :  { %p32728_p0 = scmp.ne.s32.totalorder %s35693_s10, %s32727_s0  ;;  %p32731_p1 = scmp.lt.u32.totalorder %s32727_s0, %s35693_s10 }
  0x28   :  { %p32733_p2 = pnand %p32731_p1, %p32728_p0 }
  0x2a   :  { %32736 = shalt.err (!%p32733_p2)
}
  0x2b   :  { %s32737_s12 = scalar_lea.vmem %s77_s5, 384  ;;  %p32742_p4 = scmp.lt.s32.totalorder %s77_s5, %s77_s5 }
  0x2c   :  { %p32738_p3 = scmp.ne.s32.totalorder %s77_s5, %s32737_s12  ;;  %p32743_p5 = scmp.lt.s32.totalorder %s32737_s12, %s32737_s12 }
  0x2e   :  { %p32744_p6 = por %p32743_p5, %p32742_p4 }
  0x30   :  { %p32745_p7 = pnand %p32744_p6, %p32738_p3 }
  0x32   :  { %32748 = shalt.err (!%p32745_p7)
}
  0x33   :  { %s33251_s1 = smov 128   ;;  %s33252_s4 = smov 8  }
  0x34   :  { %82 = dma.hbm_to_vmem [thread:$0]  %s35693_s10, 384, %s77_s5, [#allocation14], %s33251_s1, %s33251_s1, %s33252_s4  }
  0x35   :  { %s35694_s0 = sld [smem:[#allocation63_spill]] }
  0x3b   :  { %s32749_s11 = scalar_lea.hbm %s35694_s0, 768 }
  0x3c   :  { %p32750_p8 = scmp.ne.s32.totalorder %s35694_s0, %s32749_s11  ;;  %p32753_p9 = scmp.lt.u32.totalorder %s32749_s11, %s35694_s0 }
  0x3e   :  { %p32755_p10 = pnand %p32753_p9, %p32750_p8 }
  0x40   :  { %32758 = shalt.err (!%p32755_p10)
}
  0x41   :  { %s32759_s28 = scalar_lea.vmem %s33427_s30, 768  ;;  %p32764_p12 = scmp.lt.s32.totalorder %s33427_s30, %s33427_s30 }
  0x42   :  { %p32760_p11 = scmp.ne.s32.totalorder %s33427_s30, %s32759_s28  ;;  %p32765_p13 = scmp.lt.s32.totalorder %s32759_s28, %s32759_s28 }
  0x44   :  { %p32766_p0 = por %p32765_p13, %p32764_p12 }
  0x46   :  { %p32767_p1 = pnand %p32766_p0, %p32760_p11 }
  0x48   :  { %32770 = shalt.err (!%p32767_p1)
}
  0x49   :  { %108 = dma.hbm_to_vmem [thread:$0]  %s35694_s0, 768, %s33427_s30, [#allocation17], %s33251_s1, %s33251_s1, %s33252_s4  }
  0x4a   :  { %s33253_s8 = smov [#allocation19]   ;;  %s33254_s3 = smov [#allocation22]  }
  0x4b   :  { %s126_s9 = sshll.u32 %s33253_s8, 4  ;;  %s152_s6 = sshll.u32 %s33254_s3, 4  ;;  %s127_s9 = int_to_ptr.vmem [resolvable:$true] %s126_s9  ;;  %s33464_s6 = int_to_ptr.vmem [resolvable:$true] %s152_s6 }
  0x4c   :  { %s35695_s29 = sld [smem:[#allocation65_spill]] }
  0x52   :  { %s32771_s2 = scalar_lea.hbm %s35695_s29, 768 }
  0x53   :  { %p32772_p2 = scmp.ne.s32.totalorder %s35695_s29, %s32771_s2  ;;  %p32775_p3 = scmp.lt.u32.totalorder %s32771_s2, %s35695_s29 }
  0x55   :  { %p32777_p4 = pnand %p32775_p3, %p32772_p2 }
  0x57   :  { %32780 = shalt.err (!%p32777_p4)
}
  0x58   :  { %s32781_s30 = scalar_lea.vmem %s127_s9, 768  ;;  %p32786_p6 = scmp.lt.s32.totalorder %s127_s9, %s127_s9 }
  0x59   :  { %p32782_p5 = scmp.ne.s32.totalorder %s127_s9, %s32781_s30  ;;  %p32787_p7 = scmp.lt.s32.totalorder %s32781_s30, %s32781_s30 }
  0x5b   :  { %p32788_p8 = por %p32787_p7, %p32786_p6 }
  0x5d   :  { %p32789_p9 = pnand %p32788_p8, %p32782_p5 }
  0x5f   :  { %32792 = shalt.err (!%p32789_p9)
}
  0x60   :  { %132 = dma.hbm_to_vmem [thread:$0]  %s35695_s29, 768, %s127_s9, [#allocation20], %s33251_s1, %s33251_s1, %s33252_s4  }
  0x61   :  { %s35696_s20 = sld [smem:[#allocation68_spill]] }
  0x67   :  { %s32793_s26 = scalar_lea.hbm %s35696_s20, 1536 }
  0x68   :  { %p32794_p10 = scmp.ne.s32.totalorder %s35696_s20, %s32793_s26  ;;  %p32797_p11 = scmp.lt.u32.totalorder %s32793_s26, %s35696_s20 }
  0x6a   :  { %p32799_p12 = pnand %p32797_p11, %p32794_p10 }
  0x6c   :  { %32802 = shalt.err (!%p32799_p12)
}
  0x6d   :  { %s32803_s7 = scalar_lea.vmem %s33464_s6, 1536  ;;  %p32808_p0 = scmp.lt.s32.totalorder %s33464_s6, %s33464_s6 }
  0x6e   :  { %p32804_p13 = scmp.ne.s32.totalorder %s33464_s6, %s32803_s7  ;;  %p32809_p1 = scmp.lt.s32.totalorder %s32803_s7, %s32803_s7 }
  0x70   :  { %p32810_p2 = por %p32809_p1, %p32808_p0 }
  0x72   :  { %p32811_p3 = pnand %p32810_p2, %p32804_p13 }
  0x74   :  { %32814 = shalt.err (!%p32811_p3)
}
  0x75   :  { %158 = dma.hbm_to_vmem [thread:$0]  %s35696_s20, 1536, %s33464_s6, [#allocation23], %s33251_s1, %s33251_s1, %s33252_s4  }
  0x76   :  { %s33255_s12 = smov [#allocation25]   ;;  %s33256_s0 = smov [#allocation28]  }
  0x77   :  { %s178_s30 = sshll.u32 %s33255_s12, 4  ;;  %s202_s5 = sshll.u32 %s33256_s0, 4  ;;  %s179_s30 = int_to_ptr.vmem [resolvable:$true] %s178_s30  ;;  %s33501_s5 = int_to_ptr.vmem [resolvable:$true] %s202_s5 }
  0x78   :  { %s32815_s26 = scalar_lea.hbm %s35648_s14, 1152 }
  0x79   :  { %p32816_p4 = scmp.ne.s32.totalorder %s35648_s14, %s32815_s26  ;;  %p32819_p5 = scmp.lt.u32.totalorder %s32815_s26, %s35648_s14 }
  0x7b   :  { %p32821_p6 = pnand %p32819_p5, %p32816_p4 }
  0x7d   :  { %32824 = shalt.err (!%p32821_p6)
}
  0x7e   :  { %s32825_s6 = scalar_lea.vmem %s179_s30, 1152  ;;  %p32830_p8 = scmp.lt.s32.totalorder %s179_s30, %s179_s30 }
  0x7f   :  { %p32826_p7 = scmp.ne.s32.totalorder %s179_s30, %s32825_s6  ;;  %p32831_p9 = scmp.lt.s32.totalorder %s32825_s6, %s32825_s6 }
  0x81   :  { %p32832_p10 = por %p32831_p9, %p32830_p8 }
  0x83   :  { %p32833_p11 = pnand %p32832_p10, %p32826_p7 }
  0x85   :  { %32836 = shalt.err (!%p32833_p11)
}
  0x86   :  { %184 = dma.hbm_to_vmem [thread:$0]  %s35648_s14, 1152, %s179_s30, [#allocation26], %s33251_s1, %s33251_s1, %s33252_s4  }
  0x87   :  { %s32837_s12 = scalar_lea.hbm %s35650_s16, 1152 }
  0x88   :  { %p32838_p12 = scmp.ne.s32.totalorder %s35650_s16, %s32837_s12  ;;  %p32841_p13 = scmp.lt.u32.totalorder %s32837_s12, %s35650_s16 }
  0x8a   :  { %p32843_p0 = pnand %p32841_p13, %p32838_p12 }
  0x8c   :  { %32846 = shalt.err (!%p32843_p0)
}
  0x8d   :  { %s32847_s3 = scalar_lea.vmem %s33501_s5, 1152  ;;  %p32852_p2 = scmp.lt.s32.totalorder %s33501_s5, %s33501_s5 }
  0x8e   :  { %p32848_p1 = scmp.ne.s32.totalorder %s33501_s5, %s32847_s3  ;;  %p32853_p3 = scmp.lt.s32.totalorder %s32847_s3, %s32847_s3 }
  0x90   :  { %p32854_p4 = por %p32853_p3, %p32852_p2 }
  0x92   :  { %p32855_p5 = pnand %p32854_p4, %p32848_p1 }
  0x94   :  { %32858 = shalt.err (!%p32855_p5)
}
  0x95   :  { %208 = dma.hbm_to_vmem [thread:$0]  %s35650_s16, 1152, %s33501_s5, [#allocation29], %s33251_s1, %s33251_s1, %s33252_s4  }
  0x96   :  { %s33257_s11 = smov [#allocation31]   ;;  %s33258_s2 = smov [#allocation34]  }
  0x97   :  { %s226_s28 = sshll.u32 %s33257_s11, 4  ;;  %s252_s6 = sshll.u32 %s33258_s2, 4  ;;  %s227_s28 = int_to_ptr.vmem [resolvable:$true] %s226_s28  ;;  %s33538_s6 = int_to_ptr.vmem [resolvable:$true] %s252_s6 }
  0x98   :  { %s32859_s9 = scalar_lea.hbm %s35652_s18, 192 }
  0x99   :  { %p32860_p6 = scmp.ne.s32.totalorder %s35652_s18, %s32859_s9  ;;  %p32863_p7 = scmp.lt.u32.totalorder %s32859_s9, %s35652_s18 }
  0x9b   :  { %p32865_p8 = pnand %p32863_p7, %p32860_p6 }
  0x9d   :  { %32868 = shalt.err (!%p32865_p8)
}
  0x9e   :  { %s32869_s16 = scalar_lea.vmem %s227_s28, 192  ;;  %p32874_p10 = scmp.lt.s32.totalorder %s227_s28, %s227_s28 }
  0x9f   :  { %p32870_p9 = scmp.ne.s32.totalorder %s227_s28, %s32869_s16  ;;  %p32875_p11 = scmp.lt.s32.totalorder %s32869_s16, %s32869_s16 }
  0xa1   :  { %p32876_p12 = por %p32875_p11, %p32874_p10 }
  0xa3   :  { %p32877_p13 = pnand %p32876_p12, %p32870_p9 }
  0xa5   :  { %32880 = shalt.err (!%p32877_p13)
}
  0xa6   :  { %s33259_s5 = smov 64   ;;  %s33260_s8 = smov 4  }
  0xa7   :  { %232 = dma.hbm_to_vmem [thread:$0]  %s35652_s18, 192, %s227_s28, [#allocation32], %s33259_s5, %s33259_s5, %s33260_s8  }
  0xa8   :  { %s32881_s11 = scalar_lea.hbm %s35655_s21, 384 }
  0xa9   :  { %p32882_p0 = scmp.ne.s32.totalorder %s35655_s21, %s32881_s11  ;;  %p32885_p1 = scmp.lt.u32.totalorder %s32881_s11, %s35655_s21 }
  0xab   :  { %p32887_p2 = pnand %p32885_p1, %p32882_p0 }
  0xad   :  { %32890 = shalt.err (!%p32887_p2)
}
  0xae   :  { %s32891_s29 = scalar_lea.vmem %s33538_s6, 384  ;;  %p32896_p4 = scmp.lt.s32.totalorder %s33538_s6, %s33538_s6 }
  0xaf   :  { %p32892_p3 = scmp.ne.s32.totalorder %s33538_s6, %s32891_s29  ;;  %p32897_p5 = scmp.lt.s32.totalorder %s32891_s29, %s32891_s29 }
  0xb1   :  { %p32898_p6 = por %p32897_p5, %p32896_p4 }
  0xb3   :  { %p32899_p7 = pnand %p32898_p6, %p32892_p3 }
  0xb5   :  { %32902 = shalt.err (!%p32899_p7)
}
  0xb6   :  { %258 = dma.hbm_to_vmem [thread:$0]  %s35655_s21, 384, %s33538_s6, [#allocation35], %s33251_s1, %s33251_s1, %s33252_s4  }
  0xb7   :  { %s33261_s12 = smov [#allocation37]   ;;  %s33262_s10 = smov [#allocation40]  }
  0xb8   :  { %s276_s0 = sshll.u32 %s33261_s12, 4  ;;  %s300_s16 = sshll.u32 %s33262_s10, 4  ;;  %s277_s0 = int_to_ptr.vmem [resolvable:$true] %s276_s0  ;;  %s33575_s16 = int_to_ptr.vmem [resolvable:$true] %s300_s16 }
  0xb9   :  { %s32903_s14 = scalar_lea.hbm %s35657_s23, 768 }
  0xba   :  { %p32904_p8 = scmp.ne.s32.totalorder %s35657_s23, %s32903_s14  ;;  %p32907_p9 = scmp.lt.u32.totalorder %s32903_s14, %s35657_s23 }
  0xbc   :  { %p32909_p10 = pnand %p32907_p9, %p32904_p8 }
  0xbe   :  { %32912 = shalt.err (!%p32909_p10)
}
  0xbf   :  { %s32913_s21 = scalar_lea.vmem %s277_s0, 768  ;;  %p32918_p12 = scmp.lt.s32.totalorder %s277_s0, %s277_s0 }
  0xc0   :  { %p32914_p11 = scmp.ne.s32.totalorder %s277_s0, %s32913_s21  ;;  %p32919_p13 = scmp.lt.s32.totalorder %s32913_s21, %s32913_s21 }
  0xc2   :  { %p32920_p0 = por %p32919_p13, %p32918_p12 }
  0xc4   :  { %p32921_p1 = pnand %p32920_p0, %p32914_p11 }
  0xc6   :  { %32924 = shalt.err (!%p32921_p1)
}
  0xc7   :  { %282 = dma.hbm_to_vmem [thread:$0]  %s35657_s23, 768, %s277_s0, [#allocation38], %s33251_s1, %s33251_s1, %s33252_s4  }
  0xc8   :  { %s32925_s18 = scalar_lea.hbm %s35659_s25, 256 }
  0xc9   :  { %p32926_p2 = scmp.ne.s32.totalorder %s35659_s25, %s32925_s18  ;;  %p32929_p3 = scmp.lt.u32.totalorder %s32925_s18, %s35659_s25 }
  0xcb   :  { %p32931_p4 = pnand %p32929_p3, %p32926_p2 }
  0xcd   :  { %32934 = shalt.err (!%p32931_p4)
}
  0xce   :  { %s32935_s3 = scalar_lea.vmem %s33575_s16, 256  ;;  %p32940_p6 = scmp.lt.s32.totalorder %s33575_s16, %s33575_s16 }
  0xcf   :  { %p32936_p5 = scmp.ne.s32.totalorder %s33575_s16, %s32935_s3  ;;  %p32941_p7 = scmp.lt.s32.totalorder %s32935_s3, %s32935_s3 }
  0xd1   :  { %p32942_p8 = por %p32941_p7, %p32940_p6 }
  0xd3   :  { %p32943_p9 = pnand %p32942_p8, %p32936_p5 }
  0xd5   :  { %32946 = shalt.err (!%p32943_p9)
}
  0xd6   :  { %306 = dma.hbm_to_vmem [thread:$0]  %s35659_s25, 256, %s33575_s16, [#allocation41], %s33251_s1, %s33251_s1, %s33252_s4  }
  0xd7   :  { %s35697_s11 = sld [smem:[#allocation57_spill]] }
  0xdd   :  { %s53_s2 = sshll.u32 %s35697_s11, 4  ;;  %s54_s2 = int_to_ptr.vmem [resolvable:$true] %s53_s2 }
  0xde   :  { %s32947_s20 = scalar_lea.vmem %s54_s2, 16  ;;  %p32952_p11 = scmp.lt.s32.totalorder %s54_s2, %s54_s2 }
  0xdf   :  { %p32948_p10 = scmp.ne.s32.totalorder %s54_s2, %s32947_s20  ;;  %p32953_p12 = scmp.lt.s32.totalorder %s32947_s20, %s32947_s20 }
  0xe1   :  { %p32954_p13 = por %p32953_p12, %p32952_p11 }
  0xe3   :  { %p32955_p0 = pnand %p32954_p13, %p32948_p10 }
  0xe5   :  { %32958 = shalt.err (!%p32955_p0)
}
  0xe6   :  { %s33263_s21 = smov [#allocation8]   ;;  %s33264_s6 = smov [#allocation12]  }
  0xe7   :  { %56 = dma.vmem_to_smem %s54_s2, 16, %s33263_s21, [#allocation11]  }
  0xe8   :  { %s64_s7 = sshll.u32 %s33264_s6, 4  ;;  %s33265_s9 = smov [#allocation15]   ;;  %s65_s7 = int_to_ptr.vmem [resolvable:$true] %s64_s7 }
  0xe9   :  { %s88_s29 = sshll.u32 %s33265_s9, 4  ;;  %s35698_s18 = sld [smem:[#allocation59_spill]]  ;;  %s89_s29 = int_to_ptr.vmem [resolvable:$true] %s88_s29 }
  0xef   :  { %s32959_s28 = scalar_lea.hbm %s35698_s18, 256 }
  0xf0   :  { %p32960_p1 = scmp.ne.s32.totalorder %s35698_s18, %s32959_s28  ;;  %p32963_p2 = scmp.lt.u32.totalorder %s32959_s28, %s35698_s18 }
  0xf2   :  { %p32965_p3 = pnand %p32963_p2, %p32960_p1 }
  0xf4   :  { %32968 = shalt.err (!%p32965_p3)
}
  0xf5   :  { %s32969_s23 = scalar_lea.vmem %s65_s7, 256  ;;  %p32974_p5 = scmp.lt.s32.totalorder %s65_s7, %s65_s7 }
  0xf6   :  { %p32970_p4 = scmp.ne.s32.totalorder %s65_s7, %s32969_s23  ;;  %p32975_p6 = scmp.lt.s32.totalorder %s32969_s23, %s32969_s23 }
  0xf8   :  { %p32976_p7 = por %p32975_p6, %p32974_p5 }
  0xfa   :  { %p32977_p8 = pnand %p32976_p7, %p32970_p4 }
  0xfc   :  { %32980 = shalt.err (!%p32977_p8)
}
  0xfd   :  { %70 = dma.hbm_to_vmem [thread:$0]  %s35698_s18, 256, %s65_s7, [#allocation9], %s33251_s1, %s33251_s1, %s33252_s4  }
  0xfe   :  { %s35699_s2 = sld [smem:[#allocation61_spill]] }
 0x104   :  { %s32981_s20 = scalar_lea.hbm %s35699_s2, 768 }
 0x105   :  { %p32982_p9 = scmp.ne.s32.totalorder %s35699_s2, %s32981_s20  ;;  %p32985_p10 = scmp.lt.u32.totalorder %s32981_s20, %s35699_s2 }
 0x107   :  { %p32987_p11 = pnand %p32985_p10, %p32982_p9 }
 0x109   :  { %32990 = shalt.err (!%p32987_p11)
}
 0x10a   :  { %s32991_s16 = scalar_lea.vmem %s89_s29, 768  ;;  %p32996_p13 = scmp.lt.s32.totalorder %s89_s29, %s89_s29 }
 0x10b   :  { %p32992_p12 = scmp.ne.s32.totalorder %s89_s29, %s32991_s16  ;;  %p32997_p0 = scmp.lt.s32.totalorder %s32991_s16, %s32991_s16 }
 0x10d   :  { %p32998_p1 = por %p32997_p0, %p32996_p13 }
 0x10f   :  { %p32999_p2 = pnand %p32998_p1, %p32992_p12 }
 0x111   :  { %33002 = shalt.err (!%p32999_p2)
}
 0x112   :  { %94 = dma.hbm_to_vmem [thread:$0]  %s35699_s2, 768, %s89_s29, [#allocation14], %s33251_s1, %s33251_s1, %s33252_s4  }
 0x113   :  { %s33266_s28 = smov [#allocation18]   ;;  %s33267_s10 = smov [#allocation21]  }
 0x114   :  { %s114_s12 = sshll.u32 %s33266_s28, 4  ;;  %s140_s26 = sshll.u32 %s33267_s10, 4  ;;  %s115_s12 = int_to_ptr.vmem [resolvable:$true] %s114_s12  ;;  %s141_s26 = int_to_ptr.vmem [resolvable:$true] %s140_s26 }
 0x115   :  { %s35700_s0 = sld [smem:[#allocation64_spill]] }
 0x11b   :  { %s33003_s14 = scalar_lea.hbm %s35700_s0, 512 }
 0x11c   :  { %p33004_p3 = scmp.ne.s32.totalorder %s35700_s0, %s33003_s14  ;;  %p33007_p4 = scmp.lt.u32.totalorder %s33003_s14, %s35700_s0 }
 0x11e   :  { %p33009_p5 = pnand %p33007_p4, %p33004_p3 }
 0x120   :  { %33012 = shalt.err (!%p33009_p5)
}
 0x121   :  { %s33013_s29 = scalar_lea.vmem %s115_s12, 512  ;;  %p33018_p7 = scmp.lt.s32.totalorder %s115_s12, %s115_s12 }
 0x122   :  { %p33014_p6 = scmp.ne.s32.totalorder %s115_s12, %s33013_s29  ;;  %p33019_p8 = scmp.lt.s32.totalorder %s33013_s29, %s33013_s29 }
 0x124   :  { %p33020_p9 = por %p33019_p8, %p33018_p7 }
 0x126   :  { %p33021_p10 = pnand %p33020_p9, %p33014_p6 }
 0x128   :  { %33024 = shalt.err (!%p33021_p10)
}
 0x129   :  { %120 = dma.hbm_to_vmem [thread:$0]  %s35700_s0, 512, %s115_s12, [#allocation17], %s33251_s1, %s33251_s1, %s33252_s4  }
 0x12a   :  { %s35701_s16 = sld [smem:[#allocation67_spill]] }
 0x130   :  { %s33025_s7 = scalar_lea.hbm %s35701_s16, 256 }
 0x131   :  { %p33026_p11 = scmp.ne.s32.totalorder %s35701_s16, %s33025_s7  ;;  %p33029_p12 = scmp.lt.u32.totalorder %s33025_s7, %s35701_s16 }
 0x133   :  { %p33031_p13 = pnand %p33029_p12, %p33026_p11 }
 0x135   :  { %33034 = shalt.err (!%p33031_p13)
}
 0x136   :  { %s33035_s23 = scalar_lea.vmem %s141_s26, 256  ;;  %p33040_p1 = scmp.lt.s32.totalorder %s141_s26, %s141_s26 }
 0x137   :  { %p33036_p0 = scmp.ne.s32.totalorder %s141_s26, %s33035_s23  ;;  %p33041_p2 = scmp.lt.s32.totalorder %s33035_s23, %s33035_s23 }
 0x139   :  { %p33042_p3 = por %p33041_p2, %p33040_p1 }
 0x13b   :  { %p33043_p4 = pnand %p33042_p3, %p33036_p0 }
 0x13d   :  { %33046 = shalt.err (!%p33043_p4)
}
 0x13e   :  { %146 = dma.hbm_to_vmem [thread:$0]  %s35701_s16, 256, %s141_s26, [#allocation20], %s33251_s1, %s33251_s1, %s33252_s4  }
 0x13f   :  { %s33268_s14 = smov [#allocation24]   ;;  %s33269_s11 = smov [#allocation27]  }
 0x140   :  { %s166_s30 = sshll.u32 %s33268_s14, 4  ;;  %s190_s20 = sshll.u32 %s33269_s11, 4  ;;  %s167_s30 = int_to_ptr.vmem [resolvable:$true] %s166_s30  ;;  %s191_s20 = int_to_ptr.vmem [resolvable:$true] %s190_s20 }
 0x141   :  { %s33047_s2 = scalar_lea.hbm %s35647_s13, 768 }
 0x142   :  { %p33048_p5 = scmp.ne.s32.totalorder %s35647_s13, %s33047_s2  ;;  %p33051_p6 = scmp.lt.u32.totalorder %s33047_s2, %s35647_s13 }
 0x144   :  { %p33053_p7 = pnand %p33051_p6, %p33048_p5 }
 0x146   :  { %33056 = shalt.err (!%p33053_p7)
}
 0x147   :  { %s33057_s26 = scalar_lea.vmem %s167_s30, 768  ;;  %p33062_p9 = scmp.lt.s32.totalorder %s167_s30, %s167_s30 }
 0x148   :  { %p33058_p8 = scmp.ne.s32.totalorder %s167_s30, %s33057_s26  ;;  %p33063_p10 = scmp.lt.s32.totalorder %s33057_s26, %s33057_s26 }
 0x14a   :  { %p33064_p11 = por %p33063_p10, %p33062_p9 }
 0x14c   :  { %p33065_p12 = pnand %p33064_p11, %p33058_p8 }
 0x14e   :  { %33068 = shalt.err (!%p33065_p12)
}
 0x14f   :  { %172 = dma.hbm_to_vmem [thread:$0]  %s35647_s13, 768, %s167_s30, [#allocation23], %s33251_s1, %s33251_s1, %s33252_s4  }
 0x150   :  { %s33069_s3 = scalar_lea.hbm %s35649_s15, 256 }
 0x151   :  { %p33070_p13 = scmp.ne.s32.totalorder %s35649_s15, %s33069_s3  ;;  %p33073_p0 = scmp.lt.u32.totalorder %s33069_s3, %s35649_s15 }
 0x153   :  { %p33075_p1 = pnand %p33073_p0, %p33070_p13 }
 0x155   :  { %33078 = shalt.err (!%p33075_p1)
}
 0x156   :  { %s33079_s11 = scalar_lea.vmem %s191_s20, 256  ;;  %p33084_p3 = scmp.lt.s32.totalorder %s191_s20, %s191_s20 }
 0x157   :  { %p33080_p2 = scmp.ne.s32.totalorder %s191_s20, %s33079_s11  ;;  %p33085_p4 = scmp.lt.s32.totalorder %s33079_s11, %s33079_s11 }
 0x159   :  { %p33086_p5 = por %p33085_p4, %p33084_p3 }
 0x15b   :  { %p33087_p6 = pnand %p33086_p5, %p33080_p2 }
 0x15d   :  { %33090 = shalt.err (!%p33087_p6)
}
 0x15e   :  { %196 = dma.hbm_to_vmem [thread:$0]  %s35649_s15, 256, %s191_s20, [#allocation26], %s33251_s1, %s33251_s1, %s33252_s4  }
 0x15f   :  { %s33270_s21 = smov [#allocation30]   ;;  %s33271_s2 = smov [#allocation33]  }
 0x160   :  { %s214_s29 = sshll.u32 %s33270_s21, 4  ;;  %s238_s6 = sshll.u32 %s33271_s2, 4  ;;  %s215_s29 = int_to_ptr.vmem [resolvable:$true] %s214_s29  ;;  %s239_s6 = int_to_ptr.vmem [resolvable:$true] %s238_s6 }
 0x161   :  { %s33091_s7 = scalar_lea.hbm %s35651_s17, 128 }
 0x162   :  { %p33092_p7 = scmp.ne.s32.totalorder %s35651_s17, %s33091_s7  ;;  %p33095_p8 = scmp.lt.u32.totalorder %s33091_s7, %s35651_s17 }
 0x164   :  { %p33097_p9 = pnand %p33095_p8, %p33092_p7 }
 0x166   :  { %33100 = shalt.err (!%p33097_p9)
}
 0x167   :  { %s33101_s15 = scalar_lea.vmem %s215_s29, 128  ;;  %p33106_p11 = scmp.lt.s32.totalorder %s215_s29, %s215_s29 }
 0x168   :  { %p33102_p10 = scmp.ne.s32.totalorder %s215_s29, %s33101_s15  ;;  %p33107_p12 = scmp.lt.s32.totalorder %s33101_s15, %s33101_s15 }
 0x16a   :  { %p33108_p13 = por %p33107_p12, %p33106_p11 }
 0x16c   :  { %p33109_p0 = pnand %p33108_p13, %p33102_p10 }
 0x16e   :  { %33112 = shalt.err (!%p33109_p0)
}
 0x16f   :  { %220 = dma.hbm_to_vmem [thread:$0]  %s35651_s17, 128, %s215_s29, [#allocation29], %s33259_s5, %s33259_s5, %s33260_s8  }
 0x170   :  { %s33113_s12 = scalar_lea.hbm %s35653_s19, 384 }
 0x171   :  { %p33114_p1 = scmp.ne.s32.totalorder %s35653_s19, %s33113_s12  ;;  %p33117_p2 = scmp.lt.u32.totalorder %s33113_s12, %s35653_s19 }
 0x173   :  { %p33119_p3 = pnand %p33117_p2, %p33114_p1 }
 0x175   :  { %33122 = shalt.err (!%p33119_p3)
}
 0x176   :  { %s33123_s30 = scalar_lea.vmem %s239_s6, 384  ;;  %p33128_p5 = scmp.lt.s32.totalorder %s239_s6, %s239_s6 }
 0x177   :  { %p33124_p4 = scmp.ne.s32.totalorder %s239_s6, %s33123_s30  ;;  %p33129_p6 = scmp.lt.s32.totalorder %s33123_s30, %s33123_s30 }
 0x179   :  { %p33130_p7 = por %p33129_p6, %p33128_p5 }
 0x17b   :  { %p33131_p8 = pnand %p33130_p7, %p33124_p4 }
 0x17d   :  { %33134 = shalt.err (!%p33131_p8)
}
 0x17e   :  { %244 = dma.hbm_to_vmem [thread:$0]  %s35653_s19, 384, %s239_s6, [#allocation32], %s33251_s1, %s33251_s1, %s33252_s4  }
 0x17f   :  { %s33272_s21 = smov [#allocation36]   ;;  %s33273_s2 = smov [#allocation39]  }
 0x180   :  { %s264_s29 = sshll.u32 %s33272_s21, 4  ;;  %s288_s9 = sshll.u32 %s33273_s2, 4  ;;  %s265_s29 = int_to_ptr.vmem [resolvable:$true] %s264_s29  ;;  %s289_s9 = int_to_ptr.vmem [resolvable:$true] %s288_s9 }
 0x181   :  { %s33135_s26 = scalar_lea.hbm %s35656_s22, 512 }
 0x182   :  { %p33136_p9 = scmp.ne.s32.totalorder %s35656_s22, %s33135_s26  ;;  %p33139_p10 = scmp.lt.u32.totalorder %s33135_s26, %s35656_s22 }
 0x184   :  { %p33141_p11 = pnand %p33139_p10, %p33136_p9 }
 0x186   :  { %33144 = shalt.err (!%p33141_p11)
}
 0x187   :  { %s33145_s19 = scalar_lea.vmem %s265_s29, 512  ;;  %p33150_p13 = scmp.lt.s32.totalorder %s265_s29, %s265_s29 }
 0x188   :  { %p33146_p12 = scmp.ne.s32.totalorder %s265_s29, %s33145_s19  ;;  %p33151_p0 = scmp.lt.s32.totalorder %s33145_s19, %s33145_s19 }
 0x18a   :  { %p33152_p1 = por %p33151_p0, %p33150_p13 }
 0x18c   :  { %p33153_p2 = pnand %p33152_p1, %p33146_p12 }
 0x18e   :  { %33156 = shalt.err (!%p33153_p2)
}
 0x18f   :  { %270 = dma.hbm_to_vmem [thread:$0]  %s35656_s22, 512, %s265_s29, [#allocation35], %s33251_s1, %s33251_s1, %s33252_s4  }
 0x190   :  { %s33157_s23 = scalar_lea.hbm %s35658_s24, 1536 }
 0x191   :  { %p33158_p3 = scmp.ne.s32.totalorder %s35658_s24, %s33157_s23  ;;  %p33161_p4 = scmp.lt.u32.totalorder %s33157_s23, %s35658_s24 }
 0x193   :  { %p33163_p5 = pnand %p33161_p4, %p33158_p3 }
 0x195   :  { %33166 = shalt.err (!%p33163_p5)
}
 0x196   :  { %s33167_s13 = scalar_lea.vmem %s289_s9, 1536  ;;  %p33172_p7 = scmp.lt.s32.totalorder %s289_s9, %s289_s9 }
 0x197   :  { %p33168_p6 = scmp.ne.s32.totalorder %s289_s9, %s33167_s13  ;;  %p33173_p8 = scmp.lt.s32.totalorder %s33167_s13, %s33167_s13 }
 0x199   :  { %p33174_p9 = por %p33173_p8, %p33172_p7 }
 0x19b   :  { %p33175_p10 = pnand %p33174_p9, %p33168_p6 }
 0x19d   :  { %33178 = shalt.err (!%p33175_p10)
}
 0x19e   :  { %294 = dma.hbm_to_vmem [thread:$0]  %s35658_s24, 1536, %s289_s9, [#allocation38], %s33251_s1, %s33251_s1, %s33252_s4  }
 0x19f   :  { %s33274_s17 = smov [#allocation42]   ;;  %s33179_s2 = scalar_lea.hbm %s35661_s27, 768 }
 0x1a0   :  { %s314_s5 = sshll.u32 %s33274_s17, 4  ;;  %p33180_p11 = scmp.ne.s32.totalorder %s35661_s27, %s33179_s2  ;;  %s315_s5 = int_to_ptr.vmem [resolvable:$true] %s314_s5 }
 0x1a1   :  { %p33183_p12 = scmp.lt.u32.totalorder %s33179_s2, %s35661_s27 }
 0x1a3   :  { %p33185_p13 = pnand %p33183_p12, %p33180_p11 }
 0x1a5   :  { %33188 = shalt.err (!%p33185_p13)
}
 0x1a6   :  { %s33189_s18 = scalar_lea.vmem %s315_s5, 768  ;;  %p33194_p1 = scmp.lt.s32.totalorder %s315_s5, %s315_s5 }
 0x1a7   :  { %p33190_p0 = scmp.ne.s32.totalorder %s315_s5, %s33189_s18  ;;  %p33195_p2 = scmp.lt.s32.totalorder %s33189_s18, %s33189_s18 }
 0x1a9   :  { %p33196_p3 = por %p33195_p2, %p33194_p1 }
 0x1ab   :  { %p33197_p4 = pnand %p33196_p3, %p33190_p0 }
 0x1ad   :  { %33200 = shalt.err (!%p33197_p4)
}
 0x1ae   :  { %320 = dma.hbm_to_vmem [thread:$0]  %s35661_s27, 768, %s315_s5, [#allocation41], %s33251_s1, %s33251_s1, %s33252_s4  }
 0x1af   :  { %33223 = dma.done.wait [#allocation11], 16  }
 0x1b0   :  { %33224 = vsyncadd [#allocation11], 4294967280 }
 0x1b1   :  { %33225 = dma.done.wait [#allocation9], 256  }
 0x1b2   :  { %33226 = vsyncadd [#allocation9], 4294967040 }
 0x1b3   :  { %33227 = dma.done.wait [#allocation14], 1152  }
 0x1b4   :  { %33228 = vsyncadd [#allocation14], 4294966144 }
 0x1b5   :  { %33229 = dma.done.wait [#allocation17], 1280  }
 0x1b6   :  { %33230 = vsyncadd [#allocation17], 4294966016 }
 0x1b7   :  { %33231 = dma.done.wait [#allocation20], 1024  }
 0x1b8   :  { %33232 = vsyncadd [#allocation20], 4294966272 }
 0x1b9   :  { %33233 = dma.done.wait [#allocation23], 2304  }
 0x1ba   :  { %33234 = vsyncadd [#allocation23], 4294964992 }
 0x1bb   :  { %33235 = dma.done.wait [#allocation26], 1408  }
 0x1bc   :  { %33236 = vsyncadd [#allocation26], 4294965888 }
 0x1bd   :  { %33237 = dma.done.wait [#allocation29], 1280  }
 0x1be   :  { %33238 = vsyncadd [#allocation29], 4294966016 }
 0x1bf   :  { %33239 = dma.done.wait [#allocation32], 576  }
 0x1c0   :  { %33240 = vsyncadd [#allocation32], 4294966720 }
 0x1c1   :  { %33241 = dma.done.wait [#allocation35], 896  }
 0x1c2   :  { %33242 = vsyncadd [#allocation35], 4294966400 }
 0x1c3   :  { %33243 = dma.done.wait [#allocation38], 2304  }
 0x1c4   :  { %33244 = vsyncadd [#allocation38], 4294964992 }
 0x1c5   :  { %33245 = dma.done.wait [#allocation41], 1024  }
 0x1c6   :  { %33246 = vsyncadd [#allocation41], 4294966272 }
 0x1c7   :  { %387 = sfence }
 0x1c8   :  { %v389_v0 = vld [vmem:[#allocation12 + $0x8] sm:$0xff]  ;;  %vm390_vm0 = vcmask 64512   ;;  %v388_v1 = vld [vmem:[#allocation12] sm:$0xff]  ;;  %v33275_v2 = vmov 0.0|0.0   ;;  %v401_v4 = vld [vmem:[#allocation15 + $0x8] sm:$0xff]  ;;  %vm33276_vm1 = vmmov 0  }
 0x1c9   :  { %393 = vrot.lane.b32.xlu0 %v389_v0, %s33252_s4  ;;  %391 = vst.msk [vmem:[#allocation2] sm:$0xff] %vm390_vm0, %v388_v1  ;;  %30974 = vmatprep.subr.bf16.mxu0 %v33275_v2  ;;  %v400_v3 = vld [vmem:[#allocation15] sm:$0xff]  ;;  %v410_v6 = vand.u32 4294901760, %v401_v4  ;;  %v33277_v7 = vmov 0.0   ;;  %vm396_vm2 = vcmask 130112   ;;  %v868_v20 = vld [vmem:[#allocation15 + $0x10] sm:$0xff] }
 0x1ca   :  { %v407_v5 = vand.u32 4294901760, %v400_v3  ;;  %28564 = vmatprep.mubr.msk.f32.mxu0 %vm33276_vm1, %v33277_v7  ;;  %30971 = vmatprep.subr.bf16.mxu1 %v33275_v2  ;;  %v869_v21 = vld [vmem:[#allocation15 + $0x18] sm:$0xff]  ;;  %v871_v23 = vand.u32 4294901760, %v868_v20  ;;  %vm402_vm3 = vcmask 130048   ;;  %v866_v46 = vld [vmem:[#allocation13 + $0x8] sm:$0xff]  ;;  %v399_v53 = vld [vmem:[#allocation13] sm:$0xff] }
 0x1cb   :  { %28557 = vmatprep.mubr.msk.f32.mxu1 %vm33276_vm1, %v33277_v7  ;;  %v492_v9 = vsub.f32 %v401_v4, %v410_v6  ;;  %v874_v24 = vand.u32 4294901760, %v869_v21  ;;  %v1330_v50 = vsel %vm390_vm0, %v866_v46, 0  ;;  %v1779_v55 = vsel %vm390_vm0, %v399_v53, 0  ;;  %v2230_v1 = vld [vmem:[#allocation15 + $0x20] sm:$0xff]  ;;  %s33278_s27 = smov 16   ;;  %s35702_s19 = sld [smem:[#allocation66_spill]] }
 0x1cc   :  { %v485_v8 = vsub.f32 %v400_v3, %v407_v5  ;;  %v33788_v10 = vpack.c.bf16 %v410_v6, %v407_v5  ;;  %v949_v25 = vsub.f32 %v868_v20, %v871_v23  ;;  %v1398_v51 = vand.u32 4294901760, %v1330_v50  ;;  %v2231_v3 = vld [vmem:[#allocation15 + $0x28] sm:$0xff]  ;;  %s35703_s11 = sld [smem:[#allocation62_spill]]  ;;  %s3141_s26 = sld [smem:[#allocation8]] }
 0x1cd   :  { %v493_v12 = vand.u32 4294901760, %v492_v9  ;;  %v956_v26 = vsub.f32 %v869_v21, %v874_v24  ;;  %v30990_v37 = vpack.c.bf16 %v874_v24, %v871_v23  ;;  %v33856_v57 = vand.u32 4294901760, %v1779_v55  ;;  %s35704_s3 = sld [smem:[#allocation69_spill]]  ;;  %s33279_s0 = smov 12  }
 0x1ce   :  { %v486_v11 = vand.u32 4294901760, %v485_v8  ;;  %30973 = vmatpush3.bf16.msra.mxu1 %v33788_v10  ;;  %v30978_v13 = vpack.c.bf16 %v492_v9, %v485_v8  ;;  %v950_v29 = vand.u32 4294901760, %v949_v25  ;;  %v1399_v52 = vsub.f32 %v1330_v50, %v1398_v51  ;;  %s27245_s14 = sld [smem:[#allocation8 + $0x1]]  ;;  %s27246_s17 = sld [smem:[#allocation8 + $0x2]] }
 0x1cf   :  { %30989 = vmatprep.subr.bf16.mxu1 %v33275_v2  ;;  %v494_v15 = vsub.f32 %v492_v9, %v493_v12  ;;  %v957_v30 = vand.u32 4294901760, %v956_v26  ;;  %v30996_v42 = vpack.c.bf16 %v956_v26, %v949_v25  ;;  %v33859_v62 = vsub.f32 %v1779_v55, %v33856_v57  ;;  %s35705_s21 = sld [smem:[#allocation70_spill]]  ;;  %s27247_s25 = sld [smem:[#allocation8 + $0x3]] }
 0x1d0   :  { %v487_v14 = vsub.f32 %v485_v8, %v486_v11  ;;  %v30984_v19 = vpack.c.bf16 %v493_v12, %v486_v11  ;;  %v951_v33 = vsub.f32 %v949_v25, %v950_v29  ;;  %v1400_v54 = vand.u32 4294901760, %v1399_v52  ;;  %s35706_s16 = sld [smem:[#allocation71_spill]]  ;;  %s33281_s7 = smov [#allocation43]  }
 0x1d1   :  { %v495_v17 = vand.u32 4294901760, %v494_v15  ;;  %v958_v34 = vsub.f32 %v956_v26, %v957_v30  ;;  %v31002_v43 = vpack.c.bf16 %v957_v30, %v950_v29  ;;  %v1849_v5 = vand.u32 4294901760, %v33859_v62  ;;  %v3652_v29 = vld [vmem:[#allocation18 + $0x10] sm:$0xff]  ;;  %v3653_v30 = vld [vmem:[#allocation18 + $0x18] sm:$0xff] }
 0x1d2   :  { %v488_v16 = vand.u32 4294901760, %v487_v14  ;;  %v952_v38 = vand.u32 4294901760, %v951_v33  ;;  %v1401_v56 = vsub.f32 %v1399_v52, %v1400_v54  ;;  %v2233_v6 = vand.u32 4294901760, %v2230_v1  ;;  %3658 = vrot.lane.b32.xlu0 %v3652_v29, %s33278_s27  ;;  %3660 = vrot.lane.b32.xlu1 %v3653_v30, %s33278_s27  ;;  %v3651_v33 = vld [vmem:[#allocation18 + $0x8] sm:$0xff] }
 0x1d3   :  { %v959_v39 = vand.u32 4294901760, %v958_v34  ;;  %v2236_v8 = vand.u32 4294901760, %v2231_v3  ;;  %v1850_v12 = vsub.f32 %v33859_v62, %v1849_v5  ;;  %3655 = vst.msk [vmem:[#allocation3 + $0x8] sm:$0xff] %vm402_vm3, %v3651_v33  ;;  %vm3664_vm4 = vcmask 261248  }
 0x1d4   :  { %v30975_v18 = vpack.c.bf16 %v495_v17, %v488_v16  ;;  %v1402_v59 = vand.u32 4294901760, %v1401_v56  ;;  %vm3675_vm5 = vcmask 261120   ;;  %vm10444_vm6 = vcmask 97280  }
 0x1d5   :  { %v30993_v41 = vpack.c.bf16 %v959_v39, %v952_v38  ;;  %v33875_v14 = vsub.f32 %v2231_v3, %v2236_v8  ;;  %v1851_v16 = vand.u32 4294901760, %v1850_v12  ;;  %v31008_v23 = vpack.c.bf16 %v2236_v8, %v2233_v6 }
 0x1d6   :  { %30976 = vmatpush3.bf16.msra.mxu0 %v30975_v18  ;;  %vm10456_vm7 = vcmask 195680   ;;  %vm10446_vm8 = vcmask 93184   ;;  %vm10458_vm9 = vcmask 191584   ;;  %vm10467_vm10 = vcmask 195584  }
 0x1d7   :  { %30977 = vmatprep.subr.bf16.mxu0 %v33275_v2  ;;  %v2319_v18 = vand.u32 4294901760, %v33875_v14  ;;  %vm11517_vm11 = vcmask 1043456   ;;  %vm15658_vm12 = vcmask 27648   ;;  %vm15664_vm13 = vcmask 60448  }
 0x1d8   :  { %vm16568_vm14 = vcmask 31744  }
 0x1d9   :  { %v2320_v21 = vsub.f32 %v33875_v14, %v2319_v18 }
 0x1db   :  { %v2321_v25 = vand.u32 4294901760, %v2320_v21  ;;  %v3671_v21 = vld [vmem:[%s35702_s19] sm:$0xff] }
 0x23b   :  { %v394_v22 = vpop.permute.xlu0 %393 }
 0x23c   :  { %397 = vst.msk [vmem:[#allocation2] sm:$0xff] %vm396_vm2, %v394_v22 }
 0x243   :  { %v398_v27 = vld [vmem:[#allocation2] sm:$0xff] }
 0x244   :  { %v404_v28 = vsel %vm402_vm3, %v398_v27, 0 }
 0x245   :  { %v33794_v31 = vand.u32 4294901760, %v404_v28 }
 0x247   :  { %28565 = vmatmul.mubr.f32.vlgmr.msra.gmra.mrb[0].mxu0 %v33794_v31  ;;  %v33798_v32 = vsub.f32 %v404_v28, %v33794_v31 }
 0x248   :  { %30979 = vmatpush3.bf16.msra.mxu0 %v30978_v13  ;;  %28571 = vmatprep.mubr.msk.f32.mxu0 %vm33276_vm1, %v33277_v7  ;;  %v33873_v13 = vsub.f32 %v2230_v1, %v2233_v6 }
 0x249   :  { %v33803_v35 = vand.u32 4294901760, %v33798_v32  ;;  %30980 = vmatprep.subr.bf16.mxu0 %v33275_v2 }
 0x24a   :  { %v2312_v17 = vand.u32 4294901760, %v33873_v13  ;;  %v31014_v27 = vpack.c.bf16 %v33875_v14, %v33873_v13 }
 0x24b   :  { %v476_v36 = vsub.f32 %v33798_v32, %v33803_v35 }
 0x24c   :  { %v2313_v20 = vsub.f32 %v33873_v13, %v2312_v17  ;;  %v31020_v28 = vpack.c.bf16 %v2319_v18, %v2312_v17 }
 0x24d   :  { %v33808_v40 = vand.u32 4294901760, %v476_v36 }
 0x24e   :  { %v2314_v24 = vand.u32 4294901760, %v2313_v20  ;;  %v3661_v20 = vpop.permute.xlu1 %3660 }
 0x24f   :  { %28558 = vmatmul.mubr.f32.vlgmr.msra.gmra.mrb[0].mxu1 %v33808_v40  ;;  %28572 = vmatmul.mubr.f32.vlgmr.msra.gmra.mrb[0].mxu0 %v33798_v32  ;;  %3666 = vst.msk [vmem:[#allocation3 + $0x8] sm:$0xff] %vm3664_vm4, %v3661_v20 }
 0x250   :  { %30991 = vmatpush3.bf16.msra.mxu1 %v30990_v37  ;;  %28599 = vmatprep.mubr.msk.f32.mxu1 %vm33276_vm1, %v33277_v7  ;;  %v31011_v26 = vpack.c.bf16 %v2321_v25, %v2314_v24  ;;  %v3683_v24 = vand.u32 4294901760, %v3671_v21 }
 0x251   :  { %30982 = vmatpush3.bf16.msra.mxu0 %v33788_v10  ;;  %28578 = vmatprep.mubr.msk.f32.mxu0 %vm33276_vm1, %v33277_v7 }
 0x252   :  { %30992 = vmatprep.subr.bf16.mxu1 %v33275_v2  ;;  %30983 = vmatprep.subr.bf16.mxu0 %v33275_v2  ;;  %v33978_v33 = vsub.f32 %v3671_v21, %v3683_v24 }
 0x253   :  { %28600 = vmatmul.mubr.f32.vlgmr.msra.gmra.mrb[2].mxu1 %v33808_v40 }
 0x254   :  { %30994 = vmatpush3.bf16.msra.mxu1 %v30993_v41  ;;  %28606 = vmatprep.mubr.msk.f32.mxu1 %vm33276_vm1, %v33277_v7 }
 0x255   :  { %30995 = vmatprep.subr.bf16.mxu1 %v33275_v2 }
 0x257   :  { %28579 = vmatmul.mubr.f32.vlgmr.msra.gmra.mrb[0].mxu0 %v33803_v35 }
 0x258   :  { %30985 = vmatpush3.bf16.msra.mxu0 %v30984_v19  ;;  %28585 = vmatprep.mubr.msk.f32.mxu0 %vm33276_vm1, %v33277_v7 }
 0x259   :  { %30986 = vmatprep.subr.bf16.mxu0 %v33275_v2 }
 0x25b   :  { %28607 = vmatmul.mubr.f32.vlgmr.msra.gmra.mrb[2].mxu1 %v33794_v31 }
 0x25c   :  { %30997 = vmatpush3.bf16.msra.mxu1 %v30996_v42  ;;  %28613 = vmatprep.mubr.msk.f32.mxu1 %vm33276_vm1, %v33277_v7 }
 0x25d   :  { %30998 = vmatprep.subr.bf16.mxu1 %v33275_v2 }
 0x25f   :  { %28586 = vmatmul.mubr.f32.vlgmr.msra.gmra.mrb[0].mxu0 %v33794_v31 }
 0x260   :  { %30988 = vmatpush3.bf16.msra.mxu0 %v33788_v10  ;;  %28592 = vmatprep.mubr.msk.f32.mxu0 %vm33276_vm1, %v33277_v7 }
 0x261   :  { %28637 = vmatprep.subr.mxu0 %v33277_v7 }
 0x263   :  { %28614 = vmatmul.mubr.f32.vlgmr.msra.gmra.mrb[2].mxu1 %v33798_v32 }
 0x264   :  { %31000 = vmatpush3.bf16.msra.mxu1 %v30990_v37  ;;  %28620 = vmatprep.mubr.msk.f32.mxu1 %vm33276_vm1, %v33277_v7 }
 0x265   :  { %31001 = vmatprep.subr.bf16.mxu1 %v33275_v2 }
 0x267   :  { %28593 = vmatmul.mubr.f32.vlgmr.msra.gmra.mrb[0].mxu0 %v33794_v31 }
 0x268   :  { %28639 = vmatprep.mubr.msk.f32.mxu0 %vm33276_vm1, %v33277_v7 }
 0x26b   :  { %28621 = vmatmul.mubr.f32.vlgmr.msra.gmra.mrb[2].mxu1 %v33803_v35 }
 0x26c   :  { %31003 = vmatpush3.bf16.msra.mxu1 %v31002_v43  ;;  %28627 = vmatprep.mubr.msk.f32.mxu1 %vm33276_vm1, %v33277_v7 }
 0x26d   :  { %31004 = vmatprep.subr.bf16.mxu1 %v33275_v2 }
 0x273   :  { %28628 = vmatmul.mubr.f32.vlgmr.msra.gmra.mrb[2].mxu1 %v33794_v31 }
 0x274   :  { %31006 = vmatpush3.bf16.msra.mxu1 %v30990_v37  ;;  %28634 = vmatprep.mubr.msk.f32.mxu1 %vm33276_vm1, %v33277_v7 }
 0x275   :  { %28642 = vmatprep.subr.mxu1 %v33277_v7 }
 0x27b   :  { %28635 = vmatmul.mubr.f32.vlgmr.msra.gmra.mrb[2].mxu1 %v33794_v31 }
 0x27c   :  { %28644 = vmatprep.mubr.msk.f32.mxu1 %vm33276_vm1, %v33277_v7 }
 0x322   :  { %v479_v44 = vpop.f32.mrb[0].mxu1 }
 0x323   :  { %v28559_v45 = vpop.f32.mrb[1].mxu1 }
 0x33a   :  { %v861_v47 = vpop.f32.mrb[0].mxu0 }
 0x33b   :  { %v32177_v48 = vadd.f32 %v861_v47, %v479_v44  ;;  %v28594_v49 = vpop.f32.mrb[1].mxu0 }
 0x33d   :  { %v33861_v63 = vand.u32 4294901760, %v32177_v48 }
 0x33f   :  { %v1859_v9 = vsub.f32 %v32177_v48, %v33861_v63 }
 0x341   :  { %v1860_v15 = vand.u32 4294901760, %v1859_v9 }
 0x343   :  { %v1861_v19 = vsub.f32 %v1859_v9, %v1860_v15 }
 0x345   :  { %v1862_v22 = vand.u32 4294901760, %v1861_v19  ;;  %v3659_v19 = vpop.permute.xlu0 %3658 }
 0x34e   :  { %v1325_v58 = vpop.f32.mrb[2].mxu1 }
 0x34f   :  { %v1333_v60 = vand.u32 4294901760, %v1325_v58  ;;  %v28636_v61 = vpop.f32.mrb[3].mxu1 }
 0x351   :  { %v1410_v0 = vsub.f32 %v1325_v58, %v1333_v60  ;;  %28638 = vmatpush3.msra.mxu0 %v1333_v60 }
 0x352   :  { %28640 = vmatmul.mubr.f32.vlgmr.msra.gmra.mrb[2].mxu0 %v1402_v59  ;;  %28647 = vmatprep.subr.mxu0 %v33277_v7 }
 0x353   :  { %v1411_v4 = vand.u32 4294901760, %v1410_v0  ;;  %28648 = vmatpush3.msra.mxu0 %v1410_v0  ;;  %28649 = vmatprep.mubr.msk.f32.mxu0 %vm33276_vm1, %v33277_v7 }
 0x354   :  { %28657 = vmatprep.subr.mxu0 %v33277_v7 }
 0x355   :  { %v1412_v10 = vsub.f32 %v1410_v0, %v1411_v4 }
 0x356   :  { %28650 = vmatmul.mubr.f32.vlgmr.msra.gmra.mrb[4].mxu0 %v1399_v52 }
 0x357   :  { %v1413_v11 = vand.u32 4294901760, %v1412_v10  ;;  %28658 = vmatpush3.msra.mxu0 %v1411_v4  ;;  %28659 = vmatprep.mubr.msk.f32.mxu0 %vm33276_vm1, %v33277_v7  ;;  %v2228_v4 = vld [vmem:[#allocation13 + $0x10] sm:$0xff] }
 0x358   :  { %28667 = vmatprep.subr.mxu0 %v33277_v7 }
 0x359   :  { %28643 = vmatpush3.msra.mxu1 %v1413_v11 }
 0x35a   :  { %28645 = vmatmul.mubr.f32.vlgmr.msra.gmra.mrb[4].mxu1 %v1398_v51  ;;  %28652 = vmatprep.subr.mxu1 %v33277_v7 }
 0x35b   :  { %28660 = vmatmul.mubr.f32.vlgmr.msra.gmra.mrb[6].mxu0 %v1398_v51  ;;  %28653 = vmatpush3.msra.mxu1 %v1333_v60 }
 0x35c   :  { %28668 = vmatpush3.msra.mxu0 %v33861_v63  ;;  %28654 = vmatprep.mubr.msk.f32.mxu1 %vm33276_vm1, %v33277_v7 }
 0x35d   :  { %28662 = vmatprep.subr.mxu1 %v33277_v7  ;;  %28669 = vmatprep.mubr.msk.f32.mxu0 %vm33276_vm1, %v33277_v7 }
 0x35e   :  { %28677 = vmatprep.subr.mxu0 %v33277_v7  ;;  %28655 = vmatmul.mubr.f32.vlgmr.msra.gmra.mrb[6].mxu1 %v1400_v54 }
 0x35f   :  { %28663 = vmatpush3.msra.mxu1 %v1333_v60  ;;  %28670 = vmatmul.mubr.f32.vlgmr.msra.gmra.mrb[8].mxu0 %v1851_v16 }
 0x360   :  { %28678 = vmatpush3.msra.mxu0 %v1859_v9  ;;  %28664 = vmatprep.mubr.msk.f32.mxu1 %vm33276_vm1, %v33277_v7 }
 0x361   :  { %28672 = vmatprep.subr.mxu1 %v33277_v7  ;;  %28679 = vmatprep.mubr.msk.f32.mxu0 %vm33276_vm1, %v33277_v7 }
 0x362   :  { %28687 = vmatprep.subr.mxu0 %v33277_v7  ;;  %28665 = vmatmul.mubr.f32.vlgmr.msra.gmra.mrb[8].mxu1 %v1398_v51 }
 0x363   :  { %28673 = vmatpush3.msra.mxu1 %v1862_v22  ;;  %28680 = vmatmul.mubr.f32.vlgmr.msra.gmra.mrb[10].mxu0 %v33859_v62  ;;  %v3672_v22 = vld [vmem:[%s35702_s19 + $0x8] sm:$0xff] }
 0x364   :  { %28688 = vmatpush3.msra.mxu0 %v1860_v15  ;;  %28674 = vmatprep.mubr.msk.f32.mxu1 %vm33276_vm1, %v33277_v7  ;;  %v3686_v25 = vand.u32 4294901760, %v3672_v22 }
 0x365   :  { %28682 = vmatprep.subr.mxu1 %v33277_v7  ;;  %28689 = vmatprep.mubr.msk.f32.mxu0 %vm33276_vm1, %v33277_v7 }
 0x366   :  { %28675 = vmatmul.mubr.f32.vlgmr.msra.gmra.mrb[10].mxu1 %v33856_v57  ;;  %31007 = vmatprep.subr.bf16.mxu0 %v33275_v2  ;;  %v33974_v30 = vpack.c.bf16 %v3686_v25, %v3683_v24 }
 0x367   :  { %28683 = vmatpush3.msra.mxu1 %v33861_v63  ;;  %28690 = vmatmul.mubr.f32.vlgmr.msra.gmra.mrb[12].mxu0 %v33856_v57 }
 0x368   :  { %31009 = vmatpush3.bf16.msra.mxu0 %v31008_v23  ;;  %28684 = vmatprep.mubr.msk.f32.mxu1 %vm33276_vm1, %v33277_v7 }
 0x369   :  { %28692 = vmatprep.subr.mxu1 %v33277_v7  ;;  %28701 = vmatprep.mubr.msk.f32.mxu0 %vm33276_vm1, %v33277_v7 }
 0x36a   :  { %28685 = vmatmul.mubr.f32.vlgmr.msra.gmra.mrb[12].mxu1 %v1849_v5  ;;  %31010 = vmatprep.subr.bf16.mxu0 %v33275_v2  ;;  %v2692_v5 = vsel %vm390_vm0, %v2228_v4, 0 }
 0x36b   :  { %28693 = vmatpush3.msra.mxu1 %v33861_v63  ;;  %28702 = vmatmul.mubr.f32.vlgmr.msra.gmra.mrb[14].mxu0 %v33808_v40  ;;  %v2760_v6 = vand.u32 4294901760, %v2692_v5 }
 0x36c   :  { %28694 = vmatprep.mubr.msk.f32.mxu1 %vm33276_vm1, %v33277_v7  ;;  %31012 = vmatpush3.bf16.msra.mxu0 %v31011_v26 }
 0x36d   :  { %28708 = vmatprep.mubr.msk.f32.mxu0 %vm33276_vm1, %v33277_v7  ;;  %31013 = vmatprep.subr.bf16.mxu0 %v33275_v2  ;;  %v2761_v8 = vsub.f32 %v2692_v5, %v2760_v6 }
 0x36e   :  { %28695 = vmatmul.mubr.f32.vlgmr.msra.gmra.mrb[14].mxu1 %v33856_v57  ;;  %28739 = vmatprep.subr.mxu1 %v33277_v7 }
 0x36f   :  { %28741 = vmatprep.mubr.msk.f32.mxu1 %vm33276_vm1, %v33277_v7  ;;  %v2762_v9 = vand.u32 4294901760, %v2761_v8 }
 0x371   :  { %v2763_v10 = vsub.f32 %v2761_v8, %v2762_v9 }
 0x373   :  { %28709 = vmatmul.mubr.f32.vlgmr.msra.gmra.mrb[14].mxu0 %v33794_v31  ;;  %v2764_v12 = vand.u32 4294901760, %v2763_v10 }
 0x374   :  { %31015 = vmatpush3.bf16.msra.mxu0 %v31014_v27  ;;  %28715 = vmatprep.mubr.msk.f32.mxu0 %vm33276_vm1, %v33277_v7  ;;  %v3668_v27 = vld [vmem:[#allocation3 + $0x8] sm:$0xff] }
 0x375   :  { %31016 = vmatprep.subr.bf16.mxu0 %v33275_v2  ;;  %v3680_v29 = vsel %vm3675_vm5, %v3668_v27, 0 }
 0x37b   :  { %28716 = vmatmul.mubr.f32.vlgmr.msra.gmra.mrb[14].mxu0 %v33798_v32  ;;  %v3650_v32 = vld [vmem:[#allocation18] sm:$0xff] }
 0x37c   :  { %31018 = vmatpush3.bf16.msra.mxu0 %v31008_v23  ;;  %28722 = vmatprep.mubr.msk.f32.mxu0 %vm33276_vm1, %v33277_v7  ;;  %3654 = vst.msk [vmem:[#allocation3] sm:$0xff] %vm402_vm3, %v3650_v32  ;;  %v33976_v32 = vand.u32 4294901760, %v3680_v29 }
 0x37d   :  { %31019 = vmatprep.subr.bf16.mxu0 %v33275_v2  ;;  %3665 = vst.msk [vmem:[#allocation3] sm:$0xff] %vm3664_vm4, %v3659_v19 }
 0x383   :  { %28723 = vmatmul.mubr.f32.vlgmr.msra.gmra.mrb[14].mxu0 %v33803_v35 }
 0x384   :  { %31021 = vmatpush3.bf16.msra.mxu0 %v31020_v28  ;;  %28729 = vmatprep.mubr.msk.f32.mxu0 %vm33276_vm1, %v33277_v7 }
 0x385   :  { %31022 = vmatprep.subr.bf16.mxu0 %v33275_v2 }
 0x38b   :  { %28730 = vmatmul.mubr.f32.vlgmr.msra.gmra.mrb[14].mxu0 %v33794_v31 }
 0x38c   :  { %31024 = vmatpush3.bf16.msra.mxu0 %v31008_v23  ;;  %28736 = vmatprep.mubr.msk.f32.mxu0 %vm33276_vm1, %v33277_v7  ;;  %v3667_v23 = vld [vmem:[#allocation3] sm:$0xff] }
 0x38d   :  { %v3677_v26 = vsel %vm3675_vm5, %v3667_v23, 0 }
 0x38e   :  { %v33971_v28 = vand.u32 4294901760, %v3677_v26 }
 0x393   :  { %28737 = vmatmul.mubr.f32.vlgmr.msra.gmra.mrb[14].mxu0 %v33794_v31 }
 0x425   :  { %v1404_v2 = vpop.f32.mrb[2].mxu0 }
 0x426   :  { %v28641_v34 = vpop.f32.mrb[3].mxu0 }
 0x427   :  { %v3673_v34 = vld [vmem:[%s35702_s19 + $0x10] sm:$0xff] }
 0x429   :  { %v1554_v35 = vpop.f32.mrb[4].mxu0 }
 0x42a   :  { %v28651_v36 = vpop.f32.mrb[5].mxu0 }
 0x42b   :  { %v33989_v36 = vsub.f32 %v3677_v26, %v33971_v28 }
 0x42d   :  { %v1480_v37 = vpop.f32.mrb[4].mxu1 }
 0x42e   :  { %v1481_v38 = vadd.f32 %v1480_v37, %v1404_v2  ;;  %v1702_v31 = vpop.f32.mrb[6].mxu0  ;;  %v28646_v39 = vpop.f32.mrb[5].mxu1  ;;  %v33980_v2 = vsub.f32 %v3672_v22, %v3686_v25  ;;  %v3689_v37 = vand.u32 4294901760, %v3673_v34 }
 0x42f   :  { %v28661_v40 = vpop.f32.mrb[7].mxu0  ;;  %v3774_v39 = vand.u32 4294901760, %v33978_v33 }
 0x430   :  { %v1555_v41 = vadd.f32 %v1554_v35, %v1481_v38  ;;  %v3674_v35 = vld [vmem:[%s35702_s19 + $0x18] sm:$0xff]  ;;  %v33998_v40 = vand.u32 4294901760, %v33989_v36 }
 0x431   :  { %v1628_v42 = vpop.f32.mrb[6].mxu1  ;;  %v3692_v38 = vand.u32 4294901760, %v3674_v35 }
 0x432   :  { %v1629_v43 = vadd.f32 %v1628_v42, %v1555_v41  ;;  %v1853_v44 = vpop.f32.mrb[8].mxu0  ;;  %v28656_v45 = vpop.f32.mrb[7].mxu1  ;;  %v3781_v41 = vand.u32 4294901760, %v33980_v2 }
 0x433   :  { %v28671_v46 = vpop.f32.mrb[9].mxu0  ;;  %v34001_v42 = vpack.c.bf16 %v3692_v38, %v3689_v37  ;;  %v3787_v45 = vsub.f32 %v3673_v34, %v3689_v37 }
 0x434   :  { %v1703_v47 = vadd.f32 %v1702_v31, %v1629_v43  ;;  %v33993_v31 = vsub.f32 %v3680_v29, %v33976_v32  ;;  %v3754_v46 = vsub.f32 %v33989_v36, %v33998_v40  ;;  %v31057_v10 = vpack.c.bf16 %v3781_v41, %v3774_v39 }
 0x435   :  { %v1774_v48 = vpop.f32.mrb[8].mxu1 }
 0x436   :  { %v1775_v49 = vadd.f32 %v1774_v48, %v1703_v47  ;;  %v2003_v50 = vpop.f32.mrb[10].mxu0  ;;  %v28666_v51 = vpop.f32.mrb[9].mxu1  ;;  %v34004_v43 = vand.u32 4294901760, %v33993_v31  ;;  %v3782_v47 = vsub.f32 %v33980_v2, %v3781_v41  ;;  %v3794_v48 = vsub.f32 %v3674_v35, %v3692_v38 }
 0x437   :  { %v28681_v52 = vpop.f32.mrb[11].mxu0  ;;  %v3788_v51 = vand.u32 4294901760, %v3787_v45 }
 0x438   :  { %v1854_v53 = vadd.f32 %v1853_v44, %v1775_v49  ;;  %v3775_v44 = vsub.f32 %v33978_v33, %v3774_v39  ;;  %v3764_v49 = vsub.f32 %v33993_v31, %v34004_v43  ;;  %v34014_v52 = vand.u32 4294901760, %v3754_v46 }
 0x439   :  { %v1929_v54 = vpop.f32.mrb[10].mxu1 }
 0x43a   :  { %v1930_v55 = vadd.f32 %v1929_v54, %v1854_v53  ;;  %v2151_v56 = vpop.f32.mrb[12].mxu0  ;;  %v28676_v57 = vpop.f32.mrb[11].mxu1  ;;  %v3783_v53 = vand.u32 4294901760, %v3782_v47  ;;  %v3795_v54 = vand.u32 4294901760, %v3794_v48 }
 0x43b   :  { %v28691_v58 = vpop.f32.mrb[13].mxu0 }
 0x43c   :  { %v2004_v59 = vadd.f32 %v2003_v50, %v1930_v55  ;;  %v3776_v50 = vand.u32 4294901760, %v3775_v44  ;;  %v34016_v55 = vand.u32 4294901760, %v3764_v49  ;;  %v3796_v58 = vsub.f32 %v3794_v48, %v3795_v54 }
 0x43d   :  { %v2077_v60 = vpop.f32.mrb[12].mxu1 }
 0x43e   :  { %v2078_v61 = vadd.f32 %v2077_v60, %v2004_v59  ;;  %v28686_v62 = vpop.f32.mrb[13].mxu1  ;;  %v31033_v57 = vpack.c.bf16 %v3783_v53, %v3776_v50  ;;  %v3797_v60 = vand.u32 4294901760, %v3796_v58 }
 0x43f   :  { %v31041_v62 = vpack.c.bf16 %v33980_v2, %v33978_v33 }
 0x440   :  { %v2152_v63 = vadd.f32 %v2151_v56, %v2078_v61  ;;  %v3789_v56 = vsub.f32 %v3787_v45, %v3788_v51 }
 0x441   :  { %v2223_v0 = vpop.f32.mrb[14].mxu1 }
 0x442   :  { %v33944_v1 = vadd.f32 %v2223_v0, %v2152_v63  ;;  %v28696_v3 = vpop.f32.mrb[15].mxu1  ;;  %v3790_v59 = vand.u32 4294901760, %v3789_v56  ;;  %v3145_v63 = vld [vmem:[%s35703_s11] sm:$0xff]  ;;  %v3146_v56 = vld [vmem:[%s35703_s11 + $0x8] sm:$0xff] }
 0x443   :  { %v3148_v0 = vsel %vm390_vm0, %v3145_v63, 0  ;;  %v31045_v3 = vpack.c.bf16 %v3794_v48, %v3787_v45 }
 0x444   :  { %v31037_v61 = vpack.c.bf16 %v3797_v60, %v3790_v59  ;;  %v34029_v4 = vand.u32 4294901760, %v3148_v0  ;;  %v3151_v60 = vsel %vm390_vm0, %v3146_v56, 0 }
 0x446   :  { %v34032_v5 = vsub.f32 %v3148_v0, %v34029_v4  ;;  %v3229_v0 = vand.u32 4294901760, %v3151_v60 }
 0x466   :  { %v2687_v11 = vpop.f32.mrb[14].mxu0 }
 0x467   :  { %v2695_v13 = vand.u32 4294901760, %v2687_v11  ;;  %v28738_v14 = vpop.f32.mrb[15].mxu0 }
 0x469   :  { %v2772_v15 = vsub.f32 %v2687_v11, %v2695_v13  ;;  %28740 = vmatpush3.msra.mxu1 %v2695_v13  ;;  %v31061_v11 = vpack.c.bf16 %v3795_v54, %v3788_v51 }
 0x46a   :  { %28742 = vmatmul.mubr.f32.vlgmr.msra.gmra.mrb[16].mxu1 %v2764_v12  ;;  %28744 = vmatprep.subr.mxu1 %v33277_v7  ;;  %v27237_v12 = vld [vmem:[%s35702_s19 + $0x20] sm:$0xff] }
 0x46b   :  { %v2773_v16 = vand.u32 4294901760, %v2772_v15  ;;  %28746 = vmatprep.mubr.msk.f32.mxu1 %vm33276_vm1, %v33277_v7  ;;  %v4219_v14 = vand.u32 4294901760, %v27237_v12 }
 0x46d   :  { %v2774_v17 = vsub.f32 %v2772_v15, %v2773_v16  ;;  %v4309_v22 = vsub.f32 %v27237_v12, %v4219_v14 }
 0x46f   :  { %v2775_v18 = vand.u32 4294901760, %v2774_v17  ;;  %v27239_v17 = vld [vmem:[%s35702_s19 + $0x30] sm:$0xff]  ;;  %v4310_v24 = vand.u32 4294901760, %v4309_v22 }
 0x470   :  { %v4225_v19 = vand.u32 4294901760, %v27239_v17 }
 0x471   :  { %28745 = vmatpush3.msra.mxu1 %v2775_v18  ;;  %v27240_v18 = vld [vmem:[%s35702_s19 + $0x38] sm:$0xff]  ;;  %v4311_v26 = vsub.f32 %v4309_v22, %v4310_v24 }
 0x472   :  { %28747 = vmatmul.mubr.f32.vlgmr.msra.gmra.mrb[18].mxu1 %v2760_v6  ;;  %28749 = vmatprep.subr.mxu1 %v33277_v7  ;;  %v4228_v20 = vand.u32 4294901760, %v27240_v18  ;;  %v4323_v29 = vsub.f32 %v27239_v17, %v4225_v19 }
 0x473   :  { %28750 = vmatpush3.msra.mxu1 %v2772_v15  ;;  %28751 = vmatprep.mubr.msk.f32.mxu1 %vm33276_vm1, %v33277_v7  ;;  %v4312_v33 = vand.u32 4294901760, %v4311_v26 }
 0x474   :  { %28754 = vmatprep.subr.mxu1 %v33277_v7  ;;  %v34068_v21 = vpack.c.bf16 %v4228_v20, %v4225_v19  ;;  %v4324_v34 = vand.u32 4294901760, %v4323_v29 }
 0x476   :  { %28752 = vmatmul.mubr.f32.vlgmr.msra.gmra.mrb[20].mxu1 %v2761_v8  ;;  %v4325_v38 = vsub.f32 %v4323_v29, %v4324_v34 }
 0x477   :  { %28755 = vmatpush3.msra.mxu1 %v2695_v13  ;;  %28756 = vmatprep.mubr.msk.f32.mxu1 %vm33276_vm1, %v33277_v7 }
 0x478   :  { %28759 = vmatprep.subr.mxu1 %v33277_v7  ;;  %v4326_v41 = vand.u32 4294901760, %v4325_v38 }
 0x47a   :  { %28757 = vmatmul.mubr.f32.vlgmr.msra.gmra.mrb[22].mxu1 %v2762_v9 }
 0x47b   :  { %28760 = vmatpush3.msra.mxu1 %v2773_v16  ;;  %28761 = vmatprep.mubr.msk.f32.mxu1 %vm33276_vm1, %v33277_v7 }
 0x47c   :  { %28764 = vmatprep.subr.mxu1 %v33277_v7 }
 0x47e   :  { %28762 = vmatmul.mubr.f32.vlgmr.msra.gmra.mrb[24].mxu1 %v2760_v6 }
 0x47f   :  { %28765 = vmatpush3.msra.mxu1 %v2695_v13  ;;  %28766 = vmatprep.mubr.msk.f32.mxu1 %vm33276_vm1, %v33277_v7  ;;  %v27238_v13 = vld [vmem:[%s35702_s19 + $0x28] sm:$0xff] }
 0x480   :  { %31026 = vmatprep.subr.bf16.mxu1 %v33974_v30  ;;  %v4222_v15 = vand.u32 4294901760, %v27238_v13 }
 0x482   :  { %28767 = vmatmul.mubr.f32.vlgmr.msra.gmra.mrb[26].mxu1 %v2760_v6  ;;  %v3221_v6 = vand.u32 4294901760, %v34032_v5  ;;  %v34058_v16 = vpack.c.bf16 %v4222_v15, %v4219_v14  ;;  %v4316_v23 = vsub.f32 %v27238_v13, %v4222_v15  ;;  %v3142_v15 = vstv %s3141_s26  ;;  %s27214_s26 = sshll.u32 %s33281_s7, 4  ;;  %s27215_s26 = int_to_ptr.vmem [resolvable:$true] %s27214_s26 }
 0x483   :  { %31028 = vmatpush3.bf16.msra.mxu1 %v33974_v30  ;;  %28807 = vmatprep.mubr.f32.mxu1 %v34014_v52  ;;  %p33206_p6 = scmp.lt.s32.totalorder %s27215_s26, %s27215_s26 }
 0x484   :  { %31030 = vmatprep.subr.bf16.mxu1 %v34001_v42  ;;  %v3222_v8 = vsub.f32 %v34032_v5, %v3221_v6  ;;  %v4317_v25 = vand.u32 4294901760, %v4316_v23  ;;  %v34079_v45 = vpack.c.bf16 %v4316_v23, %v4309_v22 }
 0x486   :  { %v3223_v9 = vand.u32 4294901760, %v3222_v8  ;;  %v4318_v27 = vsub.f32 %v4316_v23, %v4317_v25  ;;  %v34083_v47 = vpack.c.bf16 %v4317_v25, %v4310_v24 }
 0x487   :  { %31032 = vmatpush3.bf16.msra.mxu1 %v34001_v42 }
 0x488   :  { %31034 = vmatprep.subr.bf16.mxu1 %v31033_v57  ;;  %28771 = vmatprep.mubr.f32.mxu0 %v3223_v9  ;;  %v4319_v2 = vand.u32 4294901760, %v4318_v27 }
 0x48a   :  { %28808 = vmatmul.mubr.f32.vlgmr.msra.gmra.mrb[28].mxu1 %v34016_v55  ;;  %v34075_v37 = vpack.c.bf16 %v4319_v2, %v4312_v33 }
 0x48b   :  { %28818 = vmatprep.mubr.f32.mxu1 %v33971_v28  ;;  %31036 = vmatpush3.bf16.msra.mxu1 %v31033_v57 }
 0x48c   :  { %31038 = vmatprep.subr.bf16.mxu1 %v31037_v61 }
 0x48f   :  { %31040 = vmatpush3.bf16.msra.mxu1 %v31037_v61 }
 0x490   :  { %31042 = vmatprep.subr.bf16.mxu1 %v31041_v62 }
 0x492   :  { %28819 = vmatmul.mubr.f32.vlgmr.msra.gmra.mrb[28].mxu1 %v33976_v32 }
 0x493   :  { %31044 = vmatpush3.bf16.msra.mxu1 %v31041_v62  ;;  %28829 = vmatprep.mubr.f32.mxu1 %v33989_v36 }
 0x494   :  { %31046 = vmatprep.subr.bf16.mxu1 %v31045_v3 }
 0x497   :  { %31048 = vmatpush3.bf16.msra.mxu1 %v31045_v3 }
 0x498   :  { %31050 = vmatprep.subr.bf16.mxu1 %v33974_v30 }
 0x49a   :  { %28830 = vmatmul.mubr.f32.vlgmr.msra.gmra.mrb[28].mxu1 %v33993_v31 }
 0x49b   :  { %31052 = vmatpush3.bf16.msra.mxu1 %v33974_v30  ;;  %28840 = vmatprep.mubr.f32.mxu1 %v33998_v40 }
 0x49c   :  { %31054 = vmatprep.subr.bf16.mxu1 %v34001_v42 }
 0x49f   :  { %31056 = vmatpush3.bf16.msra.mxu1 %v34001_v42 }
 0x4a0   :  { %31058 = vmatprep.subr.bf16.mxu1 %v31057_v10 }
 0x4a2   :  { %28841 = vmatmul.mubr.f32.vlgmr.msra.gmra.mrb[28].mxu1 %v34004_v43 }
 0x4a3   :  { %31060 = vmatpush3.bf16.msra.mxu1 %v31057_v10  ;;  %28851 = vmatprep.mubr.f32.mxu1 %v33971_v28  ;;  %v3230_v10 = vsub.f32 %v3151_v60, %v3229_v0 }
 0x4a4   :  { %31062 = vmatprep.subr.bf16.mxu1 %v31061_v11 }
 0x4a5   :  { %v3231_v14 = vand.u32 4294901760, %v3230_v10 }
 0x4a7   :  { %31064 = vmatpush3.bf16.msra.mxu1 %v31061_v11  ;;  %v3232_v19 = vsub.f32 %v3230_v10, %v3231_v14 }
 0x4a8   :  { %31066 = vmatprep.subr.bf16.mxu1 %v33974_v30 }
 0x4a9   :  { %v3233_v23 = vand.u32 4294901760, %v3232_v19 }
 0x4aa   :  { %28852 = vmatmul.mubr.f32.vlgmr.msra.gmra.mrb[28].mxu1 %v33976_v32 }
 0x4ab   :  { %31068 = vmatpush3.bf16.msra.mxu1 %v33974_v30  ;;  %28862 = vmatprep.mubr.f32.mxu1 %v33971_v28  ;;  %v4330_v30 = vsub.f32 %v27240_v18, %v4228_v20 }
 0x4ac   :  { %31070 = vmatprep.subr.bf16.mxu1 %v34001_v42 }
 0x4ad   :  { %v4331_v35 = vand.u32 4294901760, %v4330_v30  ;;  %v34081_v46 = vpack.c.bf16 %v4330_v30, %v4323_v29  ;;  %v27243_v29 = vld [vmem:[%s35702_s19 + $0x50] sm:$0xff] }
 0x4ae   :  { %v5777_v33 = vand.u32 4294901760, %v27243_v29 }
 0x4af   :  { %31072 = vmatpush3.bf16.msra.mxu1 %v34001_v42  ;;  %v4332_v39 = vsub.f32 %v4330_v30, %v4331_v35  ;;  %v34085_v48 = vpack.c.bf16 %v4331_v35, %v4324_v34  ;;  %v27244_v30 = vld [vmem:[%s35702_s19 + $0x58] sm:$0xff] }
 0x4b0   :  { %31074 = vmatprep.subr.bf16.mxu1 %v34058_v16  ;;  %v5780_v2 = vand.u32 4294901760, %v27244_v30 }
 0x4b1   :  { %v4333_v42 = vand.u32 4294901760, %v4332_v39  ;;  %v5875_v39 = vsub.f32 %v27243_v29, %v5777_v33 }
 0x4b2   :  { %28863 = vmatmul.mubr.f32.vlgmr.msra.gmra.mrb[28].mxu1 %v33976_v32 }
 0x4b3   :  { %31076 = vmatpush3.bf16.msra.mxu1 %v34058_v16  ;;  %28873 = vmatprep.mubr.f32.mxu1 %v34014_v52  ;;  %v34077_v44 = vpack.c.bf16 %v4333_v42, %v4326_v41  ;;  %v5882_v41 = vsub.f32 %v27244_v30, %v5780_v2 }
 0x4b4   :  { %31078 = vmatprep.subr.bf16.mxu1 %v34068_v21 }
 0x4b7   :  { %31080 = vmatpush3.bf16.msra.mxu1 %v34068_v21 }
 0x4ba   :  { %28874 = vmatmul.mubr.f32.vlgmr.msra.gmra.mrb[30].mxu1 %v34016_v55 }
 0x53d   :  { %v2766_v49 = vpop.f32.mrb[16].mxu1 }
 0x53e   :  { %v28743_v50 = vpop.f32.mrb[17].mxu1 }
 0x545   :  { %v2842_v51 = vpop.f32.mrb[18].mxu1 }
 0x546   :  { %v2843_v53 = vadd.f32 %v2842_v51, %v2766_v49  ;;  %v28748_v54 = vpop.f32.mrb[19].mxu1 }
 0x549   :  { %v2916_v57 = vpop.f32.mrb[20].mxu1 }
 0x54a   :  { %v2917_v58 = vadd.f32 %v2916_v57, %v2843_v53  ;;  %v28753_v59 = vpop.f32.mrb[21].mxu1 }
 0x54d   :  { %v2990_v61 = vpop.f32.mrb[22].mxu1 }
 0x54e   :  { %v2991_v62 = vadd.f32 %v2990_v61, %v2917_v58  ;;  %v28758_v63 = vpop.f32.mrb[23].mxu1  ;;  %v31189_v58 = vpack.c.bf16 %v5882_v41, %v5875_v39 }
 0x551   :  { %v3064_v3 = vpop.f32.mrb[24].mxu1 }
 0x552   :  { %v3065_v8 = vadd.f32 %v3064_v3, %v2991_v62  ;;  %v28763_v9 = vpop.f32.mrb[25].mxu1 }
 0x555   :  { %v3136_v11 = vpop.f32.mrb[26].mxu1 }
 0x556   :  { %v3137_v12 = vadd.f32 %v3136_v11, %v3065_v8  ;;  %v28768_v13 = vpop.f32.mrb[27].mxu1 }
 0x558   :  { %v3140_v17 = vadd.f32 %v3137_v12, %v33944_v1  ;;  %v27241_v1 = vld [vmem:[%s35702_s19 + $0x40] sm:$0xff] }
 0x55a   :  { %v3143_v18 = vadd.f32 %v3142_v15, %v3140_v17 }
 0x55c   :  { %v3144_v20 = vmax.f32 %v3143_v18, 0.0 }
 0x55e   :  { %v3154_v22 = vand.u32 4294901760, %v3144_v20 }
 0x560   :  { %v3241_v24 = vsub.f32 %v3144_v20, %v3154_v22  ;;  %28769 = vmatprep.subr.mxu0 %v3154_v22 }
 0x561   :  { %28770 = vmatpush3.msra.mxu0 %v3154_v22 }
 0x562   :  { %28772 = vmatmul.mubr.f32.vlgmr.msra.gmra.mrb[16].mxu0 %v3233_v23  ;;  %v3242_v25 = vand.u32 4294901760, %v3241_v24 }
 0x563   :  { %28776 = vmatprep.mubr.f32.mxu0 %v34029_v4 }
 0x564   :  { %v3243_v26 = vsub.f32 %v3241_v24, %v3242_v25 }
 0x566   :  { %v3244_v27 = vand.u32 4294901760, %v3243_v26 }
 0x568   :  { %28774 = vmatprep.subr.mxu0 %v3244_v27 }
 0x569   :  { %28775 = vmatpush3.msra.mxu0 %v3244_v27 }
 0x56a   :  { %28777 = vmatmul.mubr.f32.vlgmr.msra.gmra.mrb[16].mxu0 %v3229_v0  ;;  %28779 = vmatprep.subr.mxu0 %v3241_v24 }
 0x56b   :  { %28780 = vmatpush3.msra.mxu0 %v3241_v24  ;;  %28781 = vmatprep.mubr.f32.mxu0 %v34032_v5  ;;  %v5771_v5 = vand.u32 4294901760, %v27241_v1 }
 0x56c   :  { %28784 = vmatprep.subr.mxu0 %v3154_v22 }
 0x56d   :  { %v5861_v34 = vsub.f32 %v27241_v1, %v5771_v5 }
 0x572   :  { %28782 = vmatmul.mubr.f32.vlgmr.msra.gmra.mrb[16].mxu0 %v3230_v10 }
 0x573   :  { %28785 = vmatpush3.msra.mxu0 %v3154_v22  ;;  %28786 = vmatprep.mubr.f32.mxu0 %v3221_v6 }
 0x574   :  { %28789 = vmatprep.subr.mxu0 %v3242_v25 }
 0x57a   :  { %28787 = vmatmul.mubr.f32.vlgmr.msra.gmra.mrb[16].mxu0 %v3231_v14 }
 0x57b   :  { %28790 = vmatpush3.msra.mxu0 %v3242_v25  ;;  %28791 = vmatprep.mubr.f32.mxu0 %v34029_v4 }
 0x57c   :  { %28794 = vmatprep.subr.mxu0 %v3154_v22 }
 0x582   :  { %28792 = vmatmul.mubr.f32.vlgmr.msra.gmra.mrb[16].mxu0 %v3229_v0 }
 0x583   :  { %28795 = vmatpush3.msra.mxu0 %v3154_v22  ;;  %28796 = vmatprep.mubr.f32.mxu0 %v34029_v4  ;;  %v27242_v4 = vld [vmem:[%s35702_s19 + $0x48] sm:$0xff] }
 0x584   :  { %31082 = vmatprep.subr.bf16.mxu0 %v34075_v37  ;;  %v5774_v6 = vand.u32 4294901760, %v27242_v4 }
 0x586   :  { %v5868_v35 = vsub.f32 %v27242_v4, %v5774_v6  ;;  %v34137_v42 = vpack.c.bf16 %v5774_v6, %v5771_v5 }
 0x588   :  { %v5869_v38 = vand.u32 4294901760, %v5868_v35  ;;  %v31185_v57 = vpack.c.bf16 %v5868_v35, %v5861_v34 }
 0x58a   :  { %28797 = vmatmul.mubr.f32.vlgmr.msra.gmra.mrb[16].mxu0 %v3229_v0 }
 0x58b   :  { %31084 = vmatpush3.bf16.msra.mxu0 %v34075_v37  ;;  %28884 = vmatprep.mubr.f32.mxu0 %v33971_v28  ;;  %v5862_v37 = vand.u32 4294901760, %v5861_v34 }
 0x58c   :  { %31086 = vmatprep.subr.bf16.mxu0 %v34077_v44 }
 0x58d   :  { %v31201_v60 = vpack.c.bf16 %v5869_v38, %v5862_v37 }
 0x58f   :  { %31088 = vmatpush3.bf16.msra.mxu0 %v34077_v44  ;;  %v5863_v44 = vsub.f32 %v5861_v34, %v5862_v37 }
 0x590   :  { %31090 = vmatprep.subr.bf16.mxu0 %v34079_v45 }
 0x591   :  { %v5864_v49 = vand.u32 4294901760, %v5863_v44 }
 0x592   :  { %28885 = vmatmul.mubr.f32.vlgmr.msra.gmra.mrb[18].mxu0 %v33976_v32 }
 0x593   :  { %31092 = vmatpush3.bf16.msra.mxu0 %v34079_v45  ;;  %28895 = vmatprep.mubr.f32.mxu0 %v33989_v36  ;;  %v5870_v45 = vsub.f32 %v5868_v35, %v5869_v38 }
 0x594   :  { %31094 = vmatprep.subr.bf16.mxu0 %v34081_v46 }
 0x595   :  { %v5871_v50 = vand.u32 4294901760, %v5870_v45 }
 0x597   :  { %31096 = vmatpush3.bf16.msra.mxu0 %v34081_v46  ;;  %v5876_v46 = vand.u32 4294901760, %v5875_v39  ;;  %v31177_v53 = vpack.c.bf16 %v5871_v50, %v5864_v49  ;;  %v3669_v50 = vld [vmem:[#allocation19] sm:$0xff] }
 0x598   :  { %31098 = vmatprep.subr.bf16.mxu0 %v34058_v16 }
 0x599   :  { %v5877_v51 = vsub.f32 %v5875_v39, %v5876_v46 }
 0x59a   :  { %28896 = vmatmul.mubr.f32.vlgmr.msra.gmra.mrb[18].mxu0 %v33993_v31 }
 0x59b   :  { %31100 = vmatpush3.bf16.msra.mxu0 %v34058_v16  ;;  %28906 = vmatprep.mubr.f32.mxu0 %v33998_v40  ;;  %v5878_v54 = vand.u32 4294901760, %v5877_v51  ;;  %v5255_v51 = vsel %vm402_vm3, %v3669_v50, 0 }
 0x59c   :  { %31102 = vmatprep.subr.bf16.mxu0 %v34068_v21 }
 0x59f   :  { %31104 = vmatpush3.bf16.msra.mxu0 %v34068_v21 }
 0x5a0   :  { %31106 = vmatprep.subr.bf16.mxu0 %v34083_v47 }
 0x5a2   :  { %28907 = vmatmul.mubr.f32.vlgmr.msra.gmra.mrb[18].mxu0 %v34004_v43 }
 0x5a3   :  { %31108 = vmatpush3.bf16.msra.mxu0 %v34083_v47  ;;  %28917 = vmatprep.mubr.f32.mxu0 %v33971_v28  ;;  %v5883_v47 = vand.u32 4294901760, %v5882_v41 }
 0x5a4   :  { %31110 = vmatprep.subr.bf16.mxu0 %v34085_v48 }
 0x5a7   :  { %31112 = vmatpush3.bf16.msra.mxu0 %v34085_v48  ;;  %v34141_v48 = vpack.c.bf16 %v5780_v2, %v5777_v33 }
 0x5a8   :  { %31114 = vmatprep.subr.bf16.mxu0 %v34058_v16 }
 0x5aa   :  { %28918 = vmatmul.mubr.f32.vlgmr.msra.gmra.mrb[18].mxu0 %v33976_v32 }
 0x5ab   :  { %31116 = vmatpush3.bf16.msra.mxu0 %v34058_v16  ;;  %28928 = vmatprep.mubr.f32.mxu0 %v33971_v28  ;;  %v5884_v16 = vsub.f32 %v5882_v41, %v5883_v47 }
 0x5ac   :  { %31118 = vmatprep.subr.bf16.mxu0 %v34068_v21 }
 0x5ad   :  { %v5885_v56 = vand.u32 4294901760, %v5884_v16  ;;  %v34187_v16 = vand.u32 4294901760, %v5255_v51 }
 0x5af   :  { %31120 = vmatpush3.bf16.msra.mxu0 %v34068_v21  ;;  %v31181_v21 = vpack.c.bf16 %v5885_v56, %v5878_v54  ;;  %v5328_v54 = vsub.f32 %v5255_v51, %v34187_v16 }
 0x5b0   :  { %31170 = vmatprep.subr.bf16.mxu0 %v34137_v42 }
 0x5b2   :  { %28929 = vmatmul.mubr.f32.vlgmr.msra.gmra.mrb[18].mxu0 %v33976_v32 }
 0x5b3   :  { %31172 = vmatpush3.bf16.msra.mxu0 %v34137_v42  ;;  %29023 = vmatprep.mubr.f32.mxu0 %v34014_v52  ;;  %v28864_v52 = vpop.f32.mrb[28].mxu1 }
 0x5b4   :  { %31174 = vmatprep.subr.bf16.mxu0 %v34141_v48  ;;  %v4200_v59 = vpop.f32.mrb[29].mxu1 }
 0x5b5   :  { %v5261_v61 = vand.u32 4294901760, %v4200_v59  ;;  %v28875_v9 = vpop.f32.mrb[30].mxu1 }
 0x5b6   :  { %v4293_v11 = vpop.f32.mrb[31].mxu1 }
 0x5b7   :  { %31176 = vmatpush3.bf16.msra.mxu0 %v34141_v48 }
 0x5b8   :  { %31178 = vmatprep.subr.bf16.mxu0 %v31177_v53 }
 0x5ba   :  { %29024 = vmatmul.mubr.f32.vlgmr.msra.gmra.mrb[20].mxu0 %v34016_v55  ;;  %v5264_v55 = vand.u32 4294901760, %v28864_v52 }
 0x5bb   :  { %31180 = vmatpush3.bf16.msra.mxu0 %v31177_v53  ;;  %29034 = vmatprep.mubr.f32.mxu0 %v33971_v28  ;;  %v3670_v53 = vld [vmem:[#allocation19 + $0x8] sm:$0xff] }
 0x5bc   :  { %31182 = vmatprep.subr.bf16.mxu0 %v31181_v21  ;;  %v5356_v62 = vsub.f32 %v28864_v52, %v5264_v55  ;;  %v34158_v63 = vpack.c.bf16 %v5264_v55, %v5261_v61  ;;  %v5258_v56 = vsel %vm402_vm3, %v3670_v53, 0 }
 0x5be   :  { %v5357_v0 = vand.u32 4294901760, %v5356_v62 }
 0x5bf   :  { %31184 = vmatpush3.bf16.msra.mxu0 %v31181_v21  ;;  %v34191_v21 = vand.u32 4294901760, %v5258_v56 }
 0x5c0   :  { %31186 = vmatprep.subr.bf16.mxu0 %v31185_v57  ;;  %v5358_v8 = vsub.f32 %v5356_v62, %v5357_v0 }
 0x5c2   :  { %29035 = vmatmul.mubr.f32.vlgmr.msra.gmra.mrb[20].mxu0 %v33976_v32  ;;  %v5359_v13 = vand.u32 4294901760, %v5358_v8 }
 0x5c3   :  { %31188 = vmatpush3.bf16.msra.mxu0 %v31185_v57  ;;  %29045 = vmatprep.mubr.f32.mxu0 %v33989_v36  ;;  %v5349_v36 = vsub.f32 %v4200_v59, %v5261_v61  ;;  %v5329_v57 = vand.u32 4294901760, %v5328_v54 }
 0x5c4   :  { %31190 = vmatprep.subr.bf16.mxu0 %v31189_v58 }
 0x5c5   :  { %v5350_v3 = vand.u32 4294901760, %v5349_v36  ;;  %v34162_v10 = vpack.c.bf16 %v5356_v62, %v5349_v36  ;;  %v5330_v52 = vsub.f32 %v5328_v54, %v5329_v57 }
 0x5c7   :  { %31192 = vmatpush3.bf16.msra.mxu0 %v31189_v58  ;;  %v34165_v14 = vpack.c.bf16 %v5357_v0, %v5350_v3  ;;  %v5338_v58 = vsub.f32 %v5258_v56, %v34191_v21  ;;  %v5331_v62 = vand.u32 4294901760, %v5330_v52 }
 0x5c8   :  { %31194 = vmatprep.subr.bf16.mxu0 %v34137_v42 }
 0x5c9   :  { %v5339_v59 = vand.u32 4294901760, %v5338_v58 }
 0x5ca   :  { %29046 = vmatmul.mubr.f32.vlgmr.msra.gmra.mrb[20].mxu0 %v33993_v31  ;;  %v31205_v31 = vpack.c.bf16 %v5883_v47, %v5876_v46 }
 0x5cb   :  { %31196 = vmatpush3.bf16.msra.mxu0 %v34137_v42  ;;  %29056 = vmatprep.mubr.f32.mxu0 %v33998_v40  ;;  %v5351_v40 = vsub.f32 %v5349_v36, %v5350_v3  ;;  %v5340_v8 = vsub.f32 %v5338_v58, %v5339_v59 }
 0x5cc   :  { %31198 = vmatprep.subr.bf16.mxu0 %v34141_v48 }
 0x5cd   :  { %v5352_v12 = vand.u32 4294901760, %v5351_v40 }
 0x5cf   :  { %31200 = vmatpush3.bf16.msra.mxu0 %v34141_v48  ;;  %v34167_v15 = vpack.c.bf16 %v5359_v13, %v5352_v12 }
 0x5d0   :  { %31202 = vmatprep.subr.bf16.mxu0 %v31201_v60 }
 0x5d2   :  { %29057 = vmatmul.mubr.f32.vlgmr.msra.gmra.mrb[20].mxu0 %v34004_v43  ;;  %v4211_v43 = vld [vmem:[#allocation19 + $0x10] sm:$0xff] }
 0x5d3   :  { %31204 = vmatpush3.bf16.msra.mxu0 %v31201_v60  ;;  %29067 = vmatprep.mubr.f32.mxu0 %v33971_v28  ;;  %v4747_v17 = vsel %vm402_vm3, %v4211_v43, 0  ;;  %v5341_v43 = vand.u32 4294901760, %v5340_v8 }
 0x5d4   :  { %31206 = vmatprep.subr.bf16.mxu0 %v31205_v31  ;;  %v4819_v18 = vand.u32 4294901760, %v4747_v17 }
 0x5d6   :  { %v4820_v19 = vsub.f32 %v4747_v17, %v4819_v18 }
 0x5d7   :  { %31208 = vmatpush3.bf16.msra.mxu0 %v31205_v31 }
 0x5d8   :  { %31210 = vmatprep.subr.bf16.mxu0 %v34137_v42  ;;  %v4821_v20 = vand.u32 4294901760, %v4820_v19 }
 0x5da   :  { %29068 = vmatmul.mubr.f32.vlgmr.msra.gmra.mrb[20].mxu0 %v33976_v32  ;;  %v4822_v22 = vsub.f32 %v4820_v19, %v4821_v20 }
 0x5db   :  { %31212 = vmatpush3.bf16.msra.mxu0 %v34137_v42  ;;  %29078 = vmatprep.mubr.f32.mxu0 %v33971_v28  ;;  %v4212_v28 = vld [vmem:[#allocation19 + $0x18] sm:$0xff] }
 0x5dc   :  { %31214 = vmatprep.subr.bf16.mxu0 %v34141_v48  ;;  %v4823_v23 = vand.u32 4294901760, %v4822_v22  ;;  %v4750_v26 = vsel %vm402_vm3, %v4212_v28, 0  ;;  %v5763_v22 = vld [vmem:[#allocation19 + $0x20] sm:$0xff]  ;;  %v5764_v28 = vld [vmem:[#allocation19 + $0x28] sm:$0xff] }
 0x5dd   :  { %v34182_v27 = vand.u32 4294901760, %v4750_v26 }
 0x5de   :  { %28935 = vmatprep.mubr.f32.mxu1 %v4823_v23 }
 0x5df   :  { %31216 = vmatpush3.bf16.msra.mxu0 %v34141_v48 }
 0x5e2   :  { %29079 = vmatmul.mubr.f32.vlgmr.msra.gmra.mrb[20].mxu0 %v33976_v32  ;;  %v4830_v32 = vsub.f32 %v4750_v26, %v34182_v27  ;;  %v6302_v26 = vsel %vm402_vm3, %v5764_v28, 0  ;;  %v7326_v28 = vld [vmem:[#allocation22 + $0x10] sm:$0xff] }
 0x5e4   :  { %v4831_v4 = vand.u32 4294901760, %v4830_v32 }
 0x5e6   :  { %v4832_v2 = vsub.f32 %v4830_v32, %v4831_v4 }
 0x5e8   :  { %v4833_v41 = vand.u32 4294901760, %v4832_v2 }
 0x65d   :  { %v34177_v24 = vpop.f32.mrb[16].mxu0 }
 0x65e   :  { %v34179_v25 = vpop.f32.mrb[17].mxu0 }
 0x685   :  { %v28930_v1 = vpop.f32.mrb[18].mxu0 }
 0x686   :  { %v32178_v5 = vadd.f32 %v28930_v1, %v28875_v9  ;;  %v4736_v6 = vpop.f32.mrb[19].mxu0 }
 0x687   :  { %v32179_v29 = vadd.f32 %v4736_v6, %v4293_v11 }
 0x688   :  { %v4756_v30 = vand.u32 4294901760, %v32178_v5 }
 0x689   :  { %v4753_v33 = vand.u32 4294901760, %v32179_v29 }
 0x68a   :  { %v4848_v34 = vsub.f32 %v32178_v5, %v4756_v30 }
 0x68b   :  { %v31121_v35 = vpack.c.bf16 %v4756_v30, %v4753_v33  ;;  %v4841_v37 = vsub.f32 %v32179_v29, %v4753_v33 }
 0x68c   :  { %v4849_v38 = vand.u32 4294901760, %v4848_v34 }
 0x68d   :  { %v4842_v39 = vand.u32 4294901760, %v4841_v37  ;;  %31122 = vmatprep.subr.bf16.mxu1 %v31121_v35  ;;  %v31129_v42 = vpack.c.bf16 %v4848_v34, %v4841_v37 }
 0x68e   :  { %31124 = vmatpush3.bf16.msra.mxu1 %v31121_v35  ;;  %v4850_v44 = vsub.f32 %v4848_v34, %v4849_v38 }
 0x68f   :  { %v4843_v45 = vsub.f32 %v4841_v37, %v4842_v39  ;;  %v31137_v46 = vpack.c.bf16 %v4849_v38, %v4842_v39  ;;  %v10442_v38 = vld [vmem:[%s35704_s3 + $0x10] sm:$0xff]  ;;  %v10443_v39 = vld [vmem:[%s35704_s3 + $0x18] sm:$0xf] }
 0x690   :  { %v4851_v47 = vand.u32 4294901760, %v4850_v44  ;;  %10450 = vrot.lane.b32.xlu1 %v10442_v38, %s33279_s0  ;;  %10452 = vrot.lane.b32.xlu0 %v10443_v39, %s33279_s0 }
 0x691   :  { %28936 = vmatmul.mubr.f32.vlgmr.msra.gmra.mrb[32].mxu1 %v4833_v41  ;;  %v4844_v48 = vand.u32 4294901760, %v4843_v45  ;;  %v6815_v41 = vld [vmem:[#allocation21 + $0x8] sm:$0xff]  ;;  %v6809_v45 = vstv %s27245_s14 }
 0x692   :  { %28942 = vmatprep.mubr.f32.mxu1 %v4819_v18 }
 0x693   :  { %v31125_v49 = vpack.c.bf16 %v4851_v47, %v4844_v48 }
 0x695   :  { %31126 = vmatprep.subr.bf16.mxu1 %v31125_v49 }
 0x696   :  { %31128 = vmatpush3.bf16.msra.mxu1 %v31125_v49 }
 0x697   :  { %31130 = vmatprep.subr.bf16.mxu1 %v31129_v42 }
 0x699   :  { %28943 = vmatmul.mubr.f32.vlgmr.msra.gmra.mrb[32].mxu1 %v34182_v27 }
 0x69a   :  { %31132 = vmatpush3.bf16.msra.mxu1 %v31129_v42  ;;  %28949 = vmatprep.mubr.f32.mxu1 %v4820_v19  ;;  %v6820_v42 = vsel %vm402_vm3, %v6815_v41, 0 }
 0x69b   :  { %31134 = vmatprep.subr.bf16.mxu1 %v31121_v35  ;;  %v6899_v44 = vand.u32 4294901760, %v6820_v42 }
 0x6a1   :  { %28950 = vmatmul.mubr.f32.vlgmr.msra.gmra.mrb[32].mxu1 %v4830_v32 }
 0x6a2   :  { %31136 = vmatpush3.bf16.msra.mxu1 %v31121_v35  ;;  %28956 = vmatprep.mubr.f32.mxu1 %v4821_v20 }
 0x6a3   :  { %31138 = vmatprep.subr.bf16.mxu1 %v31137_v46 }
 0x6a9   :  { %28957 = vmatmul.mubr.f32.vlgmr.msra.gmra.mrb[32].mxu1 %v4831_v4 }
 0x6aa   :  { %31140 = vmatpush3.bf16.msra.mxu1 %v31137_v46  ;;  %28963 = vmatprep.mubr.f32.mxu1 %v4819_v18  ;;  %v6900_v46 = vsub.f32 %v6820_v42, %v6899_v44 }
 0x6ab   :  { %31142 = vmatprep.subr.bf16.mxu1 %v31121_v35 }
 0x6ac   :  { %v6901_v51 = vand.u32 4294901760, %v6900_v46 }
 0x6b1   :  { %28964 = vmatmul.mubr.f32.vlgmr.msra.gmra.mrb[32].mxu1 %v34182_v27 }
 0x6b2   :  { %31144 = vmatpush3.bf16.msra.mxu1 %v31121_v35  ;;  %28970 = vmatprep.mubr.f32.mxu1 %v4819_v18 }
 0x6b3   :  { %31146 = vmatprep.subr.bf16.mxu1 %v34158_v63 }
 0x6b5   :  { %v29080_v55 = vpop.f32.mrb[20].mxu0 }
 0x6b6   :  { %v6308_v60 = vand.u32 4294901760, %v29080_v55  ;;  %v6288_v61 = vpop.f32.mrb[21].mxu0 }
 0x6b7   :  { %v6305_v36 = vand.u32 4294901760, %v6288_v61 }
 0x6b8   :  { %v6400_v0 = vsub.f32 %v29080_v55, %v6308_v60 }
 0x6b9   :  { %v34196_v31 = vpack.c.bf16 %v6308_v60, %v6305_v36  ;;  %v6393_v3 = vsub.f32 %v6288_v61, %v6305_v36  ;;  %28971 = vmatmul.mubr.f32.vlgmr.msra.gmra.mrb[32].mxu1 %v34182_v27  ;;  %v6381_v27 = vand.u32 4294901760, %v6302_v26 }
 0x6ba   :  { %v6401_v40 = vand.u32 4294901760, %v6400_v0  ;;  %31148 = vmatpush3.bf16.msra.mxu1 %v34158_v63  ;;  %28977 = vmatprep.mubr.f32.mxu1 %v5331_v62 }
 0x6bb   :  { %v6394_v9 = vand.u32 4294901760, %v6393_v3  ;;  %31150 = vmatprep.subr.bf16.mxu1 %v34167_v15  ;;  %v31225_v11 = vpack.c.bf16 %v6400_v0, %v6393_v3  ;;  %v6382_v1 = vsub.f32 %v6302_v26, %v6381_v27  ;;  %v8373_v26 = vld [vmem:[#allocation22 + $0x30] sm:$0xff] }
 0x6bc   :  { %v6402_v12 = vsub.f32 %v6400_v0, %v6401_v40 }
 0x6bd   :  { %v6395_v13 = vsub.f32 %v6393_v3, %v6394_v9  ;;  %v31233_v17 = vpack.c.bf16 %v6401_v40, %v6394_v9  ;;  %v7324_v40 = vld [vmem:[#allocation22] sm:$0xff]  ;;  %v7325_v9 = vld [vmem:[#allocation22 + $0x8] sm:$0xff] }
 0x6be   :  { %v6403_v18 = vand.u32 4294901760, %v6402_v12  ;;  %v7335_v12 = vand.u32 4294901760, %v7324_v40 }
 0x6bf   :  { %v6396_v19 = vand.u32 4294901760, %v6395_v13  ;;  %v7338_v13 = vand.u32 4294901760, %v7325_v9 }
 0x6c1   :  { %28978 = vmatmul.mubr.f32.vlgmr.msra.gmra.mrb[32].mxu1 %v5341_v43  ;;  %v31221_v20 = vpack.c.bf16 %v6403_v18, %v6396_v19  ;;  %v8372_v43 = vld [vmem:[#allocation22 + $0x28] sm:$0xff]  ;;  %v34232_v19 = vpack.c.bf16 %v7338_v13, %v7335_v12 }
 0x6c2   :  { %31152 = vmatpush3.bf16.msra.mxu1 %v34167_v15  ;;  %28984 = vmatprep.mubr.f32.mxu1 %v34187_v16  ;;  %v6299_v15 = vsel %vm402_vm3, %v5763_v22, 0  ;;  %v8379_v18 = vand.u32 4294901760, %v8372_v43  ;;  %v7432_v22 = vsub.f32 %v7325_v9, %v7338_v13 }
 0x6c3   :  { %31154 = vmatprep.subr.bf16.mxu1 %v34162_v10  ;;  %v6371_v23 = vand.u32 4294901760, %v6299_v15 }
 0x6c9   :  { %28985 = vmatmul.mubr.f32.vlgmr.msra.gmra.mrb[32].mxu1 %v34191_v21 }
 0x6ca   :  { %31156 = vmatpush3.bf16.msra.mxu1 %v34162_v10  ;;  %28991 = vmatprep.mubr.f32.mxu1 %v5328_v54  ;;  %v6372_v10 = vsub.f32 %v6299_v15, %v6371_v23 }
 0x6cb   :  { %31158 = vmatprep.subr.bf16.mxu1 %v34158_v63 }
 0x6cc   :  { %v6373_v32 = vand.u32 4294901760, %v6372_v10 }
 0x6ce   :  { %v6374_v4 = vsub.f32 %v6372_v10, %v6373_v32 }
 0x6d0   :  { %v6375_v5 = vand.u32 4294901760, %v6374_v4  ;;  %v8374_v4 = vld [vmem:[#allocation22 + $0x38] sm:$0xff] }
 0x6d1   :  { %28992 = vmatmul.mubr.f32.vlgmr.msra.gmra.mrb[32].mxu1 %v5338_v58 }
 0x6d2   :  { %31160 = vmatpush3.bf16.msra.mxu1 %v34158_v63  ;;  %28998 = vmatprep.mubr.f32.mxu1 %v5329_v57 }
 0x6d3   :  { %31162 = vmatprep.subr.bf16.mxu1 %v34165_v14 }
 0x6d9   :  { %28999 = vmatmul.mubr.f32.vlgmr.msra.gmra.mrb[32].mxu1 %v5339_v59 }
 0x6da   :  { %31164 = vmatpush3.bf16.msra.mxu1 %v34165_v14  ;;  %29005 = vmatprep.mubr.f32.mxu1 %v34187_v16  ;;  %v6383_v14 = vand.u32 4294901760, %v6382_v1 }
 0x6db   :  { %31166 = vmatprep.subr.bf16.mxu1 %v34158_v63 }
 0x6dc   :  { %v6384_v6 = vsub.f32 %v6382_v1, %v6383_v14 }
 0x6de   :  { %v6385_v29 = vand.u32 4294901760, %v6384_v6  ;;  %v8385_v6 = vand.u32 4294901760, %v8374_v4 }
 0x6e1   :  { %29006 = vmatmul.mubr.f32.vlgmr.msra.gmra.mrb[32].mxu1 %v34191_v21 }
 0x6e2   :  { %31168 = vmatpush3.bf16.msra.mxu1 %v34158_v63  ;;  %29012 = vmatprep.mubr.f32.mxu1 %v34187_v16  ;;  %v6814_v63 = vld [vmem:[#allocation21] sm:$0xff] }
 0x6e3   :  { %31218 = vmatprep.subr.bf16.mxu1 %v34196_v31  ;;  %v6817_v30 = vsel %vm402_vm3, %v6814_v63, 0 }
 0x6e4   :  { %v6889_v33 = vand.u32 4294901760, %v6817_v30 }
 0x6e6   :  { %v6890_v2 = vsub.f32 %v6817_v30, %v6889_v33 }
 0x6e8   :  { %v6891_v34 = vand.u32 4294901760, %v6890_v2 }
 0x6e9   :  { %29013 = vmatmul.mubr.f32.vlgmr.msra.gmra.mrb[32].mxu1 %v34191_v21  ;;  %v6902_v21 = vsub.f32 %v6900_v46, %v6901_v51 }
 0x6ea   :  { %31220 = vmatpush3.bf16.msra.mxu1 %v34196_v31  ;;  %29085 = vmatprep.mubr.f32.mxu1 %v6375_v5  ;;  %v6892_v35 = vsub.f32 %v6890_v2, %v6891_v34 }
 0x6eb   :  { %31222 = vmatprep.subr.bf16.mxu1 %v31221_v20  ;;  %v6903_v60 = vand.u32 4294901760, %v6902_v21 }
 0x6ec   :  { %v6893_v37 = vand.u32 4294901760, %v6892_v35 }
 0x6ee   :  { %29127 = vmatprep.mubr.f32.mxu0 %v6893_v37 }
 0x6f1   :  { %29086 = vmatmul.mubr.f32.vlgmr.msra.gmra.mrb[32].mxu1 %v6385_v29  ;;  %v7433_v29 = vand.u32 4294901760, %v7432_v22 }
 0x6f2   :  { %31224 = vmatpush3.bf16.msra.mxu1 %v31221_v20  ;;  %29092 = vmatprep.mubr.f32.mxu1 %v6371_v23  ;;  %v7425_v20 = vsub.f32 %v7324_v40, %v7335_v12  ;;  %v10440_v12 = vld [vmem:[%s35704_s3] sm:$0xff] }
 0x6f3   :  { %31226 = vmatprep.subr.bf16.mxu1 %v31225_v11  ;;  %v7434_v38 = vsub.f32 %v7432_v22, %v7433_v29  ;;  %10445 = vst.msk [vmem:[#allocation4] sm:$0xff] %vm10444_vm6, %v10440_v12 }
 0x6f4   :  { %v7426_v5 = vand.u32 4294901760, %v7425_v20 }
 0x6f9   :  { %29093 = vmatmul.mubr.f32.vlgmr.msra.gmra.mrb[32].mxu1 %v6381_v27 }
 0x6fa   :  { %31228 = vmatpush3.bf16.msra.mxu1 %v31225_v11  ;;  %29099 = vmatprep.mubr.f32.mxu1 %v6372_v10  ;;  %v8371_v11 = vld [vmem:[#allocation22 + $0x20] sm:$0xff]  ;;  %v7327_v10 = vld [vmem:[#allocation22 + $0x18] sm:$0xff] }
 0x6fb   :  { %31230 = vmatprep.subr.bf16.mxu1 %v34196_v31 }
 0x701   :  { %29100 = vmatmul.mubr.f32.vlgmr.msra.gmra.mrb[32].mxu1 %v6382_v1  ;;  %v7344_v1 = vand.u32 4294901760, %v7327_v10 }
 0x702   :  { %31232 = vmatpush3.bf16.msra.mxu1 %v34196_v31  ;;  %29106 = vmatprep.mubr.f32.mxu1 %v6373_v32  ;;  %v7341_v32 = vand.u32 4294901760, %v7326_v28  ;;  %v10451_v13 = vpop.permute.xlu1 %10450 }
 0x703   :  { %31234 = vmatprep.subr.bf16.mxu1 %v31233_v17  ;;  %v7446_v35 = vsub.f32 %v7327_v10, %v7344_v1  ;;  %10457 = vst.msk [vmem:[#allocation4] sm:$0xff] %vm10456_vm7, %v10451_v13  ;;  %v9406_v13 = vld [vmem:[#allocation22 + $0x40] sm:$0xff] }
 0x709   :  { %29107 = vmatmul.mubr.f32.vlgmr.msra.gmra.mrb[32].mxu1 %v6383_v14  ;;  %v8382_v14 = vand.u32 4294901760, %v8373_v26 }
 0x70a   :  { %31236 = vmatpush3.bf16.msra.mxu1 %v31233_v17  ;;  %29113 = vmatprep.mubr.f32.mxu1 %v6371_v23  ;;  %v8376_v17 = vand.u32 4294901760, %v8371_v11 }
 0x70b   :  { %31238 = vmatprep.subr.bf16.mxu1 %v34196_v31  ;;  %v34242_v37 = vpack.c.bf16 %v8385_v6, %v8382_v14 }
 0x70c   :  { %v8466_v15 = vsub.f32 %v8371_v11, %v8376_v17 }
 0x70e   :  { %v8467_v63 = vand.u32 4294901760, %v8466_v15 }
 0x710   :  { %v8468_v39 = vsub.f32 %v8466_v15, %v8467_v63 }
 0x711   :  { %29114 = vmatmul.mubr.f32.vlgmr.msra.gmra.mrb[32].mxu1 %v6381_v27 }
 0x712   :  { %31240 = vmatpush3.bf16.msra.mxu1 %v34196_v31  ;;  %29120 = vmatprep.mubr.f32.mxu1 %v6371_v23  ;;  %v34234_v23 = vpack.c.bf16 %v8379_v18, %v8376_v17  ;;  %v10453_v17 = vpop.permute.xlu0 %10452 }
 0x713   :  { %31266 = vmatprep.subr.bf16.mxu1 %v34232_v19 }
 0x719   :  { %29121 = vmatmul.mubr.f32.vlgmr.msra.gmra.mrb[32].mxu1 %v6381_v27  ;;  %v8473_v27 = vsub.f32 %v8372_v43, %v8379_v18  ;;  %v10441_v43 = vld [vmem:[%s35704_s3 + $0x8] sm:$0xf] }
 0x71a   :  { %31268 = vmatpush3.bf16.msra.mxu1 %v34232_v19  ;;  %10447 = vst.msk [vmem:[#allocation4 + $0x8] sm:$0xf] %vm10446_vm8, %v10441_v43  ;;  %v9407_v43 = vld [vmem:[#allocation22 + $0x48] sm:$0xff] }
 0x71b   :  { %v8474_v30 = vand.u32 4294901760, %v8473_v27  ;;  %10459 = vst.msk [vmem:[#allocation4 + $0x8] sm:$0xf] %vm10458_vm9, %v10453_v17  ;;  %v10464_v17 = vld [vmem:[#allocation25] sm:$0xff] }
 0x71d   :  { %v8475_v41 = vsub.f32 %v8473_v27, %v8474_v30  ;;  %v34250_v40 = vpack.c.bf16 %v8474_v30, %v8467_v63  ;;  %v3643_v63 = vld [vmem:[#allocation16 + $0x8] sm:$0xff]  ;;  %v3645_v30 = vld [vmem:[#allocation16 + $0x10] sm:$0xff] }
 0x7ec   :  { %v29122_v47 = vpop.f32.mrb[32].mxu1 }
 0x7ed   :  { %v6811_v48 = vadd.f32 %v29122_v47, %v6809_v45  ;;  %v6796_v49 = vpop.f32.mrb[33].mxu1  ;;  %v7435_v47 = vand.u32 4294901760, %v7434_v38  ;;  %v7863_v38 = vsel %vm402_vm3, %v34179_v25, 0 }
 0x7ee   :  { %v6810_v50 = vadd.f32 %v6809_v45, %v6796_v49  ;;  %v7447_v45 = vand.u32 4294901760, %v7446_v35  ;;  %v8476_v49 = vand.u32 4294901760, %v8475_v41 }
 0x7ef   :  { %v6813_v16 = vmax.f32 %v6811_v48, 0.0  ;;  %v8469_v48 = vand.u32 4294901760, %v8468_v39  ;;  %v8904_v39 = vand.u32 4294901760, %v3645_v30 }
 0x7f0   :  { %v6812_v53 = vmax.f32 %v6810_v50, 0.0  ;;  %v8487_v50 = vsub.f32 %v8374_v4, %v8385_v6 }
 0x7f1   :  { %v6826_v54 = vand.u32 4294901760, %v6813_v16  ;;  %v34322_v25 = vsub.f32 %v3645_v30, %v8904_v39  ;;  %v9409_v30 = vld [vmem:[#allocation22 + $0x58] sm:$0xff] }
 0x7f2   :  { %v6823_v56 = vand.u32 4294901760, %v6812_v53  ;;  %v8488_v21 = vand.u32 4294901760, %v8487_v50 }
 0x7f3   :  { %v6918_v57 = vsub.f32 %v6813_v16, %v6826_v54  ;;  %v7448_v16 = vsub.f32 %v7446_v35, %v7447_v45 }
 0x7f4   :  { %v31241_v58 = vpack.c.bf16 %v6826_v54, %v6823_v56  ;;  %v6911_v52 = vsub.f32 %v6812_v53, %v6823_v56  ;;  %v31345_v56 = vpack.c.bf16 %v8476_v49, %v8469_v48 }
 0x7f5   :  { %v6919_v55 = vand.u32 4294901760, %v6918_v57 }
 0x7f6   :  { %v6912_v59 = vand.u32 4294901760, %v6911_v52  ;;  %31242 = vmatprep.subr.bf16.mxu0 %v31241_v58  ;;  %v31249_v61 = vpack.c.bf16 %v6918_v57, %v6911_v52 }
 0x7f7   :  { %31244 = vmatpush3.bf16.msra.mxu0 %v31241_v58  ;;  %v6920_v62 = vsub.f32 %v6918_v57, %v6919_v55 }
 0x7f8   :  { %v6913_v36 = vsub.f32 %v6911_v52, %v6912_v59  ;;  %v31257_v0 = vpack.c.bf16 %v6919_v55, %v6912_v59  ;;  %v8489_v55 = vsub.f32 %v8487_v50, %v8488_v21 }
 0x7f9   :  { %v6921_v31 = vand.u32 4294901760, %v6920_v62 }
 0x7fa   :  { %29128 = vmatmul.mubr.f32.vlgmr.msra.gmra.mrb[22].mxu0 %v6903_v60  ;;  %v6914_v3 = vand.u32 4294901760, %v6913_v36  ;;  %v31281_v36 = vpack.c.bf16 %v7432_v22, %v7425_v20 }
 0x7fb   :  { %29134 = vmatprep.mubr.f32.mxu0 %v6889_v33 }
 0x7fc   :  { %v31245_v8 = vpack.c.bf16 %v6921_v31, %v6914_v3 }
 0x7fe   :  { %31246 = vmatprep.subr.bf16.mxu0 %v31245_v8 }
 0x7ff   :  { %31248 = vmatpush3.bf16.msra.mxu0 %v31245_v8  ;;  %v34248_v8 = vpack.c.bf16 %v7433_v29, %v7426_v5  ;;  %v3642_v29 = vld [vmem:[#allocation16] sm:$0xff] }
 0x800   :  { %31250 = vmatprep.subr.bf16.mxu0 %v31249_v61 }
 0x802   :  { %29135 = vmatmul.mubr.f32.vlgmr.msra.gmra.mrb[22].mxu0 %v6899_v44 }
 0x803   :  { %31252 = vmatpush3.bf16.msra.mxu0 %v31249_v61  ;;  %29141 = vmatprep.mubr.f32.mxu0 %v6890_v2  ;;  %v7427_v2 = vsub.f32 %v7425_v20, %v7426_v5  ;;  %v8490_v61 = vand.u32 4294901760, %v8489_v55 }
 0x804   :  { %31254 = vmatprep.subr.bf16.mxu0 %v31241_v58 }
 0x805   :  { %v7428_v42 = vand.u32 4294901760, %v7427_v2  ;;  %v3646_v2 = vld [vmem:[#allocation16 + $0x18] sm:$0xff] }
 0x806   :  { %v8907_v41 = vand.u32 4294901760, %v3646_v2 }
 0x807   :  { %v31273_v54 = vpack.c.bf16 %v7435_v47, %v7428_v42  ;;  %v34314_v42 = vand.u32 4294901760, %v7863_v38  ;;  %v7866_v47 = vsel %vm402_vm3, %v34177_v24, 0 }
 0x808   :  { %v34343_v24 = vand.u32 4294901760, %v7866_v47 }
 0x809   :  { %v34333_v48 = vsub.f32 %v7863_v38, %v34314_v42  ;;  %v9420_v38 = vand.u32 4294901760, %v9409_v30 }
 0x80a   :  { %29142 = vmatmul.mubr.f32.vlgmr.msra.gmra.mrb[22].mxu0 %v6900_v46  ;;  %v8480_v46 = vsub.f32 %v8373_v26, %v8382_v14 }
 0x80b   :  { %31256 = vmatpush3.bf16.msra.mxu0 %v31241_v58  ;;  %29148 = vmatprep.mubr.f32.mxu0 %v6891_v34  ;;  %v7439_v34 = vsub.f32 %v7326_v28, %v7341_v32 }
 0x80c   :  { %31258 = vmatprep.subr.bf16.mxu0 %v31257_v0  ;;  %v8481_v53 = vand.u32 4294901760, %v8480_v46  ;;  %v31357_v3 = vpack.c.bf16 %v8487_v50, %v8480_v46 }
 0x80d   :  { %v31285_v31 = vpack.c.bf16 %v7446_v35, %v7439_v34  ;;  %v7872_v35 = vand.u32 4294901760, %v3643_v63 }
 0x80e   :  { %v8482_v52 = vsub.f32 %v8480_v46, %v8481_v53  ;;  %v34254_v11 = vpack.c.bf16 %v8488_v21, %v8481_v53  ;;  %v34324_v46 = vsub.f32 %v3646_v2, %v8907_v41  ;;  %v34349_v53 = vand.u32 4294901760, %v34333_v48 }
 0x810   :  { %v8483_v60 = vand.u32 4294901760, %v8482_v52  ;;  %v7938_v55 = vsub.f32 %v34333_v48, %v34349_v53 }
 0x812   :  { %29149 = vmatmul.mubr.f32.vlgmr.msra.gmra.mrb[22].mxu0 %v6901_v51  ;;  %v31349_v62 = vpack.c.bf16 %v8490_v61, %v8483_v60 }
 0x813   :  { %31260 = vmatpush3.bf16.msra.mxu0 %v31257_v0  ;;  %29155 = vmatprep.mubr.f32.mxu0 %v6889_v33  ;;  %v31353_v0 = vpack.c.bf16 %v8473_v27, %v8466_v15 }
 0x814   :  { %31262 = vmatprep.subr.bf16.mxu0 %v31241_v58 }
 0x81a   :  { %29156 = vmatmul.mubr.f32.vlgmr.msra.gmra.mrb[22].mxu0 %v6899_v44 }
 0x81b   :  { %31264 = vmatpush3.bf16.msra.mxu0 %v31241_v58  ;;  %29162 = vmatprep.mubr.f32.mxu0 %v6889_v33  ;;  %v34240_v33 = vpack.c.bf16 %v7344_v1, %v7341_v32  ;;  %v7449_v58 = vand.u32 4294901760, %v7448_v16  ;;  %v9000_v16 = vand.u32 4294901760, %v34324_v46 }
 0x81c   :  { %31338 = vmatprep.subr.bf16.mxu0 %v34234_v23 }
 0x81d   :  { %31270 = vmatprep.subr.bf16.mxu1 %v34240_v33 }
 0x81e   :  { %31272 = vmatpush3.bf16.msra.mxu1 %v34240_v33 }
 0x81f   :  { %31274 = vmatprep.subr.bf16.mxu1 %v31273_v54 }
 0x822   :  { %29163 = vmatmul.mubr.f32.vlgmr.msra.gmra.mrb[22].mxu0 %v6899_v44  ;;  %v7440_v44 = vand.u32 4294901760, %v7439_v34 }
 0x823   :  { %31340 = vmatpush3.bf16.msra.mxu0 %v34234_v23 }
 0x824   :  { %31342 = vmatprep.subr.bf16.mxu0 %v34242_v37  ;;  %v7441_v51 = vsub.f32 %v7439_v34, %v7440_v44  ;;  %v34252_v9 = vpack.c.bf16 %v7447_v45, %v7440_v44  ;;  %v7869_v34 = vand.u32 4294901760, %v3642_v29  ;;  %v34319_v45 = vsub.f32 %v3643_v63, %v7872_v35  ;;  %v9408_v63 = vld [vmem:[#allocation22 + $0x50] sm:$0xff] }
 0x826   :  { %v7442_v57 = vand.u32 4294901760, %v7441_v51  ;;  %v34317_v44 = vsub.f32 %v3642_v29, %v7869_v34  ;;  %v7965_v50 = vand.u32 4294901760, %v34319_v45  ;;  %v8993_v51 = vand.u32 4294901760, %v34322_v25 }
 0x827   :  { %31344 = vmatpush3.bf16.msra.mxu0 %v34242_v37  ;;  %v34371_v52 = vpack.c.bf16 %v7872_v35, %v7869_v34  ;;  %v9417_v35 = vand.u32 4294901760, %v9408_v63 }
 0x828   :  { %31346 = vmatprep.subr.bf16.mxu0 %v31345_v56  ;;  %v31277_v59 = vpack.c.bf16 %v7449_v58, %v7442_v57  ;;  %v7958_v49 = vand.u32 4294901760, %v34317_v44  ;;  %v8994_v21 = vsub.f32 %v34322_v25, %v8993_v51  ;;  %v9001_v57 = vsub.f32 %v34324_v46, %v9000_v16 }
 0x829   :  { %v34367_v58 = vsub.f32 %v7866_v47, %v34343_v24 }
 0x82a   :  { %v8995_v61 = vand.u32 4294901760, %v8994_v21 }
 0x8f5   :  { %v29164_v18 = vpop.f32.mrb[22].mxu0 }
 0x8f6   :  { %v7332_v20 = vsel %vm3675_vm5, %v29164_v18, 0  ;;  %v7314_v22 = vpop.f32.mrb[23].mxu0  ;;  %v10465_v18 = vld [vmem:[#allocation25 + $0x8] sm:$0xff] }
 0x8f7   :  { %v34264_v15 = vand.u32 4294901760, %v7332_v20  ;;  %v7329_v28 = vsel %vm3675_vm5, %v7314_v22, 0  ;;  %v9411_v22 = vand.u32 4294901760, %v9406_v13  ;;  %v10478_v29 = vand.u32 4294901760, %v10465_v18 }
 0x8f8   :  { %v34267_v10 = vand.u32 4294901760, %v7329_v28 }
 0x8f9   :  { %v34270_v26 = vsub.f32 %v7332_v20, %v34264_v15 }
 0x8fa   :  { %v34273_v27 = vsub.f32 %v7329_v28, %v34267_v10  ;;  %v9414_v28 = vand.u32 4294901760, %v9407_v43 }
 0x8fb   :  { %v34276_v32 = vand.u32 4294901760, %v34270_v26 }
 0x8fc   :  { %v34279_v1 = vand.u32 4294901760, %v34273_v27 }
 0x8fd   :  { %v7416_v4 = vsub.f32 %v34270_v26, %v34276_v32 }
 0x8fe   :  { %v7406_v14 = vsub.f32 %v34273_v27, %v34279_v1 }
 0x8ff   :  { %v34287_v6 = vand.u32 4294901760, %v7416_v4  ;;  %v10461_v4 = vld [vmem:[#allocation4 + $0x8] sm:$0xf] }
 0x900   :  { %v34285_v5 = vand.u32 4294901760, %v7406_v14  ;;  %v10475_v14 = vand.u32 4294901760, %v10464_v17  ;;  %v10472_v34 = vsel %vm10467_vm10, %v10461_v4, 0 }
 0x901   :  { %v34451_v47 = vand.u32 4294901760, %v10472_v34 }
 0x902   :  { %29173 = vmatprep.mubr.f32.mxu1 %v34285_v5  ;;  %29281 = vmatprep.mubr.f32.mxu0 %v34285_v5 }
 0x903   :  { %29174 = vmatmul.mubr.f32.vlgmr.msra.gmra.mrb[34].mxu1 %v34287_v6  ;;  %29282 = vmatmul.mubr.f32.vlgmr.msra.gmra.mrb[24].mxu0 %v34287_v6 }
 0x904   :  { %31276 = vmatpush3.bf16.msra.mxu1 %v31273_v54  ;;  %29184 = vmatprep.mubr.f32.mxu1 %v34267_v10  ;;  %v7959_v54 = vsub.f32 %v34317_v44, %v7958_v49 }
 0x905   :  { %31348 = vmatpush3.bf16.msra.mxu0 %v31345_v56  ;;  %29292 = vmatprep.mubr.f32.mxu0 %v34267_v10  ;;  %v7966_v56 = vsub.f32 %v34319_v45, %v7965_v50 }
 0x906   :  { %31278 = vmatprep.subr.bf16.mxu1 %v31277_v59  ;;  %31350 = vmatprep.subr.bf16.mxu0 %v31349_v62  ;;  %v7960_v60 = vand.u32 4294901760, %v7959_v54  ;;  %v34459_v54 = vpack.c.bf16 %v9414_v28, %v9411_v22 }
 0x908   :  { %31280 = vmatpush3.bf16.msra.mxu1 %v31277_v59  ;;  %v34377_v59 = vpack.c.bf16 %v8907_v41, %v8904_v39  ;;  %v34438_v39 = vsub.f32 %v9406_v13, %v9411_v22  ;;  %v34440_v41 = vsub.f32 %v9407_v43, %v9414_v28  ;;  %v34506_v13 = vpack.c.bf16 %v9420_v38, %v9417_v35 }
 0x909   :  { %31352 = vmatpush3.bf16.msra.mxu0 %v31349_v62  ;;  %31282 = vmatprep.subr.bf16.mxu1 %v31281_v36  ;;  %v9002_v62 = vand.u32 4294901760, %v9001_v57 }
 0x90a   :  { %31354 = vmatprep.subr.bf16.mxu0 %v31353_v0 }
 0x90b   :  { %29185 = vmatmul.mubr.f32.vlgmr.msra.gmra.mrb[34].mxu1 %v34264_v15 }
 0x90c   :  { %29293 = vmatmul.mubr.f32.vlgmr.msra.gmra.mrb[24].mxu0 %v34264_v15  ;;  %31284 = vmatpush3.bf16.msra.mxu1 %v31281_v36  ;;  %v34386_v36 = vand.u32 4294901760, %v7938_v55  ;;  %v34466_v55 = vpack.c.bf16 %v10478_v29, %v10475_v14 }
 0x90d   :  { %29195 = vmatprep.mubr.f32.mxu1 %v34273_v27  ;;  %31356 = vmatpush3.bf16.msra.mxu0 %v31353_v0 }
 0x90e   :  { %29303 = vmatprep.mubr.f32.mxu0 %v34273_v27  ;;  %31286 = vmatprep.subr.bf16.mxu1 %v31285_v31 }
 0x90f   :  { %31358 = vmatprep.subr.bf16.mxu0 %v31357_v3 }
 0x910   :  { %31288 = vmatpush3.bf16.msra.mxu1 %v31285_v31  ;;  %v31389_v31 = vpack.c.bf16 %v9002_v62, %v8995_v61 }
 0x911   :  { %31360 = vmatpush3.bf16.msra.mxu0 %v31357_v3  ;;  %31290 = vmatprep.subr.bf16.mxu1 %v34232_v19  ;;  %v31321_v3 = vpack.c.bf16 %v34319_v45, %v34317_v44  ;;  %v34443_v44 = vsub.f32 %v10464_v17, %v10475_v14  ;;  %v34445_v45 = vsub.f32 %v10465_v18, %v10478_v29 }
 0x912   :  { %31362 = vmatprep.subr.bf16.mxu0 %v34234_v23 }
 0x913   :  { %29196 = vmatmul.mubr.f32.vlgmr.msra.gmra.mrb[34].mxu1 %v34270_v26  ;;  %v10565_v21 = vand.u32 4294901760, %v34443_v44  ;;  %v10572_v57 = vand.u32 4294901760, %v34445_v45 }
 0x914   :  { %29304 = vmatmul.mubr.f32.vlgmr.msra.gmra.mrb[24].mxu0 %v34270_v26  ;;  %31292 = vmatpush3.bf16.msra.mxu1 %v34232_v19 }
 0x915   :  { %29206 = vmatprep.mubr.f32.mxu1 %v34279_v1  ;;  %31364 = vmatpush3.bf16.msra.mxu0 %v34234_v23 }
 0x916   :  { %29314 = vmatprep.mubr.f32.mxu0 %v34279_v1  ;;  %31294 = vmatprep.subr.bf16.mxu1 %v34240_v33 }
 0x917   :  { %31366 = vmatprep.subr.bf16.mxu0 %v34242_v37 }
 0x918   :  { %31296 = vmatpush3.bf16.msra.mxu1 %v34240_v33 }
 0x919   :  { %31368 = vmatpush3.bf16.msra.mxu0 %v34242_v37  ;;  %31298 = vmatprep.subr.bf16.mxu1 %v34248_v8 }
 0x91a   :  { %31370 = vmatprep.subr.bf16.mxu0 %v34250_v40 }
 0x91b   :  { %29207 = vmatmul.mubr.f32.vlgmr.msra.gmra.mrb[34].mxu1 %v34276_v32 }
 0x91c   :  { %29315 = vmatmul.mubr.f32.vlgmr.msra.gmra.mrb[24].mxu0 %v34276_v32  ;;  %31300 = vmatpush3.bf16.msra.mxu1 %v34248_v8  ;;  %v31393_v8 = vpack.c.bf16 %v34324_v46, %v34322_v25  ;;  %v10466_v25 = vld [vmem:[#allocation25 + $0x10] sm:$0xff] }
 0x91d   :  { %29217 = vmatprep.mubr.f32.mxu1 %v34267_v10  ;;  %31372 = vmatpush3.bf16.msra.mxu0 %v34250_v40  ;;  %v31329_v40 = vpack.c.bf16 %v7965_v50, %v7958_v49  ;;  %v9502_v49 = vand.u32 4294901760, %v34438_v39  ;;  %v9509_v50 = vand.u32 4294901760, %v34440_v41 }
 0x91e   :  { %29325 = vmatprep.mubr.f32.mxu0 %v34267_v10  ;;  %31302 = vmatprep.subr.bf16.mxu1 %v34252_v9 }
 0x91f   :  { %31374 = vmatprep.subr.bf16.mxu0 %v34254_v11  ;;  %v9503_v61 = vsub.f32 %v34438_v39, %v9502_v49  ;;  %v9510_v62 = vsub.f32 %v34440_v41, %v9509_v50 }
 0x920   :  { %31304 = vmatpush3.bf16.msra.mxu1 %v34252_v9  ;;  %v10460_v9 = vld [vmem:[#allocation4] sm:$0xff] }
 0x921   :  { %31376 = vmatpush3.bf16.msra.mxu0 %v34254_v11  ;;  %31306 = vmatprep.subr.bf16.mxu1 %v34232_v19  ;;  %v31401_v11 = vpack.c.bf16 %v9000_v16, %v8993_v51  ;;  %v10469_v12 = vsel %vm10467_vm10, %v10460_v9, 0  ;;  %v34455_v51 = vsub.f32 %v9408_v63, %v9417_v35  ;;  %v34457_v16 = vsub.f32 %v9409_v30, %v9420_v38 }
 0x922   :  { %31378 = vmatprep.subr.bf16.mxu0 %v34234_v23  ;;  %v34428_v20 = vand.u32 4294901760, %v10469_v12  ;;  %v9511_v9 = vand.u32 4294901760, %v9510_v62  ;;  %v31425_v35 = vpack.c.bf16 %v34440_v41, %v34438_v39  ;;  %v31489_v38 = vpack.c.bf16 %v34445_v45, %v34443_v44  ;;  %v10994_v62 = vld [vmem:[#allocation25 + $0x20] sm:$0xff] }
 0x923   :  { %29218 = vmatmul.mubr.f32.vlgmr.msra.gmra.mrb[34].mxu1 %v34264_v15 }
 0x924   :  { %29326 = vmatmul.mubr.f32.vlgmr.msra.gmra.mrb[24].mxu0 %v34264_v15  ;;  %31308 = vmatpush3.bf16.msra.mxu1 %v34232_v19  ;;  %v7967_v19 = vand.u32 4294901760, %v7966_v56  ;;  %v34434_v2 = vsub.f32 %v10469_v12, %v34428_v20  ;;  %v34461_v56 = vand.u32 4294901760, %v10466_v25 }
 0x925   :  { %29228 = vmatprep.mubr.f32.mxu1 %v34267_v10  ;;  %31380 = vmatpush3.bf16.msra.mxu0 %v34234_v23  ;;  %v34382_v23 = vand.u32 4294901760, %v34367_v58 }
 0x926   :  { %29336 = vmatprep.mubr.f32.mxu0 %v34267_v10  ;;  %31310 = vmatprep.subr.bf16.mxu1 %v34240_v33  ;;  %v31317_v0 = vpack.c.bf16 %v7967_v19, %v7960_v60  ;;  %v34449_v46 = vand.u32 4294901760, %v34434_v2  ;;  %v34473_v19 = vsub.f32 %v10472_v34, %v34451_v47 }
 0x927   :  { %31382 = vmatprep.subr.bf16.mxu0 %v34242_v37 }
 0x928   :  { %31312 = vmatpush3.bf16.msra.mxu1 %v34240_v33  ;;  %v7948_v33 = vsub.f32 %v34367_v58, %v34382_v23  ;;  %v10545_v60 = vsub.f32 %v34434_v2, %v34449_v46 }
 0x929   :  { %31384 = vmatpush3.bf16.msra.mxu0 %v34242_v37  ;;  %31314 = vmatprep.subr.bf16.mxu1 %v34371_v52 }
 0x92a   :  { %31386 = vmatprep.subr.bf16.mxu0 %v34377_v59  ;;  %v34397_v37 = vand.u32 4294901760, %v7948_v33  ;;  %v10573_v33 = vsub.f32 %v34445_v45, %v10572_v57  ;;  %v10995_v45 = vld [vmem:[#allocation25 + $0x28] sm:$0xff] }
 0x92b   :  { %29229 = vmatmul.mubr.f32.vlgmr.msra.gmra.mrb[34].mxu1 %v34264_v15 }
 0x92c   :  { %29337 = vmatmul.mubr.f32.vlgmr.msra.gmra.mrb[24].mxu0 %v34264_v15  ;;  %29235 = vmatprep.mubr.f32.mxu1 %v34386_v36  ;;  %v10574_v17 = vand.u32 4294901760, %v10573_v33 }
 0x92d   :  { %29343 = vmatprep.mubr.f32.mxu0 %v34386_v36  ;;  %31316 = vmatpush3.bf16.msra.mxu1 %v34371_v52 }
 0x92e   :  { %31388 = vmatpush3.bf16.msra.mxu0 %v34377_v59  ;;  %31318 = vmatprep.subr.bf16.mxu1 %v31317_v0 }
 0x92f   :  { %31390 = vmatprep.subr.bf16.mxu0 %v31389_v31 }
 0x933   :  { %29236 = vmatmul.mubr.f32.vlgmr.msra.gmra.mrb[34].mxu1 %v34397_v37 }
 0x934   :  { %29344 = vmatmul.mubr.f32.vlgmr.msra.gmra.mrb[24].mxu0 %v34397_v37  ;;  %29242 = vmatprep.mubr.f32.mxu1 %v34314_v42 }
 0x935   :  { %29350 = vmatprep.mubr.f32.mxu0 %v34314_v42  ;;  %31320 = vmatpush3.bf16.msra.mxu1 %v31317_v0  ;;  %v9516_v0 = vand.u32 4294901760, %v34455_v51 }
 0x936   :  { %31392 = vmatpush3.bf16.msra.mxu0 %v31389_v31  ;;  %31322 = vmatprep.subr.bf16.mxu1 %v31321_v3  ;;  %v9523_v31 = vand.u32 4294901760, %v34457_v16 }
 0x937   :  { %31394 = vmatprep.subr.bf16.mxu0 %v31393_v8 }
 0x938   :  { %v9524_v12 = vsub.f32 %v34457_v16, %v9523_v31  ;;  %v31445_v39 = vpack.c.bf16 %v9523_v31, %v9516_v0 }
 0x93a   :  { %v9525_v14 = vand.u32 4294901760, %v9524_v12 }
 0x93b   :  { %29243 = vmatmul.mubr.f32.vlgmr.msra.gmra.mrb[34].mxu1 %v34343_v24 }
 0x93c   :  { %29351 = vmatmul.mubr.f32.vlgmr.msra.gmra.mrb[24].mxu0 %v34343_v24  ;;  %29249 = vmatprep.mubr.f32.mxu1 %v34333_v48 }
 0x93d   :  { %29357 = vmatprep.mubr.f32.mxu0 %v34333_v48  ;;  %31324 = vmatpush3.bf16.msra.mxu1 %v31321_v3  ;;  %v10578_v3 = vsub.f32 %v10466_v25, %v34461_v56  ;;  %v31429_v25 = vpack.c.bf16 %v34457_v16, %v34455_v51 }
 0x93e   :  { %31396 = vmatpush3.bf16.msra.mxu0 %v31393_v8  ;;  %31326 = vmatprep.subr.bf16.mxu1 %v34371_v52  ;;  %v34495_v8 = vand.u32 4294901760, %v10545_v60  ;;  %v3649_v60 = vld [vmem:[#allocation16 + $0x28] sm:$0xff] }
 0x93f   :  { %31398 = vmatprep.subr.bf16.mxu0 %v34377_v59  ;;  %v34508_v18 = vand.u32 4294901760, %v10578_v3 }
 0x941   :  { %v10580_v63 = vsub.f32 %v10578_v3, %v34508_v18 }
 0x943   :  { %29250 = vmatmul.mubr.f32.vlgmr.msra.gmra.mrb[34].mxu1 %v34367_v58  ;;  %v10581_v34 = vand.u32 4294901760, %v10580_v63 }
 0x944   :  { %29358 = vmatmul.mubr.f32.vlgmr.msra.gmra.mrb[24].mxu0 %v34367_v58  ;;  %29256 = vmatprep.mubr.f32.mxu1 %v34349_v53 }
 0x945   :  { %29364 = vmatprep.mubr.f32.mxu0 %v34349_v53  ;;  %31328 = vmatpush3.bf16.msra.mxu1 %v34371_v52 }
 0x946   :  { %31400 = vmatpush3.bf16.msra.mxu0 %v34377_v59  ;;  %31330 = vmatprep.subr.bf16.mxu1 %v31329_v40 }
 0x947   :  { %31402 = vmatprep.subr.bf16.mxu0 %v31401_v11 }
 0x94b   :  { %29257 = vmatmul.mubr.f32.vlgmr.msra.gmra.mrb[34].mxu1 %v34382_v23 }
 0x94c   :  { %29365 = vmatmul.mubr.f32.vlgmr.msra.gmra.mrb[24].mxu0 %v34382_v23  ;;  %29263 = vmatprep.mubr.f32.mxu1 %v34314_v42 }
 0x94d   :  { %29371 = vmatprep.mubr.f32.mxu0 %v34314_v42  ;;  %31332 = vmatpush3.bf16.msra.mxu1 %v31329_v40  ;;  %v34498_v40 = vand.u32 4294901760, %v34473_v19 }
 0x94e   :  { %31404 = vmatpush3.bf16.msra.mxu0 %v31401_v11  ;;  %31334 = vmatprep.subr.bf16.mxu1 %v34371_v52  ;;  %v9517_v11 = vsub.f32 %v34455_v51, %v9516_v0  ;;  %v34576_v51 = vand.u32 4294901760, %v10995_v45 }
 0x94f   :  { %31406 = vmatprep.subr.bf16.mxu0 %v34377_v59  ;;  %v10555_v22 = vsub.f32 %v34473_v19, %v34498_v40 }
 0x950   :  { %v9518_v4 = vand.u32 4294901760, %v9517_v11  ;;  %v11100_v0 = vsub.f32 %v10995_v45, %v34576_v51 }
 0x951   :  { %v34522_v30 = vand.u32 4294901760, %v10555_v22 }
 0x953   :  { %29264 = vmatmul.mubr.f32.vlgmr.msra.gmra.mrb[34].mxu1 %v34343_v24 }
 0x954   :  { %29372 = vmatmul.mubr.f32.vlgmr.msra.gmra.mrb[24].mxu0 %v34343_v24  ;;  %29270 = vmatprep.mubr.f32.mxu1 %v34314_v42 }
 0x955   :  { %29378 = vmatprep.mubr.f32.mxu0 %v34314_v42  ;;  %31336 = vmatpush3.bf16.msra.mxu1 %v34371_v52  ;;  %v10566_v52 = vsub.f32 %v34443_v44, %v10565_v21 }
 0x956   :  { %31408 = vmatpush3.bf16.msra.mxu0 %v34377_v59  ;;  %31410 = vmatprep.subr.bf16.mxu1 %v34459_v54  ;;  %v9504_v59 = vand.u32 4294901760, %v9503_v61  ;;  %v10993_v61 = vld [vmem:[#allocation25 + $0x18] sm:$0xff] }
 0x957   :  { %31482 = vmatprep.subr.bf16.mxu0 %v34466_v55  ;;  %v10567_v43 = vand.u32 4294901760, %v10566_v52  ;;  %v10997_v33 = vand.u32 4294901760, %v10993_v61 }
 0x958   :  { %v31417_v28 = vpack.c.bf16 %v9511_v9, %v9504_v59 }
 0x959   :  { %v31485_v29 = vpack.c.bf16 %v10574_v17, %v10567_v43 }
 0x95b   :  { %29271 = vmatmul.mubr.f32.vlgmr.msra.gmra.mrb[34].mxu1 %v34343_v24 }
 0x95c   :  { %29379 = vmatmul.mubr.f32.vlgmr.msra.gmra.mrb[24].mxu0 %v34343_v24  ;;  %31412 = vmatpush3.bf16.msra.mxu1 %v34459_v54 }
 0x95d   :  { %31484 = vmatpush3.bf16.msra.mxu0 %v34466_v55  ;;  %29389 = vmatprep.mubr.f32.mxu1 %v34285_v5  ;;  %v31421_v5 = vpack.c.bf16 %v9525_v14, %v9518_v4  ;;  %v12539_v14 = vld [vmem:[#allocation25 + $0x38] sm:$0xff] }
 0x95e   :  { %29495 = vmatprep.mubr.f32.mxu0 %v34495_v8  ;;  %31414 = vmatprep.subr.bf16.mxu1 %v34506_v13  ;;  %v12545_v63 = vand.u32 4294901760, %v12539_v14 }
 0x95f   :  { %29493 = vmatprep.subr.mxu0 %v34461_v56 }
 0x960   :  { %31416 = vmatpush3.bf16.msra.mxu1 %v34506_v13 }
 0x961   :  { %29494 = vmatpush3.msra.mxu0 %v34461_v56  ;;  %31418 = vmatprep.subr.bf16.mxu1 %v31417_v28 }
 0x962   :  { %29496 = vmatmul.mubr.f32.vlgmr.msra.gmra.mrb[26].mxu0 %v34522_v30  ;;  %31486 = vmatprep.subr.bf16.mxu0 %v31485_v29 }
 0x963   :  { %29504 = vmatprep.mubr.f32.mxu0 %v34428_v20  ;;  %29390 = vmatmul.mubr.f32.vlgmr.msra.gmra.mrb[36].mxu1 %v34287_v6  ;;  %v3648_v6 = vld [vmem:[#allocation16 + $0x20] sm:$0xff] }
 0x964   :  { %31420 = vmatpush3.bf16.msra.mxu1 %v31417_v28  ;;  %29400 = vmatprep.mubr.f32.mxu1 %v34267_v10  ;;  %v9939_v52 = vand.u32 4294901760, %v3648_v6 }
 0x965   :  { %31488 = vmatpush3.bf16.msra.mxu0 %v31485_v29  ;;  %31422 = vmatprep.subr.bf16.mxu1 %v31421_v5 }
 0x966   :  { %29502 = vmatprep.subr.mxu0 %v10581_v34  ;;  %v34564_v41 = vsub.f32 %v3648_v6, %v9939_v52 }
 0x968   :  { %31424 = vmatpush3.bf16.msra.mxu1 %v31421_v5  ;;  %v10028_v16 = vand.u32 4294901760, %v34564_v41  ;;  %v12540_v5 = vld [vmem:[#allocation25 + $0x40] sm:$0xff] }
 0x969   :  { %29503 = vmatpush3.msra.mxu0 %v10581_v34  ;;  %31426 = vmatprep.subr.bf16.mxu1 %v31425_v35 }
 0x96a   :  { %29505 = vmatmul.mubr.f32.vlgmr.msra.gmra.mrb[26].mxu0 %v34451_v47  ;;  %31490 = vmatprep.subr.bf16.mxu0 %v31489_v38  ;;  %v10029_v31 = vsub.f32 %v34564_v41, %v10028_v16 }
 0x96b   :  { %29513 = vmatprep.mubr.f32.mxu0 %v34434_v2  ;;  %29401 = vmatmul.mubr.f32.vlgmr.msra.gmra.mrb[36].mxu1 %v34264_v15 }
 0x96c   :  { %31428 = vmatpush3.bf16.msra.mxu1 %v31425_v35  ;;  %29411 = vmatprep.mubr.f32.mxu1 %v34273_v27  ;;  %v31441_v27 = vpack.c.bf16 %v9509_v50, %v9502_v49  ;;  %v34571_v49 = vsub.f32 %v10993_v61, %v10997_v33 }
 0x96d   :  { %31492 = vmatpush3.bf16.msra.mxu0 %v31489_v38  ;;  %31430 = vmatprep.subr.bf16.mxu1 %v31429_v25 }
 0x96e   :  { %29511 = vmatprep.subr.mxu0 %v10578_v3 }
 0x970   :  { %31432 = vmatpush3.bf16.msra.mxu1 %v31429_v25 }
 0x971   :  { %29512 = vmatpush3.msra.mxu0 %v10578_v3  ;;  %31434 = vmatprep.subr.bf16.mxu1 %v34459_v54  ;;  %v11000_v3 = vand.u32 4294901760, %v10994_v62 }
 0x972   :  { %29514 = vmatmul.mubr.f32.vlgmr.msra.gmra.mrb[26].mxu0 %v34473_v19  ;;  %31494 = vmatprep.subr.bf16.mxu0 %v34466_v55 }
 0x973   :  { %29522 = vmatprep.mubr.f32.mxu0 %v34449_v46  ;;  %29412 = vmatmul.mubr.f32.vlgmr.msra.gmra.mrb[36].mxu1 %v34270_v26  ;;  %v31497_v26 = vpack.c.bf16 %v10572_v57, %v10565_v21  ;;  %v34573_v50 = vsub.f32 %v10994_v62, %v11000_v3  ;;  %v34605_v12 = vpack.c.bf16 %v11000_v3, %v10997_v33 }
 0x974   :  { %31436 = vmatpush3.bf16.msra.mxu1 %v34459_v54  ;;  %29422 = vmatprep.mubr.f32.mxu1 %v34279_v1  ;;  %v9942_v1 = vand.u32 4294901760, %v3649_v60 }
 0x975   :  { %31496 = vmatpush3.bf16.msra.mxu0 %v34466_v55  ;;  %31438 = vmatprep.subr.bf16.mxu1 %v34506_v13  ;;  %v11094_v57 = vand.u32 4294901760, %v34573_v50 }
 0x976   :  { %29520 = vmatprep.subr.mxu0 %v34461_v56  ;;  %v34566_v44 = vsub.f32 %v3649_v60, %v9942_v1  ;;  %v34607_v43 = vpack.c.bf16 %v9942_v1, %v9939_v52 }
 0x977   :  { %v11095_v11 = vsub.f32 %v34573_v50, %v11094_v57 }
 0x978   :  { %31440 = vmatpush3.bf16.msra.mxu1 %v34506_v13  ;;  %v10035_v21 = vand.u32 4294901760, %v34566_v44  ;;  %v31465_v4 = vpack.c.bf16 %v34566_v44, %v34564_v41 }
 0x979   :  { %29521 = vmatpush3.msra.mxu0 %v34461_v56  ;;  %31442 = vmatprep.subr.bf16.mxu1 %v31441_v27  ;;  %v11096_v22 = vand.u32 4294901760, %v11095_v11 }
 0x97a   :  { %29523 = vmatmul.mubr.f32.vlgmr.msra.gmra.mrb[26].mxu0 %v34498_v40  ;;  %31498 = vmatprep.subr.bf16.mxu0 %v31497_v26  ;;  %v10036_v59 = vsub.f32 %v34566_v44, %v10035_v21 }
 0x97b   :  { %29531 = vmatprep.mubr.f32.mxu0 %v34428_v20  ;;  %29423 = vmatmul.mubr.f32.vlgmr.msra.gmra.mrb[36].mxu1 %v34276_v32  ;;  %v11087_v32 = vand.u32 4294901760, %v34571_v49 }
 0x97c   :  { %31444 = vmatpush3.bf16.msra.mxu1 %v31441_v27  ;;  %29433 = vmatprep.mubr.f32.mxu1 %v34267_v10  ;;  %v10037_v17 = vand.u32 4294901760, %v10036_v59 }
 0x97d   :  { %31500 = vmatpush3.bf16.msra.mxu0 %v31497_v26  ;;  %31446 = vmatprep.subr.bf16.mxu1 %v31445_v39  ;;  %v11088_v9 = vsub.f32 %v34571_v49, %v11087_v32 }
 0x97e   :  { %29529 = vmatprep.subr.mxu0 %v34508_v18 }
 0x980   :  { %31448 = vmatpush3.bf16.msra.mxu1 %v31445_v39 }
 0x981   :  { %29530 = vmatpush3.msra.mxu0 %v34508_v18  ;;  %31450 = vmatprep.subr.bf16.mxu1 %v34459_v54  ;;  %v11089_v18 = vand.u32 4294901760, %v11088_v9  ;;  %v10991_v9 = vld [vmem:[#allocation24 + $0x18] sm:$0xf] }
 0x982   :  { %29532 = vmatmul.mubr.f32.vlgmr.msra.gmra.mrb[26].mxu0 %v34451_v47  ;;  %31502 = vmatprep.subr.bf16.mxu0 %v34466_v55  ;;  %v11515_v11 = vsel %vm10444_vm6, %v10991_v9, 0 }
 0x983   :  { %29540 = vmatprep.mubr.f32.mxu0 %v34428_v20  ;;  %29434 = vmatmul.mubr.f32.vlgmr.msra.gmra.mrb[36].mxu1 %v34264_v15 }
 0x984   :  { %31504 = vmatpush3.bf16.msra.mxu0 %v34466_v55  ;;  %31452 = vmatpush3.bf16.msra.mxu1 %v34459_v54  ;;  %v34610_v55 = vand.u32 4294901760, %v11100_v0  ;;  %v10030_v54 = vand.u32 4294901760, %v10029_v31 }
 0x985   :  { %29444 = vmatprep.mubr.f32.mxu1 %v34267_v10  ;;  %29538 = vmatprep.subr.mxu0 %v34461_v56 }
 0x986   :  { %31454 = vmatprep.subr.bf16.mxu1 %v34506_v13  ;;  %v11102_v10 = vsub.f32 %v11100_v0, %v34610_v55  ;;  %v31461_v28 = vpack.c.bf16 %v10037_v17, %v10030_v54 }
 0x988   :  { %29539 = vmatpush3.msra.mxu0 %v34461_v56  ;;  %31456 = vmatpush3.bf16.msra.mxu1 %v34506_v13  ;;  %v31509_v56 = vpack.c.bf16 %v11096_v22, %v11089_v18  ;;  %v11103_v13 = vand.u32 4294901760, %v11102_v10 }
 0x989   :  { %31506 = vmatprep.subr.bf16.mxu0 %v34605_v12  ;;  %31458 = vmatprep.subr.bf16.mxu1 %v34607_v43 }
 0x98a   :  { %29541 = vmatmul.mubr.f32.vlgmr.msra.gmra.mrb[26].mxu0 %v34451_v47 }
 0x98b   :  { %31508 = vmatpush3.bf16.msra.mxu0 %v34605_v12  ;;  %29549 = vmatprep.mubr.f32.mxu0 %v34495_v8 }
 0x98c   :  { %29445 = vmatmul.mubr.f32.vlgmr.msra.gmra.mrb[36].mxu1 %v34264_v15  ;;  %29547 = vmatprep.subr.mxu0 %v34576_v51  ;;  %v31513_v15 = vpack.c.bf16 %v34573_v50, %v34571_v49 }
 0x98d   :  { %29451 = vmatprep.mubr.f32.mxu1 %v34386_v36  ;;  %31460 = vmatpush3.bf16.msra.mxu1 %v34607_v43  ;;  %v31521_v36 = vpack.c.bf16 %v11094_v57, %v11087_v32 }
 0x98e   :  { %31462 = vmatprep.subr.bf16.mxu1 %v31461_v28 }
 0x98f   :  { %29548 = vmatpush3.msra.mxu0 %v34576_v51 }
 0x990   :  { %29550 = vmatmul.mubr.f32.vlgmr.msra.gmra.mrb[28].mxu0 %v34522_v30  ;;  %31510 = vmatprep.subr.bf16.mxu0 %v31509_v56 }
 0x991   :  { %29558 = vmatprep.mubr.f32.mxu0 %v34428_v20  ;;  %31512 = vmatpush3.bf16.msra.mxu0 %v31509_v56 }
 0x992   :  { %29556 = vmatprep.subr.mxu0 %v11103_v13 }
 0x994   :  { %29452 = vmatmul.mubr.f32.vlgmr.msra.gmra.mrb[36].mxu1 %v34397_v37  ;;  %v12538_v37 = vld [vmem:[#allocation25 + $0x30] sm:$0xff] }
 0x995   :  { %29458 = vmatprep.mubr.f32.mxu1 %v34314_v42  ;;  %29557 = vmatpush3.msra.mxu0 %v11103_v13  ;;  %v12542_v29 = vand.u32 4294901760, %v12538_v37 }
 0x996   :  { %31464 = vmatpush3.bf16.msra.mxu1 %v31461_v28  ;;  %31514 = vmatprep.subr.bf16.mxu0 %v31513_v15 }
 0x997   :  { %31466 = vmatprep.subr.bf16.mxu1 %v31465_v4  ;;  %v12631_v34 = vsub.f32 %v12538_v37, %v12542_v29 }
 0x998   :  { %29559 = vmatmul.mubr.f32.vlgmr.msra.gmra.mrb[28].mxu0 %v34451_v47 }
 0x999   :  { %29567 = vmatprep.mubr.f32.mxu0 %v34434_v2  ;;  %31516 = vmatpush3.bf16.msra.mxu0 %v31513_v15  ;;  %v12632_v35 = vand.u32 4294901760, %v12631_v34 }
 0x99a   :  { %29565 = vmatprep.subr.mxu0 %v11100_v0 }
 0x99b   :  { %v12633_v6 = vsub.f32 %v12631_v34, %v12632_v35 }
 0x99c   :  { %29459 = vmatmul.mubr.f32.vlgmr.msra.gmra.mrb[36].mxu1 %v34343_v24 }
 0x99d   :  { %29465 = vmatprep.mubr.f32.mxu1 %v34333_v48  ;;  %29566 = vmatpush3.msra.mxu0 %v11100_v0  ;;  %v31473_v48 = vpack.c.bf16 %v10035_v21, %v10028_v16  ;;  %v12634_v61 = vand.u32 4294901760, %v12633_v6 }
 0x99e   :  { %31468 = vmatpush3.bf16.msra.mxu1 %v31465_v4  ;;  %31518 = vmatprep.subr.bf16.mxu0 %v34605_v12 }
 0x99f   :  { %31470 = vmatprep.subr.bf16.mxu1 %v34607_v43 }
 0x9a0   :  { %29568 = vmatmul.mubr.f32.vlgmr.msra.gmra.mrb[28].mxu0 %v34473_v19 }
 0x9a1   :  { %29576 = vmatprep.mubr.f32.mxu0 %v34449_v46  ;;  %31520 = vmatpush3.bf16.msra.mxu0 %v34605_v12 }
 0x9a2   :  { %29574 = vmatprep.subr.mxu0 %v34576_v51 }
 0x9a4   :  { %29466 = vmatmul.mubr.f32.vlgmr.msra.gmra.mrb[36].mxu1 %v34367_v58  ;;  %v12638_v58 = vsub.f32 %v12539_v14, %v12545_v63 }
 0x9a5   :  { %29472 = vmatprep.mubr.f32.mxu1 %v34349_v53  ;;  %29575 = vmatpush3.msra.mxu0 %v34576_v51  ;;  %v34659_v53 = vand.u32 4294901760, %v12540_v5 }
 0x9a6   :  { %31472 = vmatpush3.bf16.msra.mxu1 %v34607_v43  ;;  %31522 = vmatprep.subr.bf16.mxu0 %v31521_v36  ;;  %v12639_v38 = vand.u32 4294901760, %v12638_v58 }
 0x9a7   :  { %31474 = vmatprep.subr.bf16.mxu1 %v31473_v48  ;;  %v12645_v25 = vsub.f32 %v12540_v5, %v34659_v53 }
 0x9a8   :  { %29577 = vmatmul.mubr.f32.vlgmr.msra.gmra.mrb[28].mxu0 %v34498_v40  ;;  %v12640_v60 = vsub.f32 %v12638_v58, %v12639_v38 }
 0x9a9   :  { %29585 = vmatprep.mubr.f32.mxu0 %v34428_v20  ;;  %31524 = vmatpush3.bf16.msra.mxu0 %v31521_v36  ;;  %v12646_v27 = vand.u32 4294901760, %v12645_v25 }
 0x9aa   :  { %29583 = vmatprep.subr.mxu0 %v34610_v55  ;;  %v12641_v62 = vand.u32 4294901760, %v12640_v60 }
 0x9ab   :  { %v12647_v26 = vsub.f32 %v12645_v25, %v12646_v27 }
 0x9ac   :  { %29473 = vmatmul.mubr.f32.vlgmr.msra.gmra.mrb[36].mxu1 %v34382_v23  ;;  %v31577_v23 = vpack.c.bf16 %v12545_v63, %v12542_v29  ;;  %v31581_v52 = vpack.c.bf16 %v12641_v62, %v12634_v61 }
 0x9ad   :  { %29479 = vmatprep.mubr.f32.mxu1 %v34314_v42  ;;  %29584 = vmatpush3.msra.mxu0 %v34610_v55  ;;  %v12648_v1 = vand.u32 4294901760, %v12647_v26 }
 0x9ae   :  { %31526 = vmatprep.subr.bf16.mxu0 %v34605_v12  ;;  %31476 = vmatpush3.bf16.msra.mxu1 %v31473_v48 }
 0x9af   :  { %31478 = vmatprep.subr.bf16.mxu1 %v34607_v43 }
 0x9b0   :  { %29586 = vmatmul.mubr.f32.vlgmr.msra.gmra.mrb[28].mxu0 %v34451_v47 }
 0x9b1   :  { %29594 = vmatprep.mubr.f32.mxu0 %v34428_v20  ;;  %31528 = vmatpush3.bf16.msra.mxu0 %v34605_v12  ;;  %v34708_v12 = vand.u32 4294901760, %v11515_v11 }
 0x9b2   :  { %29592 = vmatprep.subr.mxu0 %v34576_v51 }
 0x9b4   :  { %29480 = vmatmul.mubr.f32.vlgmr.msra.gmra.mrb[36].mxu1 %v34343_v24 }
 0x9b5   :  { %29486 = vmatprep.mubr.f32.mxu1 %v34314_v42  ;;  %29593 = vmatpush3.msra.mxu0 %v34576_v51  ;;  %v31585_v42 = vpack.c.bf16 %v12638_v58, %v12631_v34 }
 0x9b6   :  { %31578 = vmatprep.subr.bf16.mxu0 %v31577_v23  ;;  %31480 = vmatpush3.bf16.msra.mxu1 %v34607_v43  ;;  %v11599_v43 = vsub.f32 %v11515_v11, %v34708_v12 }
 0x9b8   :  { %29595 = vmatmul.mubr.f32.vlgmr.msra.gmra.mrb[28].mxu0 %v34451_v47  ;;  %v11600_v55 = vand.u32 4294901760, %v11599_v43 }
 0x9b9   :  { %31580 = vmatpush3.bf16.msra.mxu0 %v31577_v23  ;;  %29687 = vmatprep.mubr.f32.mxu0 %v34495_v8 }
 0x9ba   :  { %29685 = vmatprep.subr.mxu0 %v34659_v53  ;;  %v11601_v28 = vsub.f32 %v11599_v43, %v11600_v55 }
 0x9bc   :  { %29487 = vmatmul.mubr.f32.vlgmr.msra.gmra.mrb[36].mxu1 %v34343_v24  ;;  %v31593_v24 = vpack.c.bf16 %v12639_v38, %v12632_v35  ;;  %v11602_v48 = vand.u32 4294901760, %v11601_v28 }
 0x9bd   :  { %29686 = vmatpush3.msra.mxu0 %v34659_v53 }
 0x9be   :  { %29688 = vmatmul.mubr.f32.vlgmr.msra.gmra.mrb[30].mxu0 %v34522_v30  ;;  %31582 = vmatprep.subr.bf16.mxu0 %v31581_v52 }
 0x9bf   :  { %29696 = vmatprep.mubr.f32.mxu0 %v34428_v20  ;;  %31584 = vmatpush3.bf16.msra.mxu0 %v31581_v52 }
 0x9c0   :  { %29694 = vmatprep.subr.mxu0 %v12648_v1 }
 0x9c3   :  { %29695 = vmatpush3.msra.mxu0 %v12648_v1 }
 0x9c4   :  { %31586 = vmatprep.subr.bf16.mxu0 %v31585_v42 }
 0x9c6   :  { %29697 = vmatmul.mubr.f32.vlgmr.msra.gmra.mrb[30].mxu0 %v34451_v47 }
 0x9c7   :  { %29705 = vmatprep.mubr.f32.mxu0 %v34434_v2  ;;  %31588 = vmatpush3.bf16.msra.mxu0 %v31585_v42  ;;  %v10990_v2 = vld [vmem:[#allocation24 + $0x10] sm:$0xff] }
 0x9c8   :  { %29703 = vmatprep.subr.mxu0 %v12645_v25 }
 0x9cb   :  { %29704 = vmatpush3.msra.mxu0 %v12645_v25  ;;  %v10463_v25 = vld [vmem:[#allocation24 + $0x8] sm:$0xf] }
 0x9cc   :  { %31590 = vmatprep.subr.bf16.mxu0 %v31577_v23  ;;  %v12027_v6 = vsel %vm10444_vm6, %v10463_v25, 0 }
 0x9cd   :  { %v34720_v60 = vand.u32 4294901760, %v12027_v6 }
 0x9ce   :  { %29706 = vmatmul.mubr.f32.vlgmr.msra.gmra.mrb[30].mxu0 %v34473_v19 }
 0x9cf   :  { %29714 = vmatprep.mubr.f32.mxu0 %v34449_v46  ;;  %31592 = vmatpush3.bf16.msra.mxu0 %v31577_v23  ;;  %v11512_v46 = vsel %vm10444_vm6, %v10990_v2, 0  ;;  %v12110_v61 = vsub.f32 %v12027_v6, %v34720_v60 }
 0x9d0   :  { %29712 = vmatprep.subr.mxu0 %v34659_v53  ;;  %v34695_v19 = vand.u32 4294901760, %v11512_v46 }
 0x9d1   :  { %v12111_v52 = vand.u32 4294901760, %v12110_v61 }
 0x9d2   :  { %v11589_v8 = vsub.f32 %v11512_v46, %v34695_v19 }
 0x9d3   :  { %29713 = vmatpush3.msra.mxu0 %v34659_v53 }
 0x9d4   :  { %31594 = vmatprep.subr.bf16.mxu0 %v31593_v24 }
 0x9d6   :  { %29715 = vmatmul.mubr.f32.vlgmr.msra.gmra.mrb[30].mxu0 %v34498_v40  ;;  %v11590_v40 = vand.u32 4294901760, %v11589_v8 }
 0x9d7   :  { %29723 = vmatprep.mubr.f32.mxu0 %v34428_v20  ;;  %31596 = vmatpush3.bf16.msra.mxu0 %v31593_v24 }
 0x9d8   :  { %29721 = vmatprep.subr.mxu0 %v12646_v27  ;;  %v11591_v30 = vsub.f32 %v11589_v8, %v11590_v40 }
 0x9da   :  { %v11592_v33 = vand.u32 4294901760, %v11591_v30 }
 0x9db   :  { %29722 = vmatpush3.msra.mxu0 %v12646_v27 }
 0x9dc   :  { %31598 = vmatprep.subr.bf16.mxu0 %v31577_v23  ;;  %29601 = vmatprep.mubr.f32.mxu1 %v11592_v33  ;;  %v12112_v33 = vsub.f32 %v12110_v61, %v12111_v52 }
 0x9de   :  { %29724 = vmatmul.mubr.f32.vlgmr.msra.gmra.mrb[30].mxu0 %v34451_v47 }
 0x9df   :  { %29732 = vmatprep.mubr.f32.mxu0 %v34428_v20  ;;  %31600 = vmatpush3.bf16.msra.mxu0 %v31577_v23 }
 0x9e0   :  { %29730 = vmatprep.subr.mxu0 %v34659_v53 }
 0x9e3   :  { %29731 = vmatpush3.msra.mxu0 %v34659_v53  ;;  %v10462_v53 = vld [vmem:[#allocation24] sm:$0xff] }
 0x9e4   :  { %v12024_v35 = vsel %vm10444_vm6, %v10462_v53, 0 }
 0x9e5   :  { %v34715_v38 = vand.u32 4294901760, %v12024_v35 }
 0x9e6   :  { %29733 = vmatmul.mubr.f32.vlgmr.msra.gmra.mrb[30].mxu0 %v34451_v47 }
 0x9e7   :  { %v12100_v23 = vsub.f32 %v12024_v35, %v34715_v38 }
 0x9e9   :  { %v12101_v27 = vand.u32 4294901760, %v12100_v23 }
 0x9eb   :  { %v12102_v62 = vsub.f32 %v12100_v23, %v12101_v27 }
 0x9ed   :  { %v12103_v24 = vand.u32 4294901760, %v12102_v62 }
 0xa5d   :  { %v29542_v20 = vpop.f32.mrb[26].mxu0 }
 0xa5e   :  { %v12030_v3 = vsel %vm11517_vm11, %v29542_v20, 0  ;;  %v10979_v39 = vpop.f32.mrb[27].mxu0 }
 0xa5f   :  { %v12036_v41 = vand.u32 4294901760, %v12030_v3  ;;  %v12033_v44 = vand.u32 4294901760, %v10979_v39 }
 0xa61   :  { %v12128_v45 = vsub.f32 %v12030_v3, %v12036_v41  ;;  %v34699_v47 = vpack.c.bf16 %v12036_v41, %v12033_v44  ;;  %v12121_v49 = vsub.f32 %v10979_v39, %v12033_v44  ;;  %v12113_v44 = vand.u32 4294901760, %v12112_v33  ;;  %v14089_v33 = vld [vmem:[#allocation28 + $0x8] sm:$0xff] }
 0xa63   :  { %v12129_v50 = vand.u32 4294901760, %v12128_v45  ;;  %v12122_v51 = vand.u32 4294901760, %v12121_v49  ;;  %v34701_v16 = vpack.c.bf16 %v12128_v45, %v12121_v49 }
 0xa65   :  { %v12130_v21 = vsub.f32 %v12128_v45, %v12129_v50  ;;  %v12123_v32 = vsub.f32 %v12121_v49, %v12122_v51  ;;  %v34703_v57 = vpack.c.bf16 %v12129_v50, %v12122_v51 }
 0xa67   :  { %v12124_v0 = vand.u32 4294901760, %v12123_v32  ;;  %v12131_v31 = vand.u32 4294901760, %v12130_v21  ;;  %v12535_v21 = vld [vmem:[#allocation24 + $0x20] sm:$0xff] }
 0xa68   :  { %v13057_v32 = vsel %vm10444_vm6, %v12535_v21, 0 }
 0xa69   :  { %v34705_v59 = vpack.c.bf16 %v12131_v31, %v12124_v0  ;;  %v13132_v0 = vand.u32 4294901760, %v13057_v32  ;;  %v12536_v31 = vld [vmem:[#allocation24 + $0x28] sm:$0xf] }
 0xa8b   :  { %v29596_v54 = vpop.f32.mrb[28].mxu0 }
 0xa8c   :  { %v11519_v17 = vsel %vm11517_vm11, %v29596_v54, 0  ;;  %v11501_v18 = vpop.f32.mrb[29].mxu0 }
 0xa8d   :  { %v11525_v22 = vand.u32 4294901760, %v11519_v17  ;;  %v11522_v10 = vand.u32 4294901760, %v11501_v18 }
 0xa8f   :  { %v11617_v56 = vsub.f32 %v11519_v17, %v11525_v22  ;;  %v31529_v13 = vpack.c.bf16 %v11525_v22, %v11522_v10  ;;  %v11610_v15 = vsub.f32 %v11501_v18, %v11522_v10 }
 0xa91   :  { %v11618_v4 = vand.u32 4294901760, %v11617_v56  ;;  %v11611_v36 = vand.u32 4294901760, %v11610_v15  ;;  %31530 = vmatprep.subr.bf16.mxu1 %v31529_v13  ;;  %v31537_v37 = vpack.c.bf16 %v11617_v56, %v11610_v15 }
 0xa92   :  { %31532 = vmatpush3.bf16.msra.mxu1 %v31529_v13 }
 0xa93   :  { %v11619_v14 = vsub.f32 %v11617_v56, %v11618_v4  ;;  %v11612_v29 = vsub.f32 %v11610_v15, %v11611_v36  ;;  %v31545_v63 = vpack.c.bf16 %v11618_v4, %v11611_v36  ;;  %v15657_v15 = vld [vmem:[#allocation30 + $0x4] sm:$0xf]  ;;  %v13576_v4 = vld [vmem:[#allocation27 + $0x8] sm:$0xff] }
 0xa94   :  { %15661 = vrot.lane.b32.xlu1 %v15657_v15, %s33260_s8  ;;  %v13581_v36 = vsel %vm10444_vm6, %v13576_v4, 0  ;;  %v15656_v4 = vld [vmem:[#allocation30] sm:$0xf] }
 0xa95   :  { %29602 = vmatmul.mubr.f32.vlgmr.msra.gmra.mrb[38].mxu1 %v11602_v48  ;;  %v11613_v5 = vand.u32 4294901760, %v11612_v29  ;;  %v11620_v34 = vand.u32 4294901760, %v11619_v14  ;;  %v13663_v48 = vand.u32 4294901760, %v13581_v36  ;;  %15659 = vst.msk [vmem:[#allocation5] sm:$0xf] %vm15658_vm12, %v15656_v4 }
 0xa96   :  { %29608 = vmatprep.mubr.f32.mxu1 %v34695_v19 }
 0xa97   :  { %v31533_v58 = vpack.c.bf16 %v11620_v34, %v11613_v5  ;;  %v13664_v14 = vsub.f32 %v13581_v36, %v13663_v48 }
 0xa99   :  { %31534 = vmatprep.subr.bf16.mxu1 %v31533_v58 }
 0xa9a   :  { %31536 = vmatpush3.bf16.msra.mxu1 %v31533_v58  ;;  %v13665_v58 = vand.u32 4294901760, %v13664_v14 }
 0xa9b   :  { %31538 = vmatprep.subr.bf16.mxu1 %v31537_v37 }
 0xa9c   :  { %v13666_v6 = vsub.f32 %v13664_v14, %v13665_v58 }
 0xa9d   :  { %29609 = vmatmul.mubr.f32.vlgmr.msra.gmra.mrb[38].mxu1 %v34708_v12 }
 0xa9e   :  { %31540 = vmatpush3.bf16.msra.mxu1 %v31537_v37  ;;  %29615 = vmatprep.mubr.f32.mxu1 %v11589_v8  ;;  %v13570_v37 = vstv %s27246_s17 }
 0xa9f   :  { %31542 = vmatprep.subr.bf16.mxu1 %v31529_v13 }
 0xaa5   :  { %29616 = vmatmul.mubr.f32.vlgmr.msra.gmra.mrb[38].mxu1 %v11599_v43 }
 0xaa6   :  { %31544 = vmatpush3.bf16.msra.mxu1 %v31529_v13  ;;  %29622 = vmatprep.mubr.f32.mxu1 %v11590_v40 }
 0xaa7   :  { %31546 = vmatprep.subr.bf16.mxu1 %v31545_v63 }
 0xaad   :  { %29623 = vmatmul.mubr.f32.vlgmr.msra.gmra.mrb[38].mxu1 %v11600_v55 }
 0xaae   :  { %31548 = vmatpush3.bf16.msra.mxu1 %v31545_v63  ;;  %29629 = vmatprep.mubr.f32.mxu1 %v34695_v19 }
 0xaaf   :  { %31550 = vmatprep.subr.bf16.mxu1 %v31529_v13 }
 0xab5   :  { %29630 = vmatmul.mubr.f32.vlgmr.msra.gmra.mrb[38].mxu1 %v34708_v12 }
 0xab6   :  { %31552 = vmatpush3.bf16.msra.mxu1 %v31529_v13  ;;  %29636 = vmatprep.mubr.f32.mxu1 %v34695_v19 }
 0xab7   :  { %31554 = vmatprep.subr.bf16.mxu1 %v34699_v47 }
 0xab9   :  { %v29734_v26 = vpop.f32.mrb[30].mxu0 }
 0xaba   :  { %v13063_v1 = vsel %vm11517_vm11, %v29734_v26, 0  ;;  %v13046_v42 = vpop.f32.mrb[31].mxu0  ;;  %v13667_v26 = vand.u32 4294901760, %v13666_v6 }
 0xabb   :  { %v13069_v2 = vand.u32 4294901760, %v13063_v1  ;;  %v13066_v46 = vand.u32 4294901760, %v13046_v42 }
 0xabd   :  { %v13161_v8 = vsub.f32 %v13063_v1, %v13069_v2  ;;  %v34727_v40 = vpack.c.bf16 %v13069_v2, %v13066_v46  ;;  %v13154_v30 = vsub.f32 %v13046_v42, %v13066_v46  ;;  %29637 = vmatmul.mubr.f32.vlgmr.msra.gmra.mrb[38].mxu1 %v34708_v12 }
 0xabe   :  { %31556 = vmatpush3.bf16.msra.mxu1 %v34699_v47  ;;  %29643 = vmatprep.mubr.f32.mxu1 %v12103_v24 }
 0xabf   :  { %v13162_v19 = vand.u32 4294901760, %v13161_v8  ;;  %v13155_v20 = vand.u32 4294901760, %v13154_v30  ;;  %31558 = vmatprep.subr.bf16.mxu1 %v34705_v59  ;;  %v31609_v3 = vpack.c.bf16 %v13161_v8, %v13154_v30 }
 0xac1   :  { %v13163_v39 = vsub.f32 %v13161_v8, %v13162_v19  ;;  %v13156_v41 = vsub.f32 %v13154_v30, %v13155_v20  ;;  %v31617_v45 = vpack.c.bf16 %v13162_v19, %v13155_v20  ;;  %v14088_v30 = vld [vmem:[#allocation28] sm:$0xff]  ;;  %v14615_v19 = vld [vmem:[#allocation28 + $0x18] sm:$0xff] }
 0xac2   :  { %v14098_v20 = vand.u32 4294901760, %v14088_v30 }
 0xac3   :  { %v13157_v49 = vand.u32 4294901760, %v13156_v41  ;;  %v13164_v50 = vand.u32 4294901760, %v13163_v39  ;;  %v14616_v39 = vld [vmem:[#allocation28 + $0x20] sm:$0xff]  ;;  %v14619_v41 = vand.u32 4294901760, %v14615_v19 }
 0xac5   :  { %29644 = vmatmul.mubr.f32.vlgmr.msra.gmra.mrb[38].mxu1 %v12113_v44  ;;  %v31605_v51 = vpack.c.bf16 %v13164_v50, %v13157_v49  ;;  %v14622_v44 = vand.u32 4294901760, %v14616_v39  ;;  %v14617_v49 = vld [vmem:[#allocation28 + $0x28] sm:$0xff] }
 0xac6   :  { %31560 = vmatpush3.bf16.msra.mxu1 %v34705_v59  ;;  %29650 = vmatprep.mubr.f32.mxu1 %v34715_v38  ;;  %v13060_v59 = vsel %vm10444_vm6, %v12536_v31, 0  ;;  %v34763_v21 = vand.u32 4294901760, %v14617_v49 }
 0xac7   :  { %31562 = vmatprep.subr.bf16.mxu1 %v34701_v16  ;;  %v13142_v9 = vand.u32 4294901760, %v13060_v59 }
 0xac9   :  { %v13143_v12 = vsub.f32 %v13060_v59, %v13142_v9  ;;  %v14715_v59 = vsub.f32 %v14616_v39, %v14622_v44 }
 0xacd   :  { %29651 = vmatmul.mubr.f32.vlgmr.msra.gmra.mrb[38].mxu1 %v34720_v60 }
 0xace   :  { %31564 = vmatpush3.bf16.msra.mxu1 %v34701_v16  ;;  %29657 = vmatprep.mubr.f32.mxu1 %v12100_v23  ;;  %v13133_v16 = vsub.f32 %v13057_v32, %v13132_v0  ;;  %v14187_v32 = vsub.f32 %v14088_v30, %v14098_v20 }
 0xacf   :  { %31566 = vmatprep.subr.bf16.mxu1 %v34699_v47 }
 0xad0   :  { %v13134_v11 = vand.u32 4294901760, %v13133_v16 }
 0xad2   :  { %v13135_v43 = vsub.f32 %v13133_v16, %v13134_v11 }
 0xad4   :  { %v13136_v55 = vand.u32 4294901760, %v13135_v43  ;;  %v14716_v43 = vand.u32 4294901760, %v14715_v59 }
 0xad5   :  { %29658 = vmatmul.mubr.f32.vlgmr.msra.gmra.mrb[38].mxu1 %v12110_v61 }
 0xad6   :  { %31568 = vmatpush3.bf16.msra.mxu1 %v34699_v47  ;;  %29664 = vmatprep.mubr.f32.mxu1 %v12101_v27 }
 0xad7   :  { %31570 = vmatprep.subr.bf16.mxu1 %v34703_v57 }
 0xadd   :  { %29665 = vmatmul.mubr.f32.vlgmr.msra.gmra.mrb[38].mxu1 %v12111_v52 }
 0xade   :  { %31572 = vmatpush3.bf16.msra.mxu1 %v34703_v57  ;;  %29671 = vmatprep.mubr.f32.mxu1 %v34715_v38  ;;  %v13144_v57 = vand.u32 4294901760, %v13143_v12 }
 0xadf   :  { %31574 = vmatprep.subr.bf16.mxu1 %v34699_v47 }
 0xae0   :  { %v13145_v54 = vsub.f32 %v13143_v12, %v13144_v57 }
 0xae2   :  { %v13146_v17 = vand.u32 4294901760, %v13145_v54 }
 0xae5   :  { %29672 = vmatmul.mubr.f32.vlgmr.msra.gmra.mrb[38].mxu1 %v34720_v60 }
 0xae6   :  { %31576 = vmatpush3.bf16.msra.mxu1 %v34699_v47  ;;  %29678 = vmatprep.mubr.f32.mxu1 %v34715_v38  ;;  %v13575_v47 = vld [vmem:[#allocation27] sm:$0xff] }
 0xae7   :  { %31602 = vmatprep.subr.bf16.mxu1 %v34727_v40  ;;  %v13578_v18 = vsel %vm10444_vm6, %v13575_v47, 0 }
 0xae8   :  { %v13653_v22 = vand.u32 4294901760, %v13578_v18 }
 0xaea   :  { %v13654_v10 = vsub.f32 %v13578_v18, %v13653_v22 }
 0xaec   :  { %v13655_v28 = vand.u32 4294901760, %v13654_v10 }
 0xaed   :  { %29679 = vmatmul.mubr.f32.vlgmr.msra.gmra.mrb[38].mxu1 %v34720_v60 }
 0xaee   :  { %31604 = vmatpush3.bf16.msra.mxu1 %v34727_v40  ;;  %29739 = vmatprep.mubr.f32.mxu1 %v13136_v55  ;;  %v13656_v56 = vsub.f32 %v13654_v10, %v13655_v28 }
 0xaef   :  { %31606 = vmatprep.subr.bf16.mxu1 %v31605_v51 }
 0xaf0   :  { %v13657_v13 = vand.u32 4294901760, %v13656_v56 }
 0xaf2   :  { %29781 = vmatprep.mubr.f32.mxu0 %v13657_v13 }
 0xaf5   :  { %29740 = vmatmul.mubr.f32.vlgmr.msra.gmra.mrb[38].mxu1 %v13146_v17  ;;  %v14717_v17 = vsub.f32 %v14715_v59, %v14716_v43 }
 0xaf6   :  { %31608 = vmatpush3.bf16.msra.mxu1 %v31605_v51  ;;  %29746 = vmatprep.mubr.f32.mxu1 %v13132_v0 }
 0xaf7   :  { %31610 = vmatprep.subr.bf16.mxu1 %v31609_v3 }
 0xafd   :  { %29747 = vmatmul.mubr.f32.vlgmr.msra.gmra.mrb[38].mxu1 %v13142_v9 }
 0xafe   :  { %31612 = vmatpush3.bf16.msra.mxu1 %v31609_v3  ;;  %29753 = vmatprep.mubr.f32.mxu1 %v13133_v16  ;;  %v14101_v3 = vand.u32 4294901760, %v14089_v33  ;;  %v14708_v16 = vsub.f32 %v14615_v19, %v14619_v41  ;;  %v15668_v19 = vld [vmem:[#allocation33] sm:$0xff] }
 0xaff   :  { %31614 = vmatprep.subr.bf16.mxu1 %v34727_v40  ;;  %v34842_v39 = vand.u32 4294901760, %v15668_v19 }
 0xb00   :  { %v34759_v50 = vpack.c.bf16 %v14101_v3, %v14098_v20  ;;  %v14194_v31 = vsub.f32 %v14089_v33, %v14101_v3  ;;  %v31681_v15 = vpack.c.bf16 %v14715_v59, %v14708_v16  ;;  %v15138_v3 = vld [vmem:[#allocation28 + $0x40] sm:$0xff] }
 0xb02   :  { %v31657_v13 = vpack.c.bf16 %v14194_v31, %v14187_v32 }
 0xb05   :  { %29754 = vmatmul.mubr.f32.vlgmr.msra.gmra.mrb[38].mxu1 %v13143_v12  ;;  %v14709_v12 = vand.u32 4294901760, %v14708_v16 }
 0xb06   :  { %31616 = vmatpush3.bf16.msra.mxu1 %v34727_v40  ;;  %29760 = vmatprep.mubr.f32.mxu1 %v13134_v11  ;;  %v14195_v11 = vand.u32 4294901760, %v14194_v31  ;;  %v15662_v36 = vpop.permute.xlu1 %15661 }
 0xb07   :  { %31618 = vmatprep.subr.bf16.mxu1 %v31617_v45  ;;  %v14710_v54 = vsub.f32 %v14708_v16, %v14709_v12  ;;  %15665 = vst.msk [vmem:[#allocation5] sm:$0xf] %vm15664_vm13, %v15662_v36 }
 0xb08   :  { %v14196_v55 = vsub.f32 %v14194_v31, %v14195_v11 }
 0xb0a   :  { %v14197_v18 = vand.u32 4294901760, %v14196_v55 }
 0xb0d   :  { %29761 = vmatmul.mubr.f32.vlgmr.msra.gmra.mrb[38].mxu1 %v13144_v57 }
 0xb0e   :  { %31620 = vmatpush3.bf16.msra.mxu1 %v31617_v45  ;;  %29767 = vmatprep.mubr.f32.mxu1 %v13132_v0  ;;  %v14090_v45 = vld [vmem:[#allocation28 + $0x10] sm:$0xff] }
 0xb0f   :  { %31622 = vmatprep.subr.bf16.mxu1 %v34727_v40  ;;  %v34761_v51 = vand.u32 4294901760, %v14090_v45 }
 0xb15   :  { %29768 = vmatmul.mubr.f32.vlgmr.msra.gmra.mrb[38].mxu1 %v13142_v9 }
 0xb16   :  { %31624 = vmatpush3.bf16.msra.mxu1 %v34727_v40  ;;  %29774 = vmatprep.mubr.f32.mxu1 %v13132_v0  ;;  %v34765_v0 = vpack.c.bf16 %v14622_v44, %v14619_v41 }
 0xb17   :  { %31650 = vmatprep.subr.bf16.mxu1 %v34759_v50 }
 0xb1d   :  { %29775 = vmatmul.mubr.f32.vlgmr.msra.gmra.mrb[38].mxu1 %v13142_v9  ;;  %v14188_v9 = vand.u32 4294901760, %v14187_v32 }
 0xb1e   :  { %31652 = vmatpush3.bf16.msra.mxu1 %v34759_v50 }
 0xb1f   :  { %29823 = vmatprep.subr.mxu1 %v34761_v51  ;;  %v14189_v57 = vsub.f32 %v14187_v32, %v14188_v9  ;;  %v34857_v32 = vsub.f32 %v15668_v19, %v34842_v39 }
 0xb21   :  { %v14190_v47 = vand.u32 4294901760, %v14189_v57 }
 0xb22   :  { %29824 = vmatpush3.msra.mxu1 %v34761_v51 }
 0xbf0   :  { %v29776_v29 = vpop.f32.mrb[38].mxu1 }
 0xbf1   :  { %v13572_v63 = vadd.f32 %v29776_v29, %v13570_v37  ;;  %v13557_v5 = vpop.f32.mrb[39].mxu1 }
 0xbf2   :  { %v13571_v34 = vadd.f32 %v13570_v37, %v13557_v5  ;;  %v34777_v37 = vpack.c.bf16 %v14716_v43, %v14709_v12  ;;  %v14201_v5 = vsub.f32 %v14090_v45, %v34761_v51 }
 0xbf3   :  { %v13574_v53 = vmax.f32 %v13572_v63, 0.0 }
 0xbf4   :  { %v13573_v35 = vmax.f32 %v13571_v34, 0.0  ;;  %v14722_v34 = vsub.f32 %v14617_v49, %v34763_v21  ;;  %v34854_v49 = vand.u32 4294901760, %v15138_v3 }
 0xbf5   :  { %v13584_v38 = vsel %vm11517_vm11, %v13574_v53, 0 }
 0xbf6   :  { %v13590_v25 = vand.u32 4294901760, %v13584_v38  ;;  %v13587_v23 = vand.u32 4294901760, %v13573_v35  ;;  %v34795_v6 = vand.u32 4294901760, %v14722_v34 }
 0xbf8   :  { %v13682_v60 = vsub.f32 %v13584_v38, %v13590_v25  ;;  %v31625_v27 = vpack.c.bf16 %v13590_v25, %v13587_v23  ;;  %v13675_v61 = vsub.f32 %v13573_v35, %v13587_v23  ;;  %v34793_v23 = vand.u32 4294901760, %v14201_v5 }
 0xbfa   :  { %v13676_v62 = vand.u32 4294901760, %v13675_v61  ;;  %31626 = vmatprep.subr.bf16.mxu0 %v31625_v27  ;;  %v13683_v52 = vand.u32 4294901760, %v13682_v60  ;;  %v31633_v1 = vpack.c.bf16 %v13682_v60, %v13675_v61 }
 0xbfb   :  { %31628 = vmatpush3.bf16.msra.mxu0 %v31625_v27 }
 0xbfc   :  { %v13677_v42 = vsub.f32 %v13675_v61, %v13676_v62  ;;  %v13684_v24 = vsub.f32 %v13682_v60, %v13683_v52  ;;  %v31641_v2 = vpack.c.bf16 %v13683_v52, %v13676_v62  ;;  %v14724_v52 = vsub.f32 %v14722_v34, %v34795_v6 }
 0xbfe   :  { %29782 = vmatmul.mubr.f32.vlgmr.msra.gmra.mrb[32].mxu0 %v13667_v26  ;;  %v13678_v46 = vand.u32 4294901760, %v13677_v42  ;;  %v13685_v8 = vand.u32 4294901760, %v13684_v24  ;;  %v14203_v26 = vsub.f32 %v14201_v5, %v34793_v23 }
 0xbff   :  { %29788 = vmatprep.mubr.f32.mxu0 %v13653_v22 }
 0xc00   :  { %v31629_v40 = vpack.c.bf16 %v13685_v8, %v13678_v46  ;;  %v14204_v24 = vand.u32 4294901760, %v14203_v26  ;;  %v15136_v46 = vld [vmem:[#allocation28 + $0x30] sm:$0xff]  ;;  %v15137_v8 = vld [vmem:[#allocation28 + $0x38] sm:$0xff] }
 0xc01   :  { %v15140_v30 = vand.u32 4294901760, %v15136_v46  ;;  %v15143_v33 = vand.u32 4294901760, %v15137_v8 }
 0xc02   :  { %31630 = vmatprep.subr.bf16.mxu0 %v31629_v40 }
 0xc03   :  { %31632 = vmatpush3.bf16.msra.mxu0 %v31629_v40  ;;  %v15666_v40 = vld [vmem:[#allocation5] sm:$0xf]  ;;  %v34848_v44 = vsub.f32 %v15136_v46, %v15140_v30  ;;  %v34850_v45 = vsub.f32 %v15137_v8, %v15143_v33  ;;  %v34887_v55 = vpack.c.bf16 %v15143_v33, %v15140_v30 }
 0xc04   :  { %31634 = vmatprep.subr.bf16.mxu0 %v31633_v1  ;;  %v15670_v20 = vsel %vm390_vm0, %v15666_v40, 0 }
 0xc05   :  { %v34846_v41 = vand.u32 4294901760, %v15670_v20  ;;  %v15230_v16 = vand.u32 4294901760, %v34848_v44  ;;  %v15237_v59 = vand.u32 4294901760, %v34850_v45 }
 0xc06   :  { %29789 = vmatmul.mubr.f32.vlgmr.msra.gmra.mrb[32].mxu0 %v13663_v48 }
 0xc07   :  { %31636 = vmatpush3.bf16.msra.mxu0 %v31633_v1  ;;  %29795 = vmatprep.mubr.f32.mxu0 %v13654_v10  ;;  %v14718_v10 = vand.u32 4294901760, %v14717_v17  ;;  %v34862_v31 = vsub.f32 %v15670_v20, %v34846_v41  ;;  %v15231_v43 = vsub.f32 %v34848_v44, %v15230_v16  ;;  %v15238_v57 = vsub.f32 %v34850_v45, %v15237_v59 }
 0xc08   :  { %31638 = vmatprep.subr.bf16.mxu0 %v31625_v27 }
 0xc09   :  { %v34877_v12 = vand.u32 4294901760, %v34862_v31  ;;  %v15232_v17 = vand.u32 4294901760, %v15231_v43  ;;  %v17474_v43 = vld [vmem:[#allocation31 + $0x8] sm:$0xf] }
 0xc0e   :  { %29796 = vmatmul.mubr.f32.vlgmr.msra.gmra.mrb[32].mxu0 %v13664_v14 }
 0xc0f   :  { %31640 = vmatpush3.bf16.msra.mxu0 %v31625_v27  ;;  %29802 = vmatprep.mubr.f32.mxu0 %v13655_v28  ;;  %v31653_v28 = vpack.c.bf16 %v14197_v18, %v14190_v47  ;;  %v15239_v47 = vand.u32 4294901760, %v15238_v57  ;;  %v17924_v57 = vsel %vm16568_vm14, %v17474_v43, 0 }
 0xc10   :  { %31642 = vmatprep.subr.bf16.mxu0 %v31641_v2 }
 0xc11   :  { %31654 = vmatprep.subr.bf16.mxu1 %v31653_v28 }
 0xc16   :  { %29803 = vmatmul.mubr.f32.vlgmr.msra.gmra.mrb[32].mxu0 %v13665_v58 }
 0xc17   :  { %31644 = vmatpush3.bf16.msra.mxu0 %v31641_v2  ;;  %29809 = vmatprep.mubr.f32.mxu0 %v13653_v22  ;;  %v14725_v2 = vand.u32 4294901760, %v14724_v52 }
 0xc18   :  { %31646 = vmatprep.subr.bf16.mxu0 %v31625_v27 }
 0xc1e   :  { %29810 = vmatmul.mubr.f32.vlgmr.msra.gmra.mrb[32].mxu0 %v13663_v48 }
 0xc1f   :  { %31648 = vmatpush3.bf16.msra.mxu0 %v31625_v27  ;;  %29816 = vmatprep.mubr.f32.mxu0 %v13653_v22  ;;  %v14711_v22 = vand.u32 4294901760, %v14710_v54  ;;  %v15741_v54 = vsub.f32 %v34862_v31, %v34877_v12 }
 0xc20   :  { %31674 = vmatprep.subr.bf16.mxu0 %v34765_v0 }
 0xc21   :  { %v31677_v56 = vpack.c.bf16 %v14718_v10, %v14711_v22  ;;  %v31701_v22 = vpack.c.bf16 %v15239_v47, %v15232_v17 }
 0xc26   :  { %29817 = vmatmul.mubr.f32.vlgmr.msra.gmra.mrb[32].mxu0 %v13663_v48  ;;  %v34775_v48 = vpack.c.bf16 %v14195_v11, %v14188_v9  ;;  %v15243_v9 = vsub.f32 %v15138_v3, %v34854_v49  ;;  %v15751_v11 = vand.u32 4294901760, %v34857_v32 }
 0xc27   :  { %31676 = vmatpush3.bf16.msra.mxu0 %v34765_v0 }
 0xc28   :  { %29877 = vmatprep.subr.mxu0 %v34763_v21 }
 0xc2b   :  { %29878 = vmatpush3.msra.mxu0 %v34763_v21 }
 0xc2c   :  { %31678 = vmatprep.subr.bf16.mxu0 %v31677_v56 }
 0xcf9   :  { %v29818_v14 = vpop.f32.mrb[32].mxu0 }
 0xcfa   :  { %v14095_v29 = vsel %vm10467_vm10, %v29818_v14, 0  ;;  %v14078_v63 = vpop.f32.mrb[33].mxu0  ;;  %v15667_v14 = vld [vmem:[#allocation31] sm:$0xf] }
 0xcfb   :  { %v34782_v58 = vand.u32 4294901760, %v14095_v29  ;;  %v14092_v53 = vsel %vm10467_vm10, %v14078_v63, 0 }
 0xcfc   :  { %v34785_v35 = vand.u32 4294901760, %v14092_v53 }
 0xcfd   :  { %v34788_v38 = vsub.f32 %v14095_v29, %v34782_v58  ;;  %v17022_v29 = vsel %vm16568_vm14, %v15667_v14, 0 }
 0xcfe   :  { %v34791_v25 = vsub.f32 %v14092_v53, %v34785_v35  ;;  %v34996_v63 = vand.u32 4294901760, %v17022_v29 }
 0xcff   :  { %v34798_v60 = vand.u32 4294901760, %v34788_v38 }
 0xd00   :  { %v34801_v27 = vand.u32 4294901760, %v34791_v25 }
 0xd01   :  { %v14178_v61 = vsub.f32 %v34788_v38, %v34798_v60 }
 0xd02   :  { %v14168_v62 = vsub.f32 %v34791_v25, %v34801_v27 }
 0xd03   :  { %v34811_v42 = vand.u32 4294901760, %v14178_v61 }
 0xd04   :  { %v34809_v1 = vand.u32 4294901760, %v14168_v62 }
 0xd06   :  { %29825 = vmatprep.mubr.f32.mxu1 %v34809_v1  ;;  %29879 = vmatprep.mubr.f32.mxu0 %v34809_v1 }
 0xd07   :  { %29826 = vmatmul.mubr.f32.vlgmr.msra.gmra.mrb[34].mxu1 %v34811_v42  ;;  %29880 = vmatmul.mubr.f32.vlgmr.msra.gmra.mrb[24].mxu0 %v34811_v42 }
 0xd08   :  { %29834 = vmatprep.mubr.f32.mxu1 %v34785_v35  ;;  %29888 = vmatprep.mubr.f32.mxu0 %v34785_v35 }
 0xd09   :  { %31656 = vmatpush3.bf16.msra.mxu1 %v31653_v28  ;;  %31680 = vmatpush3.bf16.msra.mxu0 %v31677_v56  ;;  %v31705_v28 = vpack.c.bf16 %v34850_v45, %v34848_v44  ;;  %v31713_v56 = vpack.c.bf16 %v15237_v59, %v15230_v16 }
 0xd0a   :  { %29832 = vmatprep.subr.mxu1 %v14204_v24  ;;  %29886 = vmatprep.subr.mxu0 %v14725_v2 }
 0xd0d   :  { %29833 = vmatpush3.msra.mxu1 %v14204_v24  ;;  %29887 = vmatpush3.msra.mxu0 %v14725_v2  ;;  %v16119_v24 = vld [vmem:[#allocation31 + $0x4] sm:$0xf] }
 0xd0e   :  { %31658 = vmatprep.subr.bf16.mxu1 %v31657_v13  ;;  %31682 = vmatprep.subr.bf16.mxu0 %v31681_v15  ;;  %v16570_v2 = vsel %vm16568_vm14, %v16119_v24, 0 }
 0xd0f   :  { %29835 = vmatmul.mubr.f32.vlgmr.msra.gmra.mrb[34].mxu1 %v34782_v58  ;;  %29889 = vmatmul.mubr.f32.vlgmr.msra.gmra.mrb[24].mxu0 %v34782_v58  ;;  %v16641_v46 = vand.u32 4294901760, %v16570_v2 }
 0xd10   :  { %29843 = vmatprep.mubr.f32.mxu1 %v34791_v25  ;;  %29897 = vmatprep.mubr.f32.mxu0 %v34791_v25 }
 0xd11   :  { %31660 = vmatpush3.bf16.msra.mxu1 %v31657_v13  ;;  %31684 = vmatpush3.bf16.msra.mxu0 %v31681_v15  ;;  %v16121_v13 = vld [vmem:[#allocation33 + $0x8] sm:$0xff]  ;;  %v16642_v8 = vsub.f32 %v16570_v2, %v16641_v46 }
 0xd12   :  { %29841 = vmatprep.subr.mxu1 %v14201_v5  ;;  %29895 = vmatprep.subr.mxu0 %v14722_v34  ;;  %v16123_v15 = vand.u32 4294901760, %v16121_v13 }
 0xd13   :  { %v16643_v40 = vand.u32 4294901760, %v16642_v8 }
 0xd14   :  { %v16200_v4 = vsub.f32 %v16121_v13, %v16123_v15 }
 0xd15   :  { %29842 = vmatpush3.msra.mxu1 %v14201_v5  ;;  %29896 = vmatpush3.msra.mxu0 %v14722_v34  ;;  %v34999_v5 = vsub.f32 %v17022_v29, %v34996_v63  ;;  %v16644_v30 = vsub.f32 %v16642_v8, %v16643_v40 }
 0xd16   :  { %31662 = vmatprep.subr.bf16.mxu1 %v34759_v50  ;;  %31686 = vmatprep.subr.bf16.mxu0 %v34765_v0  ;;  %v16201_v36 = vand.u32 4294901760, %v16200_v4 }
 0xd17   :  { %29844 = vmatmul.mubr.f32.vlgmr.msra.gmra.mrb[34].mxu1 %v34788_v38  ;;  %29898 = vmatmul.mubr.f32.vlgmr.msra.gmra.mrb[24].mxu0 %v34788_v38  ;;  %v17095_v34 = vand.u32 4294901760, %v34999_v5  ;;  %v16645_v3 = vand.u32 4294901760, %v16644_v30 }
 0xd18   :  { %29852 = vmatprep.mubr.f32.mxu1 %v34801_v27  ;;  %29906 = vmatprep.mubr.f32.mxu0 %v34801_v27 }
 0xd19   :  { %31664 = vmatpush3.bf16.msra.mxu1 %v34759_v50  ;;  %31688 = vmatpush3.bf16.msra.mxu0 %v34765_v0  ;;  %v17096_v53 = vsub.f32 %v34999_v5, %v17095_v34 }
 0xd1a   :  { %29850 = vmatprep.subr.mxu1 %v34761_v51  ;;  %29904 = vmatprep.subr.mxu0 %v34763_v21 }
 0xd1d   :  { %29851 = vmatpush3.msra.mxu1 %v34761_v51  ;;  %29905 = vmatpush3.msra.mxu0 %v34763_v21 }
 0xd1e   :  { %31666 = vmatprep.subr.bf16.mxu1 %v34775_v48  ;;  %31690 = vmatprep.subr.bf16.mxu0 %v34777_v37 }
 0xd1f   :  { %29853 = vmatmul.mubr.f32.vlgmr.msra.gmra.mrb[34].mxu1 %v34798_v60  ;;  %29907 = vmatmul.mubr.f32.vlgmr.msra.gmra.mrb[24].mxu0 %v34798_v60 }
 0xd20   :  { %29861 = vmatprep.mubr.f32.mxu1 %v34785_v35  ;;  %29915 = vmatprep.mubr.f32.mxu0 %v34785_v35 }
 0xd21   :  { %31668 = vmatpush3.bf16.msra.mxu1 %v34775_v48  ;;  %31692 = vmatpush3.bf16.msra.mxu0 %v34777_v37  ;;  %v16202_v48 = vsub.f32 %v16200_v4, %v16201_v36 }
 0xd22   :  { %29859 = vmatprep.subr.mxu1 %v34793_v23  ;;  %29913 = vmatprep.subr.mxu0 %v34795_v6 }
 0xd23   :  { %v16203_v37 = vand.u32 4294901760, %v16202_v48 }
 0xd25   :  { %29860 = vmatpush3.msra.mxu1 %v34793_v23  ;;  %29914 = vmatpush3.msra.mxu0 %v34795_v6  ;;  %v17097_v6 = vand.u32 4294901760, %v17096_v53 }
 0xd26   :  { %31670 = vmatprep.subr.bf16.mxu1 %v34759_v50  ;;  %31694 = vmatprep.subr.bf16.mxu0 %v34765_v0 }
 0xd27   :  { %29862 = vmatmul.mubr.f32.vlgmr.msra.gmra.mrb[34].mxu1 %v34782_v58  ;;  %29916 = vmatmul.mubr.f32.vlgmr.msra.gmra.mrb[24].mxu0 %v34782_v58 }
 0xd28   :  { %29870 = vmatprep.mubr.f32.mxu1 %v34785_v35  ;;  %29924 = vmatprep.mubr.f32.mxu0 %v34785_v35 }
 0xd29   :  { %31672 = vmatpush3.bf16.msra.mxu1 %v34759_v50  ;;  %31696 = vmatpush3.bf16.msra.mxu0 %v34765_v0  ;;  %v34889_v50 = vand.u32 4294901760, %v15243_v9  ;;  %v15752_v0 = vsub.f32 %v34857_v32, %v15751_v11 }
 0xd2a   :  { %29868 = vmatprep.subr.mxu1 %v34761_v51  ;;  %29922 = vmatprep.subr.mxu0 %v34763_v21 }
 0xd2b   :  { %v15245_v18 = vsub.f32 %v15243_v9, %v34889_v50 }
 0xd2d   :  { %29869 = vmatpush3.msra.mxu1 %v34761_v51  ;;  %29923 = vmatpush3.msra.mxu0 %v34763_v21  ;;  %v15753_v51 = vand.u32 4294901760, %v15752_v0  ;;  %v34907_v21 = vand.u32 4294901760, %v15741_v54  ;;  %v15246_v10 = vand.u32 4294901760, %v15245_v18 }
 0xd2e   :  { %31698 = vmatprep.subr.bf16.mxu1 %v34887_v55  ;;  %29981 = vmatprep.subr.mxu0 %v33277_v7 }
 0xd2f   :  { %29871 = vmatmul.mubr.f32.vlgmr.msra.gmra.mrb[34].mxu1 %v34782_v58  ;;  %29925 = vmatmul.mubr.f32.vlgmr.msra.gmra.mrb[24].mxu0 %v34782_v58 }
 0xd30   :  { %31700 = vmatpush3.bf16.msra.mxu1 %v34887_v55  ;;  %29933 = vmatprep.mubr.f32.mxu1 %v34809_v1 }
 0xd31   :  { %29931 = vmatprep.subr.mxu1 %v34854_v49  ;;  %29982 = vmatpush3.msra.mxu0 %v34842_v39 }
 0xd32   :  { %29983 = vmatprep.mubr.msk.f32.mxu0 %vm33276_vm1, %v33277_v7  ;;  %29986 = vmatprep.subr.mxu0 %v33277_v7 }
 0xd33   :  { %29984 = vmatmul.mubr.f32.vlgmr.msra.gmra.mrb[34].mxu0 %v34907_v21 }
 0xd34   :  { %29932 = vmatpush3.msra.mxu1 %v34854_v49  ;;  %29987 = vmatpush3.msra.mxu0 %v15753_v51 }
 0xd35   :  { %29934 = vmatmul.mubr.f32.vlgmr.msra.gmra.mrb[36].mxu1 %v34811_v42  ;;  %31702 = vmatprep.subr.bf16.mxu1 %v31701_v22 }
 0xd36   :  { %29942 = vmatprep.mubr.f32.mxu1 %v34785_v35  ;;  %31704 = vmatpush3.bf16.msra.mxu1 %v31701_v22 }
 0xd37   :  { %29940 = vmatprep.subr.mxu1 %v15246_v10  ;;  %29988 = vmatprep.mubr.msk.f32.mxu0 %vm33276_vm1, %v33277_v7 }
 0xd38   :  { %29991 = vmatprep.subr.mxu0 %v33277_v7 }
 0xd3a   :  { %29941 = vmatpush3.msra.mxu1 %v15246_v10 }
 0xd3b   :  { %29989 = vmatmul.mubr.f32.vlgmr.msra.gmra.mrb[34].mxu0 %v34846_v41  ;;  %31706 = vmatprep.subr.bf16.mxu1 %v31705_v28 }
 0xd3c   :  { %29992 = vmatpush3.msra.mxu0 %v34857_v32  ;;  %29993 = vmatprep.mubr.msk.f32.mxu0 %vm33276_vm1, %v33277_v7 }
 0xd3d   :  { %29943 = vmatmul.mubr.f32.vlgmr.msra.gmra.mrb[36].mxu1 %v34782_v58  ;;  %29996 = vmatprep.subr.mxu0 %v33277_v7 }
 0xd3e   :  { %29951 = vmatprep.mubr.f32.mxu1 %v34791_v25  ;;  %31708 = vmatpush3.bf16.msra.mxu1 %v31705_v28 }
 0xd3f   :  { %29949 = vmatprep.subr.mxu1 %v15243_v9 }
 0xd42   :  { %29950 = vmatpush3.msra.mxu1 %v15243_v9 }
 0xd43   :  { %29994 = vmatmul.mubr.f32.vlgmr.msra.gmra.mrb[34].mxu0 %v34862_v31  ;;  %31710 = vmatprep.subr.bf16.mxu1 %v34887_v55 }
 0xd44   :  { %29997 = vmatpush3.msra.mxu0 %v34842_v39  ;;  %29998 = vmatprep.mubr.msk.f32.mxu0 %vm33276_vm1, %v33277_v7 }
 0xd45   :  { %29952 = vmatmul.mubr.f32.vlgmr.msra.gmra.mrb[36].mxu1 %v34788_v38  ;;  %30001 = vmatprep.subr.mxu0 %v33277_v7 }
 0xd46   :  { %29960 = vmatprep.mubr.f32.mxu1 %v34801_v27  ;;  %31712 = vmatpush3.bf16.msra.mxu1 %v34887_v55 }
 0xd47   :  { %29958 = vmatprep.subr.mxu1 %v34854_v49 }
 0xd4a   :  { %29959 = vmatpush3.msra.mxu1 %v34854_v49 }
 0xd4b   :  { %29999 = vmatmul.mubr.f32.vlgmr.msra.gmra.mrb[34].mxu0 %v34877_v12  ;;  %31714 = vmatprep.subr.bf16.mxu1 %v31713_v56 }
 0xd4c   :  { %30002 = vmatpush3.msra.mxu0 %v15751_v11  ;;  %30003 = vmatprep.mubr.msk.f32.mxu0 %vm33276_vm1, %v33277_v7 }
 0xd4d   :  { %29961 = vmatmul.mubr.f32.vlgmr.msra.gmra.mrb[36].mxu1 %v34798_v60  ;;  %30006 = vmatprep.subr.mxu0 %v33277_v7 }
 0xd4e   :  { %29969 = vmatprep.mubr.f32.mxu1 %v34785_v35  ;;  %31716 = vmatpush3.bf16.msra.mxu1 %v31713_v56 }
 0xd4f   :  { %29967 = vmatprep.subr.mxu1 %v34889_v50 }
 0xd52   :  { %29968 = vmatpush3.msra.mxu1 %v34889_v50 }
 0xd53   :  { %30004 = vmatmul.mubr.f32.vlgmr.msra.gmra.mrb[34].mxu0 %v34846_v41  ;;  %31718 = vmatprep.subr.bf16.mxu1 %v34887_v55 }
 0xd54   :  { %30007 = vmatpush3.msra.mxu0 %v34842_v39  ;;  %30008 = vmatprep.mubr.msk.f32.mxu0 %vm33276_vm1, %v33277_v7 }
 0xd55   :  { %29970 = vmatmul.mubr.f32.vlgmr.msra.gmra.mrb[36].mxu1 %v34782_v58  ;;  %30011 = vmatprep.subr.mxu0 %v33277_v7 }
 0xd56   :  { %29978 = vmatprep.mubr.f32.mxu1 %v34785_v35  ;;  %31720 = vmatpush3.bf16.msra.mxu1 %v34887_v55  ;;  %v17995_v55 = vand.u32 4294901760, %v17924_v57 }
 0xd57   :  { %29976 = vmatprep.subr.mxu1 %v34854_v49 }
 0xd58   :  { %v17996_v50 = vsub.f32 %v17924_v57, %v17995_v55 }
 0xd5a   :  { %29977 = vmatpush3.msra.mxu1 %v34854_v49  ;;  %v17997_v17 = vand.u32 4294901760, %v17996_v50 }
 0xd5b   :  { %30009 = vmatmul.mubr.f32.vlgmr.msra.gmra.mrb[34].mxu0 %v34846_v41  ;;  %30041 = vmatprep.subr.mxu1 %v33277_v7 }
 0xd5c   :  { %30012 = vmatpush3.msra.mxu0 %v16123_v15  ;;  %30013 = vmatprep.mubr.msk.f32.mxu0 %vm33276_vm1, %v33277_v7  ;;  %v17998_v47 = vsub.f32 %v17996_v50, %v17997_v17 }
 0xd5d   :  { %29979 = vmatmul.mubr.f32.vlgmr.msra.gmra.mrb[36].mxu1 %v34782_v58  ;;  %30016 = vmatprep.subr.mxu0 %v33277_v7  ;;  %v17476_v58 = vld [vmem:[#allocation33 + $0x10] sm:$0xff] }
 0xd5e   :  { %30043 = vmatprep.mubr.msk.f32.mxu1 %vm33276_vm1, %v33277_v7  ;;  %v17478_v35 = vand.u32 4294901760, %v17476_v58  ;;  %v17999_v56 = vand.u32 4294901760, %v17998_v47 }
 0xd5f   :  { %30014 = vmatmul.mubr.f32.vlgmr.msra.gmra.mrb[36].mxu0 %v34907_v21 }
 0xd60   :  { %30017 = vmatpush3.msra.mxu0 %v16203_v37  ;;  %30018 = vmatprep.mubr.msk.f32.mxu0 %vm33276_vm1, %v33277_v7  ;;  %v17555_v27 = vsub.f32 %v17476_v58, %v17478_v35 }
 0xd61   :  { %30021 = vmatprep.subr.mxu0 %v33277_v7 }
 0xd62   :  { %v17556_v26 = vand.u32 4294901760, %v17555_v27 }
 0xd64   :  { %v17557_v1 = vsub.f32 %v17555_v27, %v17556_v26 }
 0xd66   :  { %v17558_v42 = vand.u32 4294901760, %v17557_v1 }
 0xd67   :  { %30019 = vmatmul.mubr.f32.vlgmr.msra.gmra.mrb[36].mxu0 %v34846_v41 }
 0xd68   :  { %30022 = vmatpush3.msra.mxu0 %v16200_v4  ;;  %30023 = vmatprep.mubr.msk.f32.mxu0 %vm33276_vm1, %v33277_v7 }
 0xd69   :  { %30026 = vmatprep.subr.mxu0 %v33277_v7 }
 0xd6f   :  { %30024 = vmatmul.mubr.f32.vlgmr.msra.gmra.mrb[36].mxu0 %v34862_v31 }
 0xd70   :  { %30027 = vmatpush3.msra.mxu0 %v16123_v15  ;;  %30028 = vmatprep.mubr.msk.f32.mxu0 %vm33276_vm1, %v33277_v7 }
 0xd71   :  { %30031 = vmatprep.subr.mxu0 %v33277_v7 }
 0xd77   :  { %30029 = vmatmul.mubr.f32.vlgmr.msra.gmra.mrb[36].mxu0 %v34877_v12 }
 0xd78   :  { %30032 = vmatpush3.msra.mxu0 %v16201_v36  ;;  %30033 = vmatprep.mubr.msk.f32.mxu0 %vm33276_vm1, %v33277_v7 }
 0xd79   :  { %30036 = vmatprep.subr.mxu0 %v33277_v7 }
 0xd7f   :  { %30034 = vmatmul.mubr.f32.vlgmr.msra.gmra.mrb[36].mxu0 %v34846_v41 }
 0xd80   :  { %30037 = vmatpush3.msra.mxu0 %v16123_v15  ;;  %30038 = vmatprep.mubr.msk.f32.mxu0 %vm33276_vm1, %v33277_v7 }
 0xd81   :  { %30071 = vmatprep.subr.mxu0 %v33277_v7 }
 0xd87   :  { %30039 = vmatmul.mubr.f32.vlgmr.msra.gmra.mrb[36].mxu0 %v34846_v41 }
 0xd88   :  { %30073 = vmatprep.mubr.msk.f32.mxu0 %vm33276_vm1, %v33277_v7 }
 0xe2e   :  { %v16114_v38 = vpop.f32.mrb[34].mxu0 }
 0xe2f   :  { %v17025_v25 = vsel %vm11517_vm11, %v16114_v38, 0  ;;  %v30010_v23 = vpop.f32.mrb[35].mxu0 }
 0xe30   :  { %v35006_v60 = vand.u32 4294901760, %v17025_v25 }
 0xe32   :  { %v17105_v61 = vsub.f32 %v17025_v25, %v35006_v60  ;;  %30072 = vmatpush3.msra.mxu0 %v35006_v60 }
 0xe33   :  { %30074 = vmatmul.mubr.f32.vlgmr.msra.gmra.mrb[38].mxu0 %v17097_v6  ;;  %30081 = vmatprep.subr.mxu0 %v33277_v7 }
 0xe34   :  { %v17106_v62 = vand.u32 4294901760, %v17105_v61  ;;  %30082 = vmatpush3.msra.mxu0 %v17105_v61  ;;  %30083 = vmatprep.mubr.msk.f32.mxu0 %vm33276_vm1, %v33277_v7 }
 0xe35   :  { %30091 = vmatprep.subr.mxu0 %v33277_v7 }
 0xe36   :  { %v35014_v52 = vsub.f32 %v17105_v61, %v17106_v62 }
 0xe37   :  { %30084 = vmatmul.mubr.f32.vlgmr.msra.gmra.mrb[40].mxu0 %v34999_v5 }
 0xe38   :  { %30092 = vmatpush3.msra.mxu0 %v17106_v62  ;;  %30093 = vmatprep.mubr.msk.f32.mxu0 %vm33276_vm1, %v33277_v7 }
 0xe39   :  { %30101 = vmatprep.subr.mxu0 %v33277_v7 }
 0xe3b   :  { %30094 = vmatmul.mubr.f32.vlgmr.msra.gmra.mrb[42].mxu0 %v34996_v63 }
 0xe3c   :  { %30102 = vmatpush3.msra.mxu0 %v17478_v35  ;;  %30103 = vmatprep.mubr.msk.f32.mxu0 %vm33276_vm1, %v33277_v7 }
 0xe3d   :  { %30106 = vmatprep.subr.mxu0 %v33277_v7 }
 0xe3f   :  { %30104 = vmatmul.mubr.f32.vlgmr.msra.gmra.mrb[44].mxu0 %v34907_v21 }
 0xe40   :  { %30107 = vmatpush3.msra.mxu0 %v17558_v42  ;;  %30108 = vmatprep.mubr.msk.f32.mxu0 %vm33276_vm1, %v33277_v7 }
 0xe41   :  { %30111 = vmatprep.subr.mxu0 %v33277_v7 }
 0xe47   :  { %30109 = vmatmul.mubr.f32.vlgmr.msra.gmra.mrb[44].mxu0 %v34846_v41 }
 0xe48   :  { %30112 = vmatpush3.msra.mxu0 %v17555_v27  ;;  %30113 = vmatprep.mubr.msk.f32.mxu0 %vm33276_vm1, %v33277_v7 }
 0xe49   :  { %30116 = vmatprep.subr.mxu0 %v33277_v7 }
 0xe4f   :  { %30114 = vmatmul.mubr.f32.vlgmr.msra.gmra.mrb[44].mxu0 %v34862_v31 }
 0xe50   :  { %30117 = vmatpush3.msra.mxu0 %v17478_v35  ;;  %30118 = vmatprep.mubr.msk.f32.mxu0 %vm33276_vm1, %v33277_v7 }
 0xe51   :  { %30121 = vmatprep.subr.mxu0 %v33277_v7 }
 0xe57   :  { %30119 = vmatmul.mubr.f32.vlgmr.msra.gmra.mrb[44].mxu0 %v34877_v12 }
 0xe58   :  { %30122 = vmatpush3.msra.mxu0 %v17556_v26  ;;  %30123 = vmatprep.mubr.msk.f32.mxu0 %vm33276_vm1, %v33277_v7 }
 0xe59   :  { %30126 = vmatprep.subr.mxu0 %v33277_v7 }
 0xe5a   :  { %v16564_v33 = vpop.f32.mrb[36].mxu0 }
 0xe5b   :  { %v16573_v19 = vsel %vm11517_vm11, %v16564_v33, 0  ;;  %v30040_v20 = vpop.f32.mrb[37].mxu0 }
 0xe5c   :  { %v16576_v39 = vand.u32 4294901760, %v16573_v19 }
 0xe5e   :  { %v16653_v44 = vsub.f32 %v16573_v19, %v16576_v39  ;;  %30042 = vmatpush3.msra.mxu1 %v16576_v39 }
 0xe5f   :  { %30124 = vmatmul.mubr.f32.vlgmr.msra.gmra.mrb[44].mxu0 %v34846_v41  ;;  %30044 = vmatmul.mubr.f32.vlgmr.msra.gmra.mrb[40].mxu1 %v16645_v3 }
 0xe60   :  { %v16654_v45 = vand.u32 4294901760, %v16653_v44  ;;  %30046 = vmatprep.subr.mxu1 %v33277_v7  ;;  %30048 = vmatprep.mubr.msk.f32.mxu1 %vm33276_vm1, %v33277_v7 }
 0xe61   :  { %30127 = vmatpush3.msra.mxu0 %v17478_v35  ;;  %30128 = vmatprep.mubr.msk.f32.mxu0 %vm33276_vm1, %v33277_v7 }
 0xe62   :  { %v16655_v49 = vsub.f32 %v16653_v44, %v16654_v45 }
 0xe64   :  { %v16656_v32 = vand.u32 4294901760, %v16655_v49 }
 0xe66   :  { %30047 = vmatpush3.msra.mxu1 %v16656_v32 }
 0xe67   :  { %30049 = vmatmul.mubr.f32.vlgmr.msra.gmra.mrb[42].mxu1 %v16641_v46  ;;  %30051 = vmatprep.subr.mxu1 %v33277_v7 }
 0xe68   :  { %30129 = vmatmul.mubr.f32.vlgmr.msra.gmra.mrb[44].mxu0 %v34846_v41  ;;  %30052 = vmatpush3.msra.mxu1 %v16653_v44  ;;  %v17108_v41 = vand.u32 4294901760, %v35014_v52 }
 0xe69   :  { %30053 = vmatprep.mubr.msk.f32.mxu1 %vm33276_vm1, %v33277_v7  ;;  %30056 = vmatprep.subr.mxu1 %v33277_v7 }
 0xe6b   :  { %30054 = vmatmul.mubr.f32.vlgmr.msra.gmra.mrb[44].mxu1 %v16642_v8  ;;  %v18380_v8 = vld [vmem:[%s35705_s21] sm:$0xff] }
 0xe6c   :  { %30057 = vmatpush3.msra.mxu1 %v16576_v39  ;;  %30058 = vmatprep.mubr.msk.f32.mxu1 %vm33276_vm1, %v33277_v7 }
 0xe6d   :  { %30061 = vmatprep.subr.mxu1 %v33277_v7 }
 0xe6f   :  { %30059 = vmatmul.mubr.f32.vlgmr.msra.gmra.mrb[46].mxu1 %v16643_v40  ;;  %v18383_v40 = vsel %vm16568_vm14, %v18380_v8, 0 }
 0xe70   :  { %30062 = vmatpush3.msra.mxu1 %v16654_v45  ;;  %30063 = vmatprep.mubr.msk.f32.mxu1 %vm33276_vm1, %v33277_v7  ;;  %v35101_v30 = vand.u32 4294901760, %v18383_v40 }
 0xe71   :  { %30066 = vmatprep.subr.mxu1 %v33277_v7 }
 0xe72   :  { %v18458_v33 = vsub.f32 %v18383_v40, %v35101_v30 }
 0xe73   :  { %30064 = vmatmul.mubr.f32.vlgmr.msra.gmra.mrb[48].mxu1 %v16641_v46 }
 0xe74   :  { %30067 = vmatpush3.msra.mxu1 %v16576_v39  ;;  %30068 = vmatprep.mubr.msk.f32.mxu1 %vm33276_vm1, %v33277_v7  ;;  %v18459_v19 = vand.u32 4294901760, %v18458_v33  ;;  %v20366_v39 = vld [vmem:[#allocation36 + $0x10] sm:$0xff] }
 0xe75   :  { %30076 = vmatprep.subr.mxu1 %v33277_v7  ;;  %20372 = vrot.lane.b32.xlu0 %v20366_v39, %s33278_s27 }
 0xe76   :  { %v18460_v20 = vsub.f32 %v18458_v33, %v18459_v19 }
 0xe77   :  { %30069 = vmatmul.mubr.f32.vlgmr.msra.gmra.mrb[50].mxu1 %v16641_v46 }
 0xe78   :  { %30077 = vmatpush3.msra.mxu1 %v17108_v41  ;;  %30078 = vmatprep.mubr.msk.f32.mxu1 %vm33276_vm1, %v33277_v7  ;;  %v18461_v3 = vand.u32 4294901760, %v18460_v20 }
 0xe79   :  { %30086 = vmatprep.subr.mxu1 %v33277_v7 }
 0xe7a   :  { %30163 = vmatprep.mubr.f32.mxu0 %v18461_v3 }
 0xe7b   :  { %30079 = vmatmul.mubr.f32.vlgmr.msra.gmra.mrb[52].mxu1 %v34996_v63 }
 0xe7c   :  { %30087 = vmatpush3.msra.mxu1 %v35006_v60  ;;  %30088 = vmatprep.mubr.msk.f32.mxu1 %vm33276_vm1, %v33277_v7 }
 0xe7d   :  { %30096 = vmatprep.subr.mxu1 %v33277_v7 }
 0xe7f   :  { %30089 = vmatmul.mubr.f32.vlgmr.msra.gmra.mrb[54].mxu1 %v17095_v34 }
 0xe80   :  { %30097 = vmatpush3.msra.mxu1 %v35006_v60  ;;  %30098 = vmatprep.mubr.msk.f32.mxu1 %vm33276_vm1, %v33277_v7 }
 0xe81   :  { %30131 = vmatprep.subr.mxu1 %v33277_v7 }
 0xe83   :  { %30099 = vmatmul.mubr.f32.vlgmr.msra.gmra.mrb[56].mxu1 %v34996_v63 }
 0xe84   :  { %30133 = vmatprep.mubr.msk.f32.mxu1 %vm33276_vm1, %v33277_v7 }
 0xf06   :  { %v17099_v31 = vpop.f32.mrb[38].mxu0 }
 0xf07   :  { %v30075_v16 = vpop.f32.mrb[39].mxu0 }
 0xf08   :  { %v18381_v16 = vld [vmem:[%s35705_s21 + $0x8] sm:$0xff] }
 0xf0a   :  { %v17249_v59 = vpop.f32.mrb[40].mxu0 }
 0xf0b   :  { %v30085_v9 = vpop.f32.mrb[41].mxu0 }
 0xf0e   :  { %v17397_v11 = vpop.f32.mrb[42].mxu0 }
 0xf0f   :  { %v30095_v12 = vpop.f32.mrb[43].mxu0 }
 0xf32   :  { %v16647_v0 = vpop.f32.mrb[40].mxu1 }
 0xf33   :  { %v30045_v54 = vpop.f32.mrb[41].mxu1 }
 0xf3a   :  { %v16723_v18 = vpop.f32.mrb[42].mxu1 }
 0xf3b   :  { %v17919_v51 = vpop.f32.mrb[44].mxu0  ;;  %v16724_v21 = vadd.f32 %v16723_v18, %v16647_v0  ;;  %v30050_v22 = vpop.f32.mrb[43].mxu1 }
 0xf3c   :  { %v17927_v10 = vsel %vm11517_vm11, %v17919_v51, 0  ;;  %v30130_v28 = vpop.f32.mrb[45].mxu0 }
 0xf3d   :  { %v17930_v13 = vand.u32 4294901760, %v17927_v10 }
 0xf3e   :  { %v16797_v15 = vpop.f32.mrb[44].mxu1 }
 0xf3f   :  { %v18007_v4 = vsub.f32 %v17927_v10, %v17930_v13  ;;  %30132 = vmatpush3.msra.mxu1 %v17930_v13  ;;  %v16798_v36 = vadd.f32 %v16797_v15, %v16724_v21  ;;  %v30055_v48 = vpop.f32.mrb[45].mxu1  ;;  %v18377_v21 = vstv %s27247_s25  ;;  %s35707_s25 = sld [smem:[#allocation58_spill]] }
 0xf40   :  { %30134 = vmatmul.mubr.f32.vlgmr.msra.gmra.mrb[58].mxu1 %v17999_v56  ;;  %30136 = vmatprep.subr.mxu1 %v33277_v7 }
 0xf41   :  { %v18008_v37 = vand.u32 4294901760, %v18007_v4  ;;  %30138 = vmatprep.mubr.msk.f32.mxu1 %vm33276_vm1, %v33277_v7 }
 0xf42   :  { %v16871_v14 = vpop.f32.mrb[46].mxu1 }
 0xf43   :  { %v18009_v29 = vsub.f32 %v18007_v4, %v18008_v37  ;;  %v16872_v63 = vadd.f32 %v16871_v14, %v16798_v36  ;;  %v30060_v5 = vpop.f32.mrb[47].mxu1 }
 0xf44   :  { %v19379_v5 = vld [vmem:[#allocation34 + $0x8] sm:$0xff] }
 0xf45   :  { %v18010_v34 = vand.u32 4294901760, %v18009_v29 }
 0xf46   :  { %v16945_v58 = vpop.f32.mrb[48].mxu1 }
 0xf47   :  { %30137 = vmatpush3.msra.mxu1 %v18010_v34  ;;  %v16946_v53 = vadd.f32 %v16945_v58, %v16872_v63  ;;  %v30065_v35 = vpop.f32.mrb[49].mxu1  ;;  %v18880_v63 = vld [vmem:[#allocation34] sm:$0xff]  ;;  %v35116_v58 = vand.u32 4294901760, %v19379_v5 }
 0xf48   :  { %30139 = vmatmul.mubr.f32.vlgmr.msra.gmra.mrb[60].mxu1 %v17995_v55  ;;  %30141 = vmatprep.subr.mxu1 %v33277_v7  ;;  %v35114_v34 = vand.u32 4294901760, %v18880_v63 }
 0xf49   :  { %30142 = vmatpush3.msra.mxu1 %v18007_v4  ;;  %30143 = vmatprep.mubr.msk.f32.mxu1 %vm33276_vm1, %v33277_v7  ;;  %v19468_v35 = vsub.f32 %v19379_v5, %v35116_v58 }
 0xf4a   :  { %v17017_v38 = vpop.f32.mrb[50].mxu1  ;;  %30146 = vmatprep.subr.mxu1 %v33277_v7 }
 0xf4b   :  { %v17018_v25 = vadd.f32 %v17017_v38, %v16946_v53  ;;  %v30070_v23 = vpop.f32.mrb[51].mxu1  ;;  %v18975_v53 = vsub.f32 %v18880_v63, %v35114_v34 }
 0xf4c   :  { %30144 = vmatmul.mubr.f32.vlgmr.msra.gmra.mrb[62].mxu1 %v17996_v50 }
 0xf4d   :  { %30147 = vmatpush3.msra.mxu1 %v17930_v13  ;;  %v17100_v6 = vadd.f32 %v17099_v31, %v17018_v25  ;;  %30148 = vmatprep.mubr.msk.f32.mxu1 %vm33276_vm1, %v33277_v7  ;;  %v35124_v38 = vand.u32 4294901760, %v18975_v53  ;;  %v35126_v25 = vand.u32 4294901760, %v19468_v35 }
 0xf4e   :  { %v17175_v60 = vpop.f32.mrb[52].mxu1  ;;  %30151 = vmatprep.subr.mxu1 %v33277_v7 }
 0xf4f   :  { %v17176_v27 = vadd.f32 %v17175_v60, %v17100_v6  ;;  %v30080_v61 = vpop.f32.mrb[53].mxu1  ;;  %v18977_v23 = vsub.f32 %v18975_v53, %v35124_v38  ;;  %v19470_v6 = vsub.f32 %v19468_v35, %v35126_v25 }
 0xf50   :  { %30149 = vmatmul.mubr.f32.vlgmr.msra.gmra.mrb[64].mxu1 %v17997_v17  ;;  %v20364_v61 = vld [vmem:[#allocation36] sm:$0xff] }
 0xf51   :  { %30152 = vmatpush3.msra.mxu1 %v18008_v37  ;;  %v17250_v62 = vadd.f32 %v17249_v59, %v17176_v27  ;;  %30153 = vmatprep.mubr.msk.f32.mxu1 %vm33276_vm1, %v33277_v7  ;;  %v18978_v60 = vand.u32 4294901760, %v18977_v23  ;;  %v19471_v27 = vand.u32 4294901760, %v19470_v6  ;;  %20368 = vst.msk [vmem:[#allocation6] sm:$0xff] %vm402_vm3, %v20364_v61 }
 0xf52   :  { %v17323_v26 = vpop.f32.mrb[54].mxu1  ;;  %30156 = vmatprep.subr.mxu1 %v33277_v7 }
 0xf53   :  { %v17324_v52 = vadd.f32 %v17323_v26, %v17250_v62  ;;  %v30090_v1 = vpop.f32.mrb[55].mxu1  ;;  %v20373_v62 = vpop.permute.xlu0 %20372  ;;  %v20365_v26 = vld [vmem:[#allocation36 + $0x8] sm:$0xff] }
 0xf54   :  { %30154 = vmatmul.mubr.f32.vlgmr.msra.gmra.mrb[66].mxu1 %v17995_v55  ;;  %20369 = vst.msk [vmem:[#allocation6 + $0x8] sm:$0xff] %vm402_vm3, %v20365_v26 }
 0xf55   :  { %30157 = vmatpush3.msra.mxu1 %v17930_v13  ;;  %v17398_v42 = vadd.f32 %v17397_v11, %v17324_v52  ;;  %30158 = vmatprep.mubr.msk.f32.mxu1 %vm33276_vm1, %v33277_v7  ;;  %v20367_v7 = vld [vmem:[#allocation36 + $0x18] sm:$0xff]  ;;  %v18386_v11 = vsel %vm16568_vm14, %v18381_v16, 0  ;;  %20378 = vst.msk [vmem:[#allocation6] sm:$0xff] %vm3664_vm4, %v20373_v62 }
 0xf56   :  { %v17469_v24 = vpop.f32.mrb[56].mxu1  ;;  %20374 = vrot.lane.b32.xlu1 %v20367_v7, %s33278_s27  ;;  %30191 = vmatprep.subr.mxu1 %v35114_v34  ;;  %s27248_s27 = sld [smem:[#allocation8 + $0x4]] }
 0xf57   :  { %v17470_v2 = vadd.f32 %v17469_v24, %v17398_v42  ;;  %v30100_v46 = vpop.f32.mrb[57].mxu1 }
 0xf58   :  { %30159 = vmatmul.mubr.f32.vlgmr.msra.gmra.mrb[68].mxu1 %v17995_v55  ;;  %v18467_v55 = vand.u32 4294901760, %v18386_v11 }
 0xf59   :  { %30192 = vmatpush3.msra.mxu1 %v35114_v34 }
 0xf5a   :  { %v18468_v17 = vsub.f32 %v18386_v11, %v18467_v55  ;;  %30196 = vmatprep.subr.mxu1 %v18978_v60  ;;  %v20386_v11 = vld [vmem:[#allocation39 + $0x10] sm:$0xff] }
 0xf5c   :  { %v18469_v22 = vand.u32 4294901760, %v18468_v17 }
 0xf5e   :  { %v18470_v56 = vsub.f32 %v18468_v17, %v18469_v22 }
 0xf60   :  { %v18471_v36 = vand.u32 4294901760, %v18470_v56 }
 0xfc8   :  { %v20375_v52 = vpop.permute.xlu1 %20374 }
 0xfc9   :  { %20379 = vst.msk [vmem:[#allocation6 + $0x8] sm:$0xff] %vm3664_vm4, %v20375_v52 }
0x1013   :  { %v18001_v44 = vpop.f32.mrb[58].mxu1 }
0x1014   :  { %v30135_v45 = vpop.f32.mrb[59].mxu1 }
0x1015   :  { %v20384_v45 = vld [vmem:[#allocation39] sm:$0xff] }
0x101b   :  { %v18077_v49 = vpop.f32.mrb[60].mxu1 }
0x101c   :  { %v18078_v32 = vadd.f32 %v18077_v49, %v18001_v44  ;;  %v30140_v41 = vpop.f32.mrb[61].mxu1  ;;  %v20380_v44 = vld [vmem:[#allocation6] sm:$0xff] }
0x101d   :  { %v20385_v49 = vld [vmem:[#allocation39 + $0x8] sm:$0xff]  ;;  %v20389_v41 = vsel %vm3675_vm5, %v20380_v44, 0 }
0x101e   :  { %v20398_v16 = vand.u32 4294901760, %v20385_v49 }
0x101f   :  { %v18151_v31 = vpop.f32.mrb[62].mxu1 }
0x1020   :  { %v18152_v59 = vadd.f32 %v18151_v31, %v18078_v32  ;;  %v30145_v9 = vpop.f32.mrb[63].mxu1  ;;  %v19872_v32 = vld [vmem:[#allocation34 + $0x10] sm:$0xff]  ;;  %v20395_v31 = vand.u32 4294901760, %v20384_v45 }
0x1021   :  { %v35181_v9 = vand.u32 4294901760, %v19872_v32 }
0x1023   :  { %v18225_v12 = vpop.f32.mrb[64].mxu1 }
0x1024   :  { %v18226_v43 = vadd.f32 %v18225_v12, %v18152_v59  ;;  %v30150_v57 = vpop.f32.mrb[65].mxu1  ;;  %v20381_v59 = vld [vmem:[#allocation6 + $0x8] sm:$0xff]  ;;  %v20387_v12 = vld [vmem:[#allocation39 + $0x18] sm:$0xff] }
0x1025   :  { %v20392_v57 = vsel %vm3675_vm5, %v20381_v59, 0 }
0x1027   :  { %v18299_v50 = vpop.f32.mrb[66].mxu1 }
0x1028   :  { %v18300_v0 = vadd.f32 %v18299_v50, %v18226_v43  ;;  %v30155_v54 = vpop.f32.mrb[67].mxu1  ;;  %v35183_v43 = vand.u32 4294901760, %v20389_v41  ;;  %v20404_v50 = vand.u32 4294901760, %v20387_v12 }
0x1029   :  { %v35194_v54 = vsub.f32 %v20385_v49, %v20398_v16 }
0x102b   :  { %v18371_v47 = vpop.f32.mrb[68].mxu1 }
0x102c   :  { %v18372_v18 = vadd.f32 %v18371_v47, %v18300_v0  ;;  %v30160_v51 = vpop.f32.mrb[69].mxu1  ;;  %v35192_v0 = vsub.f32 %v20384_v45, %v20395_v31  ;;  %v19961_v47 = vsub.f32 %v19872_v32, %v35181_v9 }
0x102e   :  { %v18375_v10 = vadd.f32 %v18372_v18, %v17470_v2  ;;  %v35202_v18 = vand.u32 4294901760, %v20392_v57  ;;  %v20486_v51 = vand.u32 4294901760, %v35192_v0  ;;  %v31737_v26 = vpack.c.bf16 %v35194_v54, %v35192_v0 }
0x1030   :  { %v18378_v28 = vadd.f32 %v18377_v21, %v18375_v10  ;;  %v20493_v21 = vand.u32 4294901760, %v35194_v54  ;;  %v35208_v10 = vsub.f32 %v20387_v12, %v20404_v50 }
0x1032   :  { %v18379_v13 = vmax.f32 %v18378_v28, 0.0  ;;  %v35210_v28 = vpack.c.bf16 %v20398_v16, %v20395_v31 }
0x1034   :  { %v18389_v15 = vsel %vm11517_vm11, %v18379_v13, 0  ;;  %v35215_v13 = vand.u32 4294901760, %v19961_v47 }
0x1035   :  { %v18392_v4 = vand.u32 4294901760, %v18389_v15 }
0x1037   :  { %v18479_v48 = vsub.f32 %v18389_v15, %v18392_v4  ;;  %30161 = vmatprep.subr.mxu0 %v18392_v4  ;;  %v35220_v15 = vsub.f32 %v20392_v57, %v35202_v18 }
0x1038   :  { %30162 = vmatpush3.msra.mxu0 %v18392_v4 }
0x1039   :  { %30164 = vmatmul.mubr.f32.vlgmr.msra.gmra.mrb[46].mxu0 %v18471_v36  ;;  %v18480_v37 = vand.u32 4294901760, %v18479_v48  ;;  %v20494_v36 = vsub.f32 %v35194_v54, %v20493_v21  ;;  %v35240_v63 = vand.u32 4294901760, %v35220_v15 }
0x103a   :  { %30168 = vmatprep.mubr.f32.mxu0 %v35101_v30 }
0x103b   :  { %v18481_v14 = vsub.f32 %v18479_v48, %v18480_v37  ;;  %v20476_v23 = vsub.f32 %v35220_v15, %v35240_v63 }
0x103d   :  { %v18482_v29 = vand.u32 4294901760, %v18481_v14  ;;  %v35262_v61 = vand.u32 4294901760, %v20476_v23 }
0x103f   :  { %30166 = vmatprep.subr.mxu0 %v18482_v29 }
0x1040   :  { %30167 = vmatpush3.msra.mxu0 %v18482_v29  ;;  %v19963_v29 = vsub.f32 %v19961_v47, %v35215_v13 }
0x1041   :  { %30169 = vmatmul.mubr.f32.vlgmr.msra.gmra.mrb[46].mxu0 %v18467_v55  ;;  %30171 = vmatprep.subr.mxu0 %v18479_v48 }
0x1042   :  { %30172 = vmatpush3.msra.mxu0 %v18479_v48  ;;  %30173 = vmatprep.mubr.f32.mxu0 %v18458_v33 }
0x1043   :  { %30176 = vmatprep.subr.mxu0 %v18392_v4 }
0x1049   :  { %30174 = vmatmul.mubr.f32.vlgmr.msra.gmra.mrb[46].mxu0 %v18468_v17  ;;  %v35199_v17 = vsub.f32 %v20389_v41, %v35183_v43 }
0x104a   :  { %30177 = vmatpush3.msra.mxu0 %v18392_v4  ;;  %30178 = vmatprep.mubr.f32.mxu0 %v18459_v19 }
0x104b   :  { %30181 = vmatprep.subr.mxu0 %v18480_v37  ;;  %v35213_v56 = vand.u32 4294901760, %v35199_v17 }
0x104d   :  { %v20466_v14 = vsub.f32 %v35199_v17, %v35213_v56 }
0x1051   :  { %30179 = vmatmul.mubr.f32.vlgmr.msra.gmra.mrb[46].mxu0 %v18469_v22 }
0x1052   :  { %30182 = vmatpush3.msra.mxu0 %v18480_v37  ;;  %30183 = vmatprep.mubr.f32.mxu0 %v35101_v30  ;;  %v20507_v37 = vand.u32 4294901760, %v35208_v10 }
0x1053   :  { %30186 = vmatprep.subr.mxu0 %v18392_v4 }
0x1059   :  { %30184 = vmatmul.mubr.f32.vlgmr.msra.gmra.mrb[46].mxu0 %v18467_v55 }
0x105a   :  { %30187 = vmatpush3.msra.mxu0 %v18392_v4  ;;  %30188 = vmatprep.mubr.f32.mxu0 %v35101_v30  ;;  %v20487_v4 = vsub.f32 %v35192_v0, %v20486_v51 }
0x105b   :  { %30221 = vmatprep.subr.mxu0 %v35116_v58 }
0x1061   :  { %30189 = vmatmul.mubr.f32.vlgmr.msra.gmra.mrb[46].mxu0 %v18467_v55  ;;  %v20401_v55 = vand.u32 4294901760, %v20386_v11 }
0x1062   :  { %30222 = vmatpush3.msra.mxu0 %v35116_v58 }
0x1063   :  { %30226 = vmatprep.subr.mxu0 %v19471_v27  ;;  %v35206_v22 = vsub.f32 %v20386_v11, %v20401_v55  ;;  %v35242_v5 = vpack.c.bf16 %v20404_v50, %v20401_v55 }
0x1065   :  { %v20500_v48 = vand.u32 4294901760, %v35206_v22  ;;  %v31741_v52 = vpack.c.bf16 %v35208_v10, %v35206_v22 }
0x1134   :  { %v30190_v1 = vpop.f32.mrb[46].mxu0 }
0x1135   :  { %v18885_v42 = vsel %vm390_vm0, %v30190_v1, 0  ;;  %v18870_v24 = vpop.f32.mrb[47].mxu0  ;;  %v20926_v1 = vld [vmem:[#allocation39 + $0x20] sm:$0xff] }
0x1136   :  { %v35135_v2 = vand.u32 4294901760, %v18885_v42  ;;  %v18882_v46 = vsel %vm390_vm0, %v18870_v24, 0  ;;  %v31753_v24 = vpack.c.bf16 %v20493_v21, %v20486_v51 }
0x1137   :  { %v35138_v8 = vand.u32 4294901760, %v18882_v46 }
0x1138   :  { %v35141_v40 = vsub.f32 %v18885_v42, %v35135_v2  ;;  %v20927_v42 = vld [vmem:[#allocation39 + $0x28] sm:$0xff] }
0x1139   :  { %v35144_v30 = vsub.f32 %v18882_v46, %v35138_v8  ;;  %v20931_v46 = vand.u32 4294901760, %v20926_v1 }
0x113a   :  { %v35147_v33 = vand.u32 4294901760, %v35141_v40 }
0x113b   :  { %v35150_v19 = vand.u32 4294901760, %v35144_v30 }
0x113c   :  { %v18966_v20 = vsub.f32 %v35141_v40, %v35147_v33 }
0x113d   :  { %v18956_v3 = vsub.f32 %v35144_v30, %v35150_v19 }
0x113e   :  { %v35158_v7 = vand.u32 4294901760, %v18966_v20  ;;  %v31757_v20 = vpack.c.bf16 %v20507_v37, %v20500_v48 }
0x113f   :  { %v35156_v39 = vand.u32 4294901760, %v18956_v3 }
0x1141   :  { %30193 = vmatprep.mubr.f32.mxu1 %v35156_v39  ;;  %30223 = vmatprep.mubr.f32.mxu0 %v35156_v39 }
0x1142   :  { %30194 = vmatmul.mubr.f32.vlgmr.msra.gmra.mrb[34].mxu1 %v35158_v7  ;;  %30224 = vmatmul.mubr.f32.vlgmr.msra.gmra.mrb[24].mxu0 %v35158_v7 }
0x1143   :  { %30198 = vmatprep.mubr.f32.mxu1 %v35138_v8  ;;  %30228 = vmatprep.mubr.f32.mxu0 %v35138_v8 }
0x1144   :  { %30197 = vmatpush3.msra.mxu1 %v18978_v60  ;;  %30227 = vmatpush3.msra.mxu0 %v19471_v27 }
0x1145   :  { %30201 = vmatprep.subr.mxu1 %v18975_v53  ;;  %30231 = vmatprep.subr.mxu0 %v19468_v35 }
0x114a   :  { %30199 = vmatmul.mubr.f32.vlgmr.msra.gmra.mrb[34].mxu1 %v35135_v2  ;;  %30229 = vmatmul.mubr.f32.vlgmr.msra.gmra.mrb[24].mxu0 %v35135_v2 }
0x114b   :  { %30203 = vmatprep.mubr.f32.mxu1 %v35144_v30  ;;  %30233 = vmatprep.mubr.f32.mxu0 %v35144_v30 }
0x114c   :  { %30202 = vmatpush3.msra.mxu1 %v18975_v53  ;;  %30232 = vmatpush3.msra.mxu0 %v19468_v35  ;;  %v20501_v53 = vsub.f32 %v35206_v22, %v20500_v48  ;;  %v20508_v35 = vsub.f32 %v35208_v10, %v20507_v37  ;;  %v22478_v22 = vld [vmem:[#allocation39 + $0x40] sm:$0xff]  ;;  %v22479_v10 = vld [vmem:[#allocation39 + $0x48] sm:$0xff]  ;;  %v22481_v48 = vld [vmem:[#allocation39 + $0x58] sm:$0xff] }
0x114d   :  { %30206 = vmatprep.subr.mxu1 %v35114_v34  ;;  %30236 = vmatprep.subr.mxu0 %v35116_v58 }
0x114e   :  { %v20502_v60 = vand.u32 4294901760, %v20501_v53  ;;  %v20509_v27 = vand.u32 4294901760, %v20508_v35 }
0x1150   :  { %v31733_v62 = vpack.c.bf16 %v20509_v27, %v20502_v60 }
0x1152   :  { %30204 = vmatmul.mubr.f32.vlgmr.msra.gmra.mrb[34].mxu1 %v35141_v40  ;;  %30234 = vmatmul.mubr.f32.vlgmr.msra.gmra.mrb[24].mxu0 %v35141_v40 }
0x1153   :  { %30208 = vmatprep.mubr.f32.mxu1 %v35150_v19  ;;  %30238 = vmatprep.mubr.f32.mxu0 %v35150_v19 }
0x1154   :  { %30207 = vmatpush3.msra.mxu1 %v35114_v34  ;;  %30237 = vmatpush3.msra.mxu0 %v35116_v58 }
0x1155   :  { %30211 = vmatprep.subr.mxu1 %v35124_v38  ;;  %30241 = vmatprep.subr.mxu0 %v35126_v25 }
0x115a   :  { %30209 = vmatmul.mubr.f32.vlgmr.msra.gmra.mrb[34].mxu1 %v35147_v33  ;;  %30239 = vmatmul.mubr.f32.vlgmr.msra.gmra.mrb[24].mxu0 %v35147_v33 }
0x115b   :  { %30213 = vmatprep.mubr.f32.mxu1 %v35138_v8  ;;  %30243 = vmatprep.mubr.f32.mxu0 %v35138_v8 }
0x115c   :  { %30212 = vmatpush3.msra.mxu1 %v35124_v38  ;;  %30242 = vmatpush3.msra.mxu0 %v35126_v25  ;;  %v35250_v38 = vand.u32 4294901760, %v20466_v14  ;;  %v19964_v25 = vand.u32 4294901760, %v19963_v29  ;;  %v22492_v14 = vand.u32 4294901760, %v22481_v48 }
0x115d   :  { %30246 = vmatprep.subr.mxu0 %v35116_v58  ;;  %30216 = vmatprep.subr.mxu1 %v35114_v34 }
0x115e   :  { %v22594_v35 = vsub.f32 %v22481_v48, %v22492_v14 }
0x1160   :  { %v22595_v27 = vand.u32 4294901760, %v22594_v35 }
0x1162   :  { %30214 = vmatmul.mubr.f32.vlgmr.msra.gmra.mrb[34].mxu1 %v35135_v2  ;;  %30244 = vmatmul.mubr.f32.vlgmr.msra.gmra.mrb[24].mxu0 %v35135_v2 }
0x1163   :  { %30218 = vmatprep.mubr.f32.mxu1 %v35138_v8  ;;  %30248 = vmatprep.mubr.f32.mxu0 %v35138_v8 }
0x1164   :  { %30247 = vmatpush3.msra.mxu0 %v35116_v58  ;;  %30217 = vmatpush3.msra.mxu1 %v35114_v34  ;;  %v20488_v34 = vand.u32 4294901760, %v20487_v4  ;;  %v20495_v58 = vand.u32 4294901760, %v20494_v36  ;;  %v22486_v4 = vand.u32 4294901760, %v22479_v10  ;;  %v22480_v36 = vld [vmem:[#allocation39 + $0x50] sm:$0xff] }
0x1165   :  { %31722 = vmatprep.subr.bf16.mxu0 %v35210_v28  ;;  %30251 = vmatprep.subr.mxu1 %v35181_v9  ;;  %v22489_v37 = vand.u32 4294901760, %v22480_v36 }
0x1166   :  { %v31729_v6 = vpack.c.bf16 %v20495_v58, %v20488_v34 }
0x1167   :  { %v22587_v53 = vsub.f32 %v22480_v36, %v22489_v37 }
0x1169   :  { %v22588_v60 = vand.u32 4294901760, %v22587_v53 }
0x116a   :  { %30219 = vmatmul.mubr.f32.vlgmr.msra.gmra.mrb[34].mxu1 %v35135_v2  ;;  %30249 = vmatmul.mubr.f32.vlgmr.msra.gmra.mrb[24].mxu0 %v35135_v2 }
0x116b   :  { %31724 = vmatpush3.bf16.msra.mxu0 %v35210_v28  ;;  %30253 = vmatprep.mubr.f32.mxu1 %v35156_v39 }
0x116c   :  { %30252 = vmatpush3.msra.mxu1 %v35181_v9  ;;  %31726 = vmatprep.subr.bf16.mxu0 %v35242_v5 }
0x116d   :  { %30289 = vmatprep.mubr.f32.mxu0 %v35250_v38  ;;  %30256 = vmatprep.subr.mxu1 %v19964_v25 }
0x116e   :  { %30254 = vmatmul.mubr.f32.vlgmr.msra.gmra.mrb[36].mxu1 %v35158_v7  ;;  %v21021_v7 = vsub.f32 %v20926_v1, %v20931_v46  ;;  %v22589_v1 = vsub.f32 %v22587_v53, %v22588_v60 }
0x116f   :  { %31728 = vmatpush3.bf16.msra.mxu0 %v35242_v5  ;;  %30258 = vmatprep.mubr.f32.mxu1 %v35138_v8 }
0x1170   :  { %31730 = vmatprep.subr.bf16.mxu0 %v31729_v6  ;;  %30257 = vmatpush3.msra.mxu1 %v19964_v25 }
0x1171   :  { %30261 = vmatprep.subr.mxu1 %v19961_v47 }
0x1172   :  { %30290 = vmatmul.mubr.f32.vlgmr.msra.gmra.mrb[48].mxu0 %v35262_v61 }
0x1173   :  { %31732 = vmatpush3.bf16.msra.mxu0 %v31729_v6  ;;  %30300 = vmatprep.mubr.f32.mxu0 %v35183_v43 }
0x1174   :  { %31734 = vmatprep.subr.bf16.mxu0 %v31733_v62 }
0x1176   :  { %30259 = vmatmul.mubr.f32.vlgmr.msra.gmra.mrb[36].mxu1 %v35135_v2 }
0x1177   :  { %31736 = vmatpush3.bf16.msra.mxu0 %v31733_v62  ;;  %30263 = vmatprep.mubr.f32.mxu1 %v35144_v30  ;;  %v20928_v30 = vld [vmem:[#allocation39 + $0x30] sm:$0xff]  ;;  %v31869_v62 = vpack.c.bf16 %v22492_v14, %v22489_v37 }
0x1178   :  { %31738 = vmatprep.subr.bf16.mxu0 %v31737_v26  ;;  %30262 = vmatpush3.msra.mxu1 %v19961_v47  ;;  %v20937_v3 = vand.u32 4294901760, %v20928_v30 }
0x1179   :  { %30266 = vmatprep.subr.mxu1 %v35181_v9 }
0x117a   :  { %30301 = vmatmul.mubr.f32.vlgmr.msra.gmra.mrb[48].mxu0 %v35202_v18  ;;  %v21035_v49 = vsub.f32 %v20928_v30, %v20937_v3 }
0x117b   :  { %31740 = vmatpush3.bf16.msra.mxu0 %v31737_v26  ;;  %30311 = vmatprep.mubr.f32.mxu0 %v35199_v17 }
0x117c   :  { %31742 = vmatprep.subr.bf16.mxu0 %v31741_v52  ;;  %v21036_v59 = vand.u32 4294901760, %v21035_v49 }
0x117e   :  { %30264 = vmatmul.mubr.f32.vlgmr.msra.gmra.mrb[36].mxu1 %v35141_v40  ;;  %v20934_v40 = vand.u32 4294901760, %v20927_v42  ;;  %v21037_v55 = vsub.f32 %v21035_v49, %v21036_v59 }
0x117f   :  { %31744 = vmatpush3.bf16.msra.mxu0 %v31741_v52  ;;  %30268 = vmatprep.mubr.f32.mxu1 %v35150_v19  ;;  %v20929_v19 = vld [vmem:[#allocation39 + $0x38] sm:$0xff] }
0x1180   :  { %31746 = vmatprep.subr.bf16.mxu0 %v35210_v28  ;;  %30267 = vmatpush3.msra.mxu1 %v35181_v9  ;;  %v20940_v39 = vand.u32 4294901760, %v20929_v19  ;;  %v21028_v44 = vsub.f32 %v20927_v42, %v20934_v40  ;;  %v35301_v41 = vpack.c.bf16 %v20934_v40, %v20931_v46  ;;  %v21038_v0 = vand.u32 4294901760, %v21037_v55 }
0x1181   :  { %30271 = vmatprep.subr.mxu1 %v35215_v13  ;;  %v22596_v42 = vsub.f32 %v22594_v35, %v22595_v27  ;;  %v22590_v46 = vand.u32 4294901760, %v22589_v1 }
0x1182   :  { %30312 = vmatmul.mubr.f32.vlgmr.msra.gmra.mrb[48].mxu0 %v35220_v15  ;;  %v21029_v45 = vand.u32 4294901760, %v21028_v44  ;;  %v21042_v32 = vsub.f32 %v20929_v19, %v20940_v39  ;;  %v35311_v12 = vpack.c.bf16 %v20940_v39, %v20937_v3 }
0x1183   :  { %31748 = vmatpush3.bf16.msra.mxu0 %v35210_v28  ;;  %30322 = vmatprep.mubr.f32.mxu0 %v35213_v56  ;;  %v22597_v40 = vand.u32 4294901760, %v22596_v42 }
0x1184   :  { %31750 = vmatprep.subr.bf16.mxu0 %v35242_v5  ;;  %v21030_v16 = vsub.f32 %v21028_v44, %v21029_v45  ;;  %v21043_v11 = vand.u32 4294901760, %v21042_v32  ;;  %v31789_v51 = vpack.c.bf16 %v21042_v32, %v21035_v49 }
0x1185   :  { %v31877_v30 = vpack.c.bf16 %v22597_v40, %v22590_v46 }
0x1186   :  { %30269 = vmatmul.mubr.f32.vlgmr.msra.gmra.mrb[36].mxu1 %v35147_v33  ;;  %v21022_v33 = vand.u32 4294901760, %v21021_v7  ;;  %v21031_v57 = vand.u32 4294901760, %v21030_v16 }
0x1187   :  { %31752 = vmatpush3.bf16.msra.mxu0 %v35242_v5  ;;  %30273 = vmatprep.mubr.f32.mxu1 %v35138_v8 }
0x1188   :  { %31754 = vmatprep.subr.bf16.mxu0 %v31753_v24  ;;  %30272 = vmatpush3.msra.mxu1 %v35215_v13  ;;  %v21023_v31 = vsub.f32 %v21021_v7, %v21022_v33  ;;  %v31801_v21 = vpack.c.bf16 %v21029_v45, %v21022_v33  ;;  %v22483_v13 = vand.u32 4294901760, %v22478_v22 }
0x1189   :  { %30276 = vmatprep.subr.mxu1 %v35181_v9 }
0x118a   :  { %30323 = vmatmul.mubr.f32.vlgmr.msra.gmra.mrb[48].mxu0 %v35240_v63  ;;  %v22573_v29 = vsub.f32 %v22478_v22, %v22483_v13  ;;  %v31865_v25 = vpack.c.bf16 %v22486_v4, %v22483_v13 }
0x118b   :  { %31756 = vmatpush3.bf16.msra.mxu0 %v31753_v24  ;;  %30333 = vmatprep.mubr.f32.mxu0 %v35183_v43 }
0x118c   :  { %31758 = vmatprep.subr.bf16.mxu0 %v31757_v20  ;;  %v22574_v34 = vand.u32 4294901760, %v22573_v29 }
0x118e   :  { %30274 = vmatmul.mubr.f32.vlgmr.msra.gmra.mrb[36].mxu1 %v35135_v2  ;;  %v22575_v23 = vsub.f32 %v22573_v29, %v22574_v34 }
0x118f   :  { %31760 = vmatpush3.bf16.msra.mxu0 %v31757_v20  ;;  %30278 = vmatprep.mubr.f32.mxu1 %v35138_v8  ;;  %v21024_v8 = vand.u32 4294901760, %v21023_v31  ;;  %v31885_v20 = vpack.c.bf16 %v22594_v35, %v22587_v53 }
0x1190   :  { %31762 = vmatprep.subr.bf16.mxu0 %v35210_v28  ;;  %30277 = vmatpush3.msra.mxu1 %v35181_v9  ;;  %v21044_v9 = vsub.f32 %v21042_v32, %v21043_v11  ;;  %v22576_v26 = vand.u32 4294901760, %v22575_v23 }
0x1191   :  { %31770 = vmatprep.subr.bf16.mxu1 %v35301_v41  ;;  %v31777_v50 = vpack.c.bf16 %v21031_v57, %v21024_v8 }
0x1192   :  { %30334 = vmatmul.mubr.f32.vlgmr.msra.gmra.mrb[48].mxu0 %v35202_v18  ;;  %v21045_v54 = vand.u32 4294901760, %v21044_v9  ;;  %v20924_v9 = vld [vmem:[#allocation37 + $0x18] sm:$0xff] }
0x1193   :  { %31764 = vmatpush3.bf16.msra.mxu0 %v35210_v28  ;;  %30344 = vmatprep.mubr.f32.mxu0 %v35183_v43  ;;  %v31805_v28 = vpack.c.bf16 %v21043_v11, %v21036_v59 }
0x1194   :  { %31766 = vmatprep.subr.bf16.mxu0 %v35242_v5  ;;  %v31781_v47 = vpack.c.bf16 %v21045_v54, %v21038_v0 }
0x1196   :  { %30279 = vmatmul.mubr.f32.vlgmr.msra.gmra.mrb[36].mxu1 %v35135_v2  ;;  %v31785_v2 = vpack.c.bf16 %v21028_v44, %v21021_v7 }
0x1197   :  { %31768 = vmatpush3.bf16.msra.mxu0 %v35242_v5  ;;  %31772 = vmatpush3.bf16.msra.mxu1 %v35301_v41  ;;  %v22580_v5 = vsub.f32 %v22479_v10, %v22486_v4 }
0x1198   :  { %31774 = vmatprep.subr.bf16.mxu1 %v35311_v12  ;;  %30355 = vmatprep.mubr.f32.mxu1 %v35250_v38 }
0x1199   :  { %v22581_v58 = vand.u32 4294901760, %v22580_v5  ;;  %v31881_v19 = vpack.c.bf16 %v22580_v5, %v22573_v29 }
0x119a   :  { %30345 = vmatmul.mubr.f32.vlgmr.msra.gmra.mrb[48].mxu0 %v35202_v18 }
0x119b   :  { %31776 = vmatpush3.bf16.msra.mxu1 %v35311_v12  ;;  %v22582_v6 = vsub.f32 %v22580_v5, %v22581_v58 }
0x119c   :  { %31778 = vmatprep.subr.bf16.mxu1 %v31777_v50 }
0x119d   :  { %v22583_v52 = vand.u32 4294901760, %v22582_v6 }
0x119e   :  { %30356 = vmatmul.mubr.f32.vlgmr.msra.gmra.mrb[70].mxu1 %v35262_v61 }
0x119f   :  { %31780 = vmatpush3.bf16.msra.mxu1 %v31777_v50  ;;  %30366 = vmatprep.mubr.f32.mxu1 %v35183_v43  ;;  %v31873_v24 = vpack.c.bf16 %v22583_v52, %v22576_v26  ;;  %v21462_v50 = vsel %vm402_vm3, %v20924_v9, 0 }
0x11a0   :  { %31782 = vmatprep.subr.bf16.mxu1 %v31781_v47  ;;  %v21541_v0 = vand.u32 4294901760, %v21462_v50 }
0x11a2   :  { %v21542_v54 = vsub.f32 %v21462_v50, %v21541_v0 }
0x11a3   :  { %31784 = vmatpush3.bf16.msra.mxu1 %v31781_v47 }
0x11a4   :  { %31786 = vmatprep.subr.bf16.mxu1 %v31785_v2  ;;  %v21543_v47 = vand.u32 4294901760, %v21542_v54 }
0x11a6   :  { %30367 = vmatmul.mubr.f32.vlgmr.msra.gmra.mrb[70].mxu1 %v35202_v18  ;;  %v21544_v10 = vsub.f32 %v21542_v54, %v21543_v47 }
0x11a7   :  { %31788 = vmatpush3.bf16.msra.mxu1 %v31785_v2  ;;  %30377 = vmatprep.mubr.f32.mxu1 %v35199_v17 }
0x11a8   :  { %31790 = vmatprep.subr.bf16.mxu1 %v31789_v51  ;;  %v21545_v37 = vand.u32 4294901760, %v21544_v10 }
0x11ab   :  { %31792 = vmatpush3.bf16.msra.mxu1 %v31789_v51 }
0x11ac   :  { %31794 = vmatprep.subr.bf16.mxu1 %v35301_v41 }
0x11ae   :  { %30378 = vmatmul.mubr.f32.vlgmr.msra.gmra.mrb[70].mxu1 %v35220_v15 }
0x11af   :  { %31796 = vmatpush3.bf16.msra.mxu1 %v35301_v41  ;;  %30388 = vmatprep.mubr.f32.mxu1 %v35213_v56 }
0x11b0   :  { %31798 = vmatprep.subr.bf16.mxu1 %v35311_v12 }
0x11b3   :  { %31800 = vmatpush3.bf16.msra.mxu1 %v35311_v12 }
0x11b4   :  { %31802 = vmatprep.subr.bf16.mxu1 %v31801_v21 }
0x11b6   :  { %30389 = vmatmul.mubr.f32.vlgmr.msra.gmra.mrb[70].mxu1 %v35240_v63 }
0x11b7   :  { %31804 = vmatpush3.bf16.msra.mxu1 %v31801_v21  ;;  %30399 = vmatprep.mubr.f32.mxu1 %v35183_v43 }
0x11b8   :  { %31806 = vmatprep.subr.bf16.mxu1 %v31805_v28 }
0x11bb   :  { %31808 = vmatpush3.bf16.msra.mxu1 %v31805_v28 }
0x11bc   :  { %31810 = vmatprep.subr.bf16.mxu1 %v35301_v41 }
0x11be   :  { %30400 = vmatmul.mubr.f32.vlgmr.msra.gmra.mrb[70].mxu1 %v35202_v18 }
0x11bf   :  { %31812 = vmatpush3.bf16.msra.mxu1 %v35301_v41  ;;  %30410 = vmatprep.mubr.f32.mxu1 %v35183_v43 }
0x11c0   :  { %31814 = vmatprep.subr.bf16.mxu1 %v35311_v12 }
0x11c3   :  { %31816 = vmatpush3.bf16.msra.mxu1 %v35311_v12 }
0x11c4   :  { %31866 = vmatprep.subr.bf16.mxu1 %v31865_v25 }
0x11c6   :  { %30411 = vmatmul.mubr.f32.vlgmr.msra.gmra.mrb[70].mxu1 %v35202_v18 }
0x11c7   :  { %31868 = vmatpush3.bf16.msra.mxu1 %v31865_v25  ;;  %30505 = vmatprep.mubr.f32.mxu1 %v35250_v38  ;;  %v31897_v38 = vpack.c.bf16 %v22581_v58, %v22574_v34 }
0x11c8   :  { %31870 = vmatprep.subr.bf16.mxu1 %v31869_v62 }
0x11cb   :  { %31872 = vmatpush3.bf16.msra.mxu1 %v31869_v62 }
0x11cc   :  { %31874 = vmatprep.subr.bf16.mxu1 %v31873_v24 }
0x11ce   :  { %30506 = vmatmul.mubr.f32.vlgmr.msra.gmra.mrb[72].mxu1 %v35262_v61  ;;  %v31901_v61 = vpack.c.bf16 %v22595_v27, %v22588_v60  ;;  %v20383_v60 = vld [vmem:[#allocation37 + $0x8] sm:$0xff] }
0x11cf   :  { %31876 = vmatpush3.bf16.msra.mxu1 %v31873_v24  ;;  %30516 = vmatprep.mubr.f32.mxu1 %v35183_v43 }
0x11d0   :  { %31878 = vmatprep.subr.bf16.mxu1 %v31877_v30 }
0x11d3   :  { %31880 = vmatpush3.bf16.msra.mxu1 %v31877_v30 }
0x11d4   :  { %31882 = vmatprep.subr.bf16.mxu1 %v31881_v19 }
0x11d6   :  { %30517 = vmatmul.mubr.f32.vlgmr.msra.gmra.mrb[72].mxu1 %v35202_v18 }
0x11d7   :  { %31884 = vmatpush3.bf16.msra.mxu1 %v31881_v19  ;;  %30527 = vmatprep.mubr.f32.mxu1 %v35199_v17  ;;  %v20923_v17 = vld [vmem:[#allocation37 + $0x10] sm:$0xff] }
0x11d8   :  { %31886 = vmatprep.subr.bf16.mxu1 %v31885_v20 }
0x11db   :  { %31888 = vmatpush3.bf16.msra.mxu1 %v31885_v20 }
0x11dc   :  { %31890 = vmatprep.subr.bf16.mxu1 %v31865_v25 }
0x11de   :  { %30528 = vmatmul.mubr.f32.vlgmr.msra.gmra.mrb[72].mxu1 %v35220_v15 }
0x11df   :  { %31892 = vmatpush3.bf16.msra.mxu1 %v31865_v25  ;;  %30538 = vmatprep.mubr.f32.mxu1 %v35213_v56  ;;  %v21459_v56 = vsel %vm402_vm3, %v20923_v17, 0 }
0x11e0   :  { %31894 = vmatprep.subr.bf16.mxu1 %v31869_v62  ;;  %v35353_v15 = vand.u32 4294901760, %v21459_v56 }
0x11e3   :  { %31896 = vmatpush3.bf16.msra.mxu1 %v31869_v62 }
0x11e4   :  { %31898 = vmatprep.subr.bf16.mxu1 %v31897_v38 }
0x11e6   :  { %30539 = vmatmul.mubr.f32.vlgmr.msra.gmra.mrb[72].mxu1 %v35240_v63  ;;  %v21532_v63 = vsub.f32 %v21459_v56, %v35353_v15 }
0x11e7   :  { %31900 = vmatpush3.bf16.msra.mxu1 %v31897_v38  ;;  %30549 = vmatprep.mubr.f32.mxu1 %v35183_v43 }
0x11e8   :  { %31902 = vmatprep.subr.bf16.mxu1 %v31901_v61  ;;  %v21533_v3 = vand.u32 4294901760, %v21532_v63 }
0x11ea   :  { %v21534_v39 = vsub.f32 %v21532_v63, %v21533_v3 }
0x11eb   :  { %31904 = vmatpush3.bf16.msra.mxu1 %v31901_v61 }
0x11ec   :  { %31906 = vmatprep.subr.bf16.mxu1 %v31865_v25  ;;  %v21535_v7 = vand.u32 4294901760, %v21534_v39 }
0x11ee   :  { %30550 = vmatmul.mubr.f32.vlgmr.msra.gmra.mrb[72].mxu1 %v35202_v18  ;;  %30417 = vmatprep.mubr.f32.mxu0 %v21535_v7 }
0x11ef   :  { %31908 = vmatpush3.bf16.msra.mxu1 %v31865_v25  ;;  %30560 = vmatprep.mubr.f32.mxu1 %v35183_v43  ;;  %v20382_v25 = vld [vmem:[#allocation37] sm:$0xff] }
0x11f0   :  { %31910 = vmatprep.subr.bf16.mxu1 %v31869_v62  ;;  %v21967_v23 = vsel %vm402_vm3, %v20382_v25, 0 }
0x11f1   :  { %v35367_v6 = vand.u32 4294901760, %v21967_v23 }
0x11f3   :  { %31912 = vmatpush3.bf16.msra.mxu1 %v31869_v62  ;;  %v22040_v27 = vsub.f32 %v21967_v23, %v35367_v6  ;;  %v21970_v62 = vsel %vm402_vm3, %v20383_v60, 0 }
0x11f4   :  { %v35372_v26 = vand.u32 4294901760, %v21970_v62 }
0x11f5   :  { %v22041_v52 = vand.u32 4294901760, %v22040_v27 }
0x11f6   :  { %30561 = vmatmul.mubr.f32.vlgmr.msra.gmra.mrb[72].mxu1 %v35202_v18  ;;  %v22050_v1 = vsub.f32 %v21970_v62, %v35372_v26 }
0x11f7   :  { %v22042_v42 = vsub.f32 %v22040_v27, %v22041_v52 }
0x11f8   :  { %v22051_v24 = vand.u32 4294901760, %v22050_v1 }
0x11f9   :  { %v22043_v46 = vand.u32 4294901760, %v22042_v42 }
0x11fa   :  { %v22052_v38 = vsub.f32 %v22050_v1, %v22051_v24 }
0x126d   :  { %v30346_v44 = vpop.f32.mrb[48].mxu0 }
0x126e   :  { %v21976_v33 = vand.u32 4294901760, %v30346_v44  ;;  %v20912_v45 = vpop.f32.mrb[49].mxu0 }
0x126f   :  { %v21973_v49 = vand.u32 4294901760, %v20912_v45 }
0x1270   :  { %v22068_v43 = vsub.f32 %v30346_v44, %v21976_v33 }
0x1271   :  { %v35356_v32 = vpack.c.bf16 %v21976_v33, %v21973_v49  ;;  %v22061_v41 = vsub.f32 %v20912_v45, %v21973_v49 }
0x1272   :  { %v22069_v18 = vand.u32 4294901760, %v22068_v43 }
0x1273   :  { %v22062_v31 = vand.u32 4294901760, %v22061_v41  ;;  %v35358_v16 = vpack.c.bf16 %v22068_v43, %v22061_v41 }
0x1274   :  { %v22070_v59 = vsub.f32 %v22068_v43, %v22069_v18 }
0x1275   :  { %v22063_v11 = vsub.f32 %v22061_v41, %v22062_v31  ;;  %v35360_v12 = vpack.c.bf16 %v22069_v18, %v22062_v31  ;;  %v22475_v41 = vld [vmem:[#allocation37 + $0x20] sm:$0xff] }
0x1276   :  { %v22071_v8 = vand.u32 4294901760, %v22070_v59  ;;  %v23011_v18 = vsel %vm402_vm3, %v22475_v41, 0  ;;  %v22476_v59 = vld [vmem:[#allocation37 + $0x28] sm:$0xff] }
0x1277   :  { %v22064_v57 = vand.u32 4294901760, %v22063_v11  ;;  %v23083_v31 = vand.u32 4294901760, %v23011_v18  ;;  %v23014_v11 = vsel %vm402_vm3, %v22476_v59, 0  ;;  %v27251_v59 = vld [vmem:[%s35706_s16 + $0x30] sm:$0xff] }
0x1279   :  { %v35362_v55 = vpack.c.bf16 %v22071_v8, %v22064_v57  ;;  %v23093_v8 = vand.u32 4294901760, %v23014_v11 }
0x1299   :  { %v30412_v2 = vpop.f32.mrb[70].mxu1 }
0x129a   :  { %v21468_v51 = vand.u32 4294901760, %v30412_v2  ;;  %v21448_v21 = vpop.f32.mrb[71].mxu1 }
0x129b   :  { %v21465_v22 = vand.u32 4294901760, %v21448_v21 }
0x129c   :  { %v21560_v28 = vsub.f32 %v30412_v2, %v21468_v51 }
0x129d   :  { %v31817_v13 = vpack.c.bf16 %v21468_v51, %v21465_v22  ;;  %v21553_v4 = vsub.f32 %v21448_v21, %v21465_v22 }
0x129e   :  { %v21561_v36 = vand.u32 4294901760, %v21560_v28 }
0x129f   :  { %v21554_v48 = vand.u32 4294901760, %v21553_v4  ;;  %31818 = vmatprep.subr.bf16.mxu0 %v31817_v13  ;;  %v31825_v14 = vpack.c.bf16 %v21560_v28, %v21553_v4 }
0x12a0   :  { %v21562_v29 = vsub.f32 %v21560_v28, %v21561_v36  ;;  %31820 = vmatpush3.bf16.msra.mxu0 %v31817_v13  ;;  %v23527_v28 = vld [vmem:[#allocation40 + $0x8] sm:$0xff] }
0x12a1   :  { %v21555_v5 = vsub.f32 %v21553_v4, %v21554_v48  ;;  %v31833_v34 = vpack.c.bf16 %v21561_v36, %v21554_v48  ;;  %v23521_v36 = vstv %s27248_s27  ;;  %s33280_s27 = smov 112  }
0x12a2   :  { %v21563_v58 = vand.u32 4294901760, %v21562_v29 }
0x12a3   :  { %30418 = vmatmul.mubr.f32.vlgmr.msra.gmra.mrb[50].mxu0 %v21545_v37  ;;  %v21556_v53 = vand.u32 4294901760, %v21555_v5 }
0x12a4   :  { %30424 = vmatprep.mubr.f32.mxu0 %v35353_v15 }
0x12a5   :  { %v31821_v35 = vpack.c.bf16 %v21563_v58, %v21556_v53 }
0x12a7   :  { %31822 = vmatprep.subr.bf16.mxu0 %v31821_v35 }
0x12a8   :  { %31824 = vmatpush3.bf16.msra.mxu0 %v31821_v35 }
0x12a9   :  { %31826 = vmatprep.subr.bf16.mxu0 %v31825_v14 }
0x12ab   :  { %30425 = vmatmul.mubr.f32.vlgmr.msra.gmra.mrb[50].mxu0 %v21541_v0 }
0x12ac   :  { %31828 = vmatpush3.bf16.msra.mxu0 %v31825_v14  ;;  %30431 = vmatprep.mubr.f32.mxu0 %v21532_v63 }
0x12ad   :  { %31830 = vmatprep.subr.bf16.mxu0 %v31817_v13 }
0x12b3   :  { %30432 = vmatmul.mubr.f32.vlgmr.msra.gmra.mrb[50].mxu0 %v21542_v54 }
0x12b4   :  { %31832 = vmatpush3.bf16.msra.mxu0 %v31817_v13  ;;  %30438 = vmatprep.mubr.f32.mxu0 %v21533_v3  ;;  %v22053_v3 = vand.u32 4294901760, %v22052_v38  ;;  %v24037_v38 = vld [vmem:[%s35706_s16 + $0x8] sm:$0xff] }
0x12b5   :  { %31834 = vmatprep.subr.bf16.mxu0 %v31833_v34 }
0x12bb   :  { %30439 = vmatmul.mubr.f32.vlgmr.msra.gmra.mrb[50].mxu0 %v21543_v47 }
0x12bc   :  { %31836 = vmatpush3.bf16.msra.mxu0 %v31833_v34  ;;  %30445 = vmatprep.mubr.f32.mxu0 %v35353_v15 }
0x12bd   :  { %31838 = vmatprep.subr.bf16.mxu0 %v31817_v13 }
0x12c3   :  { %30446 = vmatmul.mubr.f32.vlgmr.msra.gmra.mrb[50].mxu0 %v21541_v0 }
0x12c4   :  { %31840 = vmatpush3.bf16.msra.mxu0 %v31817_v13  ;;  %30452 = vmatprep.mubr.f32.mxu0 %v35353_v15  ;;  %v23532_v13 = vsel %vm402_vm3, %v23527_v28, 0 }
0x12c5   :  { %31842 = vmatprep.subr.bf16.mxu0 %v35356_v32  ;;  %v23611_v4 = vand.u32 4294901760, %v23532_v13 }
0x12c7   :  { %v23612_v48 = vsub.f32 %v23532_v13, %v23611_v4 }
0x12c9   :  { %v30562_v40 = vpop.f32.mrb[72].mxu1  ;;  %v23613_v34 = vand.u32 4294901760, %v23612_v48 }
0x12ca   :  { %v23020_v30 = vand.u32 4294901760, %v30562_v40  ;;  %v23000_v19 = vpop.f32.mrb[73].mxu1 }
0x12cb   :  { %v23017_v20 = vand.u32 4294901760, %v23000_v19  ;;  %30453 = vmatmul.mubr.f32.vlgmr.msra.gmra.mrb[50].mxu0 %v21541_v0  ;;  %v23614_v23 = vsub.f32 %v23612_v48, %v23613_v34 }
0x12cc   :  { %v23112_v61 = vsub.f32 %v30562_v40, %v23020_v30  ;;  %31844 = vmatpush3.bf16.msra.mxu0 %v35356_v32  ;;  %30459 = vmatprep.mubr.f32.mxu0 %v22043_v46 }
0x12cd   :  { %v35378_v17 = vpack.c.bf16 %v23020_v30, %v23017_v20  ;;  %v23105_v56 = vsub.f32 %v23000_v19, %v23017_v20  ;;  %31846 = vmatprep.subr.bf16.mxu0 %v35362_v55  ;;  %v24036_v20 = vld [vmem:[%s35706_s16] sm:$0xff] }
0x12ce   :  { %v23113_v15 = vand.u32 4294901760, %v23112_v61 }
0x12cf   :  { %v23106_v63 = vand.u32 4294901760, %v23105_v56  ;;  %v31921_v39 = vpack.c.bf16 %v23112_v61, %v23105_v56 }
0x12d0   :  { %v23114_v7 = vsub.f32 %v23112_v61, %v23113_v15  ;;  %v24047_v61 = vand.u32 4294901760, %v24036_v20 }
0x12d1   :  { %v23107_v44 = vsub.f32 %v23105_v56, %v23106_v63  ;;  %v31929_v33 = vpack.c.bf16 %v23113_v15, %v23106_v63  ;;  %v27249_v56 = vld [vmem:[%s35706_s16 + $0x20] sm:$0xff]  ;;  %v27250_v15 = vld [vmem:[%s35706_s16 + $0x28] sm:$0xff] }
0x12d2   :  { %v23115_v45 = vand.u32 4294901760, %v23114_v7  ;;  %v24582_v63 = vand.u32 4294901760, %v27249_v56  ;;  %v24137_v7 = vsub.f32 %v24036_v20, %v24047_v61 }
0x12d3   :  { %30460 = vmatmul.mubr.f32.vlgmr.msra.gmra.mrb[50].mxu0 %v22053_v3  ;;  %v23108_v49 = vand.u32 4294901760, %v23107_v44  ;;  %v24585_v3 = vand.u32 4294901760, %v27250_v15 }
0x12d4   :  { %31848 = vmatpush3.bf16.msra.mxu0 %v35362_v55  ;;  %30466 = vmatprep.mubr.f32.mxu0 %v35367_v6  ;;  %v23094_v55 = vsub.f32 %v23014_v11, %v23093_v8  ;;  %v24138_v11 = vand.u32 4294901760, %v24137_v7 }
0x12d5   :  { %31850 = vmatprep.subr.bf16.mxu0 %v35358_v16  ;;  %v31917_v43 = vpack.c.bf16 %v23115_v45, %v23108_v49  ;;  %v24038_v45 = vld [vmem:[%s35706_s16 + $0x10] sm:$0xff]  ;;  %v24039_v49 = vld [vmem:[%s35706_s16 + $0x18] sm:$0xff]  ;;  %v24679_v41 = vsub.f32 %v27250_v15, %v24585_v3 }
0x12db   :  { %30467 = vmatmul.mubr.f32.vlgmr.msra.gmra.mrb[50].mxu0 %v35372_v26 }
0x12dc   :  { %31852 = vmatpush3.bf16.msra.mxu0 %v35358_v16  ;;  %30473 = vmatprep.mubr.f32.mxu0 %v22040_v27  ;;  %v23084_v16 = vsub.f32 %v23011_v18, %v23083_v31  ;;  %v24053_v18 = vand.u32 4294901760, %v24038_v45 }
0x12dd   :  { %31854 = vmatprep.subr.bf16.mxu0 %v35356_v32 }
0x12de   :  { %v23085_v57 = vand.u32 4294901760, %v23084_v16 }
0x12e0   :  { %v23086_v9 = vsub.f32 %v23084_v16, %v23085_v57 }
0x12e2   :  { %v23087_v50 = vand.u32 4294901760, %v23086_v9 }
0x12e3   :  { %30474 = vmatmul.mubr.f32.vlgmr.msra.gmra.mrb[50].mxu0 %v22050_v1 }
0x12e4   :  { %31856 = vmatpush3.bf16.msra.mxu0 %v35356_v32  ;;  %30480 = vmatprep.mubr.f32.mxu0 %v22041_v52  ;;  %v23615_v52 = vand.u32 4294901760, %v23614_v23 }
0x12e5   :  { %31858 = vmatprep.subr.bf16.mxu0 %v35360_v12 }
0x12eb   :  { %30481 = vmatmul.mubr.f32.vlgmr.msra.gmra.mrb[50].mxu0 %v22051_v24 }
0x12ec   :  { %31860 = vmatpush3.bf16.msra.mxu0 %v35360_v12  ;;  %30487 = vmatprep.mubr.f32.mxu0 %v35367_v6  ;;  %v23095_v12 = vand.u32 4294901760, %v23094_v55 }
0x12ed   :  { %31862 = vmatprep.subr.bf16.mxu0 %v35356_v32 }
0x12ee   :  { %v23096_v0 = vsub.f32 %v23094_v55, %v23095_v12 }
0x12f0   :  { %v23097_v54 = vand.u32 4294901760, %v23096_v0  ;;  %v24139_v0 = vsub.f32 %v24137_v7, %v24138_v11 }
0x12f3   :  { %30488 = vmatmul.mubr.f32.vlgmr.msra.gmra.mrb[50].mxu0 %v35372_v26 }
0x12f4   :  { %31864 = vmatpush3.bf16.msra.mxu0 %v35356_v32  ;;  %30494 = vmatprep.mubr.f32.mxu0 %v35367_v6  ;;  %v23526_v32 = vld [vmem:[#allocation40] sm:$0xff] }
0x12f5   :  { %31914 = vmatprep.subr.bf16.mxu0 %v35378_v17  ;;  %v23529_v47 = vsel %vm402_vm3, %v23526_v32, 0  ;;  %v24151_v32 = vsub.f32 %v24038_v45, %v24053_v18 }
0x12f6   :  { %v23601_v2 = vand.u32 4294901760, %v23529_v47 }
0x12f7   :  { %v24152_v28 = vand.u32 4294901760, %v24151_v32 }
0x12f8   :  { %v23602_v51 = vsub.f32 %v23529_v47, %v23601_v2 }
0x12fa   :  { %v23603_v21 = vand.u32 4294901760, %v23602_v51 }
0x12fb   :  { %30495 = vmatmul.mubr.f32.vlgmr.msra.gmra.mrb[50].mxu0 %v35372_v26 }
0x12fc   :  { %31916 = vmatpush3.bf16.msra.mxu0 %v35378_v17  ;;  %30567 = vmatprep.mubr.f32.mxu0 %v23087_v50  ;;  %v23604_v22 = vsub.f32 %v23602_v51, %v23603_v21 }
0x12fd   :  { %31918 = vmatprep.subr.bf16.mxu0 %v31917_v43 }
0x12fe   :  { %v23605_v10 = vand.u32 4294901760, %v23604_v22  ;;  %v24140_v22 = vand.u32 4294901760, %v24139_v0 }
0x1300   :  { %30609 = vmatprep.mubr.f32.mxu1 %v23605_v10 }
0x1303   :  { %30568 = vmatmul.mubr.f32.vlgmr.msra.gmra.mrb[50].mxu0 %v23097_v54 }
0x1304   :  { %31920 = vmatpush3.bf16.msra.mxu0 %v31917_v43  ;;  %30574 = vmatprep.mubr.f32.mxu0 %v23083_v31  ;;  %v24672_v43 = vsub.f32 %v27249_v56, %v24582_v63 }
0x1305   :  { %31922 = vmatprep.subr.bf16.mxu0 %v31921_v39 }
0x1306   :  { %v24673_v9 = vand.u32 4294901760, %v24672_v43 }
0x130b   :  { %30575 = vmatmul.mubr.f32.vlgmr.msra.gmra.mrb[50].mxu0 %v23093_v8 }
0x130c   :  { %31924 = vmatpush3.bf16.msra.mxu0 %v31921_v39  ;;  %30581 = vmatprep.mubr.f32.mxu0 %v23084_v16  ;;  %v27252_v16 = vld [vmem:[%s35706_s16 + $0x38] sm:$0xff] }
0x130d   :  { %31926 = vmatprep.subr.bf16.mxu0 %v35378_v17 }
0x1313   :  { %30582 = vmatmul.mubr.f32.vlgmr.msra.gmra.mrb[50].mxu0 %v23094_v55  ;;  %v24591_v55 = vand.u32 4294901760, %v27252_v16 }
0x1314   :  { %31928 = vmatpush3.bf16.msra.mxu0 %v35378_v17  ;;  %30588 = vmatprep.mubr.f32.mxu0 %v23085_v57  ;;  %v24588_v57 = vand.u32 4294901760, %v27251_v59 }
0x1315   :  { %31930 = vmatprep.subr.bf16.mxu0 %v31929_v33 }
0x1316   :  { %v35440_v47 = vpack.c.bf16 %v24591_v55, %v24588_v57  ;;  %v24686_v13 = vsub.f32 %v27251_v59, %v24588_v57 }
0x131b   :  { %30589 = vmatmul.mubr.f32.vlgmr.msra.gmra.mrb[50].mxu0 %v23095_v12  ;;  %v24680_v12 = vand.u32 4294901760, %v24679_v41 }
0x131c   :  { %31932 = vmatpush3.bf16.msra.mxu0 %v31929_v33  ;;  %30595 = vmatprep.mubr.f32.mxu0 %v23083_v31  ;;  %v35420_v33 = vpack.c.bf16 %v24585_v3, %v24582_v63 }
0x131d   :  { %31934 = vmatprep.subr.bf16.mxu0 %v35378_v17 }
0x1323   :  { %30596 = vmatmul.mubr.f32.vlgmr.msra.gmra.mrb[50].mxu0 %v23093_v8 }
0x1324   :  { %31936 = vmatpush3.bf16.msra.mxu0 %v35378_v17  ;;  %30602 = vmatprep.mubr.f32.mxu0 %v23083_v31  ;;  %v24050_v17 = vand.u32 4294901760, %v24037_v38  ;;  %v24056_v31 = vand.u32 4294901760, %v24039_v49 }
0x1325   :  { %32010 = vmatprep.subr.bf16.mxu0 %v35420_v33 }
0x1326   :  { %v35418_v39 = vpack.c.bf16 %v24050_v17, %v24047_v61  ;;  %v24144_v44 = vsub.f32 %v24037_v38, %v24050_v17  ;;  %v35438_v50 = vpack.c.bf16 %v24056_v31, %v24053_v18  ;;  %v27253_v18 = vld [vmem:[%s35706_s16 + $0x40] sm:$0xff] }
0x1327   :  { %v25117_v59 = vand.u32 4294901760, %v27253_v18 }
0x132b   :  { %30603 = vmatmul.mubr.f32.vlgmr.msra.gmra.mrb[50].mxu0 %v23093_v8  ;;  %v24145_v8 = vand.u32 4294901760, %v24144_v44 }
0x132c   :  { %32012 = vmatpush3.bf16.msra.mxu0 %v35420_v33 }
0x132d   :  { %v24146_v54 = vsub.f32 %v24144_v44, %v24145_v8  ;;  %32014 = vmatprep.subr.bf16.mxu0 %v35440_v47 }
0x132f   :  { %v24147_v10 = vand.u32 4294901760, %v24146_v54 }
0x1330   :  { %32016 = vmatpush3.bf16.msra.mxu0 %v35440_v47 }
0x13fe   :  { %v30604_v37 = vpop.f32.mrb[50].mxu0 }
0x13ff   :  { %v23523_v14 = vadd.f32 %v30604_v37, %v23521_v36  ;;  %v23508_v29 = vpop.f32.mrb[51].mxu0  ;;  %v24693_v37 = vsub.f32 %v27252_v16, %v24591_v55 }
0x1400   :  { %v23522_v5 = vadd.f32 %v23521_v36, %v23508_v29  ;;  %v24153_v29 = vsub.f32 %v24151_v32, %v24152_v28 }
0x1401   :  { %v23525_v58 = vmax.f32 %v23523_v14, 0.0  ;;  %v31969_v14 = vpack.c.bf16 %v24147_v10, %v24140_v22 }
0x1402   :  { %v23524_v53 = vmax.f32 %v23522_v5, 0.0  ;;  %v24687_v5 = vand.u32 4294901760, %v24686_v13 }
0x1403   :  { %v23538_v35 = vand.u32 4294901760, %v23525_v58 }
0x1404   :  { %v23535_v25 = vand.u32 4294901760, %v23524_v53 }
0x1405   :  { %v23630_v6 = vsub.f32 %v23525_v58, %v23538_v35 }
0x1406   :  { %v31937_v60 = vpack.c.bf16 %v23538_v35, %v23535_v25  ;;  %v23623_v27 = vsub.f32 %v23524_v53, %v23535_v25  ;;  %v24694_v53 = vand.u32 4294901760, %v24693_v37  ;;  %v24154_v35 = vand.u32 4294901760, %v24153_v29 }
0x1407   :  { %v23631_v62 = vand.u32 4294901760, %v23630_v6  ;;  %v24688_v25 = vsub.f32 %v24686_v13, %v24687_v5 }
0x1408   :  { %v23624_v26 = vand.u32 4294901760, %v23623_v27  ;;  %31938 = vmatprep.subr.bf16.mxu1 %v31937_v60  ;;  %v31945_v1 = vpack.c.bf16 %v23630_v6, %v23623_v27 }
0x1409   :  { %31940 = vmatpush3.bf16.msra.mxu1 %v31937_v60  ;;  %v23632_v42 = vsub.f32 %v23630_v6, %v23631_v62  ;;  %v24695_v6 = vsub.f32 %v24693_v37, %v24694_v53 }
0x140a   :  { %v23625_v24 = vsub.f32 %v23623_v27, %v23624_v26  ;;  %v31953_v46 = vpack.c.bf16 %v23631_v62, %v23624_v26 }
0x140b   :  { %v23633_v40 = vand.u32 4294901760, %v23632_v42  ;;  %v24696_v62 = vand.u32 4294901760, %v24695_v6 }
0x140c   :  { %30610 = vmatmul.mubr.f32.vlgmr.msra.gmra.mrb[74].mxu1 %v23615_v52  ;;  %v23626_v30 = vand.u32 4294901760, %v23625_v24  ;;  %v31977_v52 = vpack.c.bf16 %v24144_v44, %v24137_v7  ;;  %v32029_v24 = vpack.c.bf16 %v24693_v37, %v24686_v13 }
0x140d   :  { %30616 = vmatprep.mubr.f32.mxu1 %v23601_v2 }
0x140e   :  { %v31941_v19 = vpack.c.bf16 %v23633_v40, %v23626_v30  ;;  %v35446_v40 = vpack.c.bf16 %v24680_v12, %v24673_v9 }
0x1410   :  { %31942 = vmatprep.subr.bf16.mxu1 %v31941_v19 }
0x1411   :  { %31944 = vmatpush3.bf16.msra.mxu1 %v31941_v19  ;;  %v35450_v19 = vpack.c.bf16 %v24694_v53, %v24687_v5 }
0x1412   :  { %31946 = vmatprep.subr.bf16.mxu1 %v31945_v1 }
0x1414   :  { %30617 = vmatmul.mubr.f32.vlgmr.msra.gmra.mrb[74].mxu1 %v23611_v4 }
0x1415   :  { %31948 = vmatpush3.bf16.msra.mxu1 %v31945_v1  ;;  %30623 = vmatprep.mubr.f32.mxu1 %v23602_v51  ;;  %v24681_v51 = vsub.f32 %v24679_v41, %v24680_v12  ;;  %v32025_v1 = vpack.c.bf16 %v24679_v41, %v24672_v43 }
0x1416   :  { %31950 = vmatprep.subr.bf16.mxu1 %v31937_v60 }
0x1417   :  { %v24682_v36 = vand.u32 4294901760, %v24681_v51 }
0x141c   :  { %30624 = vmatmul.mubr.f32.vlgmr.msra.gmra.mrb[74].mxu1 %v23612_v48 }
0x141d   :  { %31952 = vmatpush3.bf16.msra.mxu1 %v31937_v60  ;;  %30630 = vmatprep.mubr.f32.mxu1 %v23603_v21  ;;  %v24158_v21 = vsub.f32 %v24039_v49, %v24056_v31  ;;  %v27254_v31 = vld [vmem:[%s35706_s16 + $0x48] sm:$0xff] }
0x141e   :  { %31954 = vmatprep.subr.bf16.mxu1 %v31953_v46  ;;  %v25120_v16 = vand.u32 4294901760, %v27254_v31 }
0x141f   :  { %v24159_v48 = vand.u32 4294901760, %v24158_v21  ;;  %v31981_v42 = vpack.c.bf16 %v24158_v21, %v24151_v32 }
0x1420   :  { %v35519_v12 = vsub.f32 %v27254_v31, %v25120_v16  ;;  %v32057_v51 = vpack.c.bf16 %v25120_v16, %v25117_v59 }
0x1421   :  { %v24160_v58 = vsub.f32 %v24158_v21, %v24159_v48  ;;  %v35448_v30 = vpack.c.bf16 %v24159_v48, %v24152_v28 }
0x1422   :  { %v25215_v54 = vand.u32 4294901760, %v35519_v12 }
0x1423   :  { %v24161_v23 = vand.u32 4294901760, %v24160_v58  ;;  %v25649_v58 = vld [vmem:[#allocation42 + $0x10] sm:$0xff] }
0x1424   :  { %30631 = vmatmul.mubr.f32.vlgmr.msra.gmra.mrb[74].mxu1 %v23613_v34  ;;  %v25216_v22 = vsub.f32 %v35519_v12, %v25215_v54  ;;  %v25652_v53 = vsel %vm402_vm3, %v25649_v58, 0 }
0x1425   :  { %31956 = vmatpush3.bf16.msra.mxu1 %v31953_v46  ;;  %30637 = vmatprep.mubr.f32.mxu1 %v23601_v2  ;;  %v31973_v27 = vpack.c.bf16 %v24161_v23, %v24154_v35  ;;  %v31993_v46 = vpack.c.bf16 %v24145_v8, %v24138_v11  ;;  %v27255_v11 = vld [vmem:[%s35706_s16 + $0x50] sm:$0xff]  ;;  %v27256_v8 = vld [vmem:[%s35706_s16 + $0x58] sm:$0xff]  ;;  %v35559_v35 = vand.u32 4294901760, %v25652_v53  ;;  %s33201_s16 = scalar_lea.vmem %s27215_s26, 512 }
0x1426   :  { %31958 = vmatprep.subr.bf16.mxu1 %v31937_v60  ;;  %v25123_v57 = vand.u32 4294901760, %v27255_v11  ;;  %v25126_v55 = vand.u32 4294901760, %v27256_v8  ;;  %p33202_p5 = scmp.ne.s32.totalorder %s27215_s26, %s33201_s16  ;;  %p33207_p7 = scmp.lt.s32.totalorder %s33201_s16, %s33201_s16 }
0x1428   :  { %v25221_v32 = vsub.f32 %v27255_v11, %v25123_v57  ;;  %p33208_p8 = por %p33207_p7, %p33206_p6 }
0x142a   :  { %v25222_v10 = vand.u32 4294901760, %v25221_v32  ;;  %p33209_p9 = pnand %p33208_p8, %p33202_p5 }
0x142c   :  { %30638 = vmatmul.mubr.f32.vlgmr.msra.gmra.mrb[74].mxu1 %v23611_v4 }
0x142d   :  { %31960 = vmatpush3.bf16.msra.mxu1 %v31937_v60  ;;  %30644 = vmatprep.mubr.f32.mxu1 %v23601_v2  ;;  %v24674_v2 = vsub.f32 %v24672_v43, %v24673_v9  ;;  %v24689_v60 = vand.u32 4294901760, %v24688_v25  ;;  %v35517_v9 = vsub.f32 %v27253_v18, %v25117_v59  ;;  %v25725_v25 = vsub.f32 %v25652_v53, %v35559_v35 }
0x142e   :  { %31962 = vmatprep.subr.bf16.mxu1 %v35418_v39 }
0x142f   :  { %v32021_v26 = vpack.c.bf16 %v24696_v62, %v24689_v60  ;;  %v25208_v0 = vand.u32 4294901760, %v35517_v9  ;;  %v25726_v23 = vand.u32 4294901760, %v25725_v25 }
0x1431   :  { %v25209_v21 = vsub.f32 %v35517_v9, %v25208_v0  ;;  %v32089_v5 = vpack.c.bf16 %v25215_v54, %v25208_v0  ;;  %v25727_v6 = vsub.f32 %v25725_v25, %v25726_v23 }
0x1433   :  { %v25210_v13 = vand.u32 4294901760, %v25209_v21  ;;  %v25728_v60 = vand.u32 4294901760, %v25727_v6 }
0x1434   :  { %30645 = vmatmul.mubr.f32.vlgmr.msra.gmra.mrb[74].mxu1 %v23611_v4  ;;  %v24675_v4 = vand.u32 4294901760, %v24674_v2  ;;  %v25228_v2 = vsub.f32 %v27256_v8, %v25126_v55 }
0x1435   :  { %31964 = vmatpush3.bf16.msra.mxu1 %v35418_v39 }
0x1436   :  { %31966 = vmatprep.subr.bf16.mxu1 %v35438_v50  ;;  %v32017_v34 = vpack.c.bf16 %v24682_v36, %v24675_v4  ;;  %v25229_v28 = vand.u32 4294901760, %v25228_v2  ;;  %v25223_v4 = vsub.f32 %v25221_v32, %v25222_v10  ;;  %v32077_v29 = vpack.c.bf16 %v25228_v2, %v25221_v32 }
0x1438   :  { %32018 = vmatprep.subr.bf16.mxu0 %v32017_v34  ;;  %v25230_v36 = vsub.f32 %v25228_v2, %v25229_v28  ;;  %v25224_v37 = vand.u32 4294901760, %v25223_v4 }
0x1439   :  { %31968 = vmatpush3.bf16.msra.mxu1 %v35438_v50 }
0x143a   :  { %31970 = vmatprep.subr.bf16.mxu1 %v31969_v14 }
0x1507   :  { %v30646_v20 = vpop.f32.mrb[74].mxu1 }
0x1508   :  { %v24044_v38 = vsel %vm3675_vm5, %v30646_v20, 0  ;;  %v24026_v61 = vpop.f32.mrb[75].mxu1 }
0x1509   :  { %v35453_v17 = vand.u32 4294901760, %v24044_v38  ;;  %v24041_v56 = vsel %vm3675_vm5, %v24026_v61, 0 }
0x150a   :  { %v35456_v15 = vand.u32 4294901760, %v24041_v56 }
0x150b   :  { %v35459_v63 = vsub.f32 %v24044_v38, %v35453_v17 }
0x150c   :  { %v35462_v3 = vsub.f32 %v24041_v56, %v35456_v15 }
0x150d   :  { %v35465_v7 = vand.u32 4294901760, %v35459_v63 }
0x150e   :  { %v35468_v44 = vand.u32 4294901760, %v35462_v3 }
0x150f   :  { %v24128_v45 = vsub.f32 %v35459_v63, %v35465_v7 }
0x1510   :  { %v24118_v49 = vsub.f32 %v35462_v3, %v35468_v44 }
0x1511   :  { %v35476_v41 = vand.u32 4294901760, %v24128_v45 }
0x1512   :  { %v35474_v43 = vand.u32 4294901760, %v24118_v49 }
0x1514   :  { %30655 = vmatprep.mubr.f32.mxu1 %v35474_v43  ;;  %30721 = vmatprep.mubr.f32.mxu0 %v35474_v43 }
0x1515   :  { %30656 = vmatmul.mubr.f32.vlgmr.msra.gmra.mrb[34].mxu1 %v35476_v41  ;;  %30722 = vmatmul.mubr.f32.vlgmr.msra.gmra.mrb[24].mxu0 %v35476_v41 }
0x1516   :  { %31972 = vmatpush3.bf16.msra.mxu1 %v31969_v14  ;;  %30666 = vmatprep.mubr.f32.mxu1 %v35456_v15  ;;  %v25231_v14 = vand.u32 4294901760, %v25230_v36 }
0x1517   :  { %32020 = vmatpush3.bf16.msra.mxu0 %v32017_v34  ;;  %30732 = vmatprep.mubr.f32.mxu0 %v35456_v15  ;;  %v32093_v34 = vpack.c.bf16 %v25229_v28, %v25222_v10  ;;  %v25647_v10 = vld [vmem:[#allocation42 + $0x8] sm:$0xff] }
0x1518   :  { %31974 = vmatprep.subr.bf16.mxu1 %v31973_v27  ;;  %32022 = vmatprep.subr.bf16.mxu0 %v32021_v26 }
0x151a   :  { %31976 = vmatpush3.bf16.msra.mxu1 %v31973_v27  ;;  %v25650_v27 = vld [vmem:[#allocation42 + $0x18] sm:$0xff] }
0x151b   :  { %32024 = vmatpush3.bf16.msra.mxu0 %v32021_v26  ;;  %31978 = vmatprep.subr.bf16.mxu1 %v31977_v52  ;;  %v25655_v62 = vsel %vm402_vm3, %v25650_v27, 0 }
0x151c   :  { %32026 = vmatprep.subr.bf16.mxu0 %v32025_v1  ;;  %v35563_v26 = vand.u32 4294901760, %v25655_v62 }
0x151d   :  { %30667 = vmatmul.mubr.f32.vlgmr.msra.gmra.mrb[34].mxu1 %v35453_v17 }
0x151e   :  { %31980 = vmatpush3.bf16.msra.mxu1 %v31977_v52  ;;  %30733 = vmatmul.mubr.f32.vlgmr.msra.gmra.mrb[24].mxu0 %v35453_v17  ;;  %v25735_v52 = vsub.f32 %v25655_v62, %v35563_v26 }
0x151f   :  { %30677 = vmatprep.mubr.f32.mxu1 %v35462_v3  ;;  %32028 = vmatpush3.bf16.msra.mxu0 %v32025_v1 }
0x1520   :  { %30743 = vmatprep.mubr.f32.mxu0 %v35462_v3  ;;  %31982 = vmatprep.subr.bf16.mxu1 %v31981_v42  ;;  %v25736_v1 = vand.u32 4294901760, %v25735_v52 }
0x1521   :  { %32030 = vmatprep.subr.bf16.mxu0 %v32029_v24 }
0x1522   :  { %31984 = vmatpush3.bf16.msra.mxu1 %v31981_v42 }
0x1523   :  { %32032 = vmatpush3.bf16.msra.mxu0 %v32029_v24  ;;  %31986 = vmatprep.subr.bf16.mxu1 %v35418_v39 }
0x1524   :  { %32034 = vmatprep.subr.bf16.mxu0 %v35420_v33 }
0x1525   :  { %30678 = vmatmul.mubr.f32.vlgmr.msra.gmra.mrb[34].mxu1 %v35459_v63 }
0x1526   :  { %31988 = vmatpush3.bf16.msra.mxu1 %v35418_v39  ;;  %30744 = vmatmul.mubr.f32.vlgmr.msra.gmra.mrb[24].mxu0 %v35459_v63 }
0x1527   :  { %30688 = vmatprep.mubr.f32.mxu1 %v35468_v44  ;;  %32036 = vmatpush3.bf16.msra.mxu0 %v35420_v33 }
0x1528   :  { %30754 = vmatprep.mubr.f32.mxu0 %v35468_v44  ;;  %31990 = vmatprep.subr.bf16.mxu1 %v35438_v50 }
0x1529   :  { %32038 = vmatprep.subr.bf16.mxu0 %v35440_v47 }
0x152a   :  { %31992 = vmatpush3.bf16.msra.mxu1 %v35438_v50 }
0x152b   :  { %32040 = vmatpush3.bf16.msra.mxu0 %v35440_v47  ;;  %31994 = vmatprep.subr.bf16.mxu1 %v31993_v46 }
0x152c   :  { %32042 = vmatprep.subr.bf16.mxu0 %v35446_v40 }
0x152d   :  { %30689 = vmatmul.mubr.f32.vlgmr.msra.gmra.mrb[34].mxu1 %v35465_v7 }
0x152e   :  { %31996 = vmatpush3.bf16.msra.mxu1 %v31993_v46  ;;  %30755 = vmatmul.mubr.f32.vlgmr.msra.gmra.mrb[24].mxu0 %v35465_v7 }
0x152f   :  { %30699 = vmatprep.mubr.f32.mxu1 %v35456_v15  ;;  %32044 = vmatpush3.bf16.msra.mxu0 %v35446_v40 }
0x1530   :  { %30765 = vmatprep.mubr.f32.mxu0 %v35456_v15  ;;  %31998 = vmatprep.subr.bf16.mxu1 %v35448_v30 }
0x1531   :  { %32046 = vmatprep.subr.bf16.mxu0 %v35450_v19 }
0x1532   :  { %32000 = vmatpush3.bf16.msra.mxu1 %v35448_v30 }
0x1533   :  { %32048 = vmatpush3.bf16.msra.mxu0 %v35450_v19  ;;  %32002 = vmatprep.subr.bf16.mxu1 %v35418_v39 }
0x1534   :  { %32050 = vmatprep.subr.bf16.mxu0 %v35420_v33 }
0x1535   :  { %30700 = vmatmul.mubr.f32.vlgmr.msra.gmra.mrb[34].mxu1 %v35453_v17 }
0x1536   :  { %32004 = vmatpush3.bf16.msra.mxu1 %v35418_v39  ;;  %30766 = vmatmul.mubr.f32.vlgmr.msra.gmra.mrb[24].mxu0 %v35453_v17  ;;  %v32061_v39 = vpack.c.bf16 %v25126_v55, %v25123_v57 }
0x1537   :  { %30710 = vmatprep.mubr.f32.mxu1 %v35456_v15  ;;  %32052 = vmatpush3.bf16.msra.mxu0 %v35420_v33  ;;  %v25217_v33 = vand.u32 4294901760, %v25216_v22 }
0x1538   :  { %30776 = vmatprep.mubr.f32.mxu0 %v35456_v15  ;;  %32006 = vmatprep.subr.bf16.mxu1 %v35438_v50 }
0x1539   :  { %32054 = vmatprep.subr.bf16.mxu0 %v35440_v47  ;;  %v32065_v48 = vpack.c.bf16 %v25217_v33, %v25210_v13 }
0x153a   :  { %32008 = vmatpush3.bf16.msra.mxu1 %v35438_v50  ;;  %v32069_v50 = vpack.c.bf16 %v25231_v14, %v25224_v37 }
0x153b   :  { %32056 = vmatpush3.bf16.msra.mxu0 %v35440_v47  ;;  %32058 = vmatprep.subr.bf16.mxu1 %v32057_v51  ;;  %v32073_v47 = vpack.c.bf16 %v35519_v12, %v35517_v9 }
0x153d   :  { %30711 = vmatmul.mubr.f32.vlgmr.msra.gmra.mrb[34].mxu1 %v35453_v17 }
0x153e   :  { %30777 = vmatmul.mubr.f32.vlgmr.msra.gmra.mrb[24].mxu0 %v35453_v17  ;;  %32060 = vmatpush3.bf16.msra.mxu1 %v32057_v51 }
0x153f   :  { %30787 = vmatprep.mubr.f32.mxu1 %v35474_v43  ;;  %32062 = vmatprep.subr.bf16.mxu1 %v32061_v39 }
0x1540   :  { %30849 = vmatprep.mubr.f32.mxu0 %v25728_v60 }
0x1542   :  { %32064 = vmatpush3.bf16.msra.mxu1 %v32061_v39 }
0x1543   :  { %32066 = vmatprep.subr.bf16.mxu1 %v32065_v48 }
0x1545   :  { %30788 = vmatmul.mubr.f32.vlgmr.msra.gmra.mrb[36].mxu1 %v35476_v41 }
0x1546   :  { %32068 = vmatpush3.bf16.msra.mxu1 %v32065_v48  ;;  %30798 = vmatprep.mubr.f32.mxu1 %v35456_v15 }
0x1547   :  { %32070 = vmatprep.subr.bf16.mxu1 %v32069_v50 }
0x154a   :  { %32072 = vmatpush3.bf16.msra.mxu1 %v32069_v50 }
0x154b   :  { %32074 = vmatprep.subr.bf16.mxu1 %v32073_v47 }
0x154d   :  { %30799 = vmatmul.mubr.f32.vlgmr.msra.gmra.mrb[36].mxu1 %v35453_v17 }
0x154e   :  { %32076 = vmatpush3.bf16.msra.mxu1 %v32073_v47  ;;  %30809 = vmatprep.mubr.f32.mxu1 %v35462_v3 }
0x154f   :  { %32078 = vmatprep.subr.bf16.mxu1 %v32077_v29 }
0x1552   :  { %32080 = vmatpush3.bf16.msra.mxu1 %v32077_v29 }
0x1553   :  { %32082 = vmatprep.subr.bf16.mxu1 %v32057_v51 }
0x1555   :  { %30810 = vmatmul.mubr.f32.vlgmr.msra.gmra.mrb[36].mxu1 %v35459_v63 }
0x1556   :  { %32084 = vmatpush3.bf16.msra.mxu1 %v32057_v51  ;;  %30820 = vmatprep.mubr.f32.mxu1 %v35468_v44 }
0x1557   :  { %32086 = vmatprep.subr.bf16.mxu1 %v32061_v39 }
0x155a   :  { %32088 = vmatpush3.bf16.msra.mxu1 %v32061_v39 }
0x155b   :  { %32090 = vmatprep.subr.bf16.mxu1 %v32089_v5 }
0x155d   :  { %30821 = vmatmul.mubr.f32.vlgmr.msra.gmra.mrb[36].mxu1 %v35465_v7 }
0x155e   :  { %32092 = vmatpush3.bf16.msra.mxu1 %v32089_v5  ;;  %30831 = vmatprep.mubr.f32.mxu1 %v35456_v15 }
0x155f   :  { %32094 = vmatprep.subr.bf16.mxu1 %v32093_v34 }
0x1562   :  { %32096 = vmatpush3.bf16.msra.mxu1 %v32093_v34 }
0x1563   :  { %32098 = vmatprep.subr.bf16.mxu1 %v32057_v51 }
0x1565   :  { %30832 = vmatmul.mubr.f32.vlgmr.msra.gmra.mrb[36].mxu1 %v35453_v17 }
0x1566   :  { %32100 = vmatpush3.bf16.msra.mxu1 %v32057_v51  ;;  %30842 = vmatprep.mubr.f32.mxu1 %v35456_v15  ;;  %v25646_v51 = vld [vmem:[#allocation42] sm:$0xff] }
0x1567   :  { %32102 = vmatprep.subr.bf16.mxu1 %v32061_v39  ;;  %v26160_v21 = vsel %vm402_vm3, %v25646_v51, 0 }
0x1568   :  { %v35575_v22 = vand.u32 4294901760, %v26160_v21 }
0x156a   :  { %32104 = vmatpush3.bf16.msra.mxu1 %v32061_v39  ;;  %v26233_v28 = vsub.f32 %v26160_v21, %v35575_v22  ;;  %v26163_v39 = vsel %vm402_vm3, %v25647_v10, 0 }
0x156b   :  { %v35580_v13 = vand.u32 4294901760, %v26163_v39 }
0x156c   :  { %v26234_v33 = vand.u32 4294901760, %v26233_v28 }
0x156d   :  { %30843 = vmatmul.mubr.f32.vlgmr.msra.gmra.mrb[36].mxu1 %v35453_v17  ;;  %v25737_v17 = vsub.f32 %v25735_v52, %v25736_v1  ;;  %v26243_v4 = vsub.f32 %v26163_v39, %v35580_v13 }
0x156e   :  { %v26235_v36 = vsub.f32 %v26233_v28, %v26234_v33 }
0x156f   :  { %v25738_v31 = vand.u32 4294901760, %v25737_v17  ;;  %v26244_v48 = vand.u32 4294901760, %v26243_v4 }
0x1570   :  { %v26236_v14 = vand.u32 4294901760, %v26235_v36 }
0x1571   :  { %v26245_v34 = vsub.f32 %v26243_v4, %v26244_v48 }
0x1573   :  { %v26246_v60 = vand.u32 4294901760, %v26245_v34 }
0x1610   :  { %v30712_v42 = vpop.f32.mrb[34].mxu1 }
0x1611   :  { %v26169_v24 = vand.u32 4294901760, %v30712_v42  ;;  %v30778_v46 = vpop.f32.mrb[24].mxu0  ;;  %v24564_v40 = vpop.f32.mrb[35].mxu1 }
0x1612   :  { %v25661_v30 = vand.u32 4294901760, %v30778_v46  ;;  %v26166_v19 = vand.u32 4294901760, %v24564_v40  ;;  %v25099_v20 = vpop.f32.mrb[25].mxu0 }
0x1613   :  { %v26261_v38 = vsub.f32 %v30712_v42, %v26169_v24  ;;  %v25658_v61 = vand.u32 4294901760, %v25099_v20  ;;  %v26668_v42 = vld [vmem:[#allocation42 + $0x20] sm:$0xff] }
0x1614   :  { %v25753_v56 = vsub.f32 %v30778_v46, %v25661_v30  ;;  %v35566_v15 = vpack.c.bf16 %v26169_v24, %v26166_v19  ;;  %v26254_v63 = vsub.f32 %v24564_v40, %v26166_v19  ;;  %v26671_v24 = vsel %vm402_vm3, %v26668_v42, 0  ;;  %v26669_v40 = vld [vmem:[#allocation42 + $0x28] sm:$0xff] }
0x1615   :  { %v26262_v3 = vand.u32 4294901760, %v26261_v38  ;;  %v32105_v7 = vpack.c.bf16 %v25661_v30, %v25658_v61  ;;  %v25746_v44 = vsub.f32 %v25099_v20, %v25658_v61  ;;  %v26743_v46 = vand.u32 4294901760, %v26671_v24 }
0x1616   :  { %v25754_v45 = vand.u32 4294901760, %v25753_v56  ;;  %v26255_v49 = vand.u32 4294901760, %v26254_v63  ;;  %v35568_v43 = vpack.c.bf16 %v26261_v38, %v26254_v63  ;;  %v26674_v19 = vsel %vm402_vm3, %v26669_v40, 0 }
0x1617   :  { %v26263_v41 = vsub.f32 %v26261_v38, %v26262_v3  ;;  %v25747_v18 = vand.u32 4294901760, %v25746_v44  ;;  %32106 = vmatprep.subr.bf16.mxu0 %v32105_v7  ;;  %v32113_v59 = vpack.c.bf16 %v25753_v56, %v25746_v44  ;;  %v26744_v30 = vsub.f32 %v26671_v24, %v26743_v46 }
0x1618   :  { %v25755_v16 = vsub.f32 %v25753_v56, %v25754_v45  ;;  %v26256_v11 = vsub.f32 %v26254_v63, %v26255_v49  ;;  %32108 = vmatpush3.bf16.msra.mxu0 %v32105_v7  ;;  %v35570_v8 = vpack.c.bf16 %v26262_v3, %v26255_v49  ;;  %v26753_v20 = vand.u32 4294901760, %v26674_v19 }
0x1619   :  { %v25748_v57 = vsub.f32 %v25746_v44, %v25747_v18  ;;  %v32121_v55 = vpack.c.bf16 %v25754_v45, %v25747_v18  ;;  %v26264_v9 = vand.u32 4294901760, %v26263_v41  ;;  %v26745_v38 = vand.u32 4294901760, %v26744_v30 }
0x161a   :  { %v25756_v12 = vand.u32 4294901760, %v25755_v16  ;;  %v26257_v0 = vand.u32 4294901760, %v26256_v11  ;;  %v26754_v61 = vsub.f32 %v26674_v19, %v26753_v20 }
0x161b   :  { %30850 = vmatmul.mubr.f32.vlgmr.msra.gmra.mrb[52].mxu0 %v25738_v31  ;;  %v25749_v54 = vand.u32 4294901760, %v25748_v57  ;;  %v26746_v17 = vsub.f32 %v26744_v30, %v26745_v38 }
0x161c   :  { %30856 = vmatprep.mubr.f32.mxu0 %v35559_v35  ;;  %v32133_v32 = vpack.c.bf16 %v26264_v9, %v26257_v0  ;;  %v26755_v56 = vand.u32 4294901760, %v26754_v61 }
0x161d   :  { %v32109_v2 = vpack.c.bf16 %v25756_v12, %v25749_v54  ;;  %v26747_v63 = vand.u32 4294901760, %v26746_v17 }
0x161e   :  { %v26756_v3 = vsub.f32 %v26754_v61, %v26755_v56 }
0x161f   :  { %32110 = vmatprep.subr.bf16.mxu0 %v32109_v2 }
0x1620   :  { %32112 = vmatpush3.bf16.msra.mxu0 %v32109_v2 }
0x1621   :  { %32114 = vmatprep.subr.bf16.mxu0 %v32113_v59 }
0x1623   :  { %30857 = vmatmul.mubr.f32.vlgmr.msra.gmra.mrb[52].mxu0 %v35563_v26 }
0x1624   :  { %32116 = vmatpush3.bf16.msra.mxu0 %v32113_v59  ;;  %30863 = vmatprep.mubr.f32.mxu0 %v25725_v25 }
0x1625   :  { %32118 = vmatprep.subr.bf16.mxu0 %v32105_v7 }
0x162b   :  { %30864 = vmatmul.mubr.f32.vlgmr.msra.gmra.mrb[52].mxu0 %v25735_v52 }
0x162c   :  { %32120 = vmatpush3.bf16.msra.mxu0 %v32105_v7  ;;  %30870 = vmatprep.mubr.f32.mxu0 %v25726_v23 }
0x162d   :  { %32122 = vmatprep.subr.bf16.mxu0 %v32121_v55 }
0x1633   :  { %30871 = vmatmul.mubr.f32.vlgmr.msra.gmra.mrb[52].mxu0 %v25736_v1 }
0x1634   :  { %32124 = vmatpush3.bf16.msra.mxu0 %v32121_v55  ;;  %30877 = vmatprep.mubr.f32.mxu0 %v35559_v35 }
0x1635   :  { %32126 = vmatprep.subr.bf16.mxu0 %v32105_v7 }
0x163b   :  { %30878 = vmatmul.mubr.f32.vlgmr.msra.gmra.mrb[52].mxu0 %v35563_v26 }
0x163c   :  { %32128 = vmatpush3.bf16.msra.mxu0 %v32105_v7  ;;  %30884 = vmatprep.mubr.f32.mxu0 %v35559_v35  ;;  %v26757_v7 = vand.u32 4294901760, %v26756_v3 }
0x163d   :  { %32130 = vmatprep.subr.bf16.mxu0 %v35566_v15 }
0x1640   :  { %v30844_v37 = vpop.f32.mrb[36].mxu1 }
0x1641   :  { %v26680_v50 = vand.u32 4294901760, %v30844_v37  ;;  %v25634_v47 = vpop.f32.mrb[37].mxu1 }
0x1642   :  { %v26677_v29 = vand.u32 4294901760, %v25634_v47 }
0x1643   :  { %v26772_v5 = vsub.f32 %v30844_v37, %v26680_v50  ;;  %30885 = vmatmul.mubr.f32.vlgmr.msra.gmra.mrb[52].mxu0 %v35563_v26 }
0x1644   :  { %v35587_v58 = vpack.c.bf16 %v26680_v50, %v26677_v29  ;;  %v26765_v53 = vsub.f32 %v25634_v47, %v26677_v29  ;;  %32132 = vmatpush3.bf16.msra.mxu0 %v35566_v15  ;;  %30891 = vmatprep.mubr.f32.mxu0 %v26236_v14 }
0x1645   :  { %v26773_v35 = vand.u32 4294901760, %v26772_v5  ;;  %32134 = vmatprep.subr.bf16.mxu0 %v32133_v32 }
0x1646   :  { %v26766_v25 = vand.u32 4294901760, %v26765_v53  ;;  %v32161_v23 = vpack.c.bf16 %v26772_v5, %v26765_v53 }
0x1647   :  { %v26774_v6 = vsub.f32 %v26772_v5, %v26773_v35 }
0x1648   :  { %v26767_v27 = vsub.f32 %v26765_v53, %v26766_v25  ;;  %v32169_v62 = vpack.c.bf16 %v26773_v35, %v26766_v25 }
0x1649   :  { %v26775_v52 = vand.u32 4294901760, %v26774_v6 }
0x164a   :  { %v26768_v1 = vand.u32 4294901760, %v26767_v27 }
0x164b   :  { %30892 = vmatmul.mubr.f32.vlgmr.msra.gmra.mrb[52].mxu0 %v26246_v60 }
0x164c   :  { %32136 = vmatpush3.bf16.msra.mxu0 %v32133_v32  ;;  %30898 = vmatprep.mubr.f32.mxu0 %v35575_v22  ;;  %v32157_v26 = vpack.c.bf16 %v26775_v52, %v26768_v1 }
0x164d   :  { %32138 = vmatprep.subr.bf16.mxu0 %v35568_v43 }
0x1653   :  { %30899 = vmatmul.mubr.f32.vlgmr.msra.gmra.mrb[52].mxu0 %v35580_v13 }
0x1654   :  { %32140 = vmatpush3.bf16.msra.mxu0 %v35568_v43  ;;  %30905 = vmatprep.mubr.f32.mxu0 %v26233_v28 }
0x1655   :  { %32142 = vmatprep.subr.bf16.mxu0 %v35566_v15 }
0x165b   :  { %30906 = vmatmul.mubr.f32.vlgmr.msra.gmra.mrb[52].mxu0 %v26243_v4 }
0x165c   :  { %32144 = vmatpush3.bf16.msra.mxu0 %v35566_v15  ;;  %30912 = vmatprep.mubr.f32.mxu0 %v26234_v33 }
0x165d   :  { %32146 = vmatprep.subr.bf16.mxu0 %v35570_v8 }
0x1663   :  { %30913 = vmatmul.mubr.f32.vlgmr.msra.gmra.mrb[52].mxu0 %v26244_v48 }
0x1664   :  { %32148 = vmatpush3.bf16.msra.mxu0 %v35570_v8  ;;  %30919 = vmatprep.mubr.f32.mxu0 %v35575_v22 }
0x1665   :  { %32150 = vmatprep.subr.bf16.mxu0 %v35566_v15 }
0x166b   :  { %30920 = vmatmul.mubr.f32.vlgmr.msra.gmra.mrb[52].mxu0 %v35580_v13 }
0x166c   :  { %32152 = vmatpush3.bf16.msra.mxu0 %v35566_v15  ;;  %30926 = vmatprep.mubr.f32.mxu0 %v35575_v22  ;;  %v27181_v15 = vstv %s35707_s25 }
0x166d   :  { %32154 = vmatprep.subr.bf16.mxu0 %v35587_v58 }
0x1673   :  { %30927 = vmatmul.mubr.f32.vlgmr.msra.gmra.mrb[52].mxu0 %v35580_v13 }
0x1674   :  { %32156 = vmatpush3.bf16.msra.mxu0 %v35587_v58  ;;  %30933 = vmatprep.mubr.f32.mxu0 %v26747_v63 }
0x1675   :  { %32158 = vmatprep.subr.bf16.mxu0 %v32157_v26 }
0x167b   :  { %30934 = vmatmul.mubr.f32.vlgmr.msra.gmra.mrb[52].mxu0 %v26757_v7 }
0x167c   :  { %32160 = vmatpush3.bf16.msra.mxu0 %v32157_v26  ;;  %30940 = vmatprep.mubr.f32.mxu0 %v26743_v46 }
0x167d   :  { %32162 = vmatprep.subr.bf16.mxu0 %v32161_v23 }
0x1683   :  { %30941 = vmatmul.mubr.f32.vlgmr.msra.gmra.mrb[52].mxu0 %v26753_v20 }
0x1684   :  { %32164 = vmatpush3.bf16.msra.mxu0 %v32161_v23  ;;  %30947 = vmatprep.mubr.f32.mxu0 %v26744_v30 }
0x1685   :  { %32166 = vmatprep.subr.bf16.mxu0 %v35587_v58 }
0x168b   :  { %30948 = vmatmul.mubr.f32.vlgmr.msra.gmra.mrb[52].mxu0 %v26754_v61 }
0x168c   :  { %32168 = vmatpush3.bf16.msra.mxu0 %v35587_v58  ;;  %30954 = vmatprep.mubr.f32.mxu0 %v26745_v38 }
0x168d   :  { %32170 = vmatprep.subr.bf16.mxu0 %v32169_v62 }
0x1693   :  { %30955 = vmatmul.mubr.f32.vlgmr.msra.gmra.mrb[52].mxu0 %v26755_v56 }
0x1694   :  { %32172 = vmatpush3.bf16.msra.mxu0 %v32169_v62  ;;  %30961 = vmatprep.mubr.f32.mxu0 %v26743_v46 }
0x1695   :  { %32174 = vmatprep.subr.bf16.mxu0 %v35587_v58 }
0x169b   :  { %30962 = vmatmul.mubr.f32.vlgmr.msra.gmra.mrb[52].mxu0 %v26753_v20 }
0x169c   :  { %32176 = vmatpush3.bf16.msra.mxu0 %v35587_v58  ;;  %30968 = vmatprep.mubr.f32.mxu0 %v26743_v46 }
0x16a3   :  { %30969 = vmatmul.mubr.f32.vlgmr.msra.gmra.mrb[52].mxu0 %v26753_v20 }
0x1776   :  { %v30970_v44 = vpop.f32.mrb[52].mxu0 }
0x1777   :  { %v27183_v45 = vadd.f32 %v30970_v44, %v27181_v15  ;;  %v27168_v49 = vpop.f32.mrb[53].mxu0 }
0x1778   :  { %v27182_v43 = vadd.f32 %v27181_v15, %v27168_v49 }
0x1779   :  { %v27185_v41 = vsub.f32 0.0, %v27183_v45 }
0x177a   :  { %v27184_v18 = vsub.f32 0.0, %v27182_v43 }
0x177b   :  { %v27188_v31 = vmul.f32 1.442695, %v27185_v41 }
0x177c   :  { %v27186_v59 = vmul.f32 1.442695, %v27184_v18 }
0x177d   :  { %32719 = vpow2.f32 %v27188_v31 }
0x177e   :  { %32721 = vpow2.f32 %v27186_v59 }
0x1787   :  { %v32720_v16 = vpop.eup %32719 }
0x1788   :  { %v32722_v11 = vpop.eup %32721  ;;  %v27191_v8 = vadd.f32 1.0, %v32720_v16 }
0x1789   :  { %v27190_v57 = vadd.f32 1.0, %v32722_v11 }
0x178a   :  { %32723 = vrcp.f32 %v27191_v8 }
0x178b   :  { %32725 = vrcp.f32 %v27190_v57 }
0x1794   :  { %v32724_v55 = vpop.eup %32723 }
0x1795   :  { %v32726_v9 = vpop.eup %32725  ;;  %27197 = vst.msk [vmem:[#allocation43 + $0x8] sm:$0xff] %vm402_vm3, %v32724_v55  ;;  %27202 = vrot.lane.b32.xlu1 %v32724_v55, %s33280_s27 }
0x1796   :  { %27196 = vst.msk [vmem:[#allocation43] sm:$0xff] %vm402_vm3, %v32726_v9  ;;  %27200 = vrot.lane.b32.xlu0 %v32726_v9, %s33280_s27 }
0x1807   :  { %v27203_v12 = vpop.permute.xlu1 %27202 }
0x1808   :  { %27208 = vst.msk [vmem:[#allocation43 + $0x18] sm:$0xff] %vm402_vm3, %v27203_v12  ;;  %v27201_v0 = vpop.permute.xlu0 %27200 }
0x1809   :  { %27207 = vst.msk [vmem:[#allocation43 + $0x10] sm:$0xff] %vm402_vm3, %v27201_v0 }
0x180a   :  { %33212 = shalt.err (!%p33209_p9)
}
0x180b   :  { %s35708_s9 = sld [smem:[#allocation72_spill]] }
0x1811   :  { %s33213_s28 = scalar_lea.hbm %s35708_s9, 512 }
0x1812   :  { %p33214_p10 = scmp.ne.s32.totalorder %s35708_s9, %s33213_s28  ;;  %p33217_p11 = scmp.lt.u32.totalorder %s33213_s28, %s35708_s9 }
0x1814   :  { %p33219_p12 = pnand %p33217_p11, %p33214_p10 }
0x1816   :  { %33222 = shalt.err (!%p33219_p12)
}
0x1817   :  { %27220 = dma.vmem_to_hbm [thread:$0]  %s27215_s26, 512, %s35708_s9, [#allocation10], %s33251_s1, %s33251_s1, %s33252_s4  }
0x1818   :  { %33247 = dma.done.wait [#allocation10], 512  }
0x1819   :  { %33248 = vsyncadd [#allocation10], 4294966784 }
0x181a   :  { %27224 = vsyncpa [#allocation9], 1 }
0x181b   :  { %27225 = vsyncpa [#allocation14], 1 }
0x181c   :  { %27226 = vsyncpa [#allocation17], 1 }
0x181d   :  { %27227 = vsyncpa [#allocation20], 1 }
0x181e   :  { %27228 = vsyncpa [#allocation23], 1 }
0x181f   :  { %27229 = vsyncpa [#allocation26], 1 }
0x1820   :  { %27230 = vsyncpa [#allocation29], 1 }
0x1821   :  { %27231 = vsyncpa [#allocation32], 1 }
0x1822   :  { %27232 = vsyncpa [#allocation35], 1 }
0x1823   :  { %27233 = vsyncpa [#allocation38], 1 }
0x1824   :  { %27234 = vsyncpa [#allocation41], 1 }
0x1825   :  { %27235 = vsyncpa [#allocation10], 1 }
0x1826   :  { %27236 = vsyncpa [#allocation11], 1 }

</bundles_post_ra>
